<compile_context>
chip_gen: v7x
topology: tpu7x:2x2x1
jax: 0.10.0
libtpu: 0.0.40
codegen_flags: <defaults>
</compile_context>

<pallas_src>
import functools

import jax
import jax.numpy as jnp
from jax.experimental import pallas as pl
from jax.experimental.pallas import tpu as pltpu

NUM_CATEGORY = 50     # num_category
NUM_CLS = 16          # self.category_num
K_NEIGH = 8           # k (scaled down from 20 for the small synthetic shapes)
NS = (64, 32, 16, 8)  # n_sample per SA level (scaled down from 512/256/128/64)


# --------------------------- Pallas kernels ---------------------------------

def _linear_kernel(x_ref, w_ref, b_ref, o_ref, *, relu):
    # x: (1, M, Cin) f32   w: (Cin, Cout) bf16   b: (1, Cout) f32
    # out: (1, M, Cout) f32  -- lane dim = Cout (lane-dense).
    x = x_ref[0].astype(jnp.bfloat16)
    y = jnp.dot(x, w_ref[...], preferred_element_type=jnp.float32)
    y = y + b_ref[...]
    if relu:
        y = jnp.maximum(y, 0.0)
    o_ref[0] = y


def linear(x, w, b, relu=True):
    """Pointwise Conv1d in channels-last form: x (B, M, Cin) -> (B, M, Cout)."""
    B, M, Cin = x.shape
    Cout = w.shape[1]
    return pl.pallas_call(
        functools.partial(_linear_kernel, relu=relu),
        out_shape=jax.ShapeDtypeStruct((B, M, Cout), jnp.float32),
        grid=(B,),
        in_specs=[
            pl.BlockSpec((1, M, Cin), lambda bb: (bb, 0, 0)),
            pl.BlockSpec((Cin, Cout), lambda bb: (0, 0)),
            pl.BlockSpec((1, Cout), lambda bb: (0, 0)),
        ],
        out_specs=pl.BlockSpec((1, M, Cout), lambda bb: (bb, 0, 0)),
        compiler_params=pltpu.CompilerParams(dimension_semantics=("parallel",)),
    )(x, w, b)


def _group_mlp_max_kernel(g_ref, w_ref, b_ref, o_ref, *, K, S):
    # g: (1, K*S, Cin) with K-major row order; w: (Cin, Cout) bf16; b: (1, Cout)
    # One MXU call for all K neighbors, then a static segment-max over K.
    g = g_ref[0].astype(jnp.bfloat16)
    y = jnp.dot(g, w_ref[...], preferred_element_type=jnp.float32)   # (K*S, Cout)
    y = jnp.maximum(y + b_ref[...], 0.0)
    acc = y[0:S]
    for kk in range(1, K):
        acc = jnp.maximum(acc, y[kk * S:(kk + 1) * S])
    o_ref[0] = acc                                                   # (S, Cout)


def group_mlp_max(g, w, b, K, S):
    """Shared MLP over grouped neighbors + max-pool over K.
    g: (B, K*S, Cin) (K-major) -> (B, S, Cout)."""
    B, _, Cin = g.shape
    Cout = w.shape[1]
    return pl.pallas_call(
        functools.partial(_group_mlp_max_kernel, K=K, S=S),
        out_shape=jax.ShapeDtypeStruct((B, S, Cout), jnp.float32),
        grid=(B,),
        in_specs=[
            pl.BlockSpec((1, K * S, Cin), lambda bb: (bb, 0, 0)),
            pl.BlockSpec((Cin, Cout), lambda bb: (0, 0)),
            pl.BlockSpec((1, Cout), lambda bb: (0, 0)),
        ],
        out_specs=pl.BlockSpec((1, S, Cout), lambda bb: (bb, 0, 0)),
        compiler_params=pltpu.CompilerParams(dimension_semantics=("parallel",)),
    )(g, w, b)


def _cdist_kernel(a_ref, bt_ref, a2_ref, b2_ref, o_ref):
    # a: (1, N1, 3)  bt: (1, 3, N2)  a2: (1, N1, 1)  b2: (1, 1, N2)
    # -> (1, N1, N2) squared distances; no in-kernel transposes, lane dim = N2.
    ab = jnp.dot(a_ref[0], bt_ref[0], preferred_element_type=jnp.float32)
    o_ref[0] = a2_ref[0] + b2_ref[0] - 2.0 * ab


def cross_sqdist(a, b):
    """Pairwise squared distances: a (B, N1, 3), b (B, N2, 3) -> (B, N1, N2)."""
    B, N1, _ = a.shape
    N2 = b.shape[1]
    bt = jnp.transpose(b, (0, 2, 1))                                   # (B, 3, N2)
    a2 = jnp.sum(a * a, axis=-1, keepdims=True)                        # (B, N1, 1)
    b2 = jnp.transpose(jnp.sum(b * b, axis=-1, keepdims=True), (0, 2, 1))  # (B,1,N2)
    return pl.pallas_call(
        _cdist_kernel,
        out_shape=jax.ShapeDtypeStruct((B, N1, N2), jnp.float32),
        grid=(B,),
        in_specs=[
            pl.BlockSpec((1, N1, 3), lambda bb: (bb, 0, 0)),
            pl.BlockSpec((1, 3, N2), lambda bb: (bb, 0, 0)),
            pl.BlockSpec((1, N1, 1), lambda bb: (bb, 0, 0)),
            pl.BlockSpec((1, 1, N2), lambda bb: (bb, 0, 0)),
        ],
        out_specs=pl.BlockSpec((1, N1, N2), lambda bb: (bb, 0, 0)),
        compiler_params=pltpu.CompilerParams(dimension_semantics=("parallel",)),
    )(a, bt, a2, b2)


def _fps_kernel(xyzt_ref, o_ref, *, npoint):
    # xyzt: (1, 3, N) -- coordinates resident in VMEM for the whole loop.
    # o:    (1, 1, npoint) int32 selected indices.
    pts = xyzt_ref[0]                                                  # (3, N)
    n = pts.shape[1]
    lane = jax.lax.broadcasted_iota(jnp.int32, (1, n), 1)
    out_lane = jax.lax.broadcasted_iota(jnp.int32, (1, npoint), 1)

    def body(i, carry):
        dist, far, sel = carry                   # (1,N) f32, (1,1) i32, (1,npoint) i32
        sel = jnp.where(out_lane == i, far, sel)
        centroid = jnp.sum(jnp.where(lane == far, pts, 0.0),
                           axis=1, keepdims=True)                      # (3, 1)
        diff = pts - centroid
        d = jnp.sum(diff * diff, axis=0, keepdims=True)                # (1, N)
        dist = jnp.minimum(dist, d)
        m = jnp.max(dist, axis=1, keepdims=True)                       # (1, 1)
        far = jnp.min(jnp.where(dist >= m, lane, n),
                      axis=1, keepdims=True).astype(jnp.int32)         # (1, 1)
        return dist, far, sel

    dist0 = jnp.full((1, n), 1e10, dtype=jnp.float32)
    far0 = jnp.zeros((1, 1), dtype=jnp.int32)
    sel0 = jnp.zeros((1, npoint), dtype=jnp.int32)
    _, _, sel = jax.lax.fori_loop(0, npoint, body, (dist0, far0, sel0))
    o_ref[0] = sel


def farthest_point_sample(xyz, npoint):
    """xyz (B, N, 3) -> (B, npoint) int32 indices (whole FPS loop in-kernel)."""
    # TODO(synk): reference FPS seeds from a random point; here it seeds from 0.
    B, N, _ = xyz.shape
    xyzt = jnp.transpose(xyz, (0, 2, 1))                               # (B, 3, N)
    idx = pl.pallas_call(
        functools.partial(_fps_kernel, npoint=npoint),
        out_shape=jax.ShapeDtypeStruct((B, 1, npoint), jnp.int32),
        grid=(B,),
        in_specs=[pl.BlockSpec((1, 3, N), lambda bb: (bb, 0, 0))],
        out_specs=pl.BlockSpec((1, 1, npoint), lambda bb: (bb, 0, 0)),
        compiler_params=pltpu.CompilerParams(dimension_semantics=("parallel",)),
    )(xyzt)
    return idx[:, 0, :]


# ------------------------------- glue ----------------------------------------

def index_points(points, idx):
    # points (B, N, C), idx (B, S) -> (B, S, C)
    return jnp.take_along_axis(points, idx[:, :, None], axis=1)


def group_gather(points, idx):
    # points (B, N, C), idx (B, ...) -> (B, ..., C)
    return jax.vmap(lambda p, i: p[i])(points, idx)


def knn_idx(query, ref, k):
    d = cross_sqdist(query, ref)          # Pallas pairwise distance
    _, idx = jax.lax.top_k(-d, k)
    return idx


def sa_block(xyz, normal, feats, n_sample, k, w, b):
    """Set-abstraction: FPS -> kNN group -> shared MLP -> max over neighbors.
    xyz/normal (B, N, 3); feats (B, N, C) channels-last or None."""
    fps_idx = farthest_point_sample(xyz, n_sample)        # Pallas, (B, S)
    new_xyz = index_points(xyz, fps_idx)                  # (B, S, 3)
    new_normal = index_points(normal, fps_idx)            # (B, S, 3)
    idx = knn_idx(new_xyz, xyz, k)                        # (B, S, k)
    idx_t = jnp.transpose(idx, (0, 2, 1))                 # (B, k, S) -> K-major grouping
    g_xyz = group_gather(xyz, idx_t) - new_xyz[:, None, :, :]   # (B, k, S, 3)
    g_nrm = group_gather(normal, idx_t)                          # (B, k, S, 3)
    parts = [g_xyz, g_nrm]
    if feats is not None:
        parts.append(group_gather(feats, idx_t))                 # (B, k, S, C)
    g = jnp.concatenate(parts, axis=-1)                          # (B, k, S, Cin)
    B, K, S, Cin = g.shape
    g = g.reshape(B, K * S, Cin)                                 # free leading merge
    new_feat = group_mlp_max(g, w, b, K, S)                      # (B, S, Cout)  (Pallas)
    return new_xyz, new_normal, new_feat


def fp_block(xyz_dense, xyz_sparse, feat_dense, feat_sparse, w, b):
    """Feature propagation: 3-NN inverse-distance interp -> concat -> linear.
    Features are channels-last (B, N, C)."""
    d = cross_sqdist(xyz_dense, xyz_sparse)               # (B, N1, N2)  (Pallas)
    k = min(3, xyz_sparse.shape[1])
    negd, idx = jax.lax.top_k(-d, k)
    dist = jnp.maximum(-negd, 0.0)
    wgt = 1.0 / (dist + 1e-8)
    wgt = wgt / jnp.sum(wgt, axis=-1, keepdims=True)
    gathered = group_gather(feat_sparse, idx)             # (B, N1, k, C2)
    interp = jnp.sum(gathered * wgt[..., None], axis=2)   # (B, N1, C2)
    cat = interp if feat_dense is None else jnp.concatenate(
        [feat_dense, interp], axis=-1)
    return linear(cat, w, b, relu=True)                   # (B, N1, Cout)  (Pallas)


# ------------------------------- model ---------------------------------------

def init_params(key):
    def lin(k, cin, cout):
        w = (0.02 * jax.random.normal(k, (cin, cout), jnp.float32)).astype(jnp.bfloat16)
        b = jnp.zeros((1, cout), jnp.float32)
        return w, b

    keys = jax.random.split(key, 9)
    return {
        "sa0": lin(keys[0], 6, 64),          # rel-xyz(3)+normal(3)        -> 64
        "sa1": lin(keys[1], 70, 128),        # 3+3+64                      -> 128
        "sa2": lin(keys[2], 134, 256),       # 3+3+128                     -> 256
        "sa3": lin(keys[3], 262, 512),       # 3+3+256                     -> 512
        "fp4": lin(keys[4], 768, 512),       # 256+512                     -> 512
        "fp5": lin(keys[5], 640, 256),       # 128+512                     -> 256
        "fp6": lin(keys[6], 320, 128),       # 64+256                      -> 128
        "fp7": lin(keys[7], 150, 128),       # cls16+xyz3+nrm3 + 128       -> 128
        "seg": lin(keys[8], 128, NUM_CATEGORY),
    }


def ridbnet_seg_forward(params, x, cls_label):
    # x: (B, 6, N)  (xyz + normals, channels-first);  cls_label: (B, 16)
    B, _, N = x.shape
    xyz_cf = x[:, :3, :]                                 # (B, 3, N)
    normal_cf = x[:, 3:, :]                              # (B, 3, N)
    xyz = jnp.transpose(xyz_cf, (0, 2, 1))               # (B, N, 3)
    normal = jnp.transpose(normal_cf, (0, 2, 1))         # (B, N, 3)

    # TODO(synk): global_transform / Point_Spatial_Attention source not
    # provided; treated as identity on the coordinates here. The reference's
    # get_graph_feature(x_global, k) tensor feeds the unavailable RiDBNet FP
    # internals and is intentionally not computed (was dead code before).

    # ---- sc0..sc3 : set-abstraction chain ----
    xyz1, nrm1, feat1 = sa_block(xyz,  normal, None,  NS[0], K_NEIGH, *params["sa0"])
    xyz2, nrm2, feat2 = sa_block(xyz1, nrm1,   feat1, NS[1], K_NEIGH, *params["sa1"])
    xyz3, nrm3, feat3 = sa_block(xyz2, nrm2,   feat2, NS[2], K_NEIGH, *params["sa2"])
    xyz4, nrm4, feat4 = sa_block(xyz3, nrm3,   feat3, NS[3], K_NEIGH, *params["sa3"])

    # ---- sc4..sc7 : feature-propagation chain ----
    f5 = fp_block(xyz3, xyz4, feat3, feat4, *params["fp4"])   # (B, 16, 512)
    f6 = fp_block(xyz2, xyz3, feat2, f5,    *params["fp5"])   # (B, 32, 256)
    f7 = fp_block(xyz1, xyz2, feat1, f6,    *params["fp6"])   # (B, 64, 128)

    cls_one_hot = jnp.broadcast_to(cls_label[:, None, :], (B, N, NUM_CLS))
    dense_feat = jnp.concatenate([cls_one_hot, xyz, normal], axis=-1)   # (B, N, 22)
    np8 = fp_block(xyz, xyz1, dense_feat, f7, *params["fp7"])           # (B, N, 128)

    # seg head: Dropout(0.4) is identity in eval mode; Conv1d(128, 50, 1).
    result = linear(np8, *params["seg"], relu=False)          # (B, N, 50)
    new_points8 = jnp.transpose(np8, (0, 2, 1))               # (B, 128, N) channels-first
    return result, new_points8


if __name__ == "__main__":
    key = jax.random.PRNGKey(0)
    k_x, k_lbl, k_p = jax.random.split(key, 3)

    B, N = 2, 128
    x = jax.random.normal(k_x, (B, 6, N), jnp.float32)
    cls_idx = jax.random.randint(k_lbl, (B,), 0, NUM_CLS)
    cls_label = jax.nn.one_hot(cls_idx, NUM_CLS, dtype=jnp.float32)

    params = init_params(k_p)
    fwd = jax.jit(functools.partial(ridbnet_seg_forward, params))
    result, new_points8 = fwd(x, cls_label)
    jax.block_until_ready((result, new_points8))

    assert result.shape == (B, N, NUM_CATEGORY)
    assert new_points8.shape == (B, 128, N)
    assert bool(jnp.all(jnp.isfinite(result)))
    print("KERNEL_OK")
</pallas_src>

<mosaic_0001>
module attributes {stable_mosaic.version = 11 : i64} {
  func.func @_fps_kernel(%arg0: i32, %arg1: memref<1x3x128xf32, #tpu.memory_space<vmem>>, %arg2: memref<1x1x64xi32, #tpu.memory_space<vmem>>) attributes {dimension_semantics = [#tpu.dimension_semantics<parallel>], iteration_bounds = array<i64: 2>, scalar_prefetch = 0 : i64, scratch_operands = 0 : i64, tpu.core_type = #tpu.core_type<tc>, window_params = [{transform_indices = @transform_0, window_bounds = array<i64: 1, 3, 128>}, {transform_indices = @transform_1, window_bounds = array<i64: 1, 1, 64>}]} {
    %c0 = arith.constant 0 : index
    %c0_0 = arith.constant 0 : index
    %c0_1 = arith.constant 0 : index
    %0 = vector.load %arg1[%c0, %c0_0, %c0_1] : memref<1x3x128xf32, #tpu.memory_space<vmem>>, vector<1x3x128xf32>
    %1 = vector.shape_cast %0 : vector<1x3x128xf32> to vector<3x128xf32>
    %2 = tpu.iota {dimensions = array<i32: 1>} : vector<1x128xi32>
    %3 = tpu.iota {dimensions = array<i32: 1>} : vector<1x64xi32>
    %cst = arith.constant 1.000000e+10 : f32
    %4 = vector.broadcast %cst : f32 to vector<1x128xf32>
    %c0_i32 = arith.constant 0 : i32
    %5 = vector.broadcast %c0_i32 : i32 to vector<1x1xi32>
    %c0_i32_2 = arith.constant 0 : i32
    %6 = vector.broadcast %c0_i32_2 : i32 to vector<1x64xi32>
    %c0_i32_3 = arith.constant 0 : i32
    %c64_i32 = arith.constant 64 : i32
    %7 = arith.addi %c0_i32_3, %c64_i32 : i32
    %c1_i32 = arith.constant 1 : i32
    %8:3 = scf.for %arg3 = %c0_i32_3 to %7 step %c1_i32 iter_args(%arg4 = %4, %arg5 = %5, %arg6 = %6) -> (vector<1x128xf32>, vector<1x1xi32>, vector<1x64xi32>)  : i32 {
      %12 = vector.broadcast %arg3 : i32 to vector<1x64xi32>
      %13 = arith.cmpi eq, %3, %12 : vector<1x64xi32>
      %14 = vector.shape_cast %arg5 : vector<1x1xi32> to vector<1x1xi32>
      %15 = vector.broadcast %14 : vector<1x1xi32> to vector<1x64xi32>
      %16 = arith.select %13, %15, %arg6 : vector<1x64xi1>, vector<1x64xi32>
      %17 = vector.broadcast %arg5 : vector<1x1xi32> to vector<1x128xi32>
      %18 = arith.cmpi eq, %2, %17 : vector<1x128xi32>
      %cst_8 = arith.constant 0.000000e+00 : f32
      %19 = vector.shape_cast %18 : vector<1x128xi1> to vector<1x128xi1>
      %20 = vector.broadcast %19 : vector<1x128xi1> to vector<3x128xi1>
      %21 = vector.broadcast %cst_8 : f32 to vector<3x128xf32>
      %22 = arith.select %20, %1, %21 : vector<3x128xi1>, vector<3x128xf32>
      %cst_9 = arith.constant dense<0.000000e+00> : vector<3xf32>
      %23 = vector.multi_reduction <add>, %22, %cst_9 [1] : vector<3x128xf32> to vector<3xf32>
      %24 = vector.shape_cast %23 : vector<3xf32> to vector<3x1xf32>
      %25 = vector.broadcast %24 : vector<3x1xf32> to vector<3x128xf32>
      %26 = arith.subf %1, %25 : vector<3x128xf32>
      %27 = arith.mulf %26, %26 : vector<3x128xf32>
      %cst_10 = arith.constant dense<0.000000e+00> : vector<128xf32>
      %28 = vector.multi_reduction <add>, %27, %cst_10 [0] : vector<3x128xf32> to vector<128xf32>
      %29 = vector.shape_cast %28 : vector<128xf32> to vector<1x128xf32>
      %30 = arith.minimumf %arg4, %29 : vector<1x128xf32>
      %cst_11 = arith.constant dense<0xFF800000> : vector<1xf32>
      %31 = vector.multi_reduction <maximumf>, %30, %cst_11 [1] : vector<1x128xf32> to vector<1xf32>
      %32 = vector.shape_cast %31 : vector<1xf32> to vector<1x1xf32>
      %33 = vector.broadcast %32 : vector<1x1xf32> to vector<1x128xf32>
      %34 = arith.cmpf oge, %30, %33 : vector<1x128xf32>
      %c128_i32 = arith.constant 128 : i32
      %35 = vector.broadcast %c128_i32 : i32 to vector<1x128xi32>
      %36 = arith.select %34, %2, %35 : vector<1x128xi1>, vector<1x128xi32>
      %cst_12 = arith.constant dense<2147483647> : vector<1xi32>
      %37 = vector.multi_reduction <minsi>, %36, %cst_12 [1] : vector<1x128xi32> to vector<1xi32>
      %38 = vector.shape_cast %37 : vector<1xi32> to vector<1x1xi32>
      scf.yield %30, %38, %16 : vector<1x128xf32>, vector<1x1xi32>, vector<1x64xi32>
    }
    %c64_i32_4 = arith.constant 64 : i32
    %c0_5 = arith.constant 0 : index
    %c0_6 = arith.constant 0 : index
    %c0_7 = arith.constant 0 : index
    %9 = vector.load %arg2[%c0_5, %c0_6, %c0_7] : memref<1x1x64xi32, #tpu.memory_space<vmem>>, vector<1x1x64xi32>
    %10 = vector.shape_cast %9 : vector<1x1x64xi32> to vector<1x64xi32>
    %11 = vector.shape_cast %8#2 : vector<1x64xi32> to vector<1x1x64xi32>
    tpu.vector_store %arg2[%c0_5, %c0_6, %c0_7], %11 {strides = array<i32>} : memref<1x1x64xi32, #tpu.memory_space<vmem>>, vector<1x1x64xi32>,
    return
  }
  func.func @transform_0(%arg0: i32) -> (i32, i32, i32) {
    %c0_i32 = arith.constant 0 : i32
    %c0_i32_0 = arith.constant 0 : i32
    %c0_i32_1 = arith.constant 0 : i32
    return %arg0, %c0_i32, %c0_i32_0 : i32, i32, i32
  }
  func.func @transform_1(%arg0: i32) -> (i32, i32, i32) {
    %c0_i32 = arith.constant 0 : i32
    %c0_i32_0 = arith.constant 0 : i32
    %c0_i32_1 = arith.constant 0 : i32
    return %arg0, %c0_i32, %c0_i32_0 : i32, i32, i32
  }
}

module attributes {stable_mosaic.version = 11 : i64} {
  func.func @_cdist_kernel(%arg0: i32, %arg1: memref<1x64x3xf32, #tpu.memory_space<vmem>>, %arg2: memref<1x3x128xf32, #tpu.memory_space<vmem>>, %arg3: memref<1x64x1xf32, #tpu.memory_space<vmem>>, %arg4: memref<1x1x128xf32, #tpu.memory_space<vmem>>, %arg5: memref<1x64x128xf32, #tpu.memory_space<vmem>>) attributes {dimension_semantics = [#tpu.dimension_semantics<parallel>], iteration_bounds = array<i64: 2>, scalar_prefetch = 0 : i64, scratch_operands = 0 : i64, tpu.core_type = #tpu.core_type<tc>, window_params = [{transform_indices = @transform_0, window_bounds = array<i64: 1, 64, 3>}, {transform_indices = @transform_1, window_bounds = array<i64: 1, 3, 128>}, {transform_indices = @transform_2, window_bounds = array<i64: 1, 64, 1>}, {transform_indices = @transform_3, window_bounds = array<i64: 1, 1, 128>}, {transform_indices = @transform_4, window_bounds = array<i64: 1, 64, 128>}]} {
    %c0 = arith.constant 0 : index
    %c0_0 = arith.constant 0 : index
    %c0_1 = arith.constant 0 : index
    %0 = vector.load %arg1[%c0, %c0_0, %c0_1] : memref<1x64x3xf32, #tpu.memory_space<vmem>>, vector<1x64x3xf32>
    %1 = vector.shape_cast %0 : vector<1x64x3xf32> to vector<64x3xf32>
    %c0_2 = arith.constant 0 : index
    %c0_3 = arith.constant 0 : index
    %c0_4 = arith.constant 0 : index
    %2 = vector.load %arg2[%c0_2, %c0_3, %c0_4] : memref<1x3x128xf32, #tpu.memory_space<vmem>>, vector<1x3x128xf32>
    %3 = vector.shape_cast %2 : vector<1x3x128xf32> to vector<3x128xf32>
    %cst = arith.constant dense<0.000000e+00> : vector<64x128xf32>
    %4 = tpu.matmul %1, %3, %cst {dimension_numbers = #tpu.dot_dimension_numbers<[1], [0], [0], [1], [0, 0, 1, 1], [], []>} : vector<64x3xf32>, vector<3x128xf32>, vector<64x128xf32> -> vector<64x128xf32>
    %c0_5 = arith.constant 0 : index
    %c0_6 = arith.constant 0 : index
    %c0_7 = arith.constant 0 : index
    %5 = vector.load %arg3[%c0_5, %c0_6, %c0_7] : memref<1x64x1xf32, #tpu.memory_space<vmem>>, vector<1x64x1xf32>
    %6 = vector.shape_cast %5 : vector<1x64x1xf32> to vector<64x1xf32>
    %c0_8 = arith.constant 0 : index
    %c0_9 = arith.constant 0 : index
    %c0_10 = arith.constant 0 : index
    %7 = vector.load %arg4[%c0_8, %c0_9, %c0_10] : memref<1x1x128xf32, #tpu.memory_space<vmem>>, vector<1x1x128xf32>
    %8 = vector.shape_cast %7 : vector<1x1x128xf32> to vector<1x128xf32>
    %9 = vector.broadcast %6 : vector<64x1xf32> to vector<64x128xf32>
    %10 = vector.broadcast %8 : vector<1x128xf32> to vector<64x128xf32>
    %11 = arith.addf %9, %10 : vector<64x128xf32>
    %cst_11 = arith.constant 2.000000e+00 : f32
    %12 = vector.broadcast %cst_11 : f32 to vector<64x128xf32>
    %13 = arith.mulf %12, %4 : vector<64x128xf32>
    %14 = arith.subf %11, %13 : vector<64x128xf32>
    %c0_12 = arith.constant 0 : index
    %c0_13 = arith.constant 0 : index
    %c0_14 = arith.constant 0 : index
    %15 = vector.load %arg5[%c0_12, %c0_13, %c0_14] : memref<1x64x128xf32, #tpu.memory_space<vmem>>, vector<1x64x128xf32>
    %16 = vector.shape_cast %15 : vector<1x64x128xf32> to vector<64x128xf32>
    %17 = vector.shape_cast %14 : vector<64x128xf32> to vector<1x64x128xf32>
    tpu.vector_store %arg5[%c0_12, %c0_13, %c0_14], %17 {strides = array<i32>} : memref<1x64x128xf32, #tpu.memory_space<vmem>>, vector<1x64x128xf32>,
    return
  }
  func.func @transform_0(%arg0: i32) -> (i32, i32, i32) {
    %c0_i32 = arith.constant 0 : i32
    %c0_i32_0 = arith.constant 0 : i32
    %c0_i32_1 = arith.constant 0 : i32
    return %arg0, %c0_i32, %c0_i32_0 : i32, i32, i32
  }
  func.func @transform_1(%arg0: i32) -> (i32, i32, i32) {
    %c0_i32 = arith.constant 0 : i32
    %c0_i32_0 = arith.constant 0 : i32
    %c0_i32_1 = arith.constant 0 : i32
    return %arg0, %c0_i32, %c0_i32_0 : i32, i32, i32
  }
  func.func @transform_2(%arg0: i32) -> (i32, i32, i32) {
    %c0_i32 = arith.constant 0 : i32
    %c0_i32_0 = arith.constant 0 : i32
    %c0_i32_1 = arith.constant 0 : i32
    return %arg0, %c0_i32, %c0_i32_0 : i32, i32, i32
  }
  func.func @transform_3(%arg0: i32) -> (i32, i32, i32) {
    %c0_i32 = arith.constant 0 : i32
    %c0_i32_0 = arith.constant 0 : i32
    %c0_i32_1 = arith.constant 0 : i32
    return %arg0, %c0_i32, %c0_i32_0 : i32, i32, i32
  }
  func.func @transform_4(%arg0: i32) -> (i32, i32, i32) {
    %c0_i32 = arith.constant 0 : i32
    %c0_i32_0 = arith.constant 0 : i32
    %c0_i32_1 = arith.constant 0 : i32
    return %arg0, %c0_i32, %c0_i32_0 : i32, i32, i32
  }
}

module attributes {stable_mosaic.version = 11 : i64} {
  func.func @_group_mlp_max_kernel(%arg0: i32, %arg1: memref<1x512x6xf32, #tpu.memory_space<vmem>>, %arg2: memref<6x64xbf16, #tpu.memory_space<vmem>>, %arg3: memref<1x64xf32, #tpu.memory_space<vmem>>, %arg4: memref<1x64x64xf32, #tpu.memory_space<vmem>>) attributes {dimension_semantics = [#tpu.dimension_semantics<parallel>], iteration_bounds = array<i64: 2>, scalar_prefetch = 0 : i64, scratch_operands = 0 : i64, tpu.core_type = #tpu.core_type<tc>, window_params = [{transform_indices = @transform_0, window_bounds = array<i64: 1, 512, 6>}, {pipeline_mode = #tpu.pipeline_mode<synchronous>, transform_indices = @transform_1, window_bounds = array<i64: 6, 64>}, {pipeline_mode = #tpu.pipeline_mode<synchronous>, transform_indices = @transform_2, window_bounds = array<i64: 1, 64>}, {transform_indices = @transform_3, window_bounds = array<i64: 1, 64, 64>}]} {
    %c0 = arith.constant 0 : index
    %c0_0 = arith.constant 0 : index
    %c0_1 = arith.constant 0 : index
    %0 = vector.load %arg1[%c0, %c0_0, %c0_1] : memref<1x512x6xf32, #tpu.memory_space<vmem>>, vector<1x512x6xf32>
    %1 = vector.shape_cast %0 : vector<1x512x6xf32> to vector<512x6xf32>
    %2 = arith.truncf %1 : vector<512x6xf32> to vector<512x6xbf16>
    %c0_2 = arith.constant 0 : index
    %c0_3 = arith.constant 0 : index
    %3 = vector.load %arg2[%c0_2, %c0_3] : memref<6x64xbf16, #tpu.memory_space<vmem>>, vector<6x64xbf16>
    %cst = arith.constant dense<0.000000e+00> : vector<512x64xf32>
    %4 = tpu.matmul %2, %3, %cst {dimension_numbers = #tpu.dot_dimension_numbers<[1], [0], [0], [1], [0, 0, 1, 1], [], []>} : vector<512x6xbf16>, vector<6x64xbf16>, vector<512x64xf32> -> vector<512x64xf32>
    %c0_4 = arith.constant 0 : index
    %c0_5 = arith.constant 0 : index
    %5 = vector.load %arg3[%c0_4, %c0_5] : memref<1x64xf32, #tpu.memory_space<vmem>>, vector<1x64xf32>
    %6 = vector.broadcast %5 : vector<1x64xf32> to vector<512x64xf32>
    %7 = arith.addf %4, %6 : vector<512x64xf32>
    %cst_6 = arith.constant 0.000000e+00 : f32
    %8 = vector.broadcast %cst_6 : f32 to vector<512x64xf32>
    %9 = arith.maximumf %7, %8 : vector<512x64xf32>
    %10 = vector.extract_strided_slice %9 {offsets = [0, 0], sizes = [64, 64], strides = [1, 1]} : vector<512x64xf32> to vector<64x64xf32>
    %11 = vector.extract_strided_slice %9 {offsets = [64, 0], sizes = [64, 64], strides = [1, 1]} : vector<512x64xf32> to vector<64x64xf32>
    %12 = arith.maximumf %10, %11 : vector<64x64xf32>
    %13 = vector.extract_strided_slice %9 {offsets = [128, 0], sizes = [64, 64], strides = [1, 1]} : vector<512x64xf32> to vector<64x64xf32>
    %14 = arith.maximumf %12, %13 : vector<64x64xf32>
    %15 = vector.extract_strided_slice %9 {offsets = [192, 0], sizes = [64, 64], strides = [1, 1]} : vector<512x64xf32> to vector<64x64xf32>
    %16 = arith.maximumf %14, %15 : vector<64x64xf32>
    %17 = vector.extract_strided_slice %9 {offsets = [256, 0], sizes = [64, 64], strides = [1, 1]} : vector<512x64xf32> to vector<64x64xf32>
    %18 = arith.maximumf %16, %17 : vector<64x64xf32>
    %19 = vector.extract_strided_slice %9 {offsets = [320, 0], sizes = [64, 64], strides = [1, 1]} : vector<512x64xf32> to vector<64x64xf32>
    %20 = arith.maximumf %18, %19 : vector<64x64xf32>
    %21 = vector.extract_strided_slice %9 {offsets = [384, 0], sizes = [64, 64], strides = [1, 1]} : vector<512x64xf32> to vector<64x64xf32>
    %22 = arith.maximumf %20, %21 : vector<64x64xf32>
    %23 = vector.extract_strided_slice %9 {offsets = [448, 0], sizes = [64, 64], strides = [1, 1]} : vector<512x64xf32> to vector<64x64xf32>
    %24 = arith.maximumf %22, %23 : vector<64x64xf32>
    %c0_7 = arith.constant 0 : index
    %c0_8 = arith.constant 0 : index
    %c0_9 = arith.constant 0 : index
    %25 = vector.load %arg4[%c0_7, %c0_8, %c0_9] : memref<1x64x64xf32, #tpu.memory_space<vmem>>, vector<1x64x64xf32>
    %26 = vector.shape_cast %25 : vector<1x64x64xf32> to vector<64x64xf32>
    %27 = vector.shape_cast %24 : vector<64x64xf32> to vector<1x64x64xf32>
    tpu.vector_store %arg4[%c0_7, %c0_8, %c0_9], %27 {strides = array<i32>} : memref<1x64x64xf32, #tpu.memory_space<vmem>>, vector<1x64x64xf32>,
    return
  }
  func.func @transform_0(%arg0: i32) -> (i32, i32, i32) {
    %c0_i32 = arith.constant 0 : i32
    %c0_i32_0 = arith.constant 0 : i32
    %c0_i32_1 = arith.constant 0 : i32
    return %arg0, %c0_i32, %c0_i32_0 : i32, i32, i32
  }
  func.func @transform_1(%arg0: i32) -> (i32, i32) {
    %c0_i32 = arith.constant 0 : i32
    %c0_i32_0 = arith.constant 0 : i32
    %c0_i32_1 = arith.constant 0 : i32
    return %c0_i32, %c0_i32_0 : i32, i32
  }
  func.func @transform_2(%arg0: i32) -> (i32, i32) {
    %c0_i32 = arith.constant 0 : i32
    %c0_i32_0 = arith.constant 0 : i32
    %c0_i32_1 = arith.constant 0 : i32
    return %c0_i32, %c0_i32_0 : i32, i32
  }
  func.func @transform_3(%arg0: i32) -> (i32, i32, i32) {
    %c0_i32 = arith.constant 0 : i32
    %c0_i32_0 = arith.constant 0 : i32
    %c0_i32_1 = arith.constant 0 : i32
    return %arg0, %c0_i32, %c0_i32_0 : i32, i32, i32
  }
}

module attributes {stable_mosaic.version = 11 : i64} {
  func.func @_fps_kernel(%arg0: i32, %arg1: memref<1x3x64xf32, #tpu.memory_space<vmem>>, %arg2: memref<1x1x32xi32, #tpu.memory_space<vmem>>) attributes {dimension_semantics = [#tpu.dimension_semantics<parallel>], iteration_bounds = array<i64: 2>, scalar_prefetch = 0 : i64, scratch_operands = 0 : i64, tpu.core_type = #tpu.core_type<tc>, window_params = [{transform_indices = @transform_0, window_bounds = array<i64: 1, 3, 64>}, {transform_indices = @transform_1, window_bounds = array<i64: 1, 1, 32>}]} {
    %c0 = arith.constant 0 : index
    %c0_0 = arith.constant 0 : index
    %c0_1 = arith.constant 0 : index
    %0 = vector.load %arg1[%c0, %c0_0, %c0_1] : memref<1x3x64xf32, #tpu.memory_space<vmem>>, vector<1x3x64xf32>
    %1 = vector.shape_cast %0 : vector<1x3x64xf32> to vector<3x64xf32>
    %2 = tpu.iota {dimensions = array<i32: 1>} : vector<1x64xi32>
    %3 = tpu.iota {dimensions = array<i32: 1>} : vector<1x32xi32>
    %cst = arith.constant 1.000000e+10 : f32
    %4 = vector.broadcast %cst : f32 to vector<1x64xf32>
    %c0_i32 = arith.constant 0 : i32
    %5 = vector.broadcast %c0_i32 : i32 to vector<1x1xi32>
    %c0_i32_2 = arith.constant 0 : i32
    %6 = vector.broadcast %c0_i32_2 : i32 to vector<1x32xi32>
    %c0_i32_3 = arith.constant 0 : i32
    %c32_i32 = arith.constant 32 : i32
    %7 = arith.addi %c0_i32_3, %c32_i32 : i32
    %c1_i32 = arith.constant 1 : i32
    %8:3 = scf.for %arg3 = %c0_i32_3 to %7 step %c1_i32 iter_args(%arg4 = %4, %arg5 = %5, %arg6 = %6) -> (vector<1x64xf32>, vector<1x1xi32>, vector<1x32xi32>)  : i32 {
      %12 = vector.broadcast %arg3 : i32 to vector<1x32xi32>
      %13 = arith.cmpi eq, %3, %12 : vector<1x32xi32>
      %14 = vector.shape_cast %arg5 : vector<1x1xi32> to vector<1x1xi32>
      %15 = vector.broadcast %14 : vector<1x1xi32> to vector<1x32xi32>
      %16 = arith.select %13, %15, %arg6 : vector<1x32xi1>, vector<1x32xi32>
      %17 = vector.broadcast %arg5 : vector<1x1xi32> to vector<1x64xi32>
      %18 = arith.cmpi eq, %2, %17 : vector<1x64xi32>
      %cst_8 = arith.constant 0.000000e+00 : f32
      %19 = vector.shape_cast %18 : vector<1x64xi1> to vector<1x64xi1>
      %20 = vector.broadcast %19 : vector<1x64xi1> to vector<3x64xi1>
      %21 = vector.broadcast %cst_8 : f32 to vector<3x64xf32>
      %22 = arith.select %20, %1, %21 : vector<3x64xi1>, vector<3x64xf32>
      %cst_9 = arith.constant dense<0.000000e+00> : vector<3xf32>
      %23 = vector.multi_reduction <add>, %22, %cst_9 [1] : vector<3x64xf32> to vector<3xf32>
      %24 = vector.shape_cast %23 : vector<3xf32> to vector<3x1xf32>
      %25 = vector.broadcast %24 : vector<3x1xf32> to vector<3x64xf32>
      %26 = arith.subf %1, %25 : vector<3x64xf32>
      %27 = arith.mulf %26, %26 : vector<3x64xf32>
      %cst_10 = arith.constant dense<0.000000e+00> : vector<64xf32>
      %28 = vector.multi_reduction <add>, %27, %cst_10 [0] : vector<3x64xf32> to vector<64xf32>
      %29 = vector.shape_cast %28 : vector<64xf32> to vector<1x64xf32>
      %30 = arith.minimumf %arg4, %29 : vector<1x64xf32>
      %cst_11 = arith.constant dense<0xFF800000> : vector<1xf32>
      %31 = vector.multi_reduction <maximumf>, %30, %cst_11 [1] : vector<1x64xf32> to vector<1xf32>
      %32 = vector.shape_cast %31 : vector<1xf32> to vector<1x1xf32>
      %33 = vector.broadcast %32 : vector<1x1xf32> to vector<1x64xf32>
      %34 = arith.cmpf oge, %30, %33 : vector<1x64xf32>
      %c64_i32 = arith.constant 64 : i32
      %35 = vector.broadcast %c64_i32 : i32 to vector<1x64xi32>
      %36 = arith.select %34, %2, %35 : vector<1x64xi1>, vector<1x64xi32>
      %cst_12 = arith.constant dense<2147483647> : vector<1xi32>
      %37 = vector.multi_reduction <minsi>, %36, %cst_12 [1] : vector<1x64xi32> to vector<1xi32>
      %38 = vector.shape_cast %37 : vector<1xi32> to vector<1x1xi32>
      scf.yield %30, %38, %16 : vector<1x64xf32>, vector<1x1xi32>, vector<1x32xi32>
    }
    %c32_i32_4 = arith.constant 32 : i32
    %c0_5 = arith.constant 0 : index
    %c0_6 = arith.constant 0 : index
    %c0_7 = arith.constant 0 : index
    %9 = vector.load %arg2[%c0_5, %c0_6, %c0_7] : memref<1x1x32xi32, #tpu.memory_space<vmem>>, vector<1x1x32xi32>
    %10 = vector.shape_cast %9 : vector<1x1x32xi32> to vector<1x32xi32>
    %11 = vector.shape_cast %8#2 : vector<1x32xi32> to vector<1x1x32xi32>
    tpu.vector_store %arg2[%c0_5, %c0_6, %c0_7], %11 {strides = array<i32>} : memref<1x1x32xi32, #tpu.memory_space<vmem>>, vector<1x1x32xi32>,
    return
  }
  func.func @transform_0(%arg0: i32) -> (i32, i32, i32) {
    %c0_i32 = arith.constant 0 : i32
    %c0_i32_0 = arith.constant 0 : i32
    %c0_i32_1 = arith.constant 0 : i32
    return %arg0, %c0_i32, %c0_i32_0 : i32, i32, i32
  }
  func.func @transform_1(%arg0: i32) -> (i32, i32, i32) {
    %c0_i32 = arith.constant 0 : i32
    %c0_i32_0 = arith.constant 0 : i32
    %c0_i32_1 = arith.constant 0 : i32
    return %arg0, %c0_i32, %c0_i32_0 : i32, i32, i32
  }
}

module attributes {stable_mosaic.version = 11 : i64} {
  func.func @_cdist_kernel(%arg0: i32, %arg1: memref<1x32x3xf32, #tpu.memory_space<vmem>>, %arg2: memref<1x3x64xf32, #tpu.memory_space<vmem>>, %arg3: memref<1x32x1xf32, #tpu.memory_space<vmem>>, %arg4: memref<1x1x64xf32, #tpu.memory_space<vmem>>, %arg5: memref<1x32x64xf32, #tpu.memory_space<vmem>>) attributes {dimension_semantics = [#tpu.dimension_semantics<parallel>], iteration_bounds = array<i64: 2>, scalar_prefetch = 0 : i64, scratch_operands = 0 : i64, tpu.core_type = #tpu.core_type<tc>, window_params = [{transform_indices = @transform_0, window_bounds = array<i64: 1, 32, 3>}, {transform_indices = @transform_1, window_bounds = array<i64: 1, 3, 64>}, {transform_indices = @transform_2, window_bounds = array<i64: 1, 32, 1>}, {transform_indices = @transform_3, window_bounds = array<i64: 1, 1, 64>}, {transform_indices = @transform_4, window_bounds = array<i64: 1, 32, 64>}]} {
    %c0 = arith.constant 0 : index
    %c0_0 = arith.constant 0 : index
    %c0_1 = arith.constant 0 : index
    %0 = vector.load %arg1[%c0, %c0_0, %c0_1] : memref<1x32x3xf32, #tpu.memory_space<vmem>>, vector<1x32x3xf32>
    %1 = vector.shape_cast %0 : vector<1x32x3xf32> to vector<32x3xf32>
    %c0_2 = arith.constant 0 : index
    %c0_3 = arith.constant 0 : index
    %c0_4 = arith.constant 0 : index
    %2 = vector.load %arg2[%c0_2, %c0_3, %c0_4] : memref<1x3x64xf32, #tpu.memory_space<vmem>>, vector<1x3x64xf32>
    %3 = vector.shape_cast %2 : vector<1x3x64xf32> to vector<3x64xf32>
    %cst = arith.constant dense<0.000000e+00> : vector<32x64xf32>
    %4 = tpu.matmul %1, %3, %cst {dimension_numbers = #tpu.dot_dimension_numbers<[1], [0], [0], [1], [0, 0, 1, 1], [], []>} : vector<32x3xf32>, vector<3x64xf32>, vector<32x64xf32> -> vector<32x64xf32>
    %c0_5 = arith.constant 0 : index
    %c0_6 = arith.constant 0 : index
    %c0_7 = arith.constant 0 : index
    %5 = vector.load %arg3[%c0_5, %c0_6, %c0_7] : memref<1x32x1xf32, #tpu.memory_space<vmem>>, vector<1x32x1xf32>
    %6 = vector.shape_cast %5 : vector<1x32x1xf32> to vector<32x1xf32>
    %c0_8 = arith.constant 0 : index
    %c0_9 = arith.constant 0 : index
    %c0_10 = arith.constant 0 : index
    %7 = vector.load %arg4[%c0_8, %c0_9, %c0_10] : memref<1x1x64xf32, #tpu.memory_space<vmem>>, vector<1x1x64xf32>
    %8 = vector.shape_cast %7 : vector<1x1x64xf32> to vector<1x64xf32>
    %9 = vector.broadcast %6 : vector<32x1xf32> to vector<32x64xf32>
    %10 = vector.broadcast %8 : vector<1x64xf32> to vector<32x64xf32>
    %11 = arith.addf %9, %10 : vector<32x64xf32>
    %cst_11 = arith.constant 2.000000e+00 : f32
    %12 = vector.broadcast %cst_11 : f32 to vector<32x64xf32>
    %13 = arith.mulf %12, %4 : vector<32x64xf32>
    %14 = arith.subf %11, %13 : vector<32x64xf32>
    %c0_12 = arith.constant 0 : index
    %c0_13 = arith.constant 0 : index
    %c0_14 = arith.constant 0 : index
    %15 = vector.load %arg5[%c0_12, %c0_13, %c0_14] : memref<1x32x64xf32, #tpu.memory_space<vmem>>, vector<1x32x64xf32>
    %16 = vector.shape_cast %15 : vector<1x32x64xf32> to vector<32x64xf32>
    %17 = vector.shape_cast %14 : vector<32x64xf32> to vector<1x32x64xf32>
    tpu.vector_store %arg5[%c0_12, %c0_13, %c0_14], %17 {strides = array<i32>} : memref<1x32x64xf32, #tpu.memory_space<vmem>>, vector<1x32x64xf32>,
    return
  }
  func.func @transform_0(%arg0: i32) -> (i32, i32, i32) {
    %c0_i32 = arith.constant 0 : i32
    %c0_i32_0 = arith.constant 0 : i32
    %c0_i32_1 = arith.constant 0 : i32
    return %arg0, %c0_i32, %c0_i32_0 : i32, i32, i32
  }
  func.func @transform_1(%arg0: i32) -> (i32, i32, i32) {
    %c0_i32 = arith.constant 0 : i32
    %c0_i32_0 = arith.constant 0 : i32
    %c0_i32_1 = arith.constant 0 : i32
    return %arg0, %c0_i32, %c0_i32_0 : i32, i32, i32
  }
  func.func @transform_2(%arg0: i32) -> (i32, i32, i32) {
    %c0_i32 = arith.constant 0 : i32
    %c0_i32_0 = arith.constant 0 : i32
    %c0_i32_1 = arith.constant 0 : i32
    return %arg0, %c0_i32, %c0_i32_0 : i32, i32, i32
  }
  func.func @transform_3(%arg0: i32) -> (i32, i32, i32) {
    %c0_i32 = arith.constant 0 : i32
    %c0_i32_0 = arith.constant 0 : i32
    %c0_i32_1 = arith.constant 0 : i32
    return %arg0, %c0_i32, %c0_i32_0 : i32, i32, i32
  }
  func.func @transform_4(%arg0: i32) -> (i32, i32, i32) {
    %c0_i32 = arith.constant 0 : i32
    %c0_i32_0 = arith.constant 0 : i32
    %c0_i32_1 = arith.constant 0 : i32
    return %arg0, %c0_i32, %c0_i32_0 : i32, i32, i32
  }
}

module attributes {stable_mosaic.version = 11 : i64} {
  func.func @_group_mlp_max_kernel(%arg0: i32, %arg1: memref<1x256x70xf32, #tpu.memory_space<vmem>>, %arg2: memref<70x128xbf16, #tpu.memory_space<vmem>>, %arg3: memref<1x128xf32, #tpu.memory_space<vmem>>, %arg4: memref<1x32x128xf32, #tpu.memory_space<vmem>>) attributes {dimension_semantics = [#tpu.dimension_semantics<parallel>], iteration_bounds = array<i64: 2>, scalar_prefetch = 0 : i64, scratch_operands = 0 : i64, tpu.core_type = #tpu.core_type<tc>, window_params = [{transform_indices = @transform_0, window_bounds = array<i64: 1, 256, 70>}, {pipeline_mode = #tpu.pipeline_mode<synchronous>, transform_indices = @transform_1, window_bounds = array<i64: 70, 128>}, {pipeline_mode = #tpu.pipeline_mode<synchronous>, transform_indices = @transform_2, window_bounds = array<i64: 1, 128>}, {transform_indices = @transform_3, window_bounds = array<i64: 1, 32, 128>}]} {
    %c0 = arith.constant 0 : index
    %c0_0 = arith.constant 0 : index
    %c0_1 = arith.constant 0 : index
    %0 = vector.load %arg1[%c0, %c0_0, %c0_1] : memref<1x256x70xf32, #tpu.memory_space<vmem>>, vector<1x256x70xf32>
    %1 = vector.shape_cast %0 : vector<1x256x70xf32> to vector<256x70xf32>
    %2 = arith.truncf %1 : vector<256x70xf32> to vector<256x70xbf16>
    %c0_2 = arith.constant 0 : index
    %c0_3 = arith.constant 0 : index
    %3 = vector.load %arg2[%c0_2, %c0_3] : memref<70x128xbf16, #tpu.memory_space<vmem>>, vector<70x128xbf16>
    %cst = arith.constant dense<0.000000e+00> : vector<256x128xf32>
    %4 = tpu.matmul %2, %3, %cst {dimension_numbers = #tpu.dot_dimension_numbers<[1], [0], [0], [1], [0, 0, 1, 1], [], []>} : vector<256x70xbf16>, vector<70x128xbf16>, vector<256x128xf32> -> vector<256x128xf32>
    %c0_4 = arith.constant 0 : index
    %c0_5 = arith.constant 0 : index
    %5 = vector.load %arg3[%c0_4, %c0_5] : memref<1x128xf32, #tpu.memory_space<vmem>>, vector<1x128xf32>
    %6 = vector.broadcast %5 : vector<1x128xf32> to vector<256x128xf32>
    %7 = arith.addf %4, %6 : vector<256x128xf32>
    %cst_6 = arith.constant 0.000000e+00 : f32
    %8 = vector.broadcast %cst_6 : f32 to vector<256x128xf32>
    %9 = arith.maximumf %7, %8 : vector<256x128xf32>
    %10 = vector.extract_strided_slice %9 {offsets = [0, 0], sizes = [32, 128], strides = [1, 1]} : vector<256x128xf32> to vector<32x128xf32>
    %11 = vector.extract_strided_slice %9 {offsets = [32, 0], sizes = [32, 128], strides = [1, 1]} : vector<256x128xf32> to vector<32x128xf32>
    %12 = arith.maximumf %10, %11 : vector<32x128xf32>
    %13 = vector.extract_strided_slice %9 {offsets = [64, 0], sizes = [32, 128], strides = [1, 1]} : vector<256x128xf32> to vector<32x128xf32>
    %14 = arith.maximumf %12, %13 : vector<32x128xf32>
    %15 = vector.extract_strided_slice %9 {offsets = [96, 0], sizes = [32, 128], strides = [1, 1]} : vector<256x128xf32> to vector<32x128xf32>
    %16 = arith.maximumf %14, %15 : vector<32x128xf32>
    %17 = vector.extract_strided_slice %9 {offsets = [128, 0], sizes = [32, 128], strides = [1, 1]} : vector<256x128xf32> to vector<32x128xf32>
    %18 = arith.maximumf %16, %17 : vector<32x128xf32>
    %19 = vector.extract_strided_slice %9 {offsets = [160, 0], sizes = [32, 128], strides = [1, 1]} : vector<256x128xf32> to vector<32x128xf32>
    %20 = arith.maximumf %18, %19 : vector<32x128xf32>
    %21 = vector.extract_strided_slice %9 {offsets = [192, 0], sizes = [32, 128], strides = [1, 1]} : vector<256x128xf32> to vector<32x128xf32>
    %22 = arith.maximumf %20, %21 : vector<32x128xf32>
    %23 = vector.extract_strided_slice %9 {offsets = [224, 0], sizes = [32, 128], strides = [1, 1]} : vector<256x128xf32> to vector<32x128xf32>
    %24 = arith.maximumf %22, %23 : vector<32x128xf32>
    %c0_7 = arith.constant 0 : index
    %c0_8 = arith.constant 0 : index
    %c0_9 = arith.constant 0 : index
    %25 = vector.load %arg4[%c0_7, %c0_8, %c0_9] : memref<1x32x128xf32, #tpu.memory_space<vmem>>, vector<1x32x128xf32>
    %26 = vector.shape_cast %25 : vector<1x32x128xf32> to vector<32x128xf32>
    %27 = vector.shape_cast %24 : vector<32x128xf32> to vector<1x32x128xf32>
    tpu.vector_store %arg4[%c0_7, %c0_8, %c0_9], %27 {strides = array<i32>} : memref<1x32x128xf32, #tpu.memory_space<vmem>>, vector<1x32x128xf32>,
    return
  }
  func.func @transform_0(%arg0: i32) -> (i32, i32, i32) {
    %c0_i32 = arith.constant 0 : i32
    %c0_i32_0 = arith.constant 0 : i32
    %c0_i32_1 = arith.constant 0 : i32
    return %arg0, %c0_i32, %c0_i32_0 : i32, i32, i32
  }
  func.func @transform_1(%arg0: i32) -> (i32, i32) {
    %c0_i32 = arith.constant 0 : i32
    %c0_i32_0 = arith.constant 0 : i32
    %c0_i32_1 = arith.constant 0 : i32
    return %c0_i32, %c0_i32_0 : i32, i32
  }
  func.func @transform_2(%arg0: i32) -> (i32, i32) {
    %c0_i32 = arith.constant 0 : i32
    %c0_i32_0 = arith.constant 0 : i32
    %c0_i32_1 = arith.constant 0 : i32
    return %c0_i32, %c0_i32_0 : i32, i32
  }
  func.func @transform_3(%arg0: i32) -> (i32, i32, i32) {
    %c0_i32 = arith.constant 0 : i32
    %c0_i32_0 = arith.constant 0 : i32
    %c0_i32_1 = arith.constant 0 : i32
    return %arg0, %c0_i32, %c0_i32_0 : i32, i32, i32
  }
}

module attributes {stable_mosaic.version = 11 : i64} {
  func.func @_fps_kernel(%arg0: i32, %arg1: memref<1x3x32xf32, #tpu.memory_space<vmem>>, %arg2: memref<1x1x16xi32, #tpu.memory_space<vmem>>) attributes {dimension_semantics = [#tpu.dimension_semantics<parallel>], iteration_bounds = array<i64: 2>, scalar_prefetch = 0 : i64, scratch_operands = 0 : i64, tpu.core_type = #tpu.core_type<tc>, window_params = [{transform_indices = @transform_0, window_bounds = array<i64: 1, 3, 32>}, {transform_indices = @transform_1, window_bounds = array<i64: 1, 1, 16>}]} {
    %c0 = arith.constant 0 : index
    %c0_0 = arith.constant 0 : index
    %c0_1 = arith.constant 0 : index
    %0 = vector.load %arg1[%c0, %c0_0, %c0_1] : memref<1x3x32xf32, #tpu.memory_space<vmem>>, vector<1x3x32xf32>
    %1 = vector.shape_cast %0 : vector<1x3x32xf32> to vector<3x32xf32>
    %2 = tpu.iota {dimensions = array<i32: 1>} : vector<1x32xi32>
    %3 = tpu.iota {dimensions = array<i32: 1>} : vector<1x16xi32>
    %cst = arith.constant 1.000000e+10 : f32
    %4 = vector.broadcast %cst : f32 to vector<1x32xf32>
    %c0_i32 = arith.constant 0 : i32
    %5 = vector.broadcast %c0_i32 : i32 to vector<1x1xi32>
    %c0_i32_2 = arith.constant 0 : i32
    %6 = vector.broadcast %c0_i32_2 : i32 to vector<1x16xi32>
    %c0_i32_3 = arith.constant 0 : i32
    %c16_i32 = arith.constant 16 : i32
    %7 = arith.addi %c0_i32_3, %c16_i32 : i32
    %c1_i32 = arith.constant 1 : i32
    %8:3 = scf.for %arg3 = %c0_i32_3 to %7 step %c1_i32 iter_args(%arg4 = %4, %arg5 = %5, %arg6 = %6) -> (vector<1x32xf32>, vector<1x1xi32>, vector<1x16xi32>)  : i32 {
      %12 = vector.broadcast %arg3 : i32 to vector<1x16xi32>
      %13 = arith.cmpi eq, %3, %12 : vector<1x16xi32>
      %14 = vector.shape_cast %arg5 : vector<1x1xi32> to vector<1x1xi32>
      %15 = vector.broadcast %14 : vector<1x1xi32> to vector<1x16xi32>
      %16 = arith.select %13, %15, %arg6 : vector<1x16xi1>, vector<1x16xi32>
      %17 = vector.broadcast %arg5 : vector<1x1xi32> to vector<1x32xi32>
      %18 = arith.cmpi eq, %2, %17 : vector<1x32xi32>
      %cst_8 = arith.constant 0.000000e+00 : f32
      %19 = vector.shape_cast %18 : vector<1x32xi1> to vector<1x32xi1>
      %20 = vector.broadcast %19 : vector<1x32xi1> to vector<3x32xi1>
      %21 = vector.broadcast %cst_8 : f32 to vector<3x32xf32>
      %22 = arith.select %20, %1, %21 : vector<3x32xi1>, vector<3x32xf32>
      %cst_9 = arith.constant dense<0.000000e+00> : vector<3xf32>
      %23 = vector.multi_reduction <add>, %22, %cst_9 [1] : vector<3x32xf32> to vector<3xf32>
      %24 = vector.shape_cast %23 : vector<3xf32> to vector<3x1xf32>
      %25 = vector.broadcast %24 : vector<3x1xf32> to vector<3x32xf32>
      %26 = arith.subf %1, %25 : vector<3x32xf32>
      %27 = arith.mulf %26, %26 : vector<3x32xf32>
      %cst_10 = arith.constant dense<0.000000e+00> : vector<32xf32>
      %28 = vector.multi_reduction <add>, %27, %cst_10 [0] : vector<3x32xf32> to vector<32xf32>
      %29 = vector.shape_cast %28 : vector<32xf32> to vector<1x32xf32>
      %30 = arith.minimumf %arg4, %29 : vector<1x32xf32>
      %cst_11 = arith.constant dense<0xFF800000> : vector<1xf32>
      %31 = vector.multi_reduction <maximumf>, %30, %cst_11 [1] : vector<1x32xf32> to vector<1xf32>
      %32 = vector.shape_cast %31 : vector<1xf32> to vector<1x1xf32>
      %33 = vector.broadcast %32 : vector<1x1xf32> to vector<1x32xf32>
      %34 = arith.cmpf oge, %30, %33 : vector<1x32xf32>
      %c32_i32 = arith.constant 32 : i32
      %35 = vector.broadcast %c32_i32 : i32 to vector<1x32xi32>
      %36 = arith.select %34, %2, %35 : vector<1x32xi1>, vector<1x32xi32>
      %cst_12 = arith.constant dense<2147483647> : vector<1xi32>
      %37 = vector.multi_reduction <minsi>, %36, %cst_12 [1] : vector<1x32xi32> to vector<1xi32>
      %38 = vector.shape_cast %37 : vector<1xi32> to vector<1x1xi32>
      scf.yield %30, %38, %16 : vector<1x32xf32>, vector<1x1xi32>, vector<1x16xi32>
    }
    %c16_i32_4 = arith.constant 16 : i32
    %c0_5 = arith.constant 0 : index
    %c0_6 = arith.constant 0 : index
    %c0_7 = arith.constant 0 : index
    %9 = vector.load %arg2[%c0_5, %c0_6, %c0_7] : memref<1x1x16xi32, #tpu.memory_space<vmem>>, vector<1x1x16xi32>
    %10 = vector.shape_cast %9 : vector<1x1x16xi32> to vector<1x16xi32>
    %11 = vector.shape_cast %8#2 : vector<1x16xi32> to vector<1x1x16xi32>
    tpu.vector_store %arg2[%c0_5, %c0_6, %c0_7], %11 {strides = array<i32>} : memref<1x1x16xi32, #tpu.memory_space<vmem>>, vector<1x1x16xi32>,
    return
  }
  func.func @transform_0(%arg0: i32) -> (i32, i32, i32) {
    %c0_i32 = arith.constant 0 : i32
    %c0_i32_0 = arith.constant 0 : i32
    %c0_i32_1 = arith.constant 0 : i32
    return %arg0, %c0_i32, %c0_i32_0 : i32, i32, i32
  }
  func.func @transform_1(%arg0: i32) -> (i32, i32, i32) {
    %c0_i32 = arith.constant 0 : i32
    %c0_i32_0 = arith.constant 0 : i32
    %c0_i32_1 = arith.constant 0 : i32
    return %arg0, %c0_i32, %c0_i32_0 : i32, i32, i32
  }
}

module attributes {stable_mosaic.version = 11 : i64} {
  func.func @_cdist_kernel(%arg0: i32, %arg1: memref<1x16x3xf32, #tpu.memory_space<vmem>>, %arg2: memref<1x3x32xf32, #tpu.memory_space<vmem>>, %arg3: memref<1x16x1xf32, #tpu.memory_space<vmem>>, %arg4: memref<1x1x32xf32, #tpu.memory_space<vmem>>, %arg5: memref<1x16x32xf32, #tpu.memory_space<vmem>>) attributes {dimension_semantics = [#tpu.dimension_semantics<parallel>], iteration_bounds = array<i64: 2>, scalar_prefetch = 0 : i64, scratch_operands = 0 : i64, tpu.core_type = #tpu.core_type<tc>, window_params = [{transform_indices = @transform_0, window_bounds = array<i64: 1, 16, 3>}, {transform_indices = @transform_1, window_bounds = array<i64: 1, 3, 32>}, {transform_indices = @transform_2, window_bounds = array<i64: 1, 16, 1>}, {transform_indices = @transform_3, window_bounds = array<i64: 1, 1, 32>}, {transform_indices = @transform_4, window_bounds = array<i64: 1, 16, 32>}]} {
    %c0 = arith.constant 0 : index
    %c0_0 = arith.constant 0 : index
    %c0_1 = arith.constant 0 : index
    %0 = vector.load %arg1[%c0, %c0_0, %c0_1] : memref<1x16x3xf32, #tpu.memory_space<vmem>>, vector<1x16x3xf32>
    %1 = vector.shape_cast %0 : vector<1x16x3xf32> to vector<16x3xf32>
    %c0_2 = arith.constant 0 : index
    %c0_3 = arith.constant 0 : index
    %c0_4 = arith.constant 0 : index
    %2 = vector.load %arg2[%c0_2, %c0_3, %c0_4] : memref<1x3x32xf32, #tpu.memory_space<vmem>>, vector<1x3x32xf32>
    %3 = vector.shape_cast %2 : vector<1x3x32xf32> to vector<3x32xf32>
    %cst = arith.constant dense<0.000000e+00> : vector<16x32xf32>
    %4 = tpu.matmul %1, %3, %cst {dimension_numbers = #tpu.dot_dimension_numbers<[1], [0], [0], [1], [0, 0, 1, 1], [], []>} : vector<16x3xf32>, vector<3x32xf32>, vector<16x32xf32> -> vector<16x32xf32>
    %c0_5 = arith.constant 0 : index
    %c0_6 = arith.constant 0 : index
    %c0_7 = arith.constant 0 : index
    %5 = vector.load %arg3[%c0_5, %c0_6, %c0_7] : memref<1x16x1xf32, #tpu.memory_space<vmem>>, vector<1x16x1xf32>
    %6 = vector.shape_cast %5 : vector<1x16x1xf32> to vector<16x1xf32>
    %c0_8 = arith.constant 0 : index
    %c0_9 = arith.constant 0 : index
    %c0_10 = arith.constant 0 : index
    %7 = vector.load %arg4[%c0_8, %c0_9, %c0_10] : memref<1x1x32xf32, #tpu.memory_space<vmem>>, vector<1x1x32xf32>
    %8 = vector.shape_cast %7 : vector<1x1x32xf32> to vector<1x32xf32>
    %9 = vector.broadcast %6 : vector<16x1xf32> to vector<16x32xf32>
    %10 = vector.broadcast %8 : vector<1x32xf32> to vector<16x32xf32>
    %11 = arith.addf %9, %10 : vector<16x32xf32>
    %cst_11 = arith.constant 2.000000e+00 : f32
    %12 = vector.broadcast %cst_11 : f32 to vector<16x32xf32>
    %13 = arith.mulf %12, %4 : vector<16x32xf32>
    %14 = arith.subf %11, %13 : vector<16x32xf32>
    %c0_12 = arith.constant 0 : index
    %c0_13 = arith.constant 0 : index
    %c0_14 = arith.constant 0 : index
    %15 = vector.load %arg5[%c0_12, %c0_13, %c0_14] : memref<1x16x32xf32, #tpu.memory_space<vmem>>, vector<1x16x32xf32>
    %16 = vector.shape_cast %15 : vector<1x16x32xf32> to vector<16x32xf32>
    %17 = vector.shape_cast %14 : vector<16x32xf32> to vector<1x16x32xf32>
    tpu.vector_store %arg5[%c0_12, %c0_13, %c0_14], %17 {strides = array<i32>} : memref<1x16x32xf32, #tpu.memory_space<vmem>>, vector<1x16x32xf32>,
    return
  }
  func.func @transform_0(%arg0: i32) -> (i32, i32, i32) {
    %c0_i32 = arith.constant 0 : i32
    %c0_i32_0 = arith.constant 0 : i32
    %c0_i32_1 = arith.constant 0 : i32
    return %arg0, %c0_i32, %c0_i32_0 : i32, i32, i32
  }
  func.func @transform_1(%arg0: i32) -> (i32, i32, i32) {
    %c0_i32 = arith.constant 0 : i32
    %c0_i32_0 = arith.constant 0 : i32
    %c0_i32_1 = arith.constant 0 : i32
    return %arg0, %c0_i32, %c0_i32_0 : i32, i32, i32
  }
  func.func @transform_2(%arg0: i32) -> (i32, i32, i32) {
    %c0_i32 = arith.constant 0 : i32
    %c0_i32_0 = arith.constant 0 : i32
    %c0_i32_1 = arith.constant 0 : i32
    return %arg0, %c0_i32, %c0_i32_0 : i32, i32, i32
  }
  func.func @transform_3(%arg0: i32) -> (i32, i32, i32) {
    %c0_i32 = arith.constant 0 : i32
    %c0_i32_0 = arith.constant 0 : i32
    %c0_i32_1 = arith.constant 0 : i32
    return %arg0, %c0_i32, %c0_i32_0 : i32, i32, i32
  }
  func.func @transform_4(%arg0: i32) -> (i32, i32, i32) {
    %c0_i32 = arith.constant 0 : i32
    %c0_i32_0 = arith.constant 0 : i32
    %c0_i32_1 = arith.constant 0 : i32
    return %arg0, %c0_i32, %c0_i32_0 : i32, i32, i32
  }
}

module attributes {stable_mosaic.version = 11 : i64} {
  func.func @_group_mlp_max_kernel(%arg0: i32, %arg1: memref<1x128x134xf32, #tpu.memory_space<vmem>>, %arg2: memref<134x256xbf16, #tpu.memory_space<vmem>>, %arg3: memref<1x256xf32, #tpu.memory_space<vmem>>, %arg4: memref<1x16x256xf32, #tpu.memory_space<vmem>>) attributes {dimension_semantics = [#tpu.dimension_semantics<parallel>], iteration_bounds = array<i64: 2>, scalar_prefetch = 0 : i64, scratch_operands = 0 : i64, tpu.core_type = #tpu.core_type<tc>, window_params = [{transform_indices = @transform_0, window_bounds = array<i64: 1, 128, 134>}, {pipeline_mode = #tpu.pipeline_mode<synchronous>, transform_indices = @transform_1, window_bounds = array<i64: 134, 256>}, {pipeline_mode = #tpu.pipeline_mode<synchronous>, transform_indices = @transform_2, window_bounds = array<i64: 1, 256>}, {transform_indices = @transform_3, window_bounds = array<i64: 1, 16, 256>}]} {
    %c0 = arith.constant 0 : index
    %c0_0 = arith.constant 0 : index
    %c0_1 = arith.constant 0 : index
    %0 = vector.load %arg1[%c0, %c0_0, %c0_1] : memref<1x128x134xf32, #tpu.memory_space<vmem>>, vector<1x128x134xf32>
    %1 = vector.shape_cast %0 : vector<1x128x134xf32> to vector<128x134xf32>
    %2 = arith.truncf %1 : vector<128x134xf32> to vector<128x134xbf16>
    %c0_2 = arith.constant 0 : index
    %c0_3 = arith.constant 0 : index
    %3 = vector.load %arg2[%c0_2, %c0_3] : memref<134x256xbf16, #tpu.memory_space<vmem>>, vector<134x256xbf16>
    %cst = arith.constant dense<0.000000e+00> : vector<128x256xf32>
    %4 = tpu.matmul %2, %3, %cst {dimension_numbers = #tpu.dot_dimension_numbers<[1], [0], [0], [1], [0, 0, 1, 1], [], []>} : vector<128x134xbf16>, vector<134x256xbf16>, vector<128x256xf32> -> vector<128x256xf32>
    %c0_4 = arith.constant 0 : index
    %c0_5 = arith.constant 0 : index
    %5 = vector.load %arg3[%c0_4, %c0_5] : memref<1x256xf32, #tpu.memory_space<vmem>>, vector<1x256xf32>
    %6 = vector.broadcast %5 : vector<1x256xf32> to vector<128x256xf32>
    %7 = arith.addf %4, %6 : vector<128x256xf32>
    %cst_6 = arith.constant 0.000000e+00 : f32
    %8 = vector.broadcast %cst_6 : f32 to vector<128x256xf32>
    %9 = arith.maximumf %7, %8 : vector<128x256xf32>
    %10 = vector.extract_strided_slice %9 {offsets = [0, 0], sizes = [16, 256], strides = [1, 1]} : vector<128x256xf32> to vector<16x256xf32>
    %11 = vector.extract_strided_slice %9 {offsets = [16, 0], sizes = [16, 256], strides = [1, 1]} : vector<128x256xf32> to vector<16x256xf32>
    %12 = arith.maximumf %10, %11 : vector<16x256xf32>
    %13 = vector.extract_strided_slice %9 {offsets = [32, 0], sizes = [16, 256], strides = [1, 1]} : vector<128x256xf32> to vector<16x256xf32>
    %14 = arith.maximumf %12, %13 : vector<16x256xf32>
    %15 = vector.extract_strided_slice %9 {offsets = [48, 0], sizes = [16, 256], strides = [1, 1]} : vector<128x256xf32> to vector<16x256xf32>
    %16 = arith.maximumf %14, %15 : vector<16x256xf32>
    %17 = vector.extract_strided_slice %9 {offsets = [64, 0], sizes = [16, 256], strides = [1, 1]} : vector<128x256xf32> to vector<16x256xf32>
    %18 = arith.maximumf %16, %17 : vector<16x256xf32>
    %19 = vector.extract_strided_slice %9 {offsets = [80, 0], sizes = [16, 256], strides = [1, 1]} : vector<128x256xf32> to vector<16x256xf32>
    %20 = arith.maximumf %18, %19 : vector<16x256xf32>
    %21 = vector.extract_strided_slice %9 {offsets = [96, 0], sizes = [16, 256], strides = [1, 1]} : vector<128x256xf32> to vector<16x256xf32>
    %22 = arith.maximumf %20, %21 : vector<16x256xf32>
    %23 = vector.extract_strided_slice %9 {offsets = [112, 0], sizes = [16, 256], strides = [1, 1]} : vector<128x256xf32> to vector<16x256xf32>
    %24 = arith.maximumf %22, %23 : vector<16x256xf32>
    %c0_7 = arith.constant 0 : index
    %c0_8 = arith.constant 0 : index
    %c0_9 = arith.constant 0 : index
    %25 = vector.load %arg4[%c0_7, %c0_8, %c0_9] : memref<1x16x256xf32, #tpu.memory_space<vmem>>, vector<1x16x256xf32>
    %26 = vector.shape_cast %25 : vector<1x16x256xf32> to vector<16x256xf32>
    %27 = vector.shape_cast %24 : vector<16x256xf32> to vector<1x16x256xf32>
    tpu.vector_store %arg4[%c0_7, %c0_8, %c0_9], %27 {strides = array<i32>} : memref<1x16x256xf32, #tpu.memory_space<vmem>>, vector<1x16x256xf32>,
    return
  }
  func.func @transform_0(%arg0: i32) -> (i32, i32, i32) {
    %c0_i32 = arith.constant 0 : i32
    %c0_i32_0 = arith.constant 0 : i32
    %c0_i32_1 = arith.constant 0 : i32
    return %arg0, %c0_i32, %c0_i32_0 : i32, i32, i32
  }
  func.func @transform_1(%arg0: i32) -> (i32, i32) {
    %c0_i32 = arith.constant 0 : i32
    %c0_i32_0 = arith.constant 0 : i32
    %c0_i32_1 = arith.constant 0 : i32
    return %c0_i32, %c0_i32_0 : i32, i32
  }
  func.func @transform_2(%arg0: i32) -> (i32, i32) {
    %c0_i32 = arith.constant 0 : i32
    %c0_i32_0 = arith.constant 0 : i32
    %c0_i32_1 = arith.constant 0 : i32
    return %c0_i32, %c0_i32_0 : i32, i32
  }
  func.func @transform_3(%arg0: i32) -> (i32, i32, i32) {
    %c0_i32 = arith.constant 0 : i32
    %c0_i32_0 = arith.constant 0 : i32
    %c0_i32_1 = arith.constant 0 : i32
    return %arg0, %c0_i32, %c0_i32_0 : i32, i32, i32
  }
}

module attributes {stable_mosaic.version = 11 : i64} {
  func.func @_fps_kernel(%arg0: i32, %arg1: memref<1x3x16xf32, #tpu.memory_space<vmem>>, %arg2: memref<1x1x8xi32, #tpu.memory_space<vmem>>) attributes {dimension_semantics = [#tpu.dimension_semantics<parallel>], iteration_bounds = array<i64: 2>, scalar_prefetch = 0 : i64, scratch_operands = 0 : i64, tpu.core_type = #tpu.core_type<tc>, window_params = [{transform_indices = @transform_0, window_bounds = array<i64: 1, 3, 16>}, {transform_indices = @transform_1, window_bounds = array<i64: 1, 1, 8>}]} {
    %c0 = arith.constant 0 : index
    %c0_0 = arith.constant 0 : index
    %c0_1 = arith.constant 0 : index
    %0 = vector.load %arg1[%c0, %c0_0, %c0_1] : memref<1x3x16xf32, #tpu.memory_space<vmem>>, vector<1x3x16xf32>
    %1 = vector.shape_cast %0 : vector<1x3x16xf32> to vector<3x16xf32>
    %2 = tpu.iota {dimensions = array<i32: 1>} : vector<1x16xi32>
    %3 = tpu.iota {dimensions = array<i32: 1>} : vector<1x8xi32>
    %cst = arith.constant 1.000000e+10 : f32
    %4 = vector.broadcast %cst : f32 to vector<1x16xf32>
    %c0_i32 = arith.constant 0 : i32
    %5 = vector.broadcast %c0_i32 : i32 to vector<1x1xi32>
    %c0_i32_2 = arith.constant 0 : i32
    %6 = vector.broadcast %c0_i32_2 : i32 to vector<1x8xi32>
    %c0_i32_3 = arith.constant 0 : i32
    %c8_i32 = arith.constant 8 : i32
    %7 = arith.addi %c0_i32_3, %c8_i32 : i32
    %c1_i32 = arith.constant 1 : i32
    %8:3 = scf.for %arg3 = %c0_i32_3 to %7 step %c1_i32 iter_args(%arg4 = %4, %arg5 = %5, %arg6 = %6) -> (vector<1x16xf32>, vector<1x1xi32>, vector<1x8xi32>)  : i32 {
      %12 = vector.broadcast %arg3 : i32 to vector<1x8xi32>
      %13 = arith.cmpi eq, %3, %12 : vector<1x8xi32>
      %14 = vector.shape_cast %arg5 : vector<1x1xi32> to vector<1x1xi32>
      %15 = vector.broadcast %14 : vector<1x1xi32> to vector<1x8xi32>
      %16 = arith.select %13, %15, %arg6 : vector<1x8xi1>, vector<1x8xi32>
      %17 = vector.broadcast %arg5 : vector<1x1xi32> to vector<1x16xi32>
      %18 = arith.cmpi eq, %2, %17 : vector<1x16xi32>
      %cst_8 = arith.constant 0.000000e+00 : f32
      %19 = vector.shape_cast %18 : vector<1x16xi1> to vector<1x16xi1>
      %20 = vector.broadcast %19 : vector<1x16xi1> to vector<3x16xi1>
      %21 = vector.broadcast %cst_8 : f32 to vector<3x16xf32>
      %22 = arith.select %20, %1, %21 : vector<3x16xi1>, vector<3x16xf32>
      %cst_9 = arith.constant dense<0.000000e+00> : vector<3xf32>
      %23 = vector.multi_reduction <add>, %22, %cst_9 [1] : vector<3x16xf32> to vector<3xf32>
      %24 = vector.shape_cast %23 : vector<3xf32> to vector<3x1xf32>
      %25 = vector.broadcast %24 : vector<3x1xf32> to vector<3x16xf32>
      %26 = arith.subf %1, %25 : vector<3x16xf32>
      %27 = arith.mulf %26, %26 : vector<3x16xf32>
      %cst_10 = arith.constant dense<0.000000e+00> : vector<16xf32>
      %28 = vector.multi_reduction <add>, %27, %cst_10 [0] : vector<3x16xf32> to vector<16xf32>
      %29 = vector.shape_cast %28 : vector<16xf32> to vector<1x16xf32>
      %30 = arith.minimumf %arg4, %29 : vector<1x16xf32>
      %cst_11 = arith.constant dense<0xFF800000> : vector<1xf32>
      %31 = vector.multi_reduction <maximumf>, %30, %cst_11 [1] : vector<1x16xf32> to vector<1xf32>
      %32 = vector.shape_cast %31 : vector<1xf32> to vector<1x1xf32>
      %33 = vector.broadcast %32 : vector<1x1xf32> to vector<1x16xf32>
      %34 = arith.cmpf oge, %30, %33 : vector<1x16xf32>
      %c16_i32 = arith.constant 16 : i32
      %35 = vector.broadcast %c16_i32 : i32 to vector<1x16xi32>
      %36 = arith.select %34, %2, %35 : vector<1x16xi1>, vector<1x16xi32>
      %cst_12 = arith.constant dense<2147483647> : vector<1xi32>
      %37 = vector.multi_reduction <minsi>, %36, %cst_12 [1] : vector<1x16xi32> to vector<1xi32>
      %38 = vector.shape_cast %37 : vector<1xi32> to vector<1x1xi32>
      scf.yield %30, %38, %16 : vector<1x16xf32>, vector<1x1xi32>, vector<1x8xi32>
    }
    %c8_i32_4 = arith.constant 8 : i32
    %c0_5 = arith.constant 0 : index
    %c0_6 = arith.constant 0 : index
    %c0_7 = arith.constant 0 : index
    %9 = vector.load %arg2[%c0_5, %c0_6, %c0_7] : memref<1x1x8xi32, #tpu.memory_space<vmem>>, vector<1x1x8xi32>
    %10 = vector.shape_cast %9 : vector<1x1x8xi32> to vector<1x8xi32>
    %11 = vector.shape_cast %8#2 : vector<1x8xi32> to vector<1x1x8xi32>
    tpu.vector_store %arg2[%c0_5, %c0_6, %c0_7], %11 {strides = array<i32>} : memref<1x1x8xi32, #tpu.memory_space<vmem>>, vector<1x1x8xi32>,
    return
  }
  func.func @transform_0(%arg0: i32) -> (i32, i32, i32) {
    %c0_i32 = arith.constant 0 : i32
    %c0_i32_0 = arith.constant 0 : i32
    %c0_i32_1 = arith.constant 0 : i32
    return %arg0, %c0_i32, %c0_i32_0 : i32, i32, i32
  }
  func.func @transform_1(%arg0: i32) -> (i32, i32, i32) {
    %c0_i32 = arith.constant 0 : i32
    %c0_i32_0 = arith.constant 0 : i32
    %c0_i32_1 = arith.constant 0 : i32
    return %arg0, %c0_i32, %c0_i32_0 : i32, i32, i32
  }
}

module attributes {stable_mosaic.version = 11 : i64} {
  func.func @_cdist_kernel(%arg0: i32, %arg1: memref<1x8x3xf32, #tpu.memory_space<vmem>>, %arg2: memref<1x3x16xf32, #tpu.memory_space<vmem>>, %arg3: memref<1x8x1xf32, #tpu.memory_space<vmem>>, %arg4: memref<1x1x16xf32, #tpu.memory_space<vmem>>, %arg5: memref<1x8x16xf32, #tpu.memory_space<vmem>>) attributes {dimension_semantics = [#tpu.dimension_semantics<parallel>], iteration_bounds = array<i64: 2>, scalar_prefetch = 0 : i64, scratch_operands = 0 : i64, tpu.core_type = #tpu.core_type<tc>, window_params = [{transform_indices = @transform_0, window_bounds = array<i64: 1, 8, 3>}, {transform_indices = @transform_1, window_bounds = array<i64: 1, 3, 16>}, {transform_indices = @transform_2, window_bounds = array<i64: 1, 8, 1>}, {transform_indices = @transform_3, window_bounds = array<i64: 1, 1, 16>}, {transform_indices = @transform_4, window_bounds = array<i64: 1, 8, 16>}]} {
    %c0 = arith.constant 0 : index
    %c0_0 = arith.constant 0 : index
    %c0_1 = arith.constant 0 : index
    %0 = vector.load %arg1[%c0, %c0_0, %c0_1] : memref<1x8x3xf32, #tpu.memory_space<vmem>>, vector<1x8x3xf32>
    %1 = vector.shape_cast %0 : vector<1x8x3xf32> to vector<8x3xf32>
    %c0_2 = arith.constant 0 : index
    %c0_3 = arith.constant 0 : index
    %c0_4 = arith.constant 0 : index
    %2 = vector.load %arg2[%c0_2, %c0_3, %c0_4] : memref<1x3x16xf32, #tpu.memory_space<vmem>>, vector<1x3x16xf32>
    %3 = vector.shape_cast %2 : vector<1x3x16xf32> to vector<3x16xf32>
    %cst = arith.constant dense<0.000000e+00> : vector<8x16xf32>
    %4 = tpu.matmul %1, %3, %cst {dimension_numbers = #tpu.dot_dimension_numbers<[1], [0], [0], [1], [0, 0, 1, 1], [], []>} : vector<8x3xf32>, vector<3x16xf32>, vector<8x16xf32> -> vector<8x16xf32>
    %c0_5 = arith.constant 0 : index
    %c0_6 = arith.constant 0 : index
    %c0_7 = arith.constant 0 : index
    %5 = vector.load %arg3[%c0_5, %c0_6, %c0_7] : memref<1x8x1xf32, #tpu.memory_space<vmem>>, vector<1x8x1xf32>
    %6 = vector.shape_cast %5 : vector<1x8x1xf32> to vector<8x1xf32>
    %c0_8 = arith.constant 0 : index
    %c0_9 = arith.constant 0 : index
    %c0_10 = arith.constant 0 : index
    %7 = vector.load %arg4[%c0_8, %c0_9, %c0_10] : memref<1x1x16xf32, #tpu.memory_space<vmem>>, vector<1x1x16xf32>
    %8 = vector.shape_cast %7 : vector<1x1x16xf32> to vector<1x16xf32>
    %9 = vector.broadcast %6 : vector<8x1xf32> to vector<8x16xf32>
    %10 = vector.broadcast %8 : vector<1x16xf32> to vector<8x16xf32>
    %11 = arith.addf %9, %10 : vector<8x16xf32>
    %cst_11 = arith.constant 2.000000e+00 : f32
    %12 = vector.broadcast %cst_11 : f32 to vector<8x16xf32>
    %13 = arith.mulf %12, %4 : vector<8x16xf32>
    %14 = arith.subf %11, %13 : vector<8x16xf32>
    %c0_12 = arith.constant 0 : index
    %c0_13 = arith.constant 0 : index
    %c0_14 = arith.constant 0 : index
    %15 = vector.load %arg5[%c0_12, %c0_13, %c0_14] : memref<1x8x16xf32, #tpu.memory_space<vmem>>, vector<1x8x16xf32>
    %16 = vector.shape_cast %15 : vector<1x8x16xf32> to vector<8x16xf32>
    %17 = vector.shape_cast %14 : vector<8x16xf32> to vector<1x8x16xf32>
    tpu.vector_store %arg5[%c0_12, %c0_13, %c0_14], %17 {strides = array<i32>} : memref<1x8x16xf32, #tpu.memory_space<vmem>>, vector<1x8x16xf32>,
    return
  }
  func.func @transform_0(%arg0: i32) -> (i32, i32, i32) {
    %c0_i32 = arith.constant 0 : i32
    %c0_i32_0 = arith.constant 0 : i32
    %c0_i32_1 = arith.constant 0 : i32
    return %arg0, %c0_i32, %c0_i32_0 : i32, i32, i32
  }
  func.func @transform_1(%arg0: i32) -> (i32, i32, i32) {
    %c0_i32 = arith.constant 0 : i32
    %c0_i32_0 = arith.constant 0 : i32
    %c0_i32_1 = arith.constant 0 : i32
    return %arg0, %c0_i32, %c0_i32_0 : i32, i32, i32
  }
  func.func @transform_2(%arg0: i32) -> (i32, i32, i32) {
    %c0_i32 = arith.constant 0 : i32
    %c0_i32_0 = arith.constant 0 : i32
    %c0_i32_1 = arith.constant 0 : i32
    return %arg0, %c0_i32, %c0_i32_0 : i32, i32, i32
  }
  func.func @transform_3(%arg0: i32) -> (i32, i32, i32) {
    %c0_i32 = arith.constant 0 : i32
    %c0_i32_0 = arith.constant 0 : i32
    %c0_i32_1 = arith.constant 0 : i32
    return %arg0, %c0_i32, %c0_i32_0 : i32, i32, i32
  }
  func.func @transform_4(%arg0: i32) -> (i32, i32, i32) {
    %c0_i32 = arith.constant 0 : i32
    %c0_i32_0 = arith.constant 0 : i32
    %c0_i32_1 = arith.constant 0 : i32
    return %arg0, %c0_i32, %c0_i32_0 : i32, i32, i32
  }
}

module attributes {stable_mosaic.version = 11 : i64} {
  func.func @_group_mlp_max_kernel(%arg0: i32, %arg1: memref<1x64x262xf32, #tpu.memory_space<vmem>>, %arg2: memref<262x512xbf16, #tpu.memory_space<vmem>>, %arg3: memref<1x512xf32, #tpu.memory_space<vmem>>, %arg4: memref<1x8x512xf32, #tpu.memory_space<vmem>>) attributes {dimension_semantics = [#tpu.dimension_semantics<parallel>], iteration_bounds = array<i64: 2>, scalar_prefetch = 0 : i64, scratch_operands = 0 : i64, tpu.core_type = #tpu.core_type<tc>, window_params = [{transform_indices = @transform_0, window_bounds = array<i64: 1, 64, 262>}, {pipeline_mode = #tpu.pipeline_mode<synchronous>, transform_indices = @transform_1, window_bounds = array<i64: 262, 512>}, {pipeline_mode = #tpu.pipeline_mode<synchronous>, transform_indices = @transform_2, window_bounds = array<i64: 1, 512>}, {transform_indices = @transform_3, window_bounds = array<i64: 1, 8, 512>}]} {
    %c0 = arith.constant 0 : index
    %c0_0 = arith.constant 0 : index
    %c0_1 = arith.constant 0 : index
    %0 = vector.load %arg1[%c0, %c0_0, %c0_1] : memref<1x64x262xf32, #tpu.memory_space<vmem>>, vector<1x64x262xf32>
    %1 = vector.shape_cast %0 : vector<1x64x262xf32> to vector<64x262xf32>
    %2 = arith.truncf %1 : vector<64x262xf32> to vector<64x262xbf16>
    %c0_2 = arith.constant 0 : index
    %c0_3 = arith.constant 0 : index
    %3 = vector.load %arg2[%c0_2, %c0_3] : memref<262x512xbf16, #tpu.memory_space<vmem>>, vector<262x512xbf16>
    %cst = arith.constant dense<0.000000e+00> : vector<64x512xf32>
    %4 = tpu.matmul %2, %3, %cst {dimension_numbers = #tpu.dot_dimension_numbers<[1], [0], [0], [1], [0, 0, 1, 1], [], []>} : vector<64x262xbf16>, vector<262x512xbf16>, vector<64x512xf32> -> vector<64x512xf32>
    %c0_4 = arith.constant 0 : index
    %c0_5 = arith.constant 0 : index
    %5 = vector.load %arg3[%c0_4, %c0_5] : memref<1x512xf32, #tpu.memory_space<vmem>>, vector<1x512xf32>
    %6 = vector.broadcast %5 : vector<1x512xf32> to vector<64x512xf32>
    %7 = arith.addf %4, %6 : vector<64x512xf32>
    %cst_6 = arith.constant 0.000000e+00 : f32
    %8 = vector.broadcast %cst_6 : f32 to vector<64x512xf32>
    %9 = arith.maximumf %7, %8 : vector<64x512xf32>
    %10 = vector.extract_strided_slice %9 {offsets = [0, 0], sizes = [8, 512], strides = [1, 1]} : vector<64x512xf32> to vector<8x512xf32>
    %11 = vector.extract_strided_slice %9 {offsets = [8, 0], sizes = [8, 512], strides = [1, 1]} : vector<64x512xf32> to vector<8x512xf32>
    %12 = arith.maximumf %10, %11 : vector<8x512xf32>
    %13 = vector.extract_strided_slice %9 {offsets = [16, 0], sizes = [8, 512], strides = [1, 1]} : vector<64x512xf32> to vector<8x512xf32>
    %14 = arith.maximumf %12, %13 : vector<8x512xf32>
    %15 = vector.extract_strided_slice %9 {offsets = [24, 0], sizes = [8, 512], strides = [1, 1]} : vector<64x512xf32> to vector<8x512xf32>
    %16 = arith.maximumf %14, %15 : vector<8x512xf32>
    %17 = vector.extract_strided_slice %9 {offsets = [32, 0], sizes = [8, 512], strides = [1, 1]} : vector<64x512xf32> to vector<8x512xf32>
    %18 = arith.maximumf %16, %17 : vector<8x512xf32>
    %19 = vector.extract_strided_slice %9 {offsets = [40, 0], sizes = [8, 512], strides = [1, 1]} : vector<64x512xf32> to vector<8x512xf32>
    %20 = arith.maximumf %18, %19 : vector<8x512xf32>
    %21 = vector.extract_strided_slice %9 {offsets = [48, 0], sizes = [8, 512], strides = [1, 1]} : vector<64x512xf32> to vector<8x512xf32>
    %22 = arith.maximumf %20, %21 : vector<8x512xf32>
    %23 = vector.extract_strided_slice %9 {offsets = [56, 0], sizes = [8, 512], strides = [1, 1]} : vector<64x512xf32> to vector<8x512xf32>
    %24 = arith.maximumf %22, %23 : vector<8x512xf32>
    %c0_7 = arith.constant 0 : index
    %c0_8 = arith.constant 0 : index
    %c0_9 = arith.constant 0 : index
    %25 = vector.load %arg4[%c0_7, %c0_8, %c0_9] : memref<1x8x512xf32, #tpu.memory_space<vmem>>, vector<1x8x512xf32>
    %26 = vector.shape_cast %25 : vector<1x8x512xf32> to vector<8x512xf32>
    %27 = vector.shape_cast %24 : vector<8x512xf32> to vector<1x8x512xf32>
    tpu.vector_store %arg4[%c0_7, %c0_8, %c0_9], %27 {strides = array<i32>} : memref<1x8x512xf32, #tpu.memory_space<vmem>>, vector<1x8x512xf32>,
    return
  }
  func.func @transform_0(%arg0: i32) -> (i32, i32, i32) {
    %c0_i32 = arith.constant 0 : i32
    %c0_i32_0 = arith.constant 0 : i32
    %c0_i32_1 = arith.constant 0 : i32
    return %arg0, %c0_i32, %c0_i32_0 : i32, i32, i32
  }
  func.func @transform_1(%arg0: i32) -> (i32, i32) {
    %c0_i32 = arith.constant 0 : i32
    %c0_i32_0 = arith.constant 0 : i32
    %c0_i32_1 = arith.constant 0 : i32
    return %c0_i32, %c0_i32_0 : i32, i32
  }
  func.func @transform_2(%arg0: i32) -> (i32, i32) {
    %c0_i32 = arith.constant 0 : i32
    %c0_i32_0 = arith.constant 0 : i32
    %c0_i32_1 = arith.constant 0 : i32
    return %c0_i32, %c0_i32_0 : i32, i32
  }
  func.func @transform_3(%arg0: i32) -> (i32, i32, i32) {
    %c0_i32 = arith.constant 0 : i32
    %c0_i32_0 = arith.constant 0 : i32
    %c0_i32_1 = arith.constant 0 : i32
    return %arg0, %c0_i32, %c0_i32_0 : i32, i32, i32
  }
}

module attributes {stable_mosaic.version = 11 : i64} {
  func.func @_cdist_kernel(%arg0: i32, %arg1: memref<1x16x3xf32, #tpu.memory_space<vmem>>, %arg2: memref<1x3x8xf32, #tpu.memory_space<vmem>>, %arg3: memref<1x16x1xf32, #tpu.memory_space<vmem>>, %arg4: memref<1x1x8xf32, #tpu.memory_space<vmem>>, %arg5: memref<1x16x8xf32, #tpu.memory_space<vmem>>) attributes {dimension_semantics = [#tpu.dimension_semantics<parallel>], iteration_bounds = array<i64: 2>, scalar_prefetch = 0 : i64, scratch_operands = 0 : i64, tpu.core_type = #tpu.core_type<tc>, window_params = [{transform_indices = @transform_0, window_bounds = array<i64: 1, 16, 3>}, {transform_indices = @transform_1, window_bounds = array<i64: 1, 3, 8>}, {transform_indices = @transform_2, window_bounds = array<i64: 1, 16, 1>}, {transform_indices = @transform_3, window_bounds = array<i64: 1, 1, 8>}, {transform_indices = @transform_4, window_bounds = array<i64: 1, 16, 8>}]} {
    %c0 = arith.constant 0 : index
    %c0_0 = arith.constant 0 : index
    %c0_1 = arith.constant 0 : index
    %0 = vector.load %arg1[%c0, %c0_0, %c0_1] : memref<1x16x3xf32, #tpu.memory_space<vmem>>, vector<1x16x3xf32>
    %1 = vector.shape_cast %0 : vector<1x16x3xf32> to vector<16x3xf32>
    %c0_2 = arith.constant 0 : index
    %c0_3 = arith.constant 0 : index
    %c0_4 = arith.constant 0 : index
    %2 = vector.load %arg2[%c0_2, %c0_3, %c0_4] : memref<1x3x8xf32, #tpu.memory_space<vmem>>, vector<1x3x8xf32>
    %3 = vector.shape_cast %2 : vector<1x3x8xf32> to vector<3x8xf32>
    %cst = arith.constant dense<0.000000e+00> : vector<16x8xf32>
    %4 = tpu.matmul %1, %3, %cst {dimension_numbers = #tpu.dot_dimension_numbers<[1], [0], [0], [1], [0, 0, 1, 1], [], []>} : vector<16x3xf32>, vector<3x8xf32>, vector<16x8xf32> -> vector<16x8xf32>
    %c0_5 = arith.constant 0 : index
    %c0_6 = arith.constant 0 : index
    %c0_7 = arith.constant 0 : index
    %5 = vector.load %arg3[%c0_5, %c0_6, %c0_7] : memref<1x16x1xf32, #tpu.memory_space<vmem>>, vector<1x16x1xf32>
    %6 = vector.shape_cast %5 : vector<1x16x1xf32> to vector<16x1xf32>
    %c0_8 = arith.constant 0 : index
    %c0_9 = arith.constant 0 : index
    %c0_10 = arith.constant 0 : index
    %7 = vector.load %arg4[%c0_8, %c0_9, %c0_10] : memref<1x1x8xf32, #tpu.memory_space<vmem>>, vector<1x1x8xf32>
    %8 = vector.shape_cast %7 : vector<1x1x8xf32> to vector<1x8xf32>
    %9 = vector.broadcast %6 : vector<16x1xf32> to vector<16x8xf32>
    %10 = vector.broadcast %8 : vector<1x8xf32> to vector<16x8xf32>
    %11 = arith.addf %9, %10 : vector<16x8xf32>
    %cst_11 = arith.constant 2.000000e+00 : f32
    %12 = vector.broadcast %cst_11 : f32 to vector<16x8xf32>
    %13 = arith.mulf %12, %4 : vector<16x8xf32>
    %14 = arith.subf %11, %13 : vector<16x8xf32>
    %c0_12 = arith.constant 0 : index
    %c0_13 = arith.constant 0 : index
    %c0_14 = arith.constant 0 : index
    %15 = vector.load %arg5[%c0_12, %c0_13, %c0_14] : memref<1x16x8xf32, #tpu.memory_space<vmem>>, vector<1x16x8xf32>
    %16 = vector.shape_cast %15 : vector<1x16x8xf32> to vector<16x8xf32>
    %17 = vector.shape_cast %14 : vector<16x8xf32> to vector<1x16x8xf32>
    tpu.vector_store %arg5[%c0_12, %c0_13, %c0_14], %17 {strides = array<i32>} : memref<1x16x8xf32, #tpu.memory_space<vmem>>, vector<1x16x8xf32>,
    return
  }
  func.func @transform_0(%arg0: i32) -> (i32, i32, i32) {
    %c0_i32 = arith.constant 0 : i32
    %c0_i32_0 = arith.constant 0 : i32
    %c0_i32_1 = arith.constant 0 : i32
    return %arg0, %c0_i32, %c0_i32_0 : i32, i32, i32
  }
  func.func @transform_1(%arg0: i32) -> (i32, i32, i32) {
    %c0_i32 = arith.constant 0 : i32
    %c0_i32_0 = arith.constant 0 : i32
    %c0_i32_1 = arith.constant 0 : i32
    return %arg0, %c0_i32, %c0_i32_0 : i32, i32, i32
  }
  func.func @transform_2(%arg0: i32) -> (i32, i32, i32) {
    %c0_i32 = arith.constant 0 : i32
    %c0_i32_0 = arith.constant 0 : i32
    %c0_i32_1 = arith.constant 0 : i32
    return %arg0, %c0_i32, %c0_i32_0 : i32, i32, i32
  }
  func.func @transform_3(%arg0: i32) -> (i32, i32, i32) {
    %c0_i32 = arith.constant 0 : i32
    %c0_i32_0 = arith.constant 0 : i32
    %c0_i32_1 = arith.constant 0 : i32
    return %arg0, %c0_i32, %c0_i32_0 : i32, i32, i32
  }
  func.func @transform_4(%arg0: i32) -> (i32, i32, i32) {
    %c0_i32 = arith.constant 0 : i32
    %c0_i32_0 = arith.constant 0 : i32
    %c0_i32_1 = arith.constant 0 : i32
    return %arg0, %c0_i32, %c0_i32_0 : i32, i32, i32
  }
}

module attributes {stable_mosaic.version = 11 : i64} {
  func.func @_linear_kernel(%arg0: i32, %arg1: memref<1x16x768xf32, #tpu.memory_space<vmem>>, %arg2: memref<768x512xbf16, #tpu.memory_space<vmem>>, %arg3: memref<1x512xf32, #tpu.memory_space<vmem>>, %arg4: memref<1x16x512xf32, #tpu.memory_space<vmem>>) attributes {dimension_semantics = [#tpu.dimension_semantics<parallel>], iteration_bounds = array<i64: 2>, scalar_prefetch = 0 : i64, scratch_operands = 0 : i64, tpu.core_type = #tpu.core_type<tc>, window_params = [{transform_indices = @transform_0, window_bounds = array<i64: 1, 16, 768>}, {pipeline_mode = #tpu.pipeline_mode<synchronous>, transform_indices = @transform_1, window_bounds = array<i64: 768, 512>}, {pipeline_mode = #tpu.pipeline_mode<synchronous>, transform_indices = @transform_2, window_bounds = array<i64: 1, 512>}, {transform_indices = @transform_3, window_bounds = array<i64: 1, 16, 512>}]} {
    %c0 = arith.constant 0 : index
    %c0_0 = arith.constant 0 : index
    %c0_1 = arith.constant 0 : index
    %0 = vector.load %arg1[%c0, %c0_0, %c0_1] : memref<1x16x768xf32, #tpu.memory_space<vmem>>, vector<1x16x768xf32>
    %1 = vector.shape_cast %0 : vector<1x16x768xf32> to vector<16x768xf32>
    %2 = arith.truncf %1 : vector<16x768xf32> to vector<16x768xbf16>
    %c0_2 = arith.constant 0 : index
    %c0_3 = arith.constant 0 : index
    %3 = vector.load %arg2[%c0_2, %c0_3] : memref<768x512xbf16, #tpu.memory_space<vmem>>, vector<768x512xbf16>
    %cst = arith.constant dense<0.000000e+00> : vector<16x512xf32>
    %4 = tpu.matmul %2, %3, %cst {dimension_numbers = #tpu.dot_dimension_numbers<[1], [0], [0], [1], [0, 0, 1, 1], [], []>} : vector<16x768xbf16>, vector<768x512xbf16>, vector<16x512xf32> -> vector<16x512xf32>
    %c0_4 = arith.constant 0 : index
    %c0_5 = arith.constant 0 : index
    %5 = vector.load %arg3[%c0_4, %c0_5] : memref<1x512xf32, #tpu.memory_space<vmem>>, vector<1x512xf32>
    %6 = vector.broadcast %5 : vector<1x512xf32> to vector<16x512xf32>
    %7 = arith.addf %4, %6 : vector<16x512xf32>
    %cst_6 = arith.constant 0.000000e+00 : f32
    %8 = vector.broadcast %cst_6 : f32 to vector<16x512xf32>
    %9 = arith.maximumf %7, %8 : vector<16x512xf32>
    %c0_7 = arith.constant 0 : index
    %c0_8 = arith.constant 0 : index
    %c0_9 = arith.constant 0 : index
    %10 = vector.load %arg4[%c0_7, %c0_8, %c0_9] : memref<1x16x512xf32, #tpu.memory_space<vmem>>, vector<1x16x512xf32>
    %11 = vector.shape_cast %10 : vector<1x16x512xf32> to vector<16x512xf32>
    %12 = vector.shape_cast %9 : vector<16x512xf32> to vector<1x16x512xf32>
    tpu.vector_store %arg4[%c0_7, %c0_8, %c0_9], %12 {strides = array<i32>} : memref<1x16x512xf32, #tpu.memory_space<vmem>>, vector<1x16x512xf32>,
    return
  }
  func.func @transform_0(%arg0: i32) -> (i32, i32, i32) {
    %c0_i32 = arith.constant 0 : i32
    %c0_i32_0 = arith.constant 0 : i32
    %c0_i32_1 = arith.constant 0 : i32
    return %arg0, %c0_i32, %c0_i32_0 : i32, i32, i32
  }
  func.func @transform_1(%arg0: i32) -> (i32, i32) {
    %c0_i32 = arith.constant 0 : i32
    %c0_i32_0 = arith.constant 0 : i32
    %c0_i32_1 = arith.constant 0 : i32
    return %c0_i32, %c0_i32_0 : i32, i32
  }
  func.func @transform_2(%arg0: i32) -> (i32, i32) {
    %c0_i32 = arith.constant 0 : i32
    %c0_i32_0 = arith.constant 0 : i32
    %c0_i32_1 = arith.constant 0 : i32
    return %c0_i32, %c0_i32_0 : i32, i32
  }
  func.func @transform_3(%arg0: i32) -> (i32, i32, i32) {
    %c0_i32 = arith.constant 0 : i32
    %c0_i32_0 = arith.constant 0 : i32
    %c0_i32_1 = arith.constant 0 : i32
    return %arg0, %c0_i32, %c0_i32_0 : i32, i32, i32
  }
}

module attributes {stable_mosaic.version = 11 : i64} {
  func.func @_cdist_kernel(%arg0: i32, %arg1: memref<1x32x3xf32, #tpu.memory_space<vmem>>, %arg2: memref<1x3x16xf32, #tpu.memory_space<vmem>>, %arg3: memref<1x32x1xf32, #tpu.memory_space<vmem>>, %arg4: memref<1x1x16xf32, #tpu.memory_space<vmem>>, %arg5: memref<1x32x16xf32, #tpu.memory_space<vmem>>) attributes {dimension_semantics = [#tpu.dimension_semantics<parallel>], iteration_bounds = array<i64: 2>, scalar_prefetch = 0 : i64, scratch_operands = 0 : i64, tpu.core_type = #tpu.core_type<tc>, window_params = [{transform_indices = @transform_0, window_bounds = array<i64: 1, 32, 3>}, {transform_indices = @transform_1, window_bounds = array<i64: 1, 3, 16>}, {transform_indices = @transform_2, window_bounds = array<i64: 1, 32, 1>}, {transform_indices = @transform_3, window_bounds = array<i64: 1, 1, 16>}, {transform_indices = @transform_4, window_bounds = array<i64: 1, 32, 16>}]} {
    %c0 = arith.constant 0 : index
    %c0_0 = arith.constant 0 : index
    %c0_1 = arith.constant 0 : index
    %0 = vector.load %arg1[%c0, %c0_0, %c0_1] : memref<1x32x3xf32, #tpu.memory_space<vmem>>, vector<1x32x3xf32>
    %1 = vector.shape_cast %0 : vector<1x32x3xf32> to vector<32x3xf32>
    %c0_2 = arith.constant 0 : index
    %c0_3 = arith.constant 0 : index
    %c0_4 = arith.constant 0 : index
    %2 = vector.load %arg2[%c0_2, %c0_3, %c0_4] : memref<1x3x16xf32, #tpu.memory_space<vmem>>, vector<1x3x16xf32>
    %3 = vector.shape_cast %2 : vector<1x3x16xf32> to vector<3x16xf32>
    %cst = arith.constant dense<0.000000e+00> : vector<32x16xf32>
    %4 = tpu.matmul %1, %3, %cst {dimension_numbers = #tpu.dot_dimension_numbers<[1], [0], [0], [1], [0, 0, 1, 1], [], []>} : vector<32x3xf32>, vector<3x16xf32>, vector<32x16xf32> -> vector<32x16xf32>
    %c0_5 = arith.constant 0 : index
    %c0_6 = arith.constant 0 : index
    %c0_7 = arith.constant 0 : index
    %5 = vector.load %arg3[%c0_5, %c0_6, %c0_7] : memref<1x32x1xf32, #tpu.memory_space<vmem>>, vector<1x32x1xf32>
    %6 = vector.shape_cast %5 : vector<1x32x1xf32> to vector<32x1xf32>
    %c0_8 = arith.constant 0 : index
    %c0_9 = arith.constant 0 : index
    %c0_10 = arith.constant 0 : index
    %7 = vector.load %arg4[%c0_8, %c0_9, %c0_10] : memref<1x1x16xf32, #tpu.memory_space<vmem>>, vector<1x1x16xf32>
    %8 = vector.shape_cast %7 : vector<1x1x16xf32> to vector<1x16xf32>
    %9 = vector.broadcast %6 : vector<32x1xf32> to vector<32x16xf32>
    %10 = vector.broadcast %8 : vector<1x16xf32> to vector<32x16xf32>
    %11 = arith.addf %9, %10 : vector<32x16xf32>
    %cst_11 = arith.constant 2.000000e+00 : f32
    %12 = vector.broadcast %cst_11 : f32 to vector<32x16xf32>
    %13 = arith.mulf %12, %4 : vector<32x16xf32>
    %14 = arith.subf %11, %13 : vector<32x16xf32>
    %c0_12 = arith.constant 0 : index
    %c0_13 = arith.constant 0 : index
    %c0_14 = arith.constant 0 : index
    %15 = vector.load %arg5[%c0_12, %c0_13, %c0_14] : memref<1x32x16xf32, #tpu.memory_space<vmem>>, vector<1x32x16xf32>
    %16 = vector.shape_cast %15 : vector<1x32x16xf32> to vector<32x16xf32>
    %17 = vector.shape_cast %14 : vector<32x16xf32> to vector<1x32x16xf32>
    tpu.vector_store %arg5[%c0_12, %c0_13, %c0_14], %17 {strides = array<i32>} : memref<1x32x16xf32, #tpu.memory_space<vmem>>, vector<1x32x16xf32>,
    return
  }
  func.func @transform_0(%arg0: i32) -> (i32, i32, i32) {
    %c0_i32 = arith.constant 0 : i32
    %c0_i32_0 = arith.constant 0 : i32
    %c0_i32_1 = arith.constant 0 : i32
    return %arg0, %c0_i32, %c0_i32_0 : i32, i32, i32
  }
  func.func @transform_1(%arg0: i32) -> (i32, i32, i32) {
    %c0_i32 = arith.constant 0 : i32
    %c0_i32_0 = arith.constant 0 : i32
    %c0_i32_1 = arith.constant 0 : i32
    return %arg0, %c0_i32, %c0_i32_0 : i32, i32, i32
  }
  func.func @transform_2(%arg0: i32) -> (i32, i32, i32) {
    %c0_i32 = arith.constant 0 : i32
    %c0_i32_0 = arith.constant 0 : i32
    %c0_i32_1 = arith.constant 0 : i32
    return %arg0, %c0_i32, %c0_i32_0 : i32, i32, i32
  }
  func.func @transform_3(%arg0: i32) -> (i32, i32, i32) {
    %c0_i32 = arith.constant 0 : i32
    %c0_i32_0 = arith.constant 0 : i32
    %c0_i32_1 = arith.constant 0 : i32
    return %arg0, %c0_i32, %c0_i32_0 : i32, i32, i32
  }
  func.func @transform_4(%arg0: i32) -> (i32, i32, i32) {
    %c0_i32 = arith.constant 0 : i32
    %c0_i32_0 = arith.constant 0 : i32
    %c0_i32_1 = arith.constant 0 : i32
    return %arg0, %c0_i32, %c0_i32_0 : i32, i32, i32
  }
}

module attributes {stable_mosaic.version = 11 : i64} {
  func.func @_cdist_kernel(%arg0: i32, %arg1: memref<1x64x3xf32, #tpu.memory_space<vmem>>, %arg2: memref<1x3x32xf32, #tpu.memory_space<vmem>>, %arg3: memref<1x64x1xf32, #tpu.memory_space<vmem>>, %arg4: memref<1x1x32xf32, #tpu.memory_space<vmem>>, %arg5: memref<1x64x32xf32, #tpu.memory_space<vmem>>) attributes {dimension_semantics = [#tpu.dimension_semantics<parallel>], iteration_bounds = array<i64: 2>, scalar_prefetch = 0 : i64, scratch_operands = 0 : i64, tpu.core_type = #tpu.core_type<tc>, window_params = [{transform_indices = @transform_0, window_bounds = array<i64: 1, 64, 3>}, {transform_indices = @transform_1, window_bounds = array<i64: 1, 3, 32>}, {transform_indices = @transform_2, window_bounds = array<i64: 1, 64, 1>}, {transform_indices = @transform_3, window_bounds = array<i64: 1, 1, 32>}, {transform_indices = @transform_4, window_bounds = array<i64: 1, 64, 32>}]} {
    %c0 = arith.constant 0 : index
    %c0_0 = arith.constant 0 : index
    %c0_1 = arith.constant 0 : index
    %0 = vector.load %arg1[%c0, %c0_0, %c0_1] : memref<1x64x3xf32, #tpu.memory_space<vmem>>, vector<1x64x3xf32>
    %1 = vector.shape_cast %0 : vector<1x64x3xf32> to vector<64x3xf32>
    %c0_2 = arith.constant 0 : index
    %c0_3 = arith.constant 0 : index
    %c0_4 = arith.constant 0 : index
    %2 = vector.load %arg2[%c0_2, %c0_3, %c0_4] : memref<1x3x32xf32, #tpu.memory_space<vmem>>, vector<1x3x32xf32>
    %3 = vector.shape_cast %2 : vector<1x3x32xf32> to vector<3x32xf32>
    %cst = arith.constant dense<0.000000e+00> : vector<64x32xf32>
    %4 = tpu.matmul %1, %3, %cst {dimension_numbers = #tpu.dot_dimension_numbers<[1], [0], [0], [1], [0, 0, 1, 1], [], []>} : vector<64x3xf32>, vector<3x32xf32>, vector<64x32xf32> -> vector<64x32xf32>
    %c0_5 = arith.constant 0 : index
    %c0_6 = arith.constant 0 : index
    %c0_7 = arith.constant 0 : index
    %5 = vector.load %arg3[%c0_5, %c0_6, %c0_7] : memref<1x64x1xf32, #tpu.memory_space<vmem>>, vector<1x64x1xf32>
    %6 = vector.shape_cast %5 : vector<1x64x1xf32> to vector<64x1xf32>
    %c0_8 = arith.constant 0 : index
    %c0_9 = arith.constant 0 : index
    %c0_10 = arith.constant 0 : index
    %7 = vector.load %arg4[%c0_8, %c0_9, %c0_10] : memref<1x1x32xf32, #tpu.memory_space<vmem>>, vector<1x1x32xf32>
    %8 = vector.shape_cast %7 : vector<1x1x32xf32> to vector<1x32xf32>
    %9 = vector.broadcast %6 : vector<64x1xf32> to vector<64x32xf32>
    %10 = vector.broadcast %8 : vector<1x32xf32> to vector<64x32xf32>
    %11 = arith.addf %9, %10 : vector<64x32xf32>
    %cst_11 = arith.constant 2.000000e+00 : f32
    %12 = vector.broadcast %cst_11 : f32 to vector<64x32xf32>
    %13 = arith.mulf %12, %4 : vector<64x32xf32>
    %14 = arith.subf %11, %13 : vector<64x32xf32>
    %c0_12 = arith.constant 0 : index
    %c0_13 = arith.constant 0 : index
    %c0_14 = arith.constant 0 : index
    %15 = vector.load %arg5[%c0_12, %c0_13, %c0_14] : memref<1x64x32xf32, #tpu.memory_space<vmem>>, vector<1x64x32xf32>
    %16 = vector.shape_cast %15 : vector<1x64x32xf32> to vector<64x32xf32>
    %17 = vector.shape_cast %14 : vector<64x32xf32> to vector<1x64x32xf32>
    tpu.vector_store %arg5[%c0_12, %c0_13, %c0_14], %17 {strides = array<i32>} : memref<1x64x32xf32, #tpu.memory_space<vmem>>, vector<1x64x32xf32>,
    return
  }
  func.func @transform_0(%arg0: i32) -> (i32, i32, i32) {
    %c0_i32 = arith.constant 0 : i32
    %c0_i32_0 = arith.constant 0 : i32
    %c0_i32_1 = arith.constant 0 : i32
    return %arg0, %c0_i32, %c0_i32_0 : i32, i32, i32
  }
  func.func @transform_1(%arg0: i32) -> (i32, i32, i32) {
    %c0_i32 = arith.constant 0 : i32
    %c0_i32_0 = arith.constant 0 : i32
    %c0_i32_1 = arith.constant 0 : i32
    return %arg0, %c0_i32, %c0_i32_0 : i32, i32, i32
  }
  func.func @transform_2(%arg0: i32) -> (i32, i32, i32) {
    %c0_i32 = arith.constant 0 : i32
    %c0_i32_0 = arith.constant 0 : i32
    %c0_i32_1 = arith.constant 0 : i32
    return %arg0, %c0_i32, %c0_i32_0 : i32, i32, i32
  }
  func.func @transform_3(%arg0: i32) -> (i32, i32, i32) {
    %c0_i32 = arith.constant 0 : i32
    %c0_i32_0 = arith.constant 0 : i32
    %c0_i32_1 = arith.constant 0 : i32
    return %arg0, %c0_i32, %c0_i32_0 : i32, i32, i32
  }
  func.func @transform_4(%arg0: i32) -> (i32, i32, i32) {
    %c0_i32 = arith.constant 0 : i32
    %c0_i32_0 = arith.constant 0 : i32
    %c0_i32_1 = arith.constant 0 : i32
    return %arg0, %c0_i32, %c0_i32_0 : i32, i32, i32
  }
}

module attributes {stable_mosaic.version = 11 : i64} {
  func.func @_linear_kernel(%arg0: i32, %arg1: memref<1x32x640xf32, #tpu.memory_space<vmem>>, %arg2: memref<640x256xbf16, #tpu.memory_space<vmem>>, %arg3: memref<1x256xf32, #tpu.memory_space<vmem>>, %arg4: memref<1x32x256xf32, #tpu.memory_space<vmem>>) attributes {dimension_semantics = [#tpu.dimension_semantics<parallel>], iteration_bounds = array<i64: 2>, scalar_prefetch = 0 : i64, scratch_operands = 0 : i64, tpu.core_type = #tpu.core_type<tc>, window_params = [{transform_indices = @transform_0, window_bounds = array<i64: 1, 32, 640>}, {pipeline_mode = #tpu.pipeline_mode<synchronous>, transform_indices = @transform_1, window_bounds = array<i64: 640, 256>}, {pipeline_mode = #tpu.pipeline_mode<synchronous>, transform_indices = @transform_2, window_bounds = array<i64: 1, 256>}, {transform_indices = @transform_3, window_bounds = array<i64: 1, 32, 256>}]} {
    %c0 = arith.constant 0 : index
    %c0_0 = arith.constant 0 : index
    %c0_1 = arith.constant 0 : index
    %0 = vector.load %arg1[%c0, %c0_0, %c0_1] : memref<1x32x640xf32, #tpu.memory_space<vmem>>, vector<1x32x640xf32>
    %1 = vector.shape_cast %0 : vector<1x32x640xf32> to vector<32x640xf32>
    %2 = arith.truncf %1 : vector<32x640xf32> to vector<32x640xbf16>
    %c0_2 = arith.constant 0 : index
    %c0_3 = arith.constant 0 : index
    %3 = vector.load %arg2[%c0_2, %c0_3] : memref<640x256xbf16, #tpu.memory_space<vmem>>, vector<640x256xbf16>
    %cst = arith.constant dense<0.000000e+00> : vector<32x256xf32>
    %4 = tpu.matmul %2, %3, %cst {dimension_numbers = #tpu.dot_dimension_numbers<[1], [0], [0], [1], [0, 0, 1, 1], [], []>} : vector<32x640xbf16>, vector<640x256xbf16>, vector<32x256xf32> -> vector<32x256xf32>
    %c0_4 = arith.constant 0 : index
    %c0_5 = arith.constant 0 : index
    %5 = vector.load %arg3[%c0_4, %c0_5] : memref<1x256xf32, #tpu.memory_space<vmem>>, vector<1x256xf32>
    %6 = vector.broadcast %5 : vector<1x256xf32> to vector<32x256xf32>
    %7 = arith.addf %4, %6 : vector<32x256xf32>
    %cst_6 = arith.constant 0.000000e+00 : f32
    %8 = vector.broadcast %cst_6 : f32 to vector<32x256xf32>
    %9 = arith.maximumf %7, %8 : vector<32x256xf32>
    %c0_7 = arith.constant 0 : index
    %c0_8 = arith.constant 0 : index
    %c0_9 = arith.constant 0 : index
    %10 = vector.load %arg4[%c0_7, %c0_8, %c0_9] : memref<1x32x256xf32, #tpu.memory_space<vmem>>, vector<1x32x256xf32>
    %11 = vector.shape_cast %10 : vector<1x32x256xf32> to vector<32x256xf32>
    %12 = vector.shape_cast %9 : vector<32x256xf32> to vector<1x32x256xf32>
    tpu.vector_store %arg4[%c0_7, %c0_8, %c0_9], %12 {strides = array<i32>} : memref<1x32x256xf32, #tpu.memory_space<vmem>>, vector<1x32x256xf32>,
    return
  }
  func.func @transform_0(%arg0: i32) -> (i32, i32, i32) {
    %c0_i32 = arith.constant 0 : i32
    %c0_i32_0 = arith.constant 0 : i32
    %c0_i32_1 = arith.constant 0 : i32
    return %arg0, %c0_i32, %c0_i32_0 : i32, i32, i32
  }
  func.func @transform_1(%arg0: i32) -> (i32, i32) {
    %c0_i32 = arith.constant 0 : i32
    %c0_i32_0 = arith.constant 0 : i32
    %c0_i32_1 = arith.constant 0 : i32
    return %c0_i32, %c0_i32_0 : i32, i32
  }
  func.func @transform_2(%arg0: i32) -> (i32, i32) {
    %c0_i32 = arith.constant 0 : i32
    %c0_i32_0 = arith.constant 0 : i32
    %c0_i32_1 = arith.constant 0 : i32
    return %c0_i32, %c0_i32_0 : i32, i32
  }
  func.func @transform_3(%arg0: i32) -> (i32, i32, i32) {
    %c0_i32 = arith.constant 0 : i32
    %c0_i32_0 = arith.constant 0 : i32
    %c0_i32_1 = arith.constant 0 : i32
    return %arg0, %c0_i32, %c0_i32_0 : i32, i32, i32
  }
}

module attributes {stable_mosaic.version = 11 : i64} {
  func.func @_linear_kernel(%arg0: i32, %arg1: memref<1x64x320xf32, #tpu.memory_space<vmem>>, %arg2: memref<320x128xbf16, #tpu.memory_space<vmem>>, %arg3: memref<1x128xf32, #tpu.memory_space<vmem>>, %arg4: memref<1x64x128xf32, #tpu.memory_space<vmem>>) attributes {dimension_semantics = [#tpu.dimension_semantics<parallel>], iteration_bounds = array<i64: 2>, scalar_prefetch = 0 : i64, scratch_operands = 0 : i64, tpu.core_type = #tpu.core_type<tc>, window_params = [{transform_indices = @transform_0, window_bounds = array<i64: 1, 64, 320>}, {pipeline_mode = #tpu.pipeline_mode<synchronous>, transform_indices = @transform_1, window_bounds = array<i64: 320, 128>}, {pipeline_mode = #tpu.pipeline_mode<synchronous>, transform_indices = @transform_2, window_bounds = array<i64: 1, 128>}, {transform_indices = @transform_3, window_bounds = array<i64: 1, 64, 128>}]} {
    %c0 = arith.constant 0 : index
    %c0_0 = arith.constant 0 : index
    %c0_1 = arith.constant 0 : index
    %0 = vector.load %arg1[%c0, %c0_0, %c0_1] : memref<1x64x320xf32, #tpu.memory_space<vmem>>, vector<1x64x320xf32>
    %1 = vector.shape_cast %0 : vector<1x64x320xf32> to vector<64x320xf32>
    %2 = arith.truncf %1 : vector<64x320xf32> to vector<64x320xbf16>
    %c0_2 = arith.constant 0 : index
    %c0_3 = arith.constant 0 : index
    %3 = vector.load %arg2[%c0_2, %c0_3] : memref<320x128xbf16, #tpu.memory_space<vmem>>, vector<320x128xbf16>
    %cst = arith.constant dense<0.000000e+00> : vector<64x128xf32>
    %4 = tpu.matmul %2, %3, %cst {dimension_numbers = #tpu.dot_dimension_numbers<[1], [0], [0], [1], [0, 0, 1, 1], [], []>} : vector<64x320xbf16>, vector<320x128xbf16>, vector<64x128xf32> -> vector<64x128xf32>
    %c0_4 = arith.constant 0 : index
    %c0_5 = arith.constant 0 : index
    %5 = vector.load %arg3[%c0_4, %c0_5] : memref<1x128xf32, #tpu.memory_space<vmem>>, vector<1x128xf32>
    %6 = vector.broadcast %5 : vector<1x128xf32> to vector<64x128xf32>
    %7 = arith.addf %4, %6 : vector<64x128xf32>
    %cst_6 = arith.constant 0.000000e+00 : f32
    %8 = vector.broadcast %cst_6 : f32 to vector<64x128xf32>
    %9 = arith.maximumf %7, %8 : vector<64x128xf32>
    %c0_7 = arith.constant 0 : index
    %c0_8 = arith.constant 0 : index
    %c0_9 = arith.constant 0 : index
    %10 = vector.load %arg4[%c0_7, %c0_8, %c0_9] : memref<1x64x128xf32, #tpu.memory_space<vmem>>, vector<1x64x128xf32>
    %11 = vector.shape_cast %10 : vector<1x64x128xf32> to vector<64x128xf32>
    %12 = vector.shape_cast %9 : vector<64x128xf32> to vector<1x64x128xf32>
    tpu.vector_store %arg4[%c0_7, %c0_8, %c0_9], %12 {strides = array<i32>} : memref<1x64x128xf32, #tpu.memory_space<vmem>>, vector<1x64x128xf32>,
    return
  }
  func.func @transform_0(%arg0: i32) -> (i32, i32, i32) {
    %c0_i32 = arith.constant 0 : i32
    %c0_i32_0 = arith.constant 0 : i32
    %c0_i32_1 = arith.constant 0 : i32
    return %arg0, %c0_i32, %c0_i32_0 : i32, i32, i32
  }
  func.func @transform_1(%arg0: i32) -> (i32, i32) {
    %c0_i32 = arith.constant 0 : i32
    %c0_i32_0 = arith.constant 0 : i32
    %c0_i32_1 = arith.constant 0 : i32
    return %c0_i32, %c0_i32_0 : i32, i32
  }
  func.func @transform_2(%arg0: i32) -> (i32, i32) {
    %c0_i32 = arith.constant 0 : i32
    %c0_i32_0 = arith.constant 0 : i32
    %c0_i32_1 = arith.constant 0 : i32
    return %c0_i32, %c0_i32_0 : i32, i32
  }
  func.func @transform_3(%arg0: i32) -> (i32, i32, i32) {
    %c0_i32 = arith.constant 0 : i32
    %c0_i32_0 = arith.constant 0 : i32
    %c0_i32_1 = arith.constant 0 : i32
    return %arg0, %c0_i32, %c0_i32_0 : i32, i32, i32
  }
}

module attributes {stable_mosaic.version = 11 : i64} {
  func.func @_cdist_kernel(%arg0: i32, %arg1: memref<1x128x3xf32, #tpu.memory_space<vmem>>, %arg2: memref<1x3x64xf32, #tpu.memory_space<vmem>>, %arg3: memref<1x128x1xf32, #tpu.memory_space<vmem>>, %arg4: memref<1x1x64xf32, #tpu.memory_space<vmem>>, %arg5: memref<1x128x64xf32, #tpu.memory_space<vmem>>) attributes {dimension_semantics = [#tpu.dimension_semantics<parallel>], iteration_bounds = array<i64: 2>, scalar_prefetch = 0 : i64, scratch_operands = 0 : i64, tpu.core_type = #tpu.core_type<tc>, window_params = [{transform_indices = @transform_0, window_bounds = array<i64: 1, 128, 3>}, {transform_indices = @transform_1, window_bounds = array<i64: 1, 3, 64>}, {transform_indices = @transform_2, window_bounds = array<i64: 1, 128, 1>}, {transform_indices = @transform_3, window_bounds = array<i64: 1, 1, 64>}, {transform_indices = @transform_4, window_bounds = array<i64: 1, 128, 64>}]} {
    %c0 = arith.constant 0 : index
    %c0_0 = arith.constant 0 : index
    %c0_1 = arith.constant 0 : index
    %0 = vector.load %arg1[%c0, %c0_0, %c0_1] : memref<1x128x3xf32, #tpu.memory_space<vmem>>, vector<1x128x3xf32>
    %1 = vector.shape_cast %0 : vector<1x128x3xf32> to vector<128x3xf32>
    %c0_2 = arith.constant 0 : index
    %c0_3 = arith.constant 0 : index
    %c0_4 = arith.constant 0 : index
    %2 = vector.load %arg2[%c0_2, %c0_3, %c0_4] : memref<1x3x64xf32, #tpu.memory_space<vmem>>, vector<1x3x64xf32>
    %3 = vector.shape_cast %2 : vector<1x3x64xf32> to vector<3x64xf32>
    %cst = arith.constant dense<0.000000e+00> : vector<128x64xf32>
    %4 = tpu.matmul %1, %3, %cst {dimension_numbers = #tpu.dot_dimension_numbers<[1], [0], [0], [1], [0, 0, 1, 1], [], []>} : vector<128x3xf32>, vector<3x64xf32>, vector<128x64xf32> -> vector<128x64xf32>
    %c0_5 = arith.constant 0 : index
    %c0_6 = arith.constant 0 : index
    %c0_7 = arith.constant 0 : index
    %5 = vector.load %arg3[%c0_5, %c0_6, %c0_7] : memref<1x128x1xf32, #tpu.memory_space<vmem>>, vector<1x128x1xf32>
    %6 = vector.shape_cast %5 : vector<1x128x1xf32> to vector<128x1xf32>
    %c0_8 = arith.constant 0 : index
    %c0_9 = arith.constant 0 : index
    %c0_10 = arith.constant 0 : index
    %7 = vector.load %arg4[%c0_8, %c0_9, %c0_10] : memref<1x1x64xf32, #tpu.memory_space<vmem>>, vector<1x1x64xf32>
    %8 = vector.shape_cast %7 : vector<1x1x64xf32> to vector<1x64xf32>
    %9 = vector.broadcast %6 : vector<128x1xf32> to vector<128x64xf32>
    %10 = vector.broadcast %8 : vector<1x64xf32> to vector<128x64xf32>
    %11 = arith.addf %9, %10 : vector<128x64xf32>
    %cst_11 = arith.constant 2.000000e+00 : f32
    %12 = vector.broadcast %cst_11 : f32 to vector<128x64xf32>
    %13 = arith.mulf %12, %4 : vector<128x64xf32>
    %14 = arith.subf %11, %13 : vector<128x64xf32>
    %c0_12 = arith.constant 0 : index
    %c0_13 = arith.constant 0 : index
    %c0_14 = arith.constant 0 : index
    %15 = vector.load %arg5[%c0_12, %c0_13, %c0_14] : memref<1x128x64xf32, #tpu.memory_space<vmem>>, vector<1x128x64xf32>
    %16 = vector.shape_cast %15 : vector<1x128x64xf32> to vector<128x64xf32>
    %17 = vector.shape_cast %14 : vector<128x64xf32> to vector<1x128x64xf32>
    tpu.vector_store %arg5[%c0_12, %c0_13, %c0_14], %17 {strides = array<i32>} : memref<1x128x64xf32, #tpu.memory_space<vmem>>, vector<1x128x64xf32>,
    return
  }
  func.func @transform_0(%arg0: i32) -> (i32, i32, i32) {
    %c0_i32 = arith.constant 0 : i32
    %c0_i32_0 = arith.constant 0 : i32
    %c0_i32_1 = arith.constant 0 : i32
    return %arg0, %c0_i32, %c0_i32_0 : i32, i32, i32
  }
  func.func @transform_1(%arg0: i32) -> (i32, i32, i32) {
    %c0_i32 = arith.constant 0 : i32
    %c0_i32_0 = arith.constant 0 : i32
    %c0_i32_1 = arith.constant 0 : i32
    return %arg0, %c0_i32, %c0_i32_0 : i32, i32, i32
  }
  func.func @transform_2(%arg0: i32) -> (i32, i32, i32) {
    %c0_i32 = arith.constant 0 : i32
    %c0_i32_0 = arith.constant 0 : i32
    %c0_i32_1 = arith.constant 0 : i32
    return %arg0, %c0_i32, %c0_i32_0 : i32, i32, i32
  }
  func.func @transform_3(%arg0: i32) -> (i32, i32, i32) {
    %c0_i32 = arith.constant 0 : i32
    %c0_i32_0 = arith.constant 0 : i32
    %c0_i32_1 = arith.constant 0 : i32
    return %arg0, %c0_i32, %c0_i32_0 : i32, i32, i32
  }
  func.func @transform_4(%arg0: i32) -> (i32, i32, i32) {
    %c0_i32 = arith.constant 0 : i32
    %c0_i32_0 = arith.constant 0 : i32
    %c0_i32_1 = arith.constant 0 : i32
    return %arg0, %c0_i32, %c0_i32_0 : i32, i32, i32
  }
}

module attributes {stable_mosaic.version = 11 : i64} {
  func.func @_linear_kernel(%arg0: i32, %arg1: memref<1x128x150xf32, #tpu.memory_space<vmem>>, %arg2: memref<150x128xbf16, #tpu.memory_space<vmem>>, %arg3: memref<1x128xf32, #tpu.memory_space<vmem>>, %arg4: memref<1x128x128xf32, #tpu.memory_space<vmem>>) attributes {dimension_semantics = [#tpu.dimension_semantics<parallel>], iteration_bounds = array<i64: 2>, scalar_prefetch = 0 : i64, scratch_operands = 0 : i64, tpu.core_type = #tpu.core_type<tc>, window_params = [{transform_indices = @transform_0, window_bounds = array<i64: 1, 128, 150>}, {pipeline_mode = #tpu.pipeline_mode<synchronous>, transform_indices = @transform_1, window_bounds = array<i64: 150, 128>}, {pipeline_mode = #tpu.pipeline_mode<synchronous>, transform_indices = @transform_2, window_bounds = array<i64: 1, 128>}, {transform_indices = @transform_3, window_bounds = array<i64: 1, 128, 128>}]} {
    %c0 = arith.constant 0 : index
    %c0_0 = arith.constant 0 : index
    %c0_1 = arith.constant 0 : index
    %0 = vector.load %arg1[%c0, %c0_0, %c0_1] : memref<1x128x150xf32, #tpu.memory_space<vmem>>, vector<1x128x150xf32>
    %1 = vector.shape_cast %0 : vector<1x128x150xf32> to vector<128x150xf32>
    %2 = arith.truncf %1 : vector<128x150xf32> to vector<128x150xbf16>
    %c0_2 = arith.constant 0 : index
    %c0_3 = arith.constant 0 : index
    %3 = vector.load %arg2[%c0_2, %c0_3] : memref<150x128xbf16, #tpu.memory_space<vmem>>, vector<150x128xbf16>
    %cst = arith.constant dense<0.000000e+00> : vector<128x128xf32>
    %4 = tpu.matmul %2, %3, %cst {dimension_numbers = #tpu.dot_dimension_numbers<[1], [0], [0], [1], [0, 0, 1, 1], [], []>} : vector<128x150xbf16>, vector<150x128xbf16>, vector<128x128xf32> -> vector<128x128xf32>
    %c0_4 = arith.constant 0 : index
    %c0_5 = arith.constant 0 : index
    %5 = vector.load %arg3[%c0_4, %c0_5] : memref<1x128xf32, #tpu.memory_space<vmem>>, vector<1x128xf32>
    %6 = vector.broadcast %5 : vector<1x128xf32> to vector<128x128xf32>
    %7 = arith.addf %4, %6 : vector<128x128xf32>
    %cst_6 = arith.constant 0.000000e+00 : f32
    %8 = vector.broadcast %cst_6 : f32 to vector<128x128xf32>
    %9 = arith.maximumf %7, %8 : vector<128x128xf32>
    %c0_7 = arith.constant 0 : index
    %c0_8 = arith.constant 0 : index
    %c0_9 = arith.constant 0 : index
    %10 = vector.load %arg4[%c0_7, %c0_8, %c0_9] : memref<1x128x128xf32, #tpu.memory_space<vmem>>, vector<1x128x128xf32>
    %11 = vector.shape_cast %10 : vector<1x128x128xf32> to vector<128x128xf32>
    %12 = vector.shape_cast %9 : vector<128x128xf32> to vector<1x128x128xf32>
    tpu.vector_store %arg4[%c0_7, %c0_8, %c0_9], %12 {strides = array<i32>} : memref<1x128x128xf32, #tpu.memory_space<vmem>>, vector<1x128x128xf32>,
    return
  }
  func.func @transform_0(%arg0: i32) -> (i32, i32, i32) {
    %c0_i32 = arith.constant 0 : i32
    %c0_i32_0 = arith.constant 0 : i32
    %c0_i32_1 = arith.constant 0 : i32
    return %arg0, %c0_i32, %c0_i32_0 : i32, i32, i32
  }
  func.func @transform_1(%arg0: i32) -> (i32, i32) {
    %c0_i32 = arith.constant 0 : i32
    %c0_i32_0 = arith.constant 0 : i32
    %c0_i32_1 = arith.constant 0 : i32
    return %c0_i32, %c0_i32_0 : i32, i32
  }
  func.func @transform_2(%arg0: i32) -> (i32, i32) {
    %c0_i32 = arith.constant 0 : i32
    %c0_i32_0 = arith.constant 0 : i32
    %c0_i32_1 = arith.constant 0 : i32
    return %c0_i32, %c0_i32_0 : i32, i32
  }
  func.func @transform_3(%arg0: i32) -> (i32, i32, i32) {
    %c0_i32 = arith.constant 0 : i32
    %c0_i32_0 = arith.constant 0 : i32
    %c0_i32_1 = arith.constant 0 : i32
    return %arg0, %c0_i32, %c0_i32_0 : i32, i32, i32
  }
}

module attributes {stable_mosaic.version = 11 : i64} {
  func.func @_linear_kernel(%arg0: i32, %arg1: memref<1x128x128xf32, #tpu.memory_space<vmem>>, %arg2: memref<128x50xbf16, #tpu.memory_space<vmem>>, %arg3: memref<1x50xf32, #tpu.memory_space<vmem>>, %arg4: memref<1x128x50xf32, #tpu.memory_space<vmem>>) attributes {dimension_semantics = [#tpu.dimension_semantics<parallel>], iteration_bounds = array<i64: 2>, scalar_prefetch = 0 : i64, scratch_operands = 0 : i64, tpu.core_type = #tpu.core_type<tc>, window_params = [{transform_indices = @transform_0, window_bounds = array<i64: 1, 128, 128>}, {pipeline_mode = #tpu.pipeline_mode<synchronous>, transform_indices = @transform_1, window_bounds = array<i64: 128, 50>}, {pipeline_mode = #tpu.pipeline_mode<synchronous>, transform_indices = @transform_2, window_bounds = array<i64: 1, 50>}, {transform_indices = @transform_3, window_bounds = array<i64: 1, 128, 50>}]} {
    %c0 = arith.constant 0 : index
    %c0_0 = arith.constant 0 : index
    %c0_1 = arith.constant 0 : index
    %0 = vector.load %arg1[%c0, %c0_0, %c0_1] : memref<1x128x128xf32, #tpu.memory_space<vmem>>, vector<1x128x128xf32>
    %1 = vector.shape_cast %0 : vector<1x128x128xf32> to vector<128x128xf32>
    %2 = arith.truncf %1 : vector<128x128xf32> to vector<128x128xbf16>
    %c0_2 = arith.constant 0 : index
    %c0_3 = arith.constant 0 : index
    %3 = vector.load %arg2[%c0_2, %c0_3] : memref<128x50xbf16, #tpu.memory_space<vmem>>, vector<128x50xbf16>
    %cst = arith.constant dense<0.000000e+00> : vector<128x50xf32>
    %4 = tpu.matmul %2, %3, %cst {dimension_numbers = #tpu.dot_dimension_numbers<[1], [0], [0], [1], [0, 0, 1, 1], [], []>} : vector<128x128xbf16>, vector<128x50xbf16>, vector<128x50xf32> -> vector<128x50xf32>
    %c0_4 = arith.constant 0 : index
    %c0_5 = arith.constant 0 : index
    %5 = vector.load %arg3[%c0_4, %c0_5] : memref<1x50xf32, #tpu.memory_space<vmem>>, vector<1x50xf32>
    %6 = vector.broadcast %5 : vector<1x50xf32> to vector<128x50xf32>
    %7 = arith.addf %4, %6 : vector<128x50xf32>
    %c0_6 = arith.constant 0 : index
    %c0_7 = arith.constant 0 : index
    %c0_8 = arith.constant 0 : index
    %8 = vector.load %arg4[%c0_6, %c0_7, %c0_8] : memref<1x128x50xf32, #tpu.memory_space<vmem>>, vector<1x128x50xf32>
    %9 = vector.shape_cast %8 : vector<1x128x50xf32> to vector<128x50xf32>
    %10 = vector.shape_cast %7 : vector<128x50xf32> to vector<1x128x50xf32>
    tpu.vector_store %arg4[%c0_6, %c0_7, %c0_8], %10 {strides = array<i32>} : memref<1x128x50xf32, #tpu.memory_space<vmem>>, vector<1x128x50xf32>,
    return
  }
  func.func @transform_0(%arg0: i32) -> (i32, i32, i32) {
    %c0_i32 = arith.constant 0 : i32
    %c0_i32_0 = arith.constant 0 : i32
    %c0_i32_1 = arith.constant 0 : i32
    return %arg0, %c0_i32, %c0_i32_0 : i32, i32, i32
  }
  func.func @transform_1(%arg0: i32) -> (i32, i32) {
    %c0_i32 = arith.constant 0 : i32
    %c0_i32_0 = arith.constant 0 : i32
    %c0_i32_1 = arith.constant 0 : i32
    return %c0_i32, %c0_i32_0 : i32, i32
  }
  func.func @transform_2(%arg0: i32) -> (i32, i32) {
    %c0_i32 = arith.constant 0 : i32
    %c0_i32_0 = arith.constant 0 : i32
    %c0_i32_1 = arith.constant 0 : i32
    return %c0_i32, %c0_i32_0 : i32, i32
  }
  func.func @transform_3(%arg0: i32) -> (i32, i32, i32) {
    %c0_i32 = arith.constant 0 : i32
    %c0_i32_0 = arith.constant 0 : i32
    %c0_i32_1 = arith.constant 0 : i32
    return %arg0, %c0_i32, %c0_i32_0 : i32, i32, i32
  }
}

</mosaic_0001>

<bundles_post_ra>
// kernel: neg.12
= control target key start
LH: loop header
LB: loop body
LE: loop exit
PB: predicated region body
PF: predicated region fallthrough
CT: control target
= control target key end

     0   :  { %s264_s0 = inlined_call_operand.vmem [shape: f32[2,64,128], index: 0, kind: input, shape index: {}]   ;;  %s265_s1 = inlined_call_operand.vmem [shape: f32[2,64,128], index: 1, kind: output, shape index: {}]  }
   0x1   :  { %v2_v0 = vld [vmem:[%s264_s0] sm:$0xff]  ;;  %v130_v2 = vld [vmem:[%s264_s0 + $0x8] sm:$0xff]  ;;  %v134_v7 = vld [vmem:[%s264_s0 + $0x10] sm:$0xff] }
   0x2   :  { %v128_v1 = vld [vmem:[%s264_s0 + $0x40] sm:$0xff]  ;;  %v5_v3 = vxor.u32 2147483648, %v2_v0  ;;  %v20_v5 = vxor.u32 2147483648, %v130_v2  ;;  %v132_v6 = vld [vmem:[%s264_s0 + $0x48] sm:$0xff]  ;;  %v136_v8 = vld [vmem:[%s264_s0 + $0x50] sm:$0xff]  ;;  %v36_v10 = vxor.u32 2147483648, %v134_v7 }
   0x3   :  { %v12_v4 = vxor.u32 2147483648, %v128_v1  ;;  %v28_v9 = vxor.u32 2147483648, %v132_v6  ;;  %v44_v11 = vxor.u32 2147483648, %v136_v8  ;;  %v138_v12 = vld [vmem:[%s264_s0 + $0x18] sm:$0xff]  ;;  %v142_v14 = vld [vmem:[%s264_s0 + $0x20] sm:$0xff]  ;;  %v146_v19 = vld [vmem:[%s264_s0 + $0x28] sm:$0xff] }
   0x4   :  { %v140_v13 = vld [vmem:[%s264_s0 + $0x58] sm:$0xff]  ;;  %7 = vst [vmem:[%s265_s1] sm:$0xff] %v5_v3  ;;  %131 = vst [vmem:[%s265_s1 + $0x8] sm:$0xff] %v20_v5  ;;  %v52_v15 = vxor.u32 2147483648, %v138_v12  ;;  %v68_v17 = vxor.u32 2147483648, %v142_v14  ;;  %v144_v18 = vld [vmem:[%s264_s0 + $0x60] sm:$0xff]  ;;  %v84_v22 = vxor.u32 2147483648, %v146_v19 }
   0x5   :  { %129 = vst [vmem:[%s265_s1 + $0x40] sm:$0xff] %v12_v4  ;;  %v60_v16 = vxor.u32 2147483648, %v140_v13  ;;  %v148_v20 = vld [vmem:[%s264_s0 + $0x68] sm:$0xff]  ;;  %133 = vst [vmem:[%s265_s1 + $0x48] sm:$0xff] %v28_v9  ;;  %v76_v21 = vxor.u32 2147483648, %v144_v18  ;;  %v150_v24 = vld [vmem:[%s264_s0 + $0x30] sm:$0xff] }
   0x6   :  { %135 = vst [vmem:[%s265_s1 + $0x10] sm:$0xff] %v36_v10  ;;  %137 = vst [vmem:[%s265_s1 + $0x50] sm:$0xff] %v44_v11  ;;  %v92_v23 = vxor.u32 2147483648, %v148_v20  ;;  %v152_v25 = vld [vmem:[%s264_s0 + $0x70] sm:$0xff]  ;;  %v154_v26 = vld [vmem:[%s264_s0 + $0x38] sm:$0xff]  ;;  %v100_v27 = vxor.u32 2147483648, %v150_v24 }
   0x7   :  { %139 = vst [vmem:[%s265_s1 + $0x18] sm:$0xff] %v52_v15  ;;  %141 = vst [vmem:[%s265_s1 + $0x58] sm:$0xff] %v60_v16  ;;  %v108_v28 = vxor.u32 2147483648, %v152_v25  ;;  %v116_v29 = vxor.u32 2147483648, %v154_v26  ;;  %v156_v30 = vld [vmem:[%s264_s0 + $0x78] sm:$0xff] }
   0x8   :  { %143 = vst [vmem:[%s265_s1 + $0x20] sm:$0xff] %v68_v17  ;;  %145 = vst [vmem:[%s265_s1 + $0x60] sm:$0xff] %v76_v21  ;;  %v124_v31 = vxor.u32 2147483648, %v156_v30 }
   0x9   :  { %147 = vst [vmem:[%s265_s1 + $0x28] sm:$0xff] %v84_v22  ;;  %149 = vst [vmem:[%s265_s1 + $0x68] sm:$0xff] %v92_v23 }
   0xa   :  { %151 = vst [vmem:[%s265_s1 + $0x30] sm:$0xff] %v100_v27  ;;  %153 = vst [vmem:[%s265_s1 + $0x70] sm:$0xff] %v108_v28 }
   0xb   :  { %155 = vst [vmem:[%s265_s1 + $0x38] sm:$0xff] %v116_v29  ;;  %157 = vst [vmem:[%s265_s1 + $0x78] sm:$0xff] %v124_v31 }

// kernel: ridbnet_seg_forward.21
= control target key start
LH: loop header
LB: loop body
LE: loop exit
PB: predicated region body
PF: predicated region fallthrough
CT: control target
= control target key end

     0   :  { %s322_s6 = smov 0   ;;  %s357_s0 = inlined_call_operand.vmem [shape: f32[2,3,128], index: 0, kind: input, shape index: {}]   ;;  %s358_s1 = inlined_call_operand.vmem [shape: s32[2,1,64], index: 1, kind: output, shape index: {}]  }
   0x1 LB: > { %s224_s7 = sadd.s32 4294967295, %s294_s6   ;;  %p228_p0 = scmp.ge.s32.totalorder %s294_s6, 1  ;;  %s294_s6 = sphi %s322_s6, %s11_s6  }
   0x2   : > { %p86_p1 = scmp.lt.s32.totalorder %s294_s6, 3 }
   0x4   : > { %p87_p2 = pnand %p228_p0, %p86_p1 }
   0x5   : > { %p103_p3 = scmp.lt.s32.totalorder (!%p87_p2), %s224_s7, 1  ;;  %v111_v0 = vlaneseq (!%p87_p2)  ;;  %v296_v3 = vmov (!%p87_p2), 0   ;;  %v300_v4 = vmov (!%p87_p2), 0   ;;  %v304_v5 = vmov (!%p87_p2), 1e+10   ;;  %s340_s15 = smov (!%p87_p2), 0  }
   0x6   : > { %90 = sbr.rel (%p87_p2) target bundleno = 618 (0x26a), region = 24 }
   0x7   : > { %v112_v1 = vand.u32 (!%p87_p2), 127, %v111_v0 }
   0xd   : > { %s360_s7 = smov (!%p103_p3, %s224_s7), 1 }
   0xe   : > { %s229_s8 = sshll.u32 %s360_s7, 2  ;;  %s109_s11 = scalar_lea.vmem %s358_s1, %s360_s7 }
   0xf   : > { %s106_s14 = scalar_lea.vmem %s357_s0, %s229_s8 }
  0x10   : > { %v110_v2 = vld [vmem:[%s106_s14] sm:$0x7] }
  0x11 LB: >> { %vm129_vm0 = vcmask 1042432   ;;  %v122_v6 = vstv %s310_s15  ;;  %vm125_vm1 = vcmp.eq.s32.totalorder %v112_v1, %v302_v4  ;;  %s118_s15 = sadd.s32 1, %s310_s15   ;;  %s310_s15 = sphi %s340_s15, %s118_s15   ;;  %v306_v5 = vphi %v304_v5, %v142_v5   ;;  %v302_v4 = vphi %v300_v4, %v160_v4   ;;  %v298_v3 = vphi %v296_v3, %v297_v3  }
  0x12   : >> { %vm123_vm2 = vcmp.eq.s32.totalorder %v112_v1, %v122_v6  ;;  %v128_v7 = vsel %vm125_vm1, %v110_v2, 0.0  ;;  %p115_p4 = scmp.ge.s32.totalorder %s118_s15, 64  }
  0x13   : >> { %v130_v8 = vsel %vm129_vm0, %v128_v7, 0.0  ;;  %v124_v9 = vsel %vm123_vm2, %v302_v4, %v298_v3   ;;  %vm161_vm5 = vcmask (%p115_p4), 516096  }
  0x14   : >> { %131 = vadd.xlane.f32.xlu0 %v130_v8  ;;  %v297_v3 = vmov %v124_v9   ;;  %162 = vst.msk [vmem:[%s109_s11] sm:$0x1] (%p115_p4), %vm161_vm5, %v124_v9 }
  0xa1   : >> { %v132_v10 = vpop.xlane.xlu0 %131 }
  0xa2   : >> { %v133_v11 = vsub.f32 %v110_v2, %v132_v10 }
  0xa4   : >> { %v134_v12 = vmul.f32 %v133_v11, %v133_v11 }
  0xa6   : >> { %v135_v13 = vsel %vm129_vm0, %v134_v12, 0.0 }
  0xa7   : >> { %v136_v14 = vrot.slane %v135_v13, 4 }
  0xa9   : >> { %v137_v15 = vadd.f32 %v136_v14, %v135_v13 }
  0xab   : >> { %v138_v16 = vrot.slane %v137_v15, 2 }
  0xad   : >> { %v139_v17 = vadd.f32 %v138_v16, %v137_v15 }
  0xaf   : >> { %v140_v18 = vrot.slane %v139_v17, 1 }
  0xb1   : >> { %v141_v19 = vadd.f32 %v140_v18, %v139_v17 }
  0xb3   : >> { %v142_v5 = vmin.f32 %v306_v5, %v141_v19  }
  0xb5   : >> { %143 = vmax.xlane.f32.xlu0 %v142_v5 }
 0x142   : >> { %v144_v20 = vpop.xlane.xlu0 %143 }
 0x143   : >> { %vm145_vm3 = vcmp.ge.f32.partialorder %v142_v5, %v144_v20 }
 0x144   : >> { %v146_v21 = vsel %vm145_vm3, %v112_v1, 128 }
 0x145   : >> { %v148_v22 = vshra.s32 %v146_v21, 16  ;;  %v147_v24 = vand.u32 65535, %v146_v21 }
 0x147   : >> { %v150_v23 = vcvt.s32.f32 %v148_v22  ;;  %v149_v25 = vcvt.s32.f32 %v147_v24 }
 0x149   : >> { %151 = vmin.xlane.f32.xlu1 %v150_v23 }
 0x1d6   : >> { %v152_v26 = vpop.xlane.xlu1 %151 }
 0x1d7   : >> { %vm153_vm4 = vcmp.eq.f32.partialorder %v150_v23, %v152_v26  ;;  %v158_v28 = vcvt.f32.s32 %v152_v26 }
 0x1d8   : >> { %v154_v27 = vsel %vm153_vm4, %v149_v25, inf }
 0x1d9   : >> { %155 = vmin.xlane.f32.xlu1 %v154_v27  ;;  %v159_v30 = vshll.u32 %v158_v28, 16 }
 0x263   : > { %117 = sbr.rel (!%p115_p4) target bundleno = 17 (0x11), region = 61 }
 0x266   : >> { %v156_v29 = vpop.xlane.xlu1 %155 }
 0x267   : >> { %v157_v31 = vcvt.f32.s32 %v156_v29 }
 0x269   : >> { %v160_v4 = vadd.s32 %v159_v30, %v157_v31  }
 0x26a PF: > { %s11_s6 = sadd.s32 1, %s294_s6  }
 0x26b   : > { %p8_p5 = scmp.ge.s32.totalorder %s11_s6, 4  }
 0x26d   :  { %10 = sbr.rel (!%p8_p5) target bundleno = 1 (0x1), region = 72 }

// kernel: ridbnet_seg_forward.22
= control target key start
LH: loop header
LB: loop body
LE: loop exit
PB: predicated region body
PF: predicated region fallthrough
CT: control target
= control target key end

     0   :  { %s664_s15 = smov 0   ;;  %s728_s0 = inlined_call_operand.vmem [shape: f32[2,64,3], index: 0, kind: input, shape index: {}]   ;;  %s729_s1 = inlined_call_operand.vmem [shape: f32[2,3,128], index: 1, kind: input, shape index: {}]   ;;  %s730_s2 = inlined_call_operand.vmem [shape: f32[2,64,1], index: 2, kind: input, shape index: {}]   ;;  %s731_s3 = inlined_call_operand.vmem [shape: f32[2,1,128], index: 3, kind: input, shape index: {}]   ;;  %s732_s4 = inlined_call_operand.vmem [shape: f32[2,64,128], index: 4, kind: output, shape index: {}]  }
   0x1 LB: > { %s567_s16 = sadd.s32 4294967295, %s636_s15   ;;  %p571_p0 = scmp.ge.s32.totalorder %s636_s15, 1  ;;  %s636_s15 = sphi %s664_s15, %s14_s15  }
   0x2   : > { %p189_p1 = scmp.lt.s32.totalorder %s636_s15, 3 }
   0x4   : > { %p190_p2 = pnand %p571_p0, %p189_p1 }
   0x5   : > { %p227_p3 = scmp.lt.s32.totalorder (!%p190_p2), %s567_s16, 1  ;;  %v638_v0 = vmov (!%p190_p2), 0   ;;  %vm283_vm0 = vcmask (!%p190_p2), 1042432   ;;  %vm258_vm1 = vcmask (!%p190_p2), 23552  }
   0x6   : > { %193 = sbr.rel (%p190_p2) target bundleno = 242 (0xf2), region = 36  ;;  %629 = vset.pattern.permute.xlu1 (!%p190_p2), %v638_v0  ;;  %628 = vset.pattern.permute.xlu0 (!%p190_p2), %v638_v0 }
   0xd   : > { %s734_s16 = smov (!%p227_p3, %s567_s16), 1 }
   0xe   : > { %s675_s17 = sshll.u32 %s734_s16, 6  ;;  %s574_s18 = sshll.u32 %s734_s16, 2 }
   0xf   : > { %s231_s21 = scalar_lea.vmem %s728_s0, %s675_s17  ;;  %s235_s24 = scalar_lea.vmem %s729_s1, %s574_s18 }
  0x10   : > { %s689_s27 = scalar_lea.vmem %s730_s2, %s675_s17  ;;  %v257_v1 = vld [vmem:[%s235_s24] sm:$0x7]  ;;  %v250_v4 = vld [vmem:[%s231_s21 + $0x8] sm:$0xff]  ;;  %v251_v6 = vld [vmem:[%s231_s21 + $0x10] sm:$0xff]  ;;  %s243_s30 = scalar_lea.vmem %s731_s3, %s734_s16 }
  0x11   : > { %v249_v2 = vld [vmem:[%s231_s21] sm:$0xff]  ;;  %603 = vmatprep.subr.msk.mxu0 %vm283_vm0, %v257_v1  ;;  %617 = vmatprep.subr.msk.mxu1 %vm283_vm0, %v257_v1  ;;  %v254_v5 = vld [vmem:[%s231_s21 + $0x28] sm:$0xff]  ;;  %v255_v7 = vld [vmem:[%s231_s21 + $0x30] sm:$0xff]  ;;  %s715_s7 = scalar_lea.vmem %s732_s4, %s675_s17 }
  0x12   : > { %v253_v3 = vld [vmem:[%s231_s21 + $0x20] sm:$0xff]  ;;  %604 = vmatpush3.msk.msra.mxu0 %vm283_vm0, %v257_v1  ;;  %618 = vmatpush3.msk.msra.mxu1 %vm283_vm0, %v257_v1  ;;  %v394_v8 = vld [vmem:[%s689_s27 + $0x10] sm:$0xff]  ;;  %v252_v10 = vld [vmem:[%s231_s21 + $0x18] sm:$0xff] }
  0x13   : > { %605 = vmatprep.mubr.msk.f32.mxu0 %vm258_vm1, %v249_v2  ;;  %611 = vmatprep.mubr.msk.f32.mxu1 %vm258_vm1, %v253_v3  ;;  %v392_v9 = vld [vmem:[%s689_s27] sm:$0xff]  ;;  %v256_v11 = vld [vmem:[%s231_s21 + $0x38] sm:$0xff]  ;;  %v393_v13 = vld [vmem:[%s689_s27 + $0x8] sm:$0xff] }
  0x14   : > { %606 = vmatmul.mubr.msk.f32.vlgmr.msra.gmra.mrb[0].mxu0 %vm258_vm1, %v250_v4  ;;  %612 = vmatmul.mubr.msk.f32.vlgmr.msra.gmra.mrb[0].mxu1 %vm258_vm1, %v254_v5  ;;  %v395_v12 = vld [vmem:[%s689_s27 + $0x18] sm:$0xff]  ;;  %v397_v14 = vld [vmem:[%s689_s27 + $0x28] sm:$0xff]  ;;  %v396_v15 = vld [vmem:[%s689_s27 + $0x20] sm:$0xff] }
  0x15   : > { %608 = vmatprep.mubr.msk.f32.mxu0 %vm258_vm1, %v251_v6  ;;  %614 = vmatprep.mubr.msk.f32.mxu1 %vm258_vm1, %v255_v7  ;;  %v399_v16 = vld [vmem:[%s689_s27 + $0x38] sm:$0xff]  ;;  %v398_v17 = vld [vmem:[%s689_s27 + $0x30] sm:$0xff]  ;;  %v588_v24 = vld [vmem:[%s243_s30] ss:$0 sm:$0xff] }
  0x16   : > { %413 = vperm.xlu1 %629, %v394_v8   ;;  %403 = vperm.xlu0 %628, %v392_v9  }
  0x18   : > { %609 = vmatmul.mubr.msk.f32.gmra.mrb[2].mxu0 %vm258_vm1, %v252_v10  ;;  %615 = vmatmul.mubr.msk.f32.gmra.mrb[2].mxu1 %vm258_vm1, %v256_v11 }
  0x1a   : > { %418 = vperm.xlu1 %629, %v395_v12   ;;  %408 = vperm.xlu0 %628, %v393_v13  }
  0x1e   : > { %428 = vperm.xlu1 %629, %v397_v14   ;;  %423 = vperm.xlu0 %628, %v396_v15  }
  0x22   : > { %438 = vperm.xlu1 %629, %v399_v16   ;;  %433 = vperm.xlu0 %628, %v398_v17  }
  0x95   : > { %v414_v18 = vpop.permute.xlu1 %413  ;;  %v404_v19 = vpop.permute.xlu0 %403 }
  0x96   : > { %v447_v33 = vadd.f32 %v588_v24, %v404_v19  ;;  %v449_v51 = vadd.f32 %v588_v24, %v414_v18 }
  0x99   : > { %v419_v20 = vpop.permute.xlu1 %418  ;;  %v409_v21 = vpop.permute.xlu0 %408 }
  0x9a   : > { %v448_v27 = vadd.f32 %v588_v24, %v409_v21  ;;  %v450_v45 = vadd.f32 %v588_v24, %v419_v20 }
  0x9d   : > { %v429_v22 = vpop.permute.xlu1 %428  ;;  %v424_v23 = vpop.permute.xlu0 %423 }
  0x9e   : > { %v452_v28 = vadd.f32 %v588_v24, %v429_v22  ;;  %v451_v34 = vadd.f32 %v588_v24, %v424_v23 }
  0xa1   : > { %v439_v35 = vpop.permute.xlu1 %438  ;;  %v434_v38 = vpop.permute.xlu0 %433 }
  0xa2   : > { %v454_v46 = vadd.f32 %v588_v24, %v439_v35  ;;  %v453_v52 = vadd.f32 %v588_v24, %v434_v38 }
  0xe7   : > { %v607_v25 = vpop.f32.mrb[0].mxu0  ;;  %v613_v26 = vpop.f32.mrb[0].mxu1 }
  0xe8   : > { %v456_v29 = vmul.f32 2.0, %v607_v25  ;;  %v460_v30 = vmul.f32 2.0, %v613_v26  ;;  %v353_v31 = vpop.f32.mrb[1].mxu0  ;;  %v373_v32 = vpop.f32.mrb[1].mxu1 }
  0xe9   : > { %v455_v36 = vmul.f32 2.0, %v353_v31  ;;  %v459_v37 = vmul.f32 2.0, %v373_v32 }
  0xea   : > { %v464_v39 = vsub.f32 %v448_v27, %v456_v29  ;;  %v468_v40 = vsub.f32 %v452_v28, %v460_v30 }
  0xeb   : > { %v463_v41 = vsub.f32 %v447_v33, %v455_v36  ;;  %v467_v42 = vsub.f32 %v451_v34, %v459_v37  ;;  %v610_v43 = vpop.f32.mrb[2].mxu0  ;;  %v616_v44 = vpop.f32.mrb[2].mxu1 }
  0xec   : > { %472 = vst [vmem:[%s715_s7 + $0x8] sm:$0xff] %v464_v39  ;;  %476 = vst [vmem:[%s715_s7 + $0x28] sm:$0xff] %v468_v40  ;;  %v458_v47 = vmul.f32 2.0, %v610_v43  ;;  %v462_v48 = vmul.f32 2.0, %v616_v44  ;;  %v363_v49 = vpop.f32.mrb[3].mxu0  ;;  %v383_v50 = vpop.f32.mrb[3].mxu1 }
  0xed   : > { %471 = vst [vmem:[%s715_s7] sm:$0xff] %v463_v41  ;;  %475 = vst [vmem:[%s715_s7 + $0x20] sm:$0xff] %v467_v42  ;;  %v457_v53 = vmul.f32 2.0, %v363_v49  ;;  %v461_v54 = vmul.f32 2.0, %v383_v50 }
  0xee   : > { %v466_v55 = vsub.f32 %v450_v45, %v458_v47  ;;  %v470_v56 = vsub.f32 %v454_v46, %v462_v48 }
  0xef   : > { %v465_v57 = vsub.f32 %v449_v51, %v457_v53  ;;  %v469_v58 = vsub.f32 %v453_v52, %v461_v54 }
  0xf0   : > { %474 = vst [vmem:[%s715_s7 + $0x18] sm:$0xff] %v466_v55  ;;  %478 = vst [vmem:[%s715_s7 + $0x38] sm:$0xff] %v470_v56 }
  0xf1   : > { %473 = vst [vmem:[%s715_s7 + $0x10] sm:$0xff] %v465_v57  ;;  %477 = vst [vmem:[%s715_s7 + $0x30] sm:$0xff] %v469_v58 }
  0xf2 PF: > { %s14_s15 = sadd.s32 1, %s636_s15  }
  0xf3   : > { %p11_p4 = scmp.ge.s32.totalorder %s14_s15, 4  }
  0xf5   :  { %13 = sbr.rel (!%p11_p4) target bundleno = 1 (0x1), region = 75 }

// kernel: ridbnet_seg_forward.23
= control target key start
LH: loop header
LB: loop body
LE: loop exit
PB: predicated region body
PF: predicated region fallthrough
CT: control target
= control target key end

     0   :  { %s1035_s12 = smov 0   ;;  %s1434_s0 = inlined_call_operand.vmem [shape: f32[2,512,6], index: 0, kind: input, shape index: {}]   ;;  %s1435_s1 = inlined_call_operand.vmem [shape: bf16[6,64], index: 1, kind: input, shape index: {}]   ;;  %s1436_s2 = inlined_call_operand.vmem [shape: f32[1,64], index: 2, kind: input, shape index: {}]   ;;  %s1437_s3 = inlined_call_operand.vmem [shape: f32[2,64,64], index: 3, kind: output, shape index: {}]  }
   0x1 LB: > { %s850_s13 = sadd.s32 4294967295, %s1013_s12   ;;  %p854_p0 = scmp.ge.s32.totalorder %s1013_s12, 1  ;;  %s1013_s12 = sphi %s1035_s12, %s13_s12  }
   0x2   : > { %p137_p1 = scmp.lt.s32.totalorder %s1013_s12, 3 }
   0x4   : > { %p138_p2 = pnand %p854_p0, %p137_p1 }
   0x5   : > { %v268_v0 = vld [vmem:[%s1435_s1] sm:$0x7] (!%p138_p2)  ;;  %vm373_vm0 = vcmask (!%p138_p2), 1042432   ;;  %p161_p3 = scmp.lt.s32.totalorder (!%p138_p2), %s850_s13, 1  ;;  %vm276_vm1 = vcmask (!%p138_p2), 48128   ;;  %vm786_vm2 = vcmask (!%p138_p2), 523264  }
   0x6   : > { %141 = sbr.rel (%p138_p2) target bundleno = 307 (0x133), region = 32  ;;  %997 = vmatprep.subr.msk.bf16.mxu0 (!%p138_p2), %vm373_vm0, %v268_v0  ;;  %v375_v1 = vsel (!%p138_p2), %vm373_vm0, %v268_v0, 0  ;;  %998 = vmatprep.subr.msk.bf16.mxu1 (!%p138_p2), %vm373_vm0, %v268_v0 }
   0x7   : > { %930 = vmatpush3.bf16.msra.mxu0 (!%p138_p2), %v375_v1  ;;  %996 = vmatpush3.bf16.msra.mxu1 (!%p138_p2), %v375_v1 }
   0xd   : > { %s1442_s13 = smov (!%p161_p3, %s850_s13), 1 }
   0xe   : > { %s894_s16 = sshll.u32 %s1442_s13, 9  ;;  %s895_s22 = sshll.u32 %s1442_s13, 6 }
   0xf   : > { %s1052_s19 = scalar_lea.vmem %s1434_s0, %s894_s16  ;;  %s1380_s25 = scalar_lea.vmem %s1437_s3, %s895_s22 }
  0x10   : > { %v172_v2 = vld [vmem:[%s1052_s19] sm:$0xff]  ;;  %v173_v3 = vld [vmem:[%s1052_s19 + $0x8] sm:$0xff]  ;;  %v174_v4 = vld [vmem:[%s1052_s19 + $0x10] sm:$0xff] }
  0x11   : > { %v236_v5 = vpack.c.bf16 %v173_v3, %v172_v2  ;;  %v175_v6 = vld [vmem:[%s1052_s19 + $0x18] sm:$0xff]  ;;  %v204_v7 = vld [vmem:[%s1052_s19 + $0x100] sm:$0xff]  ;;  %v205_v8 = vld [vmem:[%s1052_s19 + $0x108] sm:$0xff] }
  0x12   : > { %v237_v9 = vpack.c.bf16 %v175_v6, %v174_v4  ;;  %v252_v10 = vpack.c.bf16 %v205_v8, %v204_v7  ;;  %v206_v11 = vld [vmem:[%s1052_s19 + $0x110] sm:$0xff]  ;;  %v207_v12 = vld [vmem:[%s1052_s19 + $0x118] sm:$0xff]  ;;  %v176_v13 = vld [vmem:[%s1052_s19 + $0x20] sm:$0xff] }
  0x13   : > { %931 = vmatprep.mubr.msk.bf16.mxu0 %vm276_vm1, %v236_v5  ;;  %v253_v14 = vpack.c.bf16 %v207_v12, %v206_v11  ;;  %v177_v15 = vld [vmem:[%s1052_s19 + $0x28] sm:$0xff]  ;;  %v208_v17 = vld [vmem:[%s1052_s19 + $0x120] sm:$0xff]  ;;  %v178_v19 = vld [vmem:[%s1052_s19 + $0x30] sm:$0xff] }
  0x14   : > { %932 = vmatmul.mubr.msk.bf16.vlgmr.msra.gmra.mrb[0].mxu0 %vm276_vm1, %v237_v9  ;;  %963 = vmatprep.mubr.msk.bf16.mxu1 %vm276_vm1, %v252_v10  ;;  %v238_v16 = vpack.c.bf16 %v177_v15, %v176_v13  ;;  %v209_v18 = vld [vmem:[%s1052_s19 + $0x128] sm:$0xff]  ;;  %v179_v20 = vld [vmem:[%s1052_s19 + $0x38] sm:$0xff]  ;;  %v210_v22 = vld [vmem:[%s1052_s19 + $0x130] sm:$0xff] }
  0x15   : > { %964 = vmatmul.mubr.msk.bf16.vlgmr.msra.gmra.mrb[0].mxu1 %vm276_vm1, %v253_v14  ;;  %v254_v21 = vpack.c.bf16 %v209_v18, %v208_v17  ;;  %v211_v23 = vld [vmem:[%s1052_s19 + $0x138] sm:$0xff]  ;;  %v180_v24 = vld [vmem:[%s1052_s19 + $0x40] sm:$0xff]  ;;  %v181_v25 = vld [vmem:[%s1052_s19 + $0x48] sm:$0xff]  ;;  %v239_v28 = vpack.c.bf16 %v179_v20, %v178_v19 }
  0x16   : > { %935 = vmatprep.mubr.msk.bf16.mxu0 %vm276_vm1, %v238_v16  ;;  %v212_v26 = vld [vmem:[%s1052_s19 + $0x140] sm:$0xff]  ;;  %v213_v27 = vld [vmem:[%s1052_s19 + $0x148] sm:$0xff]  ;;  %v255_v29 = vpack.c.bf16 %v211_v23, %v210_v22  ;;  %v240_v30 = vpack.c.bf16 %v181_v25, %v180_v24  ;;  %v182_v32 = vld [vmem:[%s1052_s19 + $0x50] sm:$0xff] }
  0x17   : > { %967 = vmatprep.mubr.msk.bf16.mxu1 %vm276_vm1, %v254_v21  ;;  %v256_v31 = vpack.c.bf16 %v213_v27, %v212_v26  ;;  %v183_v33 = vld [vmem:[%s1052_s19 + $0x58] sm:$0xff]  ;;  %v214_v34 = vld [vmem:[%s1052_s19 + $0x150] sm:$0xff]  ;;  %v184_v36 = vld [vmem:[%s1052_s19 + $0x60] sm:$0xff] }
  0x18   : > { %v215_v35 = vld [vmem:[%s1052_s19 + $0x158] sm:$0xff]  ;;  %v185_v37 = vld [vmem:[%s1052_s19 + $0x68] sm:$0xff]  ;;  %v216_v38 = vld [vmem:[%s1052_s19 + $0x160] sm:$0xff]  ;;  %v241_v40 = vpack.c.bf16 %v183_v33, %v182_v32 }
  0x19   : > { %v217_v39 = vld [vmem:[%s1052_s19 + $0x168] sm:$0xff]  ;;  %v257_v41 = vpack.c.bf16 %v215_v35, %v214_v34  ;;  %v242_v42 = vpack.c.bf16 %v185_v37, %v184_v36  ;;  %v186_v44 = vld [vmem:[%s1052_s19 + $0x70] sm:$0xff]  ;;  %v187_v45 = vld [vmem:[%s1052_s19 + $0x78] sm:$0xff] }
  0x1a   : > { %v258_v43 = vpack.c.bf16 %v217_v39, %v216_v38  ;;  %v218_v46 = vld [vmem:[%s1052_s19 + $0x170] sm:$0xff]  ;;  %v219_v47 = vld [vmem:[%s1052_s19 + $0x178] sm:$0xff]  ;;  %v188_v48 = vld [vmem:[%s1052_s19 + $0x80] sm:$0xff]  ;;  %v243_v52 = vpack.c.bf16 %v187_v45, %v186_v44 }
  0x1b   : > { %v189_v49 = vld [vmem:[%s1052_s19 + $0x88] sm:$0xff]  ;;  %v220_v50 = vld [vmem:[%s1052_s19 + $0x180] sm:$0xff]  ;;  %v259_v53 = vpack.c.bf16 %v219_v47, %v218_v46  ;;  %v190_v56 = vld [vmem:[%s1052_s19 + $0x90] sm:$0xff] }
  0x1c   : > { %936 = vmatmul.mubr.msk.bf16.gmra.mrb[4].mxu0 %vm276_vm1, %v239_v28  ;;  %v221_v51 = vld [vmem:[%s1052_s19 + $0x188] sm:$0xff]  ;;  %v244_v54 = vpack.c.bf16 %v189_v49, %v188_v48  ;;  %v191_v57 = vld [vmem:[%s1052_s19 + $0x98] sm:$0xff]  ;;  %v222_v58 = vld [vmem:[%s1052_s19 + $0x190] sm:$0xff] }
  0x1d   : > { %968 = vmatmul.mubr.msk.bf16.gmra.mrb[4].mxu1 %vm276_vm1, %v255_v29  ;;  %939 = vmatprep.mubr.msk.bf16.mxu0 %vm276_vm1, %v240_v30  ;;  %v260_v55 = vpack.c.bf16 %v221_v51, %v220_v50  ;;  %v223_v59 = vld [vmem:[%s1052_s19 + $0x198] sm:$0xff]  ;;  %v192_v60 = vld [vmem:[%s1052_s19 + $0xa0] sm:$0xff]  ;;  %v193_v61 = vld [vmem:[%s1052_s19 + $0xa8] sm:$0xff]  ;;  %v245_v0 = vpack.c.bf16 %v191_v57, %v190_v56 }
  0x1e   : > { %971 = vmatprep.mubr.msk.bf16.mxu1 %vm276_vm1, %v256_v31  ;;  %v224_v62 = vld [vmem:[%s1052_s19 + $0x1a0] sm:$0xff]  ;;  %v225_v63 = vld [vmem:[%s1052_s19 + $0x1a8] sm:$0xff]  ;;  %v261_v1 = vpack.c.bf16 %v223_v59, %v222_v58  ;;  %v246_v2 = vpack.c.bf16 %v193_v61, %v192_v60  ;;  %v194_v4 = vld [vmem:[%s1052_s19 + $0xb0] sm:$0xff] }
  0x1f   : > { %v262_v3 = vpack.c.bf16 %v225_v63, %v224_v62  ;;  %v195_v5 = vld [vmem:[%s1052_s19 + $0xb8] sm:$0xff]  ;;  %v226_v6 = vld [vmem:[%s1052_s19 + $0x1b0] sm:$0xff]  ;;  %v196_v8 = vld [vmem:[%s1052_s19 + $0xc0] sm:$0xff] }
  0x20   : > { %v227_v7 = vld [vmem:[%s1052_s19 + $0x1b8] sm:$0xff]  ;;  %v197_v9 = vld [vmem:[%s1052_s19 + $0xc8] sm:$0xff]  ;;  %v228_v10 = vld [vmem:[%s1052_s19 + $0x1c0] sm:$0xff]  ;;  %v247_v12 = vpack.c.bf16 %v195_v5, %v194_v4 }
  0x21   : > { %v229_v11 = vld [vmem:[%s1052_s19 + $0x1c8] sm:$0xff]  ;;  %v263_v13 = vpack.c.bf16 %v227_v7, %v226_v6  ;;  %v248_v14 = vpack.c.bf16 %v197_v9, %v196_v8  ;;  %v198_v16 = vld [vmem:[%s1052_s19 + $0xd0] sm:$0xff]  ;;  %v199_v17 = vld [vmem:[%s1052_s19 + $0xd8] sm:$0xff] }
  0x22   : > { %v264_v15 = vpack.c.bf16 %v229_v11, %v228_v10  ;;  %v230_v18 = vld [vmem:[%s1052_s19 + $0x1d0] sm:$0xff]  ;;  %v231_v19 = vld [vmem:[%s1052_s19 + $0x1d8] sm:$0xff]  ;;  %v200_v20 = vld [vmem:[%s1052_s19 + $0xe0] sm:$0xff]  ;;  %v249_v24 = vpack.c.bf16 %v199_v17, %v198_v16 }
  0x23   : > { %v201_v21 = vld [vmem:[%s1052_s19 + $0xe8] sm:$0xff]  ;;  %v232_v22 = vld [vmem:[%s1052_s19 + $0x1e0] sm:$0xff]  ;;  %v265_v25 = vpack.c.bf16 %v231_v19, %v230_v18  ;;  %v202_v28 = vld [vmem:[%s1052_s19 + $0xf0] sm:$0xff] }
  0x24   : > { %940 = vmatmul.mubr.msk.bf16.gmra.mrb[8].mxu0 %vm276_vm1, %v241_v40  ;;  %v233_v23 = vld [vmem:[%s1052_s19 + $0x1e8] sm:$0xff]  ;;  %v250_v26 = vpack.c.bf16 %v201_v21, %v200_v20  ;;  %v203_v29 = vld [vmem:[%s1052_s19 + $0xf8] sm:$0xff]  ;;  %v234_v30 = vld [vmem:[%s1052_s19 + $0x1f0] sm:$0xff] }
  0x25   : > { %972 = vmatmul.mubr.msk.bf16.gmra.mrb[8].mxu1 %vm276_vm1, %v257_v41  ;;  %943 = vmatprep.mubr.msk.bf16.mxu0 %vm276_vm1, %v242_v42  ;;  %v266_v27 = vpack.c.bf16 %v233_v23, %v232_v22  ;;  %v235_v31 = vld [vmem:[%s1052_s19 + $0x1f8] sm:$0xff]  ;;  %v251_v32 = vpack.c.bf16 %v203_v29, %v202_v28  ;;  %v1167_v49 = vld [vmem:[%s1436_s2] ss:$0 sm:$0xff] }
  0x26   : > { %975 = vmatprep.mubr.msk.bf16.mxu1 %vm276_vm1, %v258_v43  ;;  %v267_v33 = vpack.c.bf16 %v235_v31, %v234_v30 }
  0x2c   : > { %944 = vmatmul.mubr.msk.bf16.gmra.mrb[12].mxu0 %vm276_vm1, %v243_v52 }
  0x2d   : > { %976 = vmatmul.mubr.msk.bf16.gmra.mrb[12].mxu1 %vm276_vm1, %v259_v53  ;;  %947 = vmatprep.mubr.msk.bf16.mxu0 %vm276_vm1, %v244_v54 }
  0x2e   : > { %979 = vmatprep.mubr.msk.bf16.mxu1 %vm276_vm1, %v260_v55 }
  0x34   : > { %948 = vmatmul.mubr.msk.bf16.gmra.mrb[16].mxu0 %vm276_vm1, %v245_v0 }
  0x35   : > { %980 = vmatmul.mubr.msk.bf16.gmra.mrb[16].mxu1 %vm276_vm1, %v261_v1  ;;  %951 = vmatprep.mubr.msk.bf16.mxu0 %vm276_vm1, %v246_v2 }
  0x36   : > { %983 = vmatprep.mubr.msk.bf16.mxu1 %vm276_vm1, %v262_v3 }
  0x3c   : > { %952 = vmatmul.mubr.msk.bf16.gmra.mrb[20].mxu0 %vm276_vm1, %v247_v12 }
  0x3d   : > { %984 = vmatmul.mubr.msk.bf16.gmra.mrb[20].mxu1 %vm276_vm1, %v263_v13  ;;  %955 = vmatprep.mubr.msk.bf16.mxu0 %vm276_vm1, %v248_v14 }
  0x3e   : > { %987 = vmatprep.mubr.msk.bf16.mxu1 %vm276_vm1, %v264_v15 }
  0x44   : > { %956 = vmatmul.mubr.msk.bf16.gmra.mrb[24].mxu0 %vm276_vm1, %v249_v24 }
  0x45   : > { %988 = vmatmul.mubr.msk.bf16.gmra.mrb[24].mxu1 %vm276_vm1, %v265_v25  ;;  %959 = vmatprep.mubr.msk.bf16.mxu0 %vm276_vm1, %v250_v26 }
  0x46   : > { %991 = vmatprep.mubr.msk.bf16.mxu1 %vm276_vm1, %v266_v27 }
  0x4c   : > { %960 = vmatmul.mubr.msk.bf16.gmra.mrb[28].mxu0 %vm276_vm1, %v251_v32 }
  0x4d   : > { %992 = vmatmul.mubr.msk.bf16.gmra.mrb[28].mxu1 %vm276_vm1, %v267_v33 }
  0xe7   : > { %v933_v34 = vpop.f32.mrb[0].mxu0 }
  0xe8   : > { %v411_v35 = vpop.f32.mrb[1].mxu0  ;;  %v1150_v36 = vpop.f32.mrb[0].mxu1  ;;  %v420_v51 = vadd.f32 %v933_v34, %v1167_v49 }
  0xe9   : > { %v934_v37 = vpop.f32.mrb[2].mxu0  ;;  %v1152_v38 = vpop.f32.mrb[1].mxu1  ;;  %v412_v52 = vadd.f32 %v1167_v49, %v411_v35 }
  0xea   : > { %v414_v39 = vpop.f32.mrb[3].mxu0  ;;  %v1154_v40 = vpop.f32.mrb[2].mxu1  ;;  %v423_v54 = vadd.f32 %v934_v37, %v1167_v49  ;;  %v668_v62 = vmax.f32 %v420_v51, 0.0 }
  0xeb   : > { %v1156_v41 = vpop.f32.mrb[3].mxu1  ;;  %v415_v58 = vadd.f32 %v1167_v49, %v414_v39  ;;  %v666_v3 = vmax.f32 %v412_v52, 0.0 }
  0xec   : > { %v669_v7 = vmax.f32 %v423_v54, 0.0 }
  0xed   : > { %v667_v10 = vmax.f32 %v415_v58, 0.0  ;;  %v1218_v58 = vadd.f32 %v1167_v49, %v1152_v38 }
  0xef   : > { %v937_v42 = vpop.f32.mrb[4].mxu0 }
  0xf0   : > { %v427_v43 = vpop.f32.mrb[5].mxu0  ;;  %v1158_v44 = vpop.f32.mrb[4].mxu1  ;;  %v436_v13 = vadd.f32 %v937_v42, %v1167_v49 }
  0xf1   : > { %v938_v45 = vpop.f32.mrb[6].mxu0  ;;  %v1160_v46 = vpop.f32.mrb[5].mxu1  ;;  %v428_v15 = vadd.f32 %v1167_v49, %v427_v43  ;;  %v1232_v38 = vadd.f32 %v1158_v44, %v1167_v49 }
  0xf2   : > { %v430_v47 = vpop.f32.mrb[7].mxu0  ;;  %v1162_v48 = vpop.f32.mrb[6].mxu1  ;;  %v439_v18 = vadd.f32 %v938_v45, %v1167_v49  ;;  %v672_v26 = vmax.f32 %v436_v13, 0.0 }
  0xf3   : > { %v1169_v50 = vpop.f32.mrb[7].mxu1  ;;  %v431_v22 = vadd.f32 %v1167_v49, %v430_v47  ;;  %v670_v31 = vmax.f32 %v428_v15, 0.0 }
  0xf4   : > { %v673_v35 = vmax.f32 %v439_v18, 0.0  ;;  %v698_v18 = vmax.f32 %v1218_v58, 0.0 }
  0xf5   : > { %v671_v42 = vmax.f32 %v431_v22, 0.0 }
  0xf7   : > { %v941_v53 = vpop.f32.mrb[8].mxu0 }
  0xf8   : > { %v452_v55 = vadd.f32 %v941_v53, %v1167_v49  ;;  %v443_v56 = vpop.f32.mrb[9].mxu0  ;;  %v1175_v57 = vpop.f32.mrb[8].mxu1 }
  0xf9   : > { %v444_v59 = vadd.f32 %v1167_v49, %v443_v56  ;;  %v942_v60 = vpop.f32.mrb[10].mxu0  ;;  %v1179_v61 = vpop.f32.mrb[9].mxu1  ;;  %v1214_v56 = vadd.f32 %v1150_v36, %v1167_v49  ;;  %v1251_v13 = vadd.f32 %v1175_v57, %v1167_v49 }
  0xfa   : > { %v676_v63 = vmax.f32 %v452_v55, 0.0  ;;  %v455_v0 = vadd.f32 %v942_v60, %v1167_v49  ;;  %v446_v1 = vpop.f32.mrb[11].mxu0  ;;  %v1182_v2 = vpop.f32.mrb[10].mxu1 }
  0xfb   : > { %v674_v4 = vmax.f32 %v444_v59, 0.0  ;;  %v447_v5 = vadd.f32 %v1167_v49, %v446_v1  ;;  %v1185_v6 = vpop.f32.mrb[11].mxu1 }
  0xfc   : > { %v732_v8 = vmax.f32 %v668_v62, %v676_v63  ;;  %v677_v9 = vmax.f32 %v455_v0, 0.0  ;;  %v1223_v63 = vadd.f32 %v1154_v40, %v1167_v49  ;;  %v1227_v0 = vadd.f32 %v1167_v49, %v1156_v41 }
  0xfd   : > { %v730_v11 = vmax.f32 %v666_v3, %v674_v4  ;;  %v675_v12 = vmax.f32 %v447_v5, 0.0  ;;  %v1236_v5 = vadd.f32 %v1167_v49, %v1160_v46  ;;  %v1241_v41 = vadd.f32 %v1162_v48, %v1167_v49 }
  0xfe   : > { %v733_v14 = vmax.f32 %v669_v7, %v677_v9 }
  0xff   : > { %v731_v16 = vmax.f32 %v667_v10, %v675_v12  ;;  %v945_v17 = vpop.f32.mrb[12].mxu0  ;;  %v1245_v10 = vadd.f32 %v1167_v49, %v1169_v50  ;;  %v699_v50 = vmax.f32 %v1227_v0, 0.0  ;;  %v702_v57 = vmax.f32 %v1236_v5, 0.0 }
 0x100   : > { %v468_v19 = vadd.f32 %v945_v17, %v1167_v49  ;;  %v459_v20 = vpop.f32.mrb[13].mxu0  ;;  %v1191_v21 = vpop.f32.mrb[12].mxu1  ;;  %v700_v17 = vmax.f32 %v1214_v56, 0.0 }
 0x101   : > { %v460_v23 = vadd.f32 %v1167_v49, %v459_v20  ;;  %v946_v24 = vpop.f32.mrb[14].mxu0  ;;  %v1195_v25 = vpop.f32.mrb[13].mxu1 }
 0x102   : > { %v680_v27 = vmax.f32 %v468_v19, 0.0  ;;  %v471_v28 = vadd.f32 %v946_v24, %v1167_v49  ;;  %v462_v29 = vpop.f32.mrb[15].mxu0  ;;  %v1198_v30 = vpop.f32.mrb[14].mxu1  ;;  %v701_v19 = vmax.f32 %v1223_v63, 0.0 }
 0x103   : > { %v678_v32 = vmax.f32 %v460_v23, 0.0  ;;  %v463_v33 = vadd.f32 %v1167_v49, %v462_v29  ;;  %v1201_v34 = vpop.f32.mrb[15].mxu1  ;;  %v703_v23 = vmax.f32 %v1245_v10, 0.0 }
 0x104   : > { %v1203_v37 = vmax.f32 %v672_v26, %v680_v27  ;;  %v681_v39 = vmax.f32 %v471_v28, 0.0  ;;  %v708_v27 = vmax.f32 %v1251_v13, 0.0  ;;  %v1271_v28 = vadd.f32 %v1167_v49, %v1179_v61 }
 0x105   : > { %v1205_v43 = vmax.f32 %v670_v31, %v678_v32  ;;  %v679_v45 = vmax.f32 %v463_v33, 0.0  ;;  %v1280_v33 = vadd.f32 %v1167_v49, %v1185_v6 }
 0x106   : > { %v1207_v47 = vmax.f32 %v673_v35, %v681_v39  ;;  %v1284_v35 = vadd.f32 %v1191_v21, %v1167_v49  ;;  %v1300_v21 = vadd.f32 %v1167_v49, %v1201_v34  ;;  %v706_v34 = vmax.f32 %v1271_v28, 0.0 }
 0x107   : > { %v1209_v51 = vmax.f32 %v671_v42, %v679_v45  ;;  %v949_v52 = vpop.f32.mrb[16].mxu0 }
 0x108   : > { %v484_v53 = vadd.f32 %v949_v52, %v1167_v49  ;;  %v475_v54 = vpop.f32.mrb[17].mxu0  ;;  %v981_v55 = vpop.f32.mrb[16].mxu1  ;;  %v1293_v52 = vadd.f32 %v1198_v30, %v1167_v49 }
 0x109   : > { %v476_v59 = vadd.f32 %v1167_v49, %v475_v54  ;;  %v950_v60 = vpop.f32.mrb[18].mxu0  ;;  %v603_v62 = vpop.f32.mrb[17].mxu1 }
 0x10a   : > { %v684_v1 = vmax.f32 %v484_v53, 0.0  ;;  %v487_v36 = vadd.f32 %v950_v60, %v1167_v49  ;;  %v478_v3 = vpop.f32.mrb[19].mxu0  ;;  %v982_v4 = vpop.f32.mrb[18].mxu1 }
 0x10b   : > { %v682_v7 = vmax.f32 %v476_v59, 0.0  ;;  %v479_v40 = vadd.f32 %v1167_v49, %v478_v3  ;;  %v606_v9 = vpop.f32.mrb[19].mxu1  ;;  %v1303_v59 = vadd.f32 %v981_v55, %v1167_v49  ;;  %v1312_v30 = vadd.f32 %v982_v4, %v1167_v49 }
 0x10c   : > { %v1247_v12 = vmax.f32 %v732_v8, %v684_v1  ;;  %v685_v44 = vmax.f32 %v487_v36, 0.0  ;;  %v704_v8 = vmax.f32 %v1232_v38, 0.0  ;;  %v1309_v1 = vadd.f32 %v1167_v49, %v603_v62 }
 0x10d   : > { %v1253_v46 = vmax.f32 %v730_v11, %v682_v7  ;;  %v683_v15 = vmax.f32 %v479_v40, 0.0  ;;  %v705_v11 = vmax.f32 %v1241_v41, 0.0  ;;  %v707_v55 = vmax.f32 %v1280_v33, 0.0 }
 0x10e   : > { %v1257_v48 = vmax.f32 %v733_v14, %v685_v44  ;;  %v712_v40 = vmax.f32 %v1284_v35, 0.0 }
 0x10f   : > { %v1262_v20 = vmax.f32 %v731_v16, %v683_v15  ;;  %v953_v22 = vpop.f32.mrb[20].mxu0  ;;  %v1275_v16 = vadd.f32 %v1182_v2, %v1167_v49  ;;  %v1289_v2 = vadd.f32 %v1167_v49, %v1195_v25 }
 0x110   : > { %v500_v24 = vadd.f32 %v953_v22, %v1167_v49  ;;  %v491_v26 = vpop.f32.mrb[21].mxu0  ;;  %v985_v14 = vpop.f32.mrb[20].mxu1  ;;  %v716_v22 = vmax.f32 %v1303_v59, 0.0 }
 0x111   : > { %v492_v29 = vadd.f32 %v1167_v49, %v491_v26  ;;  %v954_v31 = vpop.f32.mrb[22].mxu0  ;;  %v619_v32 = vpop.f32.mrb[21].mxu1  ;;  %v709_v7 = vmax.f32 %v1275_v16, 0.0  ;;  %v710_v62 = vmax.f32 %v1289_v2, 0.0  ;;  %v1440_v2 = vmax.f32 %v1300_v21, 0.0 }
 0x112   : > { %v688_v39 = vmax.f32 %v500_v24, 0.0  ;;  %v503_v61 = vadd.f32 %v954_v31, %v1167_v49  ;;  %v494_v42 = vpop.f32.mrb[23].mxu0  ;;  %v986_v45 = vpop.f32.mrb[22].mxu1  ;;  %v1332_v24 = vadd.f32 %v1167_v49, %v606_v9  ;;  %v717_v31 = vmax.f32 %v1312_v30, 0.0 }
 0x113   : > { %v686_v53 = vmax.f32 %v492_v29, 0.0  ;;  %v495_v6 = vadd.f32 %v1167_v49, %v494_v42  ;;  %v1296_v54 = vpop.f32.mrb[23].mxu1  ;;  %v714_v29 = vmax.f32 %v1309_v1, 0.0 }
 0x114   : > { %v1306_v60 = vmax.f32 %v1203_v37, %v688_v39  ;;  %v689_v25 = vmax.f32 %v503_v61, 0.0  ;;  %v1338_v39 = vadd.f32 %v985_v14, %v1167_v49  ;;  %v715_v15 = vmax.f32 %v1332_v24, 0.0 }
 0x115   : > { %v1315_v36 = vmax.f32 %v1205_v43, %v686_v53  ;;  %v687_v3 = vmax.f32 %v495_v6, 0.0  ;;  %v1342_v53 = vadd.f32 %v1167_v49, %v619_v32  ;;  %v623_v33 = vadd.f32 %v1167_v49, %v1296_v54 }
 0x116   : > { %v1321_v37 = vmax.f32 %v1207_v47, %v689_v25  ;;  %v1438_v35 = vmax.f32 %v1338_v39, 0.0 }
 0x117   : > { %v1327_v44 = vmax.f32 %v1209_v51, %v687_v3  ;;  %v957_v43 = vpop.f32.mrb[24].mxu0  ;;  %v719_v10 = vmax.f32 %v623_v33, 0.0 }
 0x118   : > { %v516_v47 = vadd.f32 %v957_v43, %v1167_v49  ;;  %v507_v26 = vpop.f32.mrb[25].mxu0  ;;  %v989_v28 = vpop.f32.mrb[24].mxu1 }
 0x119   : > { %v508_v51 = vadd.f32 %v1167_v49, %v507_v26  ;;  %v958_v61 = vpop.f32.mrb[26].mxu0  ;;  %v635_v42 = vpop.f32.mrb[25].mxu1  ;;  %v644_v25 = vadd.f32 %v989_v28, %v1167_v49 }
 0x11a   : > { %v692_v9 = vmax.f32 %v516_v47, 0.0  ;;  %v519_v6 = vadd.f32 %v958_v61, %v1167_v49  ;;  %v510_v59 = vpop.f32.mrb[27].mxu0  ;;  %v990_v3 = vpop.f32.mrb[26].mxu1  ;;  %v636_v14 = vadd.f32 %v1167_v49, %v635_v42  ;;  %v718_v42 = vmax.f32 %v1342_v53, 0.0 }
 0x11b   : > { %v690_v1 = vmax.f32 %v508_v51, 0.0  ;;  %v511_v30 = vadd.f32 %v1167_v49, %v510_v59  ;;  %v647_v43 = vadd.f32 %v990_v3, %v1167_v49  ;;  %v638_v26 = vpop.f32.mrb[27].mxu1  ;;  %v1354_v51 = vadd.f32 %v986_v45, %v1167_v49 }
 0x11c   : > { %v748_v32 = vmax.f32 %v1247_v12, %v692_v9  ;;  %v693_v47 = vmax.f32 %v519_v6, 0.0  ;;  %v639_v61 = vadd.f32 %v1167_v49, %v638_v26  ;;  %v724_v12 = vmax.f32 %v644_v25, 0.0 }
 0x11d   : > { %v746_v59 = vmax.f32 %v1253_v46, %v690_v1  ;;  %v691_v4 = vmax.f32 %v511_v30, 0.0  ;;  %v722_v26 = vmax.f32 %v636_v14, 0.0  ;;  %v725_v28 = vmax.f32 %v647_v43, 0.0 }
 0x11e   : > { %v756_v3 = vmax.f32 %v748_v32, %v700_v17  ;;  %v749_v24 = vmax.f32 %v1257_v48, %v693_v47  ;;  %v723_v17 = vmax.f32 %v639_v61, 0.0 }
 0x11f   : > { %v754_v9 = vmax.f32 %v746_v59, %v698_v18  ;;  %v747_v6 = vmax.f32 %v1262_v20, %v691_v4  ;;  %v961_v45 = vpop.f32.mrb[28].mxu0 }
 0x120   : > { %v757_v46 = vmax.f32 %v749_v24, %v701_v19  ;;  %v764_v1 = vmax.f32 %v756_v3, %v708_v27  ;;  %v532_v56 = vadd.f32 %v961_v45, %v1167_v49  ;;  %v523_v48 = vpop.f32.mrb[29].mxu0  ;;  %v993_v25 = vpop.f32.mrb[28].mxu1 }
 0x121   : > { %v755_v58 = vmax.f32 %v747_v6, %v699_v50  ;;  %v762_v18 = vmax.f32 %v754_v9, %v706_v34  ;;  %v524_v20 = vadd.f32 %v1167_v49, %v523_v48  ;;  %v962_v4 = vpop.f32.mrb[30].mxu0  ;;  %v660_v30 = vadd.f32 %v993_v25, %v1167_v49  ;;  %v651_v63 = vpop.f32.mrb[29].mxu1 }
 0x122   : > { %v772_v19 = vmax.f32 %v764_v1, %v716_v22  ;;  %v765_v13 = vmax.f32 %v757_v46, %v709_v7  ;;  %v696_v27 = vmax.f32 %v532_v56, 0.0  ;;  %v535_v14 = vadd.f32 %v962_v4, %v1167_v49  ;;  %v526_v43 = vpop.f32.mrb[31].mxu0  ;;  %v994_v32 = vpop.f32.mrb[30].mxu1 }
 0x123   : > { %v770_v0 = vmax.f32 %v762_v18, %v714_v29  ;;  %v763_v50 = vmax.f32 %v755_v58, %v707_v55  ;;  %v694_v34 = vmax.f32 %v524_v20, 0.0  ;;  %v527_v16 = vadd.f32 %v1167_v49, %v526_v43  ;;  %v654_v7 = vpop.f32.mrb[31].mxu1 }
 0x124   : > { %v780_v22 = vmax.f32 %v772_v19, %v724_v12  ;;  %v773_v47 = vmax.f32 %v765_v13, %v717_v31  ;;  %v752_v61 = vmax.f32 %v1306_v60, %v696_v27  ;;  %v697_v59 = vmax.f32 %v535_v14, 0.0 }
 0x125   : > { %v778_v3 = vmax.f32 %v770_v0, %v722_v26  ;;  %v771_v24 = vmax.f32 %v763_v50, %v715_v15  ;;  %v750_v9 = vmax.f32 %v1315_v36, %v694_v34  ;;  %v695_v6 = vmax.f32 %v527_v16, 0.0 }
 0x126   : > { %789 = vst.msk [vmem:[%s1380_s25 + $0x10] sm:$0xff] %vm786_vm2, %v780_v22  ;;  %v781_v55 = vmax.f32 %v773_v47, %v725_v28  ;;  %v760_v29 = vmax.f32 %v752_v61, %v704_v8  ;;  %v753_v31 = vmax.f32 %v1321_v37, %v697_v59  ;;  %v652_v12 = vadd.f32 %v1167_v49, %v651_v63 }
 0x127   : > { %787 = vst.msk [vmem:[%s1380_s25] sm:$0xff] %vm786_vm2, %v778_v3  ;;  %v779_v60 = vmax.f32 %v771_v24, %v723_v17  ;;  %v758_v15 = vmax.f32 %v750_v9, %v702_v57  ;;  %v751_v36 = vmax.f32 %v1327_v44, %v695_v6  ;;  %v728_v28 = vmax.f32 %v660_v30, 0.0 }
 0x128   : > { %790 = vst.msk [vmem:[%s1380_s25 + $0x18] sm:$0xff] %vm786_vm2, %v781_v55  ;;  %v761_v54 = vmax.f32 %v753_v31, %v705_v11  ;;  %v768_v38 = vmax.f32 %v760_v29, %v712_v40  ;;  %v663_v8 = vadd.f32 %v994_v32, %v1167_v49  ;;  %v726_v57 = vmax.f32 %v652_v12, 0.0 }
 0x129   : > { %788 = vst.msk [vmem:[%s1380_s25 + $0x8] sm:$0xff] %vm786_vm2, %v779_v60  ;;  %v759_v5 = vmax.f32 %v751_v36, %v703_v23  ;;  %v766_v37 = vmax.f32 %v758_v15, %v710_v62  ;;  %v655_v41 = vadd.f32 %v1167_v49, %v654_v7  ;;  %v721_v11 = vmax.f32 %v1354_v51, 0.0 }
 0x12a   : > { %v776_v40 = vmax.f32 %v768_v38, %v1438_v35  ;;  %v1439_v44 = vmax.f32 %v1293_v52, 0.0  ;;  %v729_v46 = vmax.f32 %v663_v8, 0.0 }
 0x12b   : > { %v774_v23 = vmax.f32 %v766_v37, %v718_v42  ;;  %v767_v62 = vmax.f32 %v759_v5, %v1440_v2  ;;  %v727_v51 = vmax.f32 %v655_v41, 0.0 }
 0x12c   : > { %v769_v26 = vmax.f32 %v761_v54, %v1439_v44  ;;  %v784_v45 = vmax.f32 %v776_v40, %v728_v28 }
 0x12d   : > { %v782_v1 = vmax.f32 %v774_v23, %v726_v57  ;;  %v775_v56 = vmax.f32 %v767_v62, %v719_v10 }
 0x12e   : > { %v777_v49 = vmax.f32 %v769_v26, %v721_v11  ;;  %793 = vst.msk [vmem:[%s1380_s25 + $0x30] sm:$0xff] %vm786_vm2, %v784_v45 }
 0x12f   : > { %791 = vst.msk [vmem:[%s1380_s25 + $0x20] sm:$0xff] %vm786_vm2, %v782_v1  ;;  %v783_v52 = vmax.f32 %v775_v56, %v727_v51 }
 0x130   : > { %v785_v39 = vmax.f32 %v777_v49, %v729_v46 }
 0x131   : > { %792 = vst.msk [vmem:[%s1380_s25 + $0x28] sm:$0xff] %vm786_vm2, %v783_v52 }
 0x132   : > { %794 = vst.msk [vmem:[%s1380_s25 + $0x38] sm:$0xff] %vm786_vm2, %v785_v39 }
 0x133 PF: > { %s13_s12 = sadd.s32 1, %s1013_s12  }
 0x134   : > { %p10_p4 = scmp.ge.s32.totalorder %s13_s12, 4  }
 0x136   :  { %12 = sbr.rel (!%p10_p4) target bundleno = 1 (0x1), region = 62 }

// kernel: ridbnet_seg_forward.24
= control target key start
LH: loop header
LB: loop body
LE: loop exit
PB: predicated region body
PF: predicated region fallthrough
CT: control target
= control target key end

     0   :  { %s325_s6 = smov 0   ;;  %s360_s0 = inlined_call_operand.vmem [shape: f32[2,3,64], index: 0, kind: input, shape index: {}]   ;;  %s361_s1 = inlined_call_operand.vmem [shape: s32[2,1,32], index: 1, kind: output, shape index: {}]  }
   0x1 LB: > { %s227_s7 = sadd.s32 4294967295, %s297_s6   ;;  %p231_p0 = scmp.ge.s32.totalorder %s297_s6, 1  ;;  %s297_s6 = sphi %s325_s6, %s11_s6  }
   0x2   : > { %p86_p1 = scmp.lt.s32.totalorder %s297_s6, 3 }
   0x4   : > { %p87_p2 = pnand %p231_p0, %p86_p1 }
   0x5   : > { %p103_p3 = scmp.lt.s32.totalorder (!%p87_p2), %s227_s7, 1  ;;  %v111_v0 = vlaneseq (!%p87_p2)  ;;  %v299_v3 = vmov (!%p87_p2), 0   ;;  %v303_v4 = vmov (!%p87_p2), 0   ;;  %v307_v5 = vmov (!%p87_p2), 1e+10   ;;  %s343_s15 = smov (!%p87_p2), 0  }
   0x6   : > { %90 = sbr.rel (%p87_p2) target bundleno = 620 (0x26c), region = 24 }
   0x7   : > { %v112_v1 = vand.u32 (!%p87_p2), 127, %v111_v0 }
   0xd   : > { %s363_s7 = smov (!%p103_p3, %s227_s7), 1 }
   0xe   : > { %s232_s8 = sshll.u32 %s363_s7, 2  ;;  %s109_s11 = scalar_lea.vmem %s361_s1, %s363_s7 }
   0xf   : > { %s106_s14 = scalar_lea.vmem %s360_s0, %s232_s8 }
  0x10   : > { %v110_v2 = vld [vmem:[%s106_s14] sm:$0x7] }
  0x11 LB: >> { %vm129_vm0 = vcmask 518144   ;;  %v122_v6 = vstv %s313_s15  ;;  %vm125_vm1 = vcmp.eq.s32.totalorder %v112_v1, %v305_v4  ;;  %vm143_vm3 = vcmask 523264   ;;  %s118_s15 = sadd.s32 1, %s313_s15   ;;  %s313_s15 = sphi %s343_s15, %s118_s15   ;;  %v309_v5 = vphi %v307_v5, %v142_v5   ;;  %v305_v4 = vphi %v303_v4, %v163_v4   ;;  %v301_v3 = vphi %v299_v3, %v300_v3  }
  0x12   : >> { %vm123_vm2 = vcmp.eq.s32.totalorder %v112_v1, %v122_v6  ;;  %v128_v7 = vsel %vm125_vm1, %v110_v2, 0.0  ;;  %p115_p4 = scmp.ge.s32.totalorder %s118_s15, 32  }
  0x13   : >> { %v130_v8 = vsel %vm129_vm0, %v128_v7, 0.0  ;;  %v124_v9 = vsel %vm123_vm2, %v305_v4, %v301_v3   ;;  %vm164_vm6 = vcmask (%p115_p4), 253952  }
  0x14   : >> { %131 = vadd.xlane.f32.xlu0 %v130_v8  ;;  %v300_v3 = vmov %v124_v9   ;;  %165 = vst.msk [vmem:[%s109_s11] sm:$0x1] (%p115_p4), %vm164_vm6, %v124_v9 }
  0xa1   : >> { %v132_v10 = vpop.xlane.xlu0 %131 }
  0xa2   : >> { %v133_v11 = vsub.f32 %v110_v2, %v132_v10 }
  0xa4   : >> { %v134_v12 = vmul.f32 %v133_v11, %v133_v11 }
  0xa6   : >> { %v135_v13 = vsel %vm129_vm0, %v134_v12, 0.0 }
  0xa7   : >> { %v136_v14 = vrot.slane %v135_v13, 4 }
  0xa9   : >> { %v137_v15 = vadd.f32 %v136_v14, %v135_v13 }
  0xab   : >> { %v138_v16 = vrot.slane %v137_v15, 2 }
  0xad   : >> { %v139_v17 = vadd.f32 %v138_v16, %v137_v15 }
  0xaf   : >> { %v140_v18 = vrot.slane %v139_v17, 1 }
  0xb1   : >> { %v141_v19 = vadd.f32 %v140_v18, %v139_v17 }
  0xb3   : >> { %v142_v5 = vmin.f32 %v309_v5, %v141_v19  }
  0xb5   : >> { %v144_v20 = vsel %vm143_vm3, %v142_v5, -inf }
  0xb6   : >> { %145 = vmax.xlane.f32.xlu0 %v144_v20 }
 0x143   : >> { %v146_v21 = vpop.xlane.xlu0 %145 }
 0x144   : >> { %vm147_vm4 = vcmp.ge.f32.partialorder %v142_v5, %v146_v21 }
 0x145   : >> { %v148_v22 = vsel %vm147_vm4, %v112_v1, 64 }
 0x146   : >> { %v149_v23 = vsel %vm143_vm3, %v148_v22, 2147483647 }
 0x147   : >> { %v151_v24 = vshra.s32 %v149_v23, 16  ;;  %v150_v26 = vand.u32 65535, %v149_v23 }
 0x149   : >> { %v153_v25 = vcvt.s32.f32 %v151_v24  ;;  %v152_v28 = vcvt.s32.f32 %v150_v26 }
 0x14b   : >> { %154 = vmin.xlane.f32.xlu1 %v153_v25 }
 0x1d8   : >> { %v155_v27 = vpop.xlane.xlu1 %154 }
 0x1d9   : >> { %vm156_vm5 = vcmp.eq.f32.partialorder %v153_v25, %v155_v27  ;;  %v161_v30 = vcvt.f32.s32 %v155_v27 }
 0x1da   : >> { %v157_v29 = vsel %vm156_vm5, %v152_v28, inf }
 0x1db   : >> { %158 = vmin.xlane.f32.xlu1 %v157_v29  ;;  %v162_v32 = vshll.u32 %v161_v30, 16 }
 0x265   : > { %117 = sbr.rel (!%p115_p4) target bundleno = 17 (0x11), region = 61 }
 0x268   : >> { %v159_v31 = vpop.xlane.xlu1 %158 }
 0x269   : >> { %v160_v33 = vcvt.f32.s32 %v159_v31 }
 0x26b   : >> { %v163_v4 = vadd.s32 %v162_v32, %v160_v33  }
 0x26c PF: > { %s11_s6 = sadd.s32 1, %s297_s6  }
 0x26d   : > { %p8_p5 = scmp.ge.s32.totalorder %s11_s6, 4  }
 0x26f   :  { %10 = sbr.rel (!%p8_p5) target bundleno = 1 (0x1), region = 72 }

// kernel: neg.13
= control target key start
LH: loop header
LB: loop body
LE: loop exit
PB: predicated region body
PF: predicated region fallthrough
CT: control target
= control target key end

     0   :  { %s136_s0 = inlined_call_operand.vmem [shape: f32[2,32,64], index: 0, kind: input, shape index: {}]   ;;  %s137_s1 = inlined_call_operand.vmem [shape: f32[2,32,64], index: 1, kind: output, shape index: {}]  }
   0x1   :  { %v2_v0 = vld [vmem:[%s136_s0] sm:$0xff]  ;;  %v66_v2 = vld [vmem:[%s136_s0 + $0x8] sm:$0xff]  ;;  %v70_v7 = vld [vmem:[%s136_s0 + $0x10] sm:$0xff] }
   0x2   :  { %v64_v1 = vld [vmem:[%s136_s0 + $0x20] sm:$0xff]  ;;  %v5_v3 = vxor.u32 2147483648, %v2_v0  ;;  %v20_v5 = vxor.u32 2147483648, %v66_v2  ;;  %v68_v6 = vld [vmem:[%s136_s0 + $0x28] sm:$0xff]  ;;  %v72_v8 = vld [vmem:[%s136_s0 + $0x30] sm:$0xff]  ;;  %v36_v10 = vxor.u32 2147483648, %v70_v7 }
   0x3   :  { %v12_v4 = vxor.u32 2147483648, %v64_v1  ;;  %v28_v9 = vxor.u32 2147483648, %v68_v6  ;;  %v44_v11 = vxor.u32 2147483648, %v72_v8  ;;  %v74_v12 = vld [vmem:[%s136_s0 + $0x18] sm:$0xff] }
   0x4   :  { %v76_v13 = vld [vmem:[%s136_s0 + $0x38] sm:$0xff]  ;;  %7 = vst [vmem:[%s137_s1] sm:$0xff] %v5_v3  ;;  %67 = vst [vmem:[%s137_s1 + $0x8] sm:$0xff] %v20_v5  ;;  %v52_v14 = vxor.u32 2147483648, %v74_v12 }
   0x5   :  { %65 = vst [vmem:[%s137_s1 + $0x20] sm:$0xff] %v12_v4  ;;  %v60_v15 = vxor.u32 2147483648, %v76_v13  ;;  %69 = vst [vmem:[%s137_s1 + $0x28] sm:$0xff] %v28_v9 }
   0x6   :  { %71 = vst [vmem:[%s137_s1 + $0x10] sm:$0xff] %v36_v10  ;;  %73 = vst [vmem:[%s137_s1 + $0x30] sm:$0xff] %v44_v11 }
   0x7   :  { %75 = vst [vmem:[%s137_s1 + $0x18] sm:$0xff] %v52_v14  ;;  %77 = vst [vmem:[%s137_s1 + $0x38] sm:$0xff] %v60_v15 }

// kernel: ridbnet_seg_forward.25
= control target key start
LH: loop header
LB: loop body
LE: loop exit
PB: predicated region body
PF: predicated region fallthrough
CT: control target
= control target key end

     0   :  { %s575_s15 = smov 0   ;;  %s615_s0 = inlined_call_operand.vmem [shape: f32[2,32,3], index: 0, kind: input, shape index: {}]   ;;  %s616_s1 = inlined_call_operand.vmem [shape: f32[2,3,64], index: 1, kind: input, shape index: {}]   ;;  %s617_s2 = inlined_call_operand.vmem [shape: f32[2,32,1], index: 2, kind: input, shape index: {}]   ;;  %s618_s3 = inlined_call_operand.vmem [shape: f32[2,1,64], index: 3, kind: input, shape index: {}]   ;;  %s619_s4 = inlined_call_operand.vmem [shape: f32[2,32,64], index: 4, kind: output, shape index: {}]  }
   0x1 LB: > { %s492_s16 = sadd.s32 4294967295, %s547_s15   ;;  %p496_p0 = scmp.ge.s32.totalorder %s547_s15, 1  ;;  %s547_s15 = sphi %s575_s15, %s14_s15  }
   0x2   : > { %p189_p1 = scmp.lt.s32.totalorder %s547_s15, 3 }
   0x4   : > { %p190_p2 = pnand %p496_p0, %p189_p1 }
   0x5   : > { %p227_p3 = scmp.lt.s32.totalorder (!%p190_p2), %s492_s16, 1  ;;  %v549_v0 = vmov (!%p190_p2), 0   ;;  %vm267_vm0 = vcmask (!%p190_p2), 1042432   ;;  %vm254_vm1 = vcmask (!%p190_p2), 23552   ;;  %vm399_vm2 = vcmask (!%p190_p2), 523264  }
   0x6   : > { %193 = sbr.rel (%p190_p2) target bundleno = 238 (0xee), region = 36  ;;  %540 = vset.pattern.permute.xlu1 (!%p190_p2), %v549_v0  ;;  %539 = vset.pattern.permute.xlu0 (!%p190_p2), %v549_v0 }
   0xd   : > { %s621_s16 = smov (!%p227_p3, %s492_s16), 1 }
   0xe   : > { %s499_s17 = sshll.u32 %s621_s16, 2  ;;  %s587_s18 = sshll.u32 %s621_s16, 5 }
   0xf   : > { %s235_s21 = scalar_lea.vmem %s616_s1, %s499_s17  ;;  %s231_s24 = scalar_lea.vmem %s615_s0, %s587_s18 }
  0x10   : > { %v253_v1 = vld [vmem:[%s235_s21] sm:$0x7]  ;;  %v251_v3 = vld [vmem:[%s231_s24 + $0x10] sm:$0xff]  ;;  %s240_s27 = scalar_lea.vmem %s617_s2, %s587_s18  ;;  %v250_v4 = vld [vmem:[%s231_s24 + $0x8] sm:$0xff]  ;;  %s243_s30 = scalar_lea.vmem %s618_s3, %s621_s16 }
  0x11   : > { %v249_v2 = vld [vmem:[%s231_s24] sm:$0xff]  ;;  %520 = vmatprep.subr.msk.mxu0 %vm267_vm0, %v253_v1  ;;  %528 = vmatprep.subr.msk.mxu1 %vm267_vm0, %v253_v1  ;;  %v252_v5 = vld [vmem:[%s231_s24 + $0x18] sm:$0xff]  ;;  %v358_v6 = vld [vmem:[%s240_s27 + $0x10] sm:$0xff]  ;;  %s248_s7 = scalar_lea.vmem %s619_s4, %s587_s18 }
  0x12   : > { %521 = vmatpush3.msk.msra.mxu0 %vm267_vm0, %v253_v1  ;;  %529 = vmatpush3.msk.msra.mxu1 %vm267_vm0, %v253_v1  ;;  %v356_v7 = vld [vmem:[%s240_s27] sm:$0xff]  ;;  %v359_v8 = vld [vmem:[%s240_s27 + $0x18] sm:$0xff]  ;;  %v357_v9 = vld [vmem:[%s240_s27 + $0x8] sm:$0xff] }
  0x13   : > { %522 = vmatprep.mubr.msk.f32.mxu0 %vm254_vm1, %v249_v2  ;;  %525 = vmatprep.mubr.msk.f32.mxu1 %vm254_vm1, %v251_v3  ;;  %v509_v12 = vld [vmem:[%s243_s30] ss:$0 sm:$0xff] }
  0x14   : > { %523 = vmatmul.mubr.msk.f32.vlgmr.msra.gmra.mrb[0].mxu0 %vm254_vm1, %v250_v4  ;;  %526 = vmatmul.mubr.msk.f32.vlgmr.msra.gmra.mrb[0].mxu1 %vm254_vm1, %v252_v5 }
  0x15   : > { %373 = vperm.xlu1 %540, %v358_v6   ;;  %363 = vperm.xlu0 %539, %v356_v7  }
  0x19   : > { %378 = vperm.xlu1 %540, %v359_v8   ;;  %368 = vperm.xlu0 %539, %v357_v9  }
  0x94   : > { %v374_v10 = vpop.permute.xlu1 %373  ;;  %v364_v11 = vpop.permute.xlu0 %363 }
  0x95   : > { %v389_v23 = vadd.f32 %v509_v12, %v374_v10  ;;  %v387_v24 = vadd.f32 %v509_v12, %v364_v11 }
  0x98   : > { %v379_v13 = vpop.permute.xlu1 %378  ;;  %v369_v14 = vpop.permute.xlu0 %368 }
  0x99   : > { %v390_v17 = vadd.f32 %v509_v12, %v379_v13  ;;  %v388_v18 = vadd.f32 %v509_v12, %v369_v14 }
  0xe7   : > { %v524_v15 = vpop.f32.mrb[0].mxu0  ;;  %v527_v16 = vpop.f32.mrb[0].mxu1 }
  0xe8   : > { %v392_v19 = vmul.f32 2.0, %v524_v15  ;;  %v394_v20 = vmul.f32 2.0, %v527_v16  ;;  %v337_v21 = vpop.f32.mrb[1].mxu0  ;;  %v347_v22 = vpop.f32.mrb[1].mxu1 }
  0xe9   : > { %v391_v25 = vmul.f32 2.0, %v337_v21  ;;  %v393_v26 = vmul.f32 2.0, %v347_v22 }
  0xea   : > { %v396_v27 = vsub.f32 %v388_v18, %v392_v19  ;;  %v398_v28 = vsub.f32 %v390_v17, %v394_v20 }
  0xeb   : > { %v395_v29 = vsub.f32 %v387_v24, %v391_v25  ;;  %v397_v30 = vsub.f32 %v389_v23, %v393_v26 }
  0xec   : > { %401 = vst.msk [vmem:[%s248_s7 + $0x8] sm:$0xff] %vm399_vm2, %v396_v27  ;;  %403 = vst.msk [vmem:[%s248_s7 + $0x18] sm:$0xff] %vm399_vm2, %v398_v28 }
  0xed   : > { %400 = vst.msk [vmem:[%s248_s7] sm:$0xff] %vm399_vm2, %v395_v29  ;;  %402 = vst.msk [vmem:[%s248_s7 + $0x10] sm:$0xff] %vm399_vm2, %v397_v30 }
  0xee PF: > { %s14_s15 = sadd.s32 1, %s547_s15  }
  0xef   : > { %p11_p4 = scmp.ge.s32.totalorder %s14_s15, 4  }
  0xf1   :  { %13 = sbr.rel (!%p11_p4) target bundleno = 1 (0x1), region = 75 }

// kernel: ridbnet_seg_forward.26
= control target key start
LH: loop header
LB: loop body
LE: loop exit
PB: predicated region body
PF: predicated region fallthrough
CT: control target
= control target key end

     0   :  { %s747_s12 = smov 0   ;;  %s870_s0 = inlined_call_operand.vmem [shape: f32[2,256,70], index: 0, kind: input, shape index: {}]   ;;  %s871_s1 = inlined_call_operand.vmem [shape: bf16[70,128], index: 1, kind: input, shape index: {}]   ;;  %s872_s2 = inlined_call_operand.vmem [shape: f32[1,128], index: 2, kind: input, shape index: {}]   ;;  %s873_s3 = inlined_call_operand.vmem [shape: f32[2,32,128], index: 3, kind: output, shape index: {}]  }
   0x1 LB: > { %s596_s13 = sadd.s32 4294967295, %s725_s12   ;;  %p600_p0 = scmp.ge.s32.totalorder %s725_s12, 1  ;;  %s725_s12 = sphi %s747_s12, %s13_s12  }
   0x2   : > { %p137_p1 = scmp.lt.s32.totalorder %s725_s12, 3 }
   0x4   : > { %p138_p2 = pnand %p600_p0, %p137_p1 }
   0x5   : > { %v714_v0 = vld [vmem:[%s871_s1] sm:$0xff] (!%p138_p2)   ;;  %v715_v1 = vld [vmem:[%s871_s1 + $0x8] sm:$0xff] (!%p138_p2)   ;;  %p161_p3 = scmp.lt.s32.totalorder (!%p138_p2), %s596_s13, 1  ;;  %v716_v2 = vld [vmem:[%s871_s1 + $0x10] sm:$0xff] (!%p138_p2)   ;;  %vm263_vm0 = vcmask (!%p138_p2), 572416   ;;  %vm312_vm1 = vcmask (!%p138_p2), 1042432  }
   0x6   : > { %141 = sbr.rel (%p138_p2) target bundleno = 280 (0x118), region = 32  ;;  %652 = vmatprep.subr.bf16.mxu0 (!%p138_p2), %v714_v0  ;;  %694 = vmatprep.subr.bf16.mxu1 (!%p138_p2), %v714_v0  ;;  %v717_v5 = vld [vmem:[%s871_s1 + $0x18] sm:$0xff] (!%p138_p2)   ;;  %v718_v10 = vld [vmem:[%s871_s1 + $0x20] ss:$0 sps:$4 sm:$0x77] (!%p138_p2)  }
   0x7   : > { %653 = vmatpush3.bf16.msra.mxu0 (!%p138_p2), %v714_v0  ;;  %699 = vmatpush3.bf16.msra.mxu1 (!%p138_p2), %v714_v0  ;;  %v314_v16 = vsel (!%p138_p2), %vm312_vm1, %v718_v10, 0  ;;  %v829_v62 = vld [vmem:[%s872_s2] ss:$0 sm:$0xff] (!%p138_p2) }
   0x8   : > { %654 = vmatprep.subr.bf16.mxu0 (!%p138_p2), %v715_v1  ;;  %695 = vmatprep.subr.bf16.mxu1 (!%p138_p2), %v715_v1 }
   0xb   : > { %655 = vmatpush3.bf16.msra.mxu0 (!%p138_p2), %v715_v1  ;;  %700 = vmatpush3.bf16.msra.mxu1 (!%p138_p2), %v715_v1 }
   0xc   : > { %656 = vmatprep.subr.bf16.mxu0 (!%p138_p2), %v716_v2  ;;  %696 = vmatprep.subr.bf16.mxu1 (!%p138_p2), %v716_v2 }
   0xd   : > { %s875_s13 = smov (!%p161_p3, %s596_s13), 1 }
   0xe   : > { %s629_s20 = sshll.u32 %s875_s13, 8  ;;  %s630_s30 = sshll.u32 %s875_s13, 5 }
   0xf   : > { %s770_s23 = scalar_lea.vmem %s870_s0, %s629_s20  ;;  %657 = vmatpush3.bf16.msra.mxu0 %v716_v2  ;;  %701 = vmatpush3.bf16.msra.mxu1 %v716_v2  ;;  %s170_s6 = scalar_lea.vmem %s873_s3, %s630_s30 }
  0x10   : > { %v172_v3 = vld [vmem:[%s770_s23] sm:$0xff]  ;;  %v173_v4 = vld [vmem:[%s770_s23 + $0x8] sm:$0xff]  ;;  %658 = vmatprep.subr.bf16.mxu0 %v717_v5  ;;  %697 = vmatprep.subr.bf16.mxu1 %v717_v5  ;;  %v174_v11 = vld [vmem:[%s770_s23 + $0x10] sm:$0xff] }
  0x11   : > { %v204_v6 = vpack.c.bf16 %v173_v4, %v172_v3  ;;  %v188_v7 = vld [vmem:[%s770_s23 + $0x80] sm:$0xff]  ;;  %v189_v8 = vld [vmem:[%s770_s23 + $0x88] sm:$0xff]  ;;  %v175_v12 = vld [vmem:[%s770_s23 + $0x18] sm:$0xff] }
  0x12   : > { %v212_v9 = vpack.c.bf16 %v189_v8, %v188_v7  ;;  %v190_v13 = vld [vmem:[%s770_s23 + $0x90] sm:$0xff]  ;;  %v191_v14 = vld [vmem:[%s770_s23 + $0x98] sm:$0xff]  ;;  %v176_v15 = vld [vmem:[%s770_s23 + $0x20] sm:$0xff]  ;;  %v205_v20 = vpack.c.bf16 %v175_v12, %v174_v11 }
  0x13   : > { %662 = vmatprep.mubr.msk.bf16.mxu0 %vm263_vm0, %v204_v6  ;;  %659 = vmatpush3.bf16.msra.mxu0 %v717_v5  ;;  %v177_v17 = vld [vmem:[%s770_s23 + $0x28] sm:$0xff]  ;;  %v192_v18 = vld [vmem:[%s770_s23 + $0xa0] sm:$0xff]  ;;  %v213_v21 = vpack.c.bf16 %v191_v14, %v190_v13  ;;  %v178_v24 = vld [vmem:[%s770_s23 + $0x30] sm:$0xff] }
  0x14   : > { %678 = vmatprep.mubr.msk.bf16.mxu1 %vm263_vm0, %v212_v9  ;;  %702 = vmatpush3.bf16.msra.mxu1 %v717_v5  ;;  %v193_v19 = vld [vmem:[%s770_s23 + $0xa8] sm:$0xff]  ;;  %v206_v22 = vpack.c.bf16 %v177_v17, %v176_v15  ;;  %v179_v25 = vld [vmem:[%s770_s23 + $0x38] sm:$0xff]  ;;  %v194_v26 = vld [vmem:[%s770_s23 + $0xb0] sm:$0xff] }
  0x15   : > { %704 = vmatprep.subr.msk.bf16.mxu0 %vm312_vm1, %v718_v10  ;;  %705 = vmatprep.subr.msk.bf16.mxu1 %vm312_vm1, %v718_v10  ;;  %v214_v23 = vpack.c.bf16 %v193_v19, %v192_v18  ;;  %v195_v27 = vld [vmem:[%s770_s23 + $0xb8] sm:$0xff]  ;;  %v180_v28 = vld [vmem:[%s770_s23 + $0x40] sm:$0xff]  ;;  %v181_v29 = vld [vmem:[%s770_s23 + $0x48] sm:$0xff]  ;;  %v207_v32 = vpack.c.bf16 %v179_v25, %v178_v24 }
  0x16   : > { %v196_v30 = vld [vmem:[%s770_s23 + $0xc0] sm:$0xff]  ;;  %v197_v31 = vld [vmem:[%s770_s23 + $0xc8] sm:$0xff]  ;;  %v215_v33 = vpack.c.bf16 %v195_v27, %v194_v26  ;;  %v208_v34 = vpack.c.bf16 %v181_v29, %v180_v28  ;;  %v182_v36 = vld [vmem:[%s770_s23 + $0x50] sm:$0xff] }
  0x17   : > { %661 = vmatpush3.bf16.msra.mxu0 %v314_v16  ;;  %v216_v35 = vpack.c.bf16 %v197_v31, %v196_v30  ;;  %v183_v37 = vld [vmem:[%s770_s23 + $0x58] sm:$0xff]  ;;  %v198_v38 = vld [vmem:[%s770_s23 + $0xd0] sm:$0xff]  ;;  %v184_v40 = vld [vmem:[%s770_s23 + $0x60] sm:$0xff] }
  0x18   : > { %703 = vmatpush3.bf16.msra.mxu1 %v314_v16  ;;  %v199_v39 = vld [vmem:[%s770_s23 + $0xd8] sm:$0xff]  ;;  %v185_v41 = vld [vmem:[%s770_s23 + $0x68] sm:$0xff]  ;;  %v200_v42 = vld [vmem:[%s770_s23 + $0xe0] sm:$0xff]  ;;  %v209_v44 = vpack.c.bf16 %v183_v37, %v182_v36 }
  0x19   : > { %v201_v43 = vld [vmem:[%s770_s23 + $0xe8] sm:$0xff]  ;;  %v217_v45 = vpack.c.bf16 %v199_v39, %v198_v38  ;;  %v210_v46 = vpack.c.bf16 %v185_v41, %v184_v40  ;;  %v186_v48 = vld [vmem:[%s770_s23 + $0x70] sm:$0xff]  ;;  %v187_v49 = vld [vmem:[%s770_s23 + $0x78] sm:$0xff] }
  0x1a   : > { %663 = vmatmul.mubr.msk.bf16.vlgmr.msra.gmra.mrb[0].mxu0 %vm263_vm0, %v205_v20  ;;  %v218_v47 = vpack.c.bf16 %v201_v43, %v200_v42  ;;  %v202_v50 = vld [vmem:[%s770_s23 + $0xf0] sm:$0xff]  ;;  %v203_v51 = vld [vmem:[%s770_s23 + $0xf8] sm:$0xff]  ;;  %v211_v52 = vpack.c.bf16 %v187_v49, %v186_v48 }
  0x1b   : > { %679 = vmatmul.mubr.msk.bf16.vlgmr.msra.gmra.mrb[0].mxu1 %vm263_vm0, %v213_v21  ;;  %666 = vmatprep.mubr.msk.bf16.mxu0 %vm263_vm0, %v206_v22  ;;  %v219_v53 = vpack.c.bf16 %v203_v51, %v202_v50 }
  0x1c   : > { %682 = vmatprep.mubr.msk.bf16.mxu1 %vm263_vm0, %v214_v23 }
  0x22   : > { %667 = vmatmul.mubr.msk.bf16.gmra.mrb[4].mxu0 %vm263_vm0, %v207_v32 }
  0x23   : > { %683 = vmatmul.mubr.msk.bf16.gmra.mrb[4].mxu1 %vm263_vm0, %v215_v33  ;;  %670 = vmatprep.mubr.msk.bf16.mxu0 %vm263_vm0, %v208_v34 }
  0x24   : > { %686 = vmatprep.mubr.msk.bf16.mxu1 %vm263_vm0, %v216_v35 }
  0x2a   : > { %671 = vmatmul.mubr.msk.bf16.gmra.mrb[8].mxu0 %vm263_vm0, %v209_v44 }
  0x2b   : > { %687 = vmatmul.mubr.msk.bf16.gmra.mrb[8].mxu1 %vm263_vm0, %v217_v45  ;;  %674 = vmatprep.mubr.msk.bf16.mxu0 %vm263_vm0, %v210_v46 }
  0x2c   : > { %690 = vmatprep.mubr.msk.bf16.mxu1 %vm263_vm0, %v218_v47 }
  0x32   : > { %675 = vmatmul.mubr.msk.bf16.gmra.mrb[12].mxu0 %vm263_vm0, %v211_v52 }
  0x33   : > { %691 = vmatmul.mubr.msk.bf16.gmra.mrb[12].mxu1 %vm263_vm0, %v219_v53 }
  0xed   : > { %v664_v54 = vpop.f32.mrb[0].mxu0 }
  0xee   : > { %v680_v55 = vpop.f32.mrb[0].mxu1  ;;  %v350_v56 = vpop.f32.mrb[1].mxu0  ;;  %v359_v63 = vadd.f32 %v664_v54, %v829_v62 }
  0xef   : > { %v414_v57 = vpop.f32.mrb[1].mxu1  ;;  %v665_v58 = vpop.f32.mrb[2].mxu0  ;;  %v351_v0 = vadd.f32 %v829_v62, %v350_v56  ;;  %v423_v41 = vadd.f32 %v680_v55, %v829_v62 }
  0xf0   : > { %v681_v59 = vpop.f32.mrb[2].mxu1  ;;  %v353_v60 = vpop.f32.mrb[3].mxu0  ;;  %v362_v3 = vadd.f32 %v665_v58, %v829_v62  ;;  %v479_v11 = vmax.f32 %v359_v63, 0.0  ;;  %v415_v42 = vadd.f32 %v829_v62, %v414_v57 }
  0xf1   : > { %v417_v61 = vpop.f32.mrb[3].mxu1  ;;  %v354_v7 = vadd.f32 %v829_v62, %v353_v60  ;;  %v477_v16 = vmax.f32 %v351_v0, 0.0  ;;  %v426_v45 = vadd.f32 %v681_v59, %v829_v62  ;;  %v495_v56 = vmax.f32 %v423_v41, 0.0 }
  0xf2   : > { %v480_v19 = vmax.f32 %v362_v3, 0.0  ;;  %v418_v46 = vadd.f32 %v829_v62, %v417_v61  ;;  %v493_v55 = vmax.f32 %v415_v42, 0.0 }
  0xf3   : > { %v478_v22 = vmax.f32 %v354_v7, 0.0  ;;  %v496_v63 = vmax.f32 %v426_v45, 0.0 }
  0xf4   : > { %v494_v61 = vmax.f32 %v418_v46, 0.0 }
  0xf5   : > { %v668_v1 = vpop.f32.mrb[4].mxu0 }
  0xf6   : > { %v684_v2 = vpop.f32.mrb[4].mxu1  ;;  %v375_v4 = vadd.f32 %v668_v1, %v829_v62  ;;  %v366_v5 = vpop.f32.mrb[5].mxu0 }
  0xf7   : > { %v430_v6 = vpop.f32.mrb[5].mxu1  ;;  %v367_v8 = vadd.f32 %v829_v62, %v366_v5  ;;  %v669_v9 = vpop.f32.mrb[6].mxu0  ;;  %v439_v49 = vadd.f32 %v684_v2, %v829_v62 }
  0xf8   : > { %v685_v10 = vpop.f32.mrb[6].mxu1  ;;  %v483_v12 = vmax.f32 %v375_v4, 0.0  ;;  %v378_v13 = vadd.f32 %v669_v9, %v829_v62  ;;  %v369_v14 = vpop.f32.mrb[7].mxu0  ;;  %v431_v51 = vadd.f32 %v829_v62, %v430_v6 }
  0xf9   : > { %v433_v15 = vpop.f32.mrb[7].mxu1  ;;  %v481_v17 = vmax.f32 %v367_v8, 0.0  ;;  %v370_v18 = vadd.f32 %v829_v62, %v369_v14  ;;  %v442_v57 = vadd.f32 %v685_v10, %v829_v62  ;;  %v499_v4 = vmax.f32 %v439_v49, 0.0 }
  0xfa   : > { %v511_v20 = vmax.f32 %v479_v11, %v483_v12  ;;  %v484_v21 = vmax.f32 %v378_v13, 0.0  ;;  %v434_v0 = vadd.f32 %v829_v62, %v433_v15  ;;  %v497_v10 = vmax.f32 %v431_v51, 0.0 }
  0xfb   : > { %v509_v23 = vmax.f32 %v477_v16, %v481_v17  ;;  %v482_v24 = vmax.f32 %v370_v18, 0.0  ;;  %v500_v14 = vmax.f32 %v442_v57, 0.0 }
  0xfc   : > { %v512_v25 = vmax.f32 %v480_v19, %v484_v21  ;;  %v498_v18 = vmax.f32 %v434_v0, 0.0 }
  0xfd   : > { %v510_v26 = vmax.f32 %v478_v22, %v482_v24  ;;  %v672_v27 = vpop.f32.mrb[8].mxu0 }
  0xfe   : > { %v688_v28 = vpop.f32.mrb[8].mxu1  ;;  %v391_v29 = vadd.f32 %v672_v27, %v829_v62  ;;  %v382_v30 = vpop.f32.mrb[9].mxu0 }
  0xff   : > { %v446_v31 = vpop.f32.mrb[9].mxu1  ;;  %v383_v32 = vadd.f32 %v829_v62, %v382_v30  ;;  %v673_v33 = vpop.f32.mrb[10].mxu0  ;;  %v455_v5 = vadd.f32 %v688_v28, %v829_v62 }
 0x100   : > { %v689_v34 = vpop.f32.mrb[10].mxu1  ;;  %v487_v35 = vmax.f32 %v391_v29, 0.0  ;;  %v394_v36 = vadd.f32 %v673_v33, %v829_v62  ;;  %v385_v37 = vpop.f32.mrb[11].mxu0  ;;  %v447_v11 = vadd.f32 %v829_v62, %v446_v31 }
 0x101   : > { %v449_v38 = vpop.f32.mrb[11].mxu1  ;;  %v485_v39 = vmax.f32 %v383_v32, 0.0  ;;  %v386_v40 = vadd.f32 %v829_v62, %v385_v37  ;;  %v503_v22 = vmax.f32 %v455_v5, 0.0 }
 0x102   : > { %v515_v43 = vmax.f32 %v511_v20, %v487_v35  ;;  %v488_v44 = vmax.f32 %v394_v36, 0.0  ;;  %v450_v27 = vadd.f32 %v829_v62, %v449_v38 }
 0x103   : > { %v513_v47 = vmax.f32 %v509_v23, %v485_v39  ;;  %v486_v48 = vmax.f32 %v386_v40, 0.0  ;;  %v458_v23 = vadd.f32 %v689_v34, %v829_v62 }
 0x104   : > { %v516_v50 = vmax.f32 %v512_v25, %v488_v44  ;;  %v502_v42 = vmax.f32 %v450_v27, 0.0 }
 0x105   : > { %v514_v52 = vmax.f32 %v510_v26, %v486_v48  ;;  %v676_v53 = vpop.f32.mrb[12].mxu0  ;;  %v501_v26 = vmax.f32 %v447_v11, 0.0  ;;  %v504_v40 = vmax.f32 %v458_v23, 0.0 }
 0x106   : > { %v692_v54 = vpop.f32.mrb[12].mxu1  ;;  %v407_v58 = vadd.f32 %v676_v53, %v829_v62  ;;  %v398_v60 = vpop.f32.mrb[13].mxu0 }
 0x107   : > { %v462_v59 = vpop.f32.mrb[13].mxu1  ;;  %v399_v1 = vadd.f32 %v829_v62, %v398_v60  ;;  %v677_v2 = vpop.f32.mrb[14].mxu0  ;;  %v471_v17 = vadd.f32 %v692_v54, %v829_v62 }
 0x108   : > { %v693_v3 = vpop.f32.mrb[14].mxu1  ;;  %v491_v6 = vmax.f32 %v407_v58, 0.0  ;;  %v410_v7 = vadd.f32 %v677_v2, %v829_v62  ;;  %v401_v8 = vpop.f32.mrb[15].mxu0  ;;  %v463_v21 = vadd.f32 %v829_v62, %v462_v59 }
 0x109   : > { %v465_v9 = vpop.f32.mrb[15].mxu1  ;;  %v489_v12 = vmax.f32 %v399_v1, 0.0  ;;  %v402_v13 = vadd.f32 %v829_v62, %v401_v8  ;;  %v507_v31 = vmax.f32 %v471_v17, 0.0  ;;  %v474_v33 = vadd.f32 %v693_v3, %v829_v62 }
 0x10a   : > { %v519_v15 = vmax.f32 %v515_v43, %v491_v6  ;;  %v492_v16 = vmax.f32 %v410_v7, 0.0  ;;  %v505_v36 = vmax.f32 %v463_v21, 0.0  ;;  %v466_v39 = vadd.f32 %v829_v62, %v465_v9 }
 0x10b   : > { %v517_v19 = vmax.f32 %v513_v47, %v489_v12  ;;  %v490_v20 = vmax.f32 %v402_v13, 0.0  ;;  %v508_v45 = vmax.f32 %v474_v33, 0.0 }
 0x10c   : > { %v523_v24 = vmax.f32 %v519_v15, %v495_v56  ;;  %v520_v25 = vmax.f32 %v516_v50, %v492_v16  ;;  %v506_v48 = vmax.f32 %v466_v39, 0.0 }
 0x10d   : > { %v521_v28 = vmax.f32 %v517_v19, %v493_v55  ;;  %v518_v29 = vmax.f32 %v514_v52, %v490_v20 }
 0x10e   : > { %v524_v30 = vmax.f32 %v520_v25, %v496_v63  ;;  %v527_v32 = vmax.f32 %v523_v24, %v499_v4 }
 0x10f   : > { %v522_v35 = vmax.f32 %v518_v29, %v494_v61  ;;  %v525_v37 = vmax.f32 %v521_v28, %v497_v10 }
 0x110   : > { %v531_v34 = vmax.f32 %v527_v32, %v503_v22  ;;  %v528_v41 = vmax.f32 %v524_v30, %v500_v14 }
 0x111   : > { %v529_v38 = vmax.f32 %v525_v37, %v501_v26  ;;  %v526_v43 = vmax.f32 %v522_v35, %v498_v18 }
 0x112   : > { %v535_v44 = vmax.f32 %v531_v34, %v507_v31  ;;  %v532_v46 = vmax.f32 %v528_v41, %v504_v40 }
 0x113   : > { %v533_v47 = vmax.f32 %v529_v38, %v505_v36  ;;  %v530_v49 = vmax.f32 %v526_v43, %v502_v42 }
 0x114   : > { %539 = vst [vmem:[%s170_s6 + $0x10] sm:$0xff] %v535_v44  ;;  %v536_v50 = vmax.f32 %v532_v46, %v508_v45 }
 0x115   : > { %537 = vst [vmem:[%s170_s6] sm:$0xff] %v533_v47  ;;  %v534_v62 = vmax.f32 %v530_v49, %v506_v48 }
 0x116   : > { %540 = vst [vmem:[%s170_s6 + $0x18] sm:$0xff] %v536_v50 }
 0x117   : > { %538 = vst [vmem:[%s170_s6 + $0x8] sm:$0xff] %v534_v62 }
 0x118 PF: > { %s13_s12 = sadd.s32 1, %s725_s12  }
 0x119   : > { %p10_p4 = scmp.ge.s32.totalorder %s13_s12, 4  }
 0x11b   :  { %12 = sbr.rel (!%p10_p4) target bundleno = 1 (0x1), region = 62 }

// kernel: ridbnet_seg_forward.27
= control target key start
LH: loop header
LB: loop body
LE: loop exit
PB: predicated region body
PF: predicated region fallthrough
CT: control target
= control target key end

     0   :  { %s325_s6 = smov 0   ;;  %s360_s0 = inlined_call_operand.vmem [shape: f32[2,3,32], index: 0, kind: input, shape index: {}]   ;;  %s361_s1 = inlined_call_operand.vmem [shape: s32[2,1,16], index: 1, kind: output, shape index: {}]  }
   0x1 LB: > { %s227_s7 = sadd.s32 4294967295, %s297_s6   ;;  %p231_p0 = scmp.ge.s32.totalorder %s297_s6, 1  ;;  %s297_s6 = sphi %s325_s6, %s11_s6  }
   0x2   : > { %p86_p1 = scmp.lt.s32.totalorder %s297_s6, 3 }
   0x4   : > { %p87_p2 = pnand %p231_p0, %p86_p1 }
   0x5   : > { %p103_p3 = scmp.lt.s32.totalorder (!%p87_p2), %s227_s7, 1  ;;  %v111_v0 = vlaneseq (!%p87_p2)  ;;  %v299_v3 = vmov (!%p87_p2), 0   ;;  %v303_v4 = vmov (!%p87_p2), 0   ;;  %v307_v5 = vmov (!%p87_p2), 1e+10   ;;  %s343_s15 = smov (!%p87_p2), 0  }
   0x6   : > { %90 = sbr.rel (%p87_p2) target bundleno = 620 (0x26c), region = 24 }
   0x7   : > { %v112_v1 = vand.u32 (!%p87_p2), 127, %v111_v0 }
   0xd   : > { %s363_s7 = smov (!%p103_p3, %s227_s7), 1 }
   0xe   : > { %s232_s8 = sshll.u32 %s363_s7, 2  ;;  %s109_s11 = scalar_lea.vmem %s361_s1, %s363_s7 }
   0xf   : > { %s106_s14 = scalar_lea.vmem %s360_s0, %s232_s8 }
  0x10   : > { %v110_v2 = vld [vmem:[%s106_s14] sm:$0x7] }
  0x11 LB: >> { %vm129_vm0 = vcmask 256000   ;;  %v122_v6 = vstv %s313_s15  ;;  %vm125_vm1 = vcmp.eq.s32.totalorder %v112_v1, %v305_v4  ;;  %vm143_vm3 = vcmask 261120   ;;  %s118_s15 = sadd.s32 1, %s313_s15   ;;  %s313_s15 = sphi %s343_s15, %s118_s15   ;;  %v309_v5 = vphi %v307_v5, %v142_v5   ;;  %v305_v4 = vphi %v303_v4, %v163_v4   ;;  %v301_v3 = vphi %v299_v3, %v300_v3  }
  0x12   : >> { %vm123_vm2 = vcmp.eq.s32.totalorder %v112_v1, %v122_v6  ;;  %v128_v7 = vsel %vm125_vm1, %v110_v2, 0.0  ;;  %p115_p4 = scmp.ge.s32.totalorder %s118_s15, 16  }
  0x13   : >> { %v130_v8 = vsel %vm129_vm0, %v128_v7, 0.0  ;;  %v124_v9 = vsel %vm123_vm2, %v305_v4, %v301_v3   ;;  %vm164_vm6 = vcmask (%p115_p4), 122880  }
  0x14   : >> { %131 = vadd.xlane.f32.xlu0 %v130_v8  ;;  %v300_v3 = vmov %v124_v9   ;;  %165 = vst.msk [vmem:[%s109_s11] sm:$0x1] (%p115_p4), %vm164_vm6, %v124_v9 }
  0xa1   : >> { %v132_v10 = vpop.xlane.xlu0 %131 }
  0xa2   : >> { %v133_v11 = vsub.f32 %v110_v2, %v132_v10 }
  0xa4   : >> { %v134_v12 = vmul.f32 %v133_v11, %v133_v11 }
  0xa6   : >> { %v135_v13 = vsel %vm129_vm0, %v134_v12, 0.0 }
  0xa7   : >> { %v136_v14 = vrot.slane %v135_v13, 4 }
  0xa9   : >> { %v137_v15 = vadd.f32 %v136_v14, %v135_v13 }
  0xab   : >> { %v138_v16 = vrot.slane %v137_v15, 2 }
  0xad   : >> { %v139_v17 = vadd.f32 %v138_v16, %v137_v15 }
  0xaf   : >> { %v140_v18 = vrot.slane %v139_v17, 1 }
  0xb1   : >> { %v141_v19 = vadd.f32 %v140_v18, %v139_v17 }
  0xb3   : >> { %v142_v5 = vmin.f32 %v309_v5, %v141_v19  }
  0xb5   : >> { %v144_v20 = vsel %vm143_vm3, %v142_v5, -inf }
  0xb6   : >> { %145 = vmax.xlane.f32.xlu0 %v144_v20 }
 0x143   : >> { %v146_v21 = vpop.xlane.xlu0 %145 }
 0x144   : >> { %vm147_vm4 = vcmp.ge.f32.partialorder %v142_v5, %v146_v21 }
 0x145   : >> { %v148_v22 = vsel %vm147_vm4, %v112_v1, 32 }
 0x146   : >> { %v149_v23 = vsel %vm143_vm3, %v148_v22, 2147483647 }
 0x147   : >> { %v151_v24 = vshra.s32 %v149_v23, 16  ;;  %v150_v26 = vand.u32 65535, %v149_v23 }
 0x149   : >> { %v153_v25 = vcvt.s32.f32 %v151_v24  ;;  %v152_v28 = vcvt.s32.f32 %v150_v26 }
 0x14b   : >> { %154 = vmin.xlane.f32.xlu1 %v153_v25 }
 0x1d8   : >> { %v155_v27 = vpop.xlane.xlu1 %154 }
 0x1d9   : >> { %vm156_vm5 = vcmp.eq.f32.partialorder %v153_v25, %v155_v27  ;;  %v161_v30 = vcvt.f32.s32 %v155_v27 }
 0x1da   : >> { %v157_v29 = vsel %vm156_vm5, %v152_v28, inf }
 0x1db   : >> { %158 = vmin.xlane.f32.xlu1 %v157_v29  ;;  %v162_v32 = vshll.u32 %v161_v30, 16 }
 0x265   : > { %117 = sbr.rel (!%p115_p4) target bundleno = 17 (0x11), region = 61 }
 0x268   : >> { %v159_v31 = vpop.xlane.xlu1 %158 }
 0x269   : >> { %v160_v33 = vcvt.f32.s32 %v159_v31 }
 0x26b   : >> { %v163_v4 = vadd.s32 %v162_v32, %v160_v33  }
 0x26c PF: > { %s11_s6 = sadd.s32 1, %s297_s6  }
 0x26d   : > { %p8_p5 = scmp.ge.s32.totalorder %s11_s6, 4  }
 0x26f   :  { %10 = sbr.rel (!%p8_p5) target bundleno = 1 (0x1), region = 72 }

// kernel: neg.14
= control target key start
LH: loop header
LB: loop body
LE: loop exit
PB: predicated region body
PF: predicated region fallthrough
CT: control target
= control target key end

     0   :  { %s72_s0 = inlined_call_operand.vmem [shape: f32[2,16,32], index: 0, kind: input, shape index: {}]   ;;  %s73_s1 = inlined_call_operand.vmem [shape: f32[2,16,32], index: 1, kind: output, shape index: {}]  }
   0x1   :  { %v2_v0 = vld [vmem:[%s72_s0] sm:$0xff]  ;;  %v32_v1 = vld [vmem:[%s72_s0 + $0x10] sm:$0xff]  ;;  %v34_v2 = vld [vmem:[%s72_s0 + $0x8] sm:$0xff] }
   0x2   :  { %v5_v3 = vxor.u32 2147483648, %v2_v0  ;;  %v12_v4 = vxor.u32 2147483648, %v32_v1  ;;  %v20_v5 = vxor.u32 2147483648, %v34_v2  ;;  %v36_v6 = vld [vmem:[%s72_s0 + $0x18] sm:$0xff] }
   0x3   :  { %v28_v7 = vxor.u32 2147483648, %v36_v6 }
   0x4   :  { %7 = vst [vmem:[%s73_s1] sm:$0xff] %v5_v3  ;;  %33 = vst [vmem:[%s73_s1 + $0x10] sm:$0xff] %v12_v4 }
   0x5   :  { %35 = vst [vmem:[%s73_s1 + $0x8] sm:$0xff] %v20_v5  ;;  %37 = vst [vmem:[%s73_s1 + $0x18] sm:$0xff] %v28_v7 }

// kernel: ridbnet_seg_forward.28
= control target key start
LH: loop header
LB: loop body
LE: loop exit
PB: predicated region body
PF: predicated region fallthrough
CT: control target
= control target key end

     0   :  { %s527_s15 = smov 0   ;;  %s553_s0 = inlined_call_operand.vmem [shape: f32[2,16,3], index: 0, kind: input, shape index: {}]   ;;  %s554_s1 = inlined_call_operand.vmem [shape: f32[2,3,32], index: 1, kind: input, shape index: {}]   ;;  %s555_s2 = inlined_call_operand.vmem [shape: f32[2,16,1], index: 2, kind: input, shape index: {}]   ;;  %s556_s3 = inlined_call_operand.vmem [shape: f32[2,1,32], index: 3, kind: input, shape index: {}]   ;;  %s557_s4 = inlined_call_operand.vmem [shape: f32[2,16,32], index: 4, kind: output, shape index: {}]  }
   0x1 LB: > { %s454_s16 = sadd.s32 4294967295, %s499_s15   ;;  %p458_p0 = scmp.ge.s32.totalorder %s499_s15, 1  ;;  %s499_s15 = sphi %s527_s15, %s14_s15  }
   0x2   : > { %p189_p1 = scmp.lt.s32.totalorder %s499_s15, 3 }
   0x4   : > { %p190_p2 = pnand %p458_p0, %p189_p1 }
   0x5   : > { %p227_p3 = scmp.lt.s32.totalorder (!%p190_p2), %s454_s16, 1  ;;  %v501_v0 = vmov (!%p190_p2), 0   ;;  %vm259_vm0 = vcmask (!%p190_p2), 1042432   ;;  %vm252_vm1 = vcmask (!%p190_p2), 23552   ;;  %vm363_vm2 = vcmask (!%p190_p2), 261120  }
   0x6   : > { %193 = sbr.rel (%p190_p2) target bundleno = 237 (0xed), region = 36  ;;  %492 = vset.pattern.permute.xlu0 (!%p190_p2), %v501_v0 }
   0xd   : > { %s559_s16 = smov (!%p227_p3, %s454_s16), 1 }
   0xe   : > { %s461_s17 = sshll.u32 %s559_s16, 2  ;;  %s472_s18 = sshll.u32 %s559_s16, 4 }
   0xf   : > { %s235_s21 = scalar_lea.vmem %s554_s1, %s461_s17  ;;  %s231_s24 = scalar_lea.vmem %s553_s0, %s472_s18 }
  0x10   : > { %v251_v1 = vld [vmem:[%s235_s21] sm:$0x7]  ;;  %v250_v3 = vld [vmem:[%s231_s24 + $0x8] sm:$0xff]  ;;  %s240_s27 = scalar_lea.vmem %s555_s2, %s472_s18  ;;  %s243_s30 = scalar_lea.vmem %s556_s3, %s559_s16 }
  0x11   : > { %v249_v2 = vld [vmem:[%s231_s24] sm:$0xff]  ;;  %478 = vmatprep.subr.msk.mxu0 %vm259_vm0, %v251_v1  ;;  %v339_v5 = vld [vmem:[%s240_s27 + $0x8] sm:$0xff]  ;;  %s248_s7 = scalar_lea.vmem %s557_s4, %s472_s18 }
  0x12   : > { %480 = vmatprep.mubr.msk.f32.mxu0 %vm252_vm1, %v249_v2  ;;  %v338_v4 = vld [vmem:[%s240_s27] sm:$0xff]  ;;  %479 = vmatpush3.msk.msra.mxu0 %vm259_vm0, %v251_v1 }
  0x13   : > { %343 = vperm.xlu0 %492, %v338_v4   ;;  %481 = vmatmul.mubr.msk.f32.vlgmr.msra.gmra.mrb[0].mxu0 %vm252_vm1, %v250_v3  ;;  %v469_v7 = vld [vmem:[%s243_s30] ss:$0 sm:$0xff] }
  0x17   : > { %348 = vperm.xlu0 %492, %v339_v5  }
  0x92   : > { %v344_v6 = vpop.permute.xlu0 %343 }
  0x93   : > { %v357_v13 = vadd.f32 %v469_v7, %v344_v6 }
  0x96   : > { %v349_v8 = vpop.permute.xlu0 %348 }
  0x97   : > { %v358_v10 = vadd.f32 %v469_v7, %v349_v8 }
  0xe6   : > { %v482_v9 = vpop.f32.mrb[0].mxu0 }
  0xe7   : > { %v360_v11 = vmul.f32 2.0, %v482_v9  ;;  %v329_v12 = vpop.f32.mrb[1].mxu0 }
  0xe8   : > { %v359_v14 = vmul.f32 2.0, %v329_v12 }
  0xe9   : > { %v362_v15 = vsub.f32 %v358_v10, %v360_v11 }
  0xea   : > { %v361_v16 = vsub.f32 %v357_v13, %v359_v14 }
  0xeb   : > { %365 = vst.msk [vmem:[%s248_s7 + $0x8] sm:$0xff] %vm363_vm2, %v362_v15 }
  0xec   : > { %364 = vst.msk [vmem:[%s248_s7] sm:$0xff] %vm363_vm2, %v361_v16 }
  0xed PF: > { %s14_s15 = sadd.s32 1, %s499_s15  }
  0xee   : > { %p11_p4 = scmp.ge.s32.totalorder %s14_s15, 4  }
  0xf0   :  { %13 = sbr.rel (!%p11_p4) target bundleno = 1 (0x1), region = 75 }

// kernel: ridbnet_seg_forward.30
= control target key start
LH: loop header
LB: loop body
LE: loop exit
PB: predicated region body
PF: predicated region fallthrough
CT: control target
= control target key end

     0   :  { %s325_s6 = smov 0   ;;  %s360_s0 = inlined_call_operand.vmem [shape: f32[2,3,16], index: 0, kind: input, shape index: {}]   ;;  %s361_s1 = inlined_call_operand.vmem [shape: s32[2,1,8], index: 1, kind: output, shape index: {}]  }
   0x1 LB: > { %s227_s7 = sadd.s32 4294967295, %s297_s6   ;;  %p231_p0 = scmp.ge.s32.totalorder %s297_s6, 1  ;;  %s297_s6 = sphi %s325_s6, %s11_s6  }
   0x2   : > { %p86_p1 = scmp.lt.s32.totalorder %s297_s6, 3 }
   0x4   : > { %p87_p2 = pnand %p231_p0, %p86_p1 }
   0x5   : > { %p103_p3 = scmp.lt.s32.totalorder (!%p87_p2), %s227_s7, 1  ;;  %v111_v0 = vlaneseq (!%p87_p2)  ;;  %v299_v3 = vmov (!%p87_p2), 0   ;;  %v303_v4 = vmov (!%p87_p2), 0   ;;  %v307_v5 = vmov (!%p87_p2), 1e+10   ;;  %s343_s15 = smov (!%p87_p2), 0  }
   0x6   : > { %90 = sbr.rel (%p87_p2) target bundleno = 620 (0x26c), region = 24 }
   0x7   : > { %v112_v1 = vand.u32 (!%p87_p2), 127, %v111_v0 }
   0xd   : > { %s363_s7 = smov (!%p103_p3, %s227_s7), 1 }
   0xe   : > { %s232_s8 = sshll.u32 %s363_s7, 2  ;;  %s109_s11 = scalar_lea.vmem %s361_s1, %s363_s7 }
   0xf   : > { %s106_s14 = scalar_lea.vmem %s360_s0, %s232_s8 }
  0x10   : > { %v110_v2 = vld [vmem:[%s106_s14] sm:$0x7] }
  0x11 LB: >> { %vm129_vm0 = vcmask 124928   ;;  %v122_v6 = vstv %s313_s15  ;;  %vm125_vm1 = vcmp.eq.s32.totalorder %v112_v1, %v305_v4  ;;  %vm143_vm3 = vcmask 130048   ;;  %s118_s15 = sadd.s32 1, %s313_s15   ;;  %s313_s15 = sphi %s343_s15, %s118_s15   ;;  %v309_v5 = vphi %v307_v5, %v142_v5   ;;  %v305_v4 = vphi %v303_v4, %v163_v4   ;;  %v301_v3 = vphi %v299_v3, %v300_v3  }
  0x12   : >> { %vm123_vm2 = vcmp.eq.s32.totalorder %v112_v1, %v122_v6  ;;  %v128_v7 = vsel %vm125_vm1, %v110_v2, 0.0  ;;  %p115_p4 = scmp.ge.s32.totalorder %s118_s15, 8  }
  0x13   : >> { %v130_v8 = vsel %vm129_vm0, %v128_v7, 0.0  ;;  %v124_v9 = vsel %vm123_vm2, %v305_v4, %v301_v3   ;;  %vm164_vm6 = vcmask (%p115_p4), 57344  }
  0x14   : >> { %131 = vadd.xlane.f32.xlu0 %v130_v8  ;;  %v300_v3 = vmov %v124_v9   ;;  %165 = vst.msk [vmem:[%s109_s11] sm:$0x1] (%p115_p4), %vm164_vm6, %v124_v9 }
  0xa1   : >> { %v132_v10 = vpop.xlane.xlu0 %131 }
  0xa2   : >> { %v133_v11 = vsub.f32 %v110_v2, %v132_v10 }
  0xa4   : >> { %v134_v12 = vmul.f32 %v133_v11, %v133_v11 }
  0xa6   : >> { %v135_v13 = vsel %vm129_vm0, %v134_v12, 0.0 }
  0xa7   : >> { %v136_v14 = vrot.slane %v135_v13, 4 }
  0xa9   : >> { %v137_v15 = vadd.f32 %v136_v14, %v135_v13 }
  0xab   : >> { %v138_v16 = vrot.slane %v137_v15, 2 }
  0xad   : >> { %v139_v17 = vadd.f32 %v138_v16, %v137_v15 }
  0xaf   : >> { %v140_v18 = vrot.slane %v139_v17, 1 }
  0xb1   : >> { %v141_v19 = vadd.f32 %v140_v18, %v139_v17 }
  0xb3   : >> { %v142_v5 = vmin.f32 %v309_v5, %v141_v19  }
  0xb5   : >> { %v144_v20 = vsel %vm143_vm3, %v142_v5, -inf }
  0xb6   : >> { %145 = vmax.xlane.f32.xlu0 %v144_v20 }
 0x143   : >> { %v146_v21 = vpop.xlane.xlu0 %145 }
 0x144   : >> { %vm147_vm4 = vcmp.ge.f32.partialorder %v142_v5, %v146_v21 }
 0x145   : >> { %v148_v22 = vsel %vm147_vm4, %v112_v1, 16 }
 0x146   : >> { %v149_v23 = vsel %vm143_vm3, %v148_v22, 2147483647 }
 0x147   : >> { %v151_v24 = vshra.s32 %v149_v23, 16  ;;  %v150_v26 = vand.u32 65535, %v149_v23 }
 0x149   : >> { %v153_v25 = vcvt.s32.f32 %v151_v24  ;;  %v152_v28 = vcvt.s32.f32 %v150_v26 }
 0x14b   : >> { %154 = vmin.xlane.f32.xlu1 %v153_v25 }
 0x1d8   : >> { %v155_v27 = vpop.xlane.xlu1 %154 }
 0x1d9   : >> { %vm156_vm5 = vcmp.eq.f32.partialorder %v153_v25, %v155_v27  ;;  %v161_v30 = vcvt.f32.s32 %v155_v27 }
 0x1da   : >> { %v157_v29 = vsel %vm156_vm5, %v152_v28, inf }
 0x1db   : >> { %158 = vmin.xlane.f32.xlu1 %v157_v29  ;;  %v162_v32 = vshll.u32 %v161_v30, 16 }
 0x265   : > { %117 = sbr.rel (!%p115_p4) target bundleno = 17 (0x11), region = 61 }
 0x268   : >> { %v159_v31 = vpop.xlane.xlu1 %158 }
 0x269   : >> { %v160_v33 = vcvt.f32.s32 %v159_v31 }
 0x26b   : >> { %v163_v4 = vadd.s32 %v162_v32, %v160_v33  }
 0x26c PF: > { %s11_s6 = sadd.s32 1, %s297_s6  }
 0x26d   : > { %p8_p5 = scmp.ge.s32.totalorder %s11_s6, 4  }
 0x26f   :  { %10 = sbr.rel (!%p8_p5) target bundleno = 1 (0x1), region = 72 }

// kernel: ridbnet_seg_forward.29
= control target key start
LH: loop header
LB: loop body
LE: loop exit
PB: predicated region body
PF: predicated region fallthrough
CT: control target
= control target key end

     0   :  { %s718_s12 = smov 0   ;;  %s871_s0 = inlined_call_operand.vmem [shape: f32[2,128,134], index: 0, kind: input, shape index: {}]   ;;  %s872_s1 = inlined_call_operand.vmem [shape: bf16[134,256], index: 1, kind: input, shape index: {}]   ;;  %s873_s2 = inlined_call_operand.vmem [shape: f32[1,256], index: 2, kind: input, shape index: {}]   ;;  %s874_s3 = inlined_call_operand.vmem [shape: f32[2,16,256], index: 3, kind: output, shape index: {}]  }
   0x1 LB: > { %s598_s13 = sadd.s32 4294967295, %s696_s12   ;;  %p602_p0 = scmp.ge.s32.totalorder %s696_s12, 1  ;;  %s696_s12 = sphi %s718_s12, %s13_s12  }
   0x2   : > { %p137_p1 = scmp.lt.s32.totalorder %s696_s12, 3 }
   0x4   : > { %p138_p2 = pnand %p602_p0, %p137_p1 }
   0x5   : > { %v664_v0 = vld [vmem:[%s872_s1 + $0x4] ss:$8 sps:$4 sm:$0xff] (!%p138_p2)   ;;  %p161_p3 = scmp.lt.s32.totalorder (!%p138_p2), %s598_s13, 1  ;;  %v666_v1 = vld [vmem:[%s872_s1] ss:$8 sps:$4 sm:$0xff] (!%p138_p2)   ;;  %vm334_vm0 = vcmask (!%p138_p2), 48128  }
   0x6   : > { %141 = sbr.rel (%p138_p2) target bundleno = 296 (0x128), region = 32  ;;  %366 = vmatprep.subr.bf16.mxu0 (!%p138_p2), %v664_v0  ;;  %v667_v2 = vld [vmem:[%s872_s1 + $0x14] ss:$8 sps:$4 sm:$0xff] (!%p138_p2)   ;;  %638 = vmatprep.subr.bf16.mxu1 (!%p138_p2), %v664_v0  ;;  %v669_v3 = vld [vmem:[%s872_s1 + $0x10] ss:$8 sps:$4 sm:$0xff] (!%p138_p2)   ;;  %vm359_vm1 = vcmask (!%p138_p2), 1042432  }
   0x7   : > { %367 = vmatpush1.bf16.msra.mxu0 (!%p138_p2), %v666_v1  ;;  %647 = vmatpush1.bf16.msra.mxu1 (!%p138_p2), %v666_v1  ;;  %v670_v4 = vld [vmem:[%s872_s1 + $0x24] ss:$8 sps:$4 sm:$0xff] (!%p138_p2)   ;;  %v672_v5 = vld [vmem:[%s872_s1 + $0x20] ss:$8 sps:$4 sm:$0xff] (!%p138_p2)   ;;  %v673_v6 = vld [vmem:[%s872_s1 + $0x34] ss:$8 sps:$4 sm:$0xff] (!%p138_p2)  }
   0x8   : > { %368 = vmatprep.subr.bf16.mxu0 (!%p138_p2), %v667_v2  ;;  %639 = vmatprep.subr.bf16.mxu1 (!%p138_p2), %v667_v2  ;;  %v675_v7 = vld [vmem:[%s872_s1 + $0x30] ss:$8 sps:$4 sm:$0xff] (!%p138_p2)   ;;  %v676_v10 = vld [vmem:[%s872_s1 + $0x44] ss:$8 sps:$4 sm:$0xff] (!%p138_p2)   ;;  %v678_v15 = vld [vmem:[%s872_s1 + $0x40] ss:$8 sps:$4 sm:$0xff] (!%p138_p2)  }
   0x9   : > { %v679_v16 = vld [vmem:[%s872_s1 + $0x54] ss:$8 sps:$4 sm:$0xff] (!%p138_p2)   ;;  %v681_v17 = vld [vmem:[%s872_s1 + $0x50] ss:$8 sps:$4 sm:$0xff] (!%p138_p2)   ;;  %v682_v18 = vld [vmem:[%s872_s1 + $0x64] ss:$8 sps:$4 sm:$0xff] (!%p138_p2)  }
   0xa   : > { %v684_v19 = vld [vmem:[%s872_s1 + $0x60] ss:$8 sps:$4 sm:$0xff] (!%p138_p2)   ;;  %v685_v20 = vld [vmem:[%s872_s1 + $0x74] ss:$8 sps:$4 sm:$0xff] (!%p138_p2)   ;;  %v687_v22 = vld [vmem:[%s872_s1 + $0x70] ss:$8 sps:$4 sm:$0xff] (!%p138_p2)  }
   0xb   : > { %369 = vmatpush1.bf16.msra.mxu0 (!%p138_p2), %v669_v3  ;;  %648 = vmatpush1.bf16.msra.mxu1 (!%p138_p2), %v669_v3  ;;  %v236_v21 = vld [vmem:[%s872_s1 + $0x80] sm:$0x77] (!%p138_p2) }
   0xc   : > { %370 = vmatprep.subr.bf16.mxu0 (!%p138_p2), %v670_v4  ;;  %640 = vmatprep.subr.bf16.mxu1 (!%p138_p2), %v670_v4  ;;  %v624_v23 = vcombine.high (!%p138_p2), %v236_v21, %v236_v21  ;;  %v623_v24 = vcombine.low (!%p138_p2), %v236_v21, %v236_v21  ;;  %v239_v4 = vlaneseq (!%p138_p2) }
   0xd   : > { %s876_s13 = smov (!%p161_p3, %s598_s13), 1 }
   0xe   : > { %s636_s24 = sshll.u32 %s876_s13, 8  ;;  %v361_v30 = vsel %vm359_vm1, %v623_v24, 0  ;;  %s637_s29 = sshll.u32 %s876_s13, 5 }
   0xf   : > { %s753_s4 = scalar_lea.vmem %s871_s0, %s636_s24  ;;  %371 = vmatpush1.bf16.msra.mxu0 %v672_v5  ;;  %649 = vmatpush1.bf16.msra.mxu1 %v672_v5  ;;  %v240_v5 = vshrl.u32 %v239_v4, 7  ;;  %s170_s5 = scalar_lea.vmem %s874_s3, %s637_s29 }
  0x10   : > { %v173_v8 = vld [vmem:[%s753_s4 + $0x8] sm:$0xff]  ;;  %v175_v9 = vld [vmem:[%s753_s4 + $0x18] sm:$0xff]  ;;  %372 = vmatprep.subr.bf16.mxu0 %v673_v6  ;;  %641 = vmatprep.subr.bf16.mxu1 %v673_v6  ;;  %v172_v25 = vld [vmem:[%s753_s4] sm:$0xff] }
  0x11   : > { %v205_v11 = vpack.c.bf16 %v175_v9, %v173_v8  ;;  %v189_v12 = vld [vmem:[%s753_s4 + $0x88] sm:$0xff]  ;;  %v191_v13 = vld [vmem:[%s753_s4 + $0x98] sm:$0xff]  ;;  %v174_v26 = vld [vmem:[%s753_s4 + $0x10] sm:$0xff]  ;;  %v241_v6 = vsub.s32 0, %v240_v5  ;;  %v245_v9 = vsub.s32 1, %v240_v5 }
  0x12   : > { %v213_v14 = vpack.c.bf16 %v191_v13, %v189_v12  ;;  %v188_v27 = vld [vmem:[%s753_s4 + $0x80] sm:$0xff]  ;;  %v190_v28 = vld [vmem:[%s753_s4 + $0x90] sm:$0xff]  ;;  %v177_v29 = vld [vmem:[%s753_s4 + $0x28] sm:$0xff]  ;;  %v204_v34 = vpack.c.bf16 %v174_v26, %v172_v25 }
  0x13   : > { %626 = vmatprep.mubr.msk.bf16.mxu0 %vm334_vm0, %v205_v11  ;;  %373 = vmatpush1.bf16.msra.mxu0 %v675_v7  ;;  %v179_v31 = vld [vmem:[%s753_s4 + $0x38] sm:$0xff]  ;;  %v193_v32 = vld [vmem:[%s753_s4 + $0xa8] sm:$0xff]  ;;  %v212_v35 = vpack.c.bf16 %v190_v28, %v188_v27  ;;  %v176_v38 = vld [vmem:[%s753_s4 + $0x20] sm:$0xff] }
  0x14   : > { %650 = vmatpush1.bf16.msra.mxu1 %v675_v7  ;;  %374 = vmatprep.subr.bf16.mxu0 %v676_v10  ;;  %v195_v33 = vld [vmem:[%s753_s4 + $0xb8] sm:$0xff]  ;;  %v207_v36 = vpack.c.bf16 %v179_v31, %v177_v29  ;;  %v178_v39 = vld [vmem:[%s753_s4 + $0x30] sm:$0xff]  ;;  %v192_v40 = vld [vmem:[%s753_s4 + $0xa0] sm:$0xff] }
  0x15   : > { %642 = vmatprep.subr.bf16.mxu1 %v676_v10  ;;  %630 = vmatprep.mubr.msk.bf16.mxu1 %vm334_vm0, %v213_v14  ;;  %v215_v37 = vpack.c.bf16 %v195_v33, %v193_v32  ;;  %v194_v41 = vld [vmem:[%s753_s4 + $0xb0] sm:$0xff]  ;;  %v181_v42 = vld [vmem:[%s753_s4 + $0x48] sm:$0xff]  ;;  %v183_v43 = vld [vmem:[%s753_s4 + $0x58] sm:$0xff]  ;;  %v206_v46 = vpack.c.bf16 %v178_v39, %v176_v38 }
  0x16   : > { %v197_v44 = vld [vmem:[%s753_s4 + $0xc8] sm:$0xff]  ;;  %v199_v45 = vld [vmem:[%s753_s4 + $0xd8] sm:$0xff]  ;;  %v214_v47 = vpack.c.bf16 %v194_v41, %v192_v40  ;;  %v209_v48 = vpack.c.bf16 %v183_v43, %v181_v42  ;;  %v180_v50 = vld [vmem:[%s753_s4 + $0x40] sm:$0xff] }
  0x17   : > { %375 = vmatpush1.bf16.msra.mxu0 %v678_v15  ;;  %v217_v49 = vpack.c.bf16 %v199_v45, %v197_v44  ;;  %v182_v51 = vld [vmem:[%s753_s4 + $0x50] sm:$0xff]  ;;  %v196_v52 = vld [vmem:[%s753_s4 + $0xc0] sm:$0xff]  ;;  %v185_v54 = vld [vmem:[%s753_s4 + $0x68] sm:$0xff] }
  0x18   : > { %651 = vmatpush1.bf16.msra.mxu1 %v678_v15  ;;  %376 = vmatprep.subr.bf16.mxu0 %v679_v16  ;;  %v198_v53 = vld [vmem:[%s753_s4 + $0xd0] sm:$0xff]  ;;  %v187_v55 = vld [vmem:[%s753_s4 + $0x78] sm:$0xff]  ;;  %v201_v56 = vld [vmem:[%s753_s4 + $0xe8] sm:$0xff]  ;;  %v208_v58 = vpack.c.bf16 %v182_v51, %v180_v50 }
  0x19   : > { %643 = vmatprep.subr.bf16.mxu1 %v679_v16  ;;  %v203_v57 = vld [vmem:[%s753_s4 + $0xf8] sm:$0xff]  ;;  %v216_v59 = vpack.c.bf16 %v198_v53, %v196_v52  ;;  %v211_v60 = vpack.c.bf16 %v187_v55, %v185_v54  ;;  %v184_v62 = vld [vmem:[%s753_s4 + $0x60] sm:$0xff]  ;;  %v186_v63 = vld [vmem:[%s753_s4 + $0x70] sm:$0xff] }
  0x1a   : > { %v219_v61 = vpack.c.bf16 %v203_v57, %v201_v56  ;;  %v200_v0 = vld [vmem:[%s753_s4 + $0xe0] sm:$0xff]  ;;  %v202_v1 = vld [vmem:[%s753_s4 + $0xf0] sm:$0xff]  ;;  %v210_v2 = vpack.c.bf16 %v186_v63, %v184_v62 }
  0x1b   : > { %377 = vmatpush1.bf16.msra.mxu0 %v681_v17  ;;  %v218_v3 = vpack.c.bf16 %v202_v1, %v200_v0  ;;  %v237_v7 = vld [vmem:[%s873_s2] sm:$0x3] }
  0x1c   : > { %652 = vmatpush1.bf16.msra.mxu1 %v681_v17  ;;  %378 = vmatprep.subr.bf16.mxu0 %v682_v18  ;;  %v828_v15 = vrot.slane %v237_v7, %v241_v6 }
  0x1d   : > { %644 = vmatprep.subr.bf16.mxu1 %v682_v18  ;;  %v830_v18 = vrot.slane %v237_v7, %v245_v9 }
  0x1f   : > { %379 = vmatpush1.bf16.msra.mxu0 %v684_v19 }
  0x20   : > { %653 = vmatpush1.bf16.msra.mxu1 %v684_v19  ;;  %380 = vmatprep.subr.bf16.mxu0 %v685_v20 }
  0x21   : > { %645 = vmatprep.subr.bf16.mxu1 %v685_v20 }
  0x23   : > { %381 = vmatpush1.bf16.msra.mxu0 %v687_v22 }
  0x24   : > { %654 = vmatpush1.bf16.msra.mxu1 %v687_v22  ;;  %625 = vmatprep.subr.msk.bf16.mxu0 %vm359_vm1, %v624_v23 }
  0x25   : > { %646 = vmatprep.subr.msk.bf16.mxu1 %vm359_vm1, %v624_v23 }
  0x27   : > { %383 = vmatpush1.bf16.msra.mxu0 %v361_v30 }
  0x28   : > { %655 = vmatpush1.bf16.msra.mxu1 %v361_v30 }
  0x2a   : > { %399 = vmatmul.mubr.bf16.vlgmr.msra.gmra.mrb[0].mxu0 %v204_v34 }
  0x2b   : > { %439 = vmatmul.mubr.bf16.vlgmr.msra.gmra.mrb[0].mxu1 %v212_v35  ;;  %627 = vmatprep.mubr.msk.bf16.mxu0 %vm334_vm0, %v207_v36 }
  0x2c   : > { %631 = vmatprep.mubr.msk.bf16.mxu1 %vm334_vm0, %v215_v37 }
  0x32   : > { %409 = vmatmul.mubr.bf16.gmra.mrb[4].mxu0 %v206_v46 }
  0x33   : > { %449 = vmatmul.mubr.bf16.gmra.mrb[4].mxu1 %v214_v47  ;;  %628 = vmatprep.mubr.msk.bf16.mxu0 %vm334_vm0, %v209_v48 }
  0x34   : > { %632 = vmatprep.mubr.msk.bf16.mxu1 %vm334_vm0, %v217_v49 }
  0x3a   : > { %419 = vmatmul.mubr.bf16.gmra.mrb[8].mxu0 %v208_v58 }
  0x3b   : > { %459 = vmatmul.mubr.bf16.gmra.mrb[8].mxu1 %v216_v59  ;;  %629 = vmatprep.mubr.msk.bf16.mxu0 %vm334_vm0, %v211_v60 }
  0x3c   : > { %633 = vmatprep.mubr.msk.bf16.mxu1 %vm334_vm0, %v219_v61 }
  0x42   : > { %429 = vmatmul.mubr.bf16.gmra.mrb[12].mxu0 %v210_v2 }
  0x43   : > { %469 = vmatmul.mubr.bf16.gmra.mrb[12].mxu1 %v218_v3 }
  0xfd   : > { %v400_v8 = vpop.f32.mrb[0].mxu0 }
  0xfe   : > { %v440_v10 = vpop.f32.mrb[0].mxu1  ;;  %v402_v11 = vpop.f32.mrb[1].mxu0  ;;  %v401_v19 = vadd.f32 %v400_v8, %v828_v15 }
  0xff   : > { %v442_v12 = vpop.f32.mrb[1].mxu1  ;;  %v404_v13 = vpop.f32.mrb[2].mxu0  ;;  %v403_v20 = vadd.f32 %v402_v11, %v830_v18  ;;  %v441_v61 = vadd.f32 %v440_v10, %v828_v15 }
 0x100   : > { %v444_v14 = vpop.f32.mrb[2].mxu1  ;;  %v406_v16 = vpop.f32.mrb[3].mxu0  ;;  %v405_v23 = vadd.f32 %v404_v13, %v828_v15  ;;  %v479_v31 = vmax.f32 %v401_v19, 0.0  ;;  %v443_v62 = vadd.f32 %v442_v12, %v830_v18 }
 0x101   : > { %v446_v17 = vpop.f32.mrb[3].mxu1  ;;  %v407_v27 = vadd.f32 %v406_v16, %v830_v18  ;;  %v480_v36 = vmax.f32 %v403_v20, 0.0  ;;  %v445_v1 = vadd.f32 %v444_v14, %v828_v15  ;;  %v495_v13 = vmax.f32 %v441_v61, 0.0 }
 0x102   : > { %v481_v39 = vmax.f32 %v405_v23, 0.0  ;;  %v447_v2 = vadd.f32 %v446_v17, %v830_v18  ;;  %v496_v10 = vmax.f32 %v443_v62, 0.0 }
 0x103   : > { %v482_v42 = vmax.f32 %v407_v27, 0.0  ;;  %v497_v20 = vmax.f32 %v445_v1, 0.0 }
 0x104   : > { %v498_v17 = vmax.f32 %v447_v2, 0.0 }
 0x105   : > { %v410_v21 = vpop.f32.mrb[4].mxu0 }
 0x106   : > { %v450_v22 = vpop.f32.mrb[4].mxu1  ;;  %v411_v24 = vadd.f32 %v410_v21, %v828_v15  ;;  %v412_v25 = vpop.f32.mrb[5].mxu0 }
 0x107   : > { %v452_v26 = vpop.f32.mrb[5].mxu1  ;;  %v413_v28 = vadd.f32 %v412_v25, %v830_v18  ;;  %v414_v29 = vpop.f32.mrb[6].mxu0  ;;  %v451_v5 = vadd.f32 %v450_v22, %v828_v15 }
 0x108   : > { %v454_v30 = vpop.f32.mrb[6].mxu1  ;;  %v483_v32 = vmax.f32 %v411_v24, 0.0  ;;  %v415_v33 = vadd.f32 %v414_v29, %v828_v15  ;;  %v416_v34 = vpop.f32.mrb[7].mxu0  ;;  %v453_v7 = vadd.f32 %v452_v26, %v830_v18 }
 0x109   : > { %v456_v35 = vpop.f32.mrb[7].mxu1  ;;  %v484_v37 = vmax.f32 %v413_v28, 0.0  ;;  %v417_v38 = vadd.f32 %v416_v34, %v830_v18  ;;  %v455_v12 = vadd.f32 %v454_v30, %v828_v15  ;;  %v499_v25 = vmax.f32 %v451_v5, 0.0 }
 0x10a   : > { %v511_v40 = vmax.f32 %v479_v31, %v483_v32  ;;  %v485_v41 = vmax.f32 %v415_v33, 0.0  ;;  %v457_v21 = vadd.f32 %v456_v35, %v830_v18  ;;  %v500_v31 = vmax.f32 %v453_v7, 0.0 }
 0x10b   : > { %v512_v43 = vmax.f32 %v480_v36, %v484_v37  ;;  %v486_v44 = vmax.f32 %v417_v38, 0.0  ;;  %v501_v36 = vmax.f32 %v455_v12, 0.0 }
 0x10c   : > { %v513_v45 = vmax.f32 %v481_v39, %v485_v41  ;;  %v502_v39 = vmax.f32 %v457_v21, 0.0 }
 0x10d   : > { %v514_v46 = vmax.f32 %v482_v42, %v486_v44  ;;  %v420_v47 = vpop.f32.mrb[8].mxu0 }
 0x10e   : > { %v460_v48 = vpop.f32.mrb[8].mxu1  ;;  %v421_v49 = vadd.f32 %v420_v47, %v828_v15  ;;  %v422_v50 = vpop.f32.mrb[9].mxu0 }
 0x10f   : > { %v462_v51 = vpop.f32.mrb[9].mxu1  ;;  %v423_v52 = vadd.f32 %v422_v50, %v830_v18  ;;  %v424_v53 = vpop.f32.mrb[10].mxu0  ;;  %v461_v26 = vadd.f32 %v460_v48, %v828_v15 }
 0x110   : > { %v464_v54 = vpop.f32.mrb[10].mxu1  ;;  %v487_v55 = vmax.f32 %v421_v49, 0.0  ;;  %v425_v56 = vadd.f32 %v424_v53, %v828_v15  ;;  %v426_v57 = vpop.f32.mrb[11].mxu0  ;;  %v463_v32 = vadd.f32 %v462_v51, %v830_v18 }
 0x111   : > { %v466_v58 = vpop.f32.mrb[11].mxu1  ;;  %v488_v59 = vmax.f32 %v423_v52, 0.0  ;;  %v427_v60 = vadd.f32 %v426_v57, %v830_v18  ;;  %v465_v44 = vadd.f32 %v464_v54, %v828_v15 }
 0x112   : > { %v515_v63 = vmax.f32 %v511_v40, %v487_v55  ;;  %v489_v0 = vmax.f32 %v425_v56, 0.0  ;;  %v504_v47 = vmax.f32 %v463_v32, 0.0  ;;  %v467_v48 = vadd.f32 %v466_v58, %v830_v18 }
 0x113   : > { %v516_v3 = vmax.f32 %v512_v43, %v488_v59  ;;  %v490_v4 = vmax.f32 %v427_v60, 0.0  ;;  %v503_v43 = vmax.f32 %v461_v26, 0.0  ;;  %v505_v61 = vmax.f32 %v465_v44, 0.0 }
 0x114   : > { %v517_v6 = vmax.f32 %v513_v45, %v489_v0 }
 0x115   : > { %v518_v8 = vmax.f32 %v514_v46, %v490_v4  ;;  %v430_v9 = vpop.f32.mrb[12].mxu0 }
 0x116   : > { %v470_v11 = vpop.f32.mrb[12].mxu1  ;;  %v431_v16 = vadd.f32 %v430_v9, %v828_v15  ;;  %v432_v19 = vpop.f32.mrb[13].mxu0 }
 0x117   : > { %v472_v14 = vpop.f32.mrb[13].mxu1  ;;  %v433_v22 = vadd.f32 %v432_v19, %v830_v18  ;;  %v434_v23 = vpop.f32.mrb[14].mxu0  ;;  %v471_v38 = vadd.f32 %v470_v11, %v828_v15 }
 0x118   : > { %v474_v24 = vpop.f32.mrb[14].mxu1  ;;  %v491_v27 = vmax.f32 %v431_v16, 0.0  ;;  %v435_v28 = vadd.f32 %v434_v23, %v828_v15  ;;  %v436_v29 = vpop.f32.mrb[15].mxu0  ;;  %v473_v42 = vadd.f32 %v472_v14, %v830_v18 }
 0x119   : > { %v476_v30 = vpop.f32.mrb[15].mxu1  ;;  %v492_v33 = vmax.f32 %v433_v22, 0.0  ;;  %v437_v34 = vadd.f32 %v436_v29, %v830_v18  ;;  %v507_v52 = vmax.f32 %v471_v38, 0.0  ;;  %v475_v55 = vadd.f32 %v474_v24, %v828_v15 }
 0x11a   : > { %v519_v35 = vmax.f32 %v515_v63, %v491_v27  ;;  %v493_v37 = vmax.f32 %v435_v28, 0.0  ;;  %v508_v57 = vmax.f32 %v473_v42, 0.0  ;;  %v477_v60 = vadd.f32 %v476_v30, %v830_v18 }
 0x11b   : > { %v520_v40 = vmax.f32 %v516_v3, %v492_v33  ;;  %v494_v41 = vmax.f32 %v437_v34, 0.0  ;;  %v506_v63 = vmax.f32 %v467_v48, 0.0  ;;  %v509_v2 = vmax.f32 %v475_v55, 0.0 }
 0x11c   : > { %v523_v45 = vmax.f32 %v519_v35, %v495_v13  ;;  %v521_v46 = vmax.f32 %v517_v6, %v493_v37  ;;  %v510_v15 = vmax.f32 %v477_v60, 0.0 }
 0x11d   : > { %v524_v49 = vmax.f32 %v520_v40, %v496_v10  ;;  %v522_v50 = vmax.f32 %v518_v8, %v494_v41 }
 0x11e   : > { %v525_v51 = vmax.f32 %v521_v46, %v497_v20  ;;  %v527_v53 = vmax.f32 %v523_v45, %v499_v25 }
 0x11f   : > { %v526_v56 = vmax.f32 %v522_v50, %v498_v17  ;;  %v528_v59 = vmax.f32 %v524_v49, %v500_v31 }
 0x120   : > { %v531_v54 = vmax.f32 %v527_v53, %v503_v43  ;;  %v529_v62 = vmax.f32 %v525_v51, %v501_v36 }
 0x121   : > { %v532_v58 = vmax.f32 %v528_v59, %v504_v47  ;;  %v530_v0 = vmax.f32 %v526_v56, %v502_v39 }
 0x122   : > { %v535_v1 = vmax.f32 %v531_v54, %v507_v52  ;;  %v533_v3 = vmax.f32 %v529_v62, %v505_v61 }
 0x123   : > { %v536_v4 = vmax.f32 %v532_v58, %v508_v57  ;;  %v534_v5 = vmax.f32 %v530_v0, %v506_v63 }
 0x124   : > { %539 = vst [vmem:[%s170_s5] sm:$0xff] %v535_v1  ;;  %v537_v6 = vmax.f32 %v533_v3, %v509_v2 }
 0x125   : > { %540 = vst [vmem:[%s170_s5 + $0x8] sm:$0xff] %v536_v4  ;;  %v538_v18 = vmax.f32 %v534_v5, %v510_v15 }
 0x126   : > { %541 = vst [vmem:[%s170_s5 + $0x10] sm:$0xff] %v537_v6 }
 0x127   : > { %542 = vst [vmem:[%s170_s5 + $0x18] sm:$0xff] %v538_v18 }
 0x128 PF: > { %s13_s12 = sadd.s32 1, %s696_s12  }
 0x129   : > { %p10_p4 = scmp.ge.s32.totalorder %s13_s12, 4  }
 0x12b   :  { %12 = sbr.rel (!%p10_p4) target bundleno = 1 (0x1), region = 62 }

// kernel: neg.15
= control target key start
LH: loop header
LB: loop body
LE: loop exit
PB: predicated region body
PF: predicated region fallthrough
CT: control target
= control target key end

     0   :  { %s40_s0 = inlined_call_operand.vmem [shape: f32[2,8,16], index: 0, kind: input, shape index: {}]   ;;  %s41_s1 = inlined_call_operand.vmem [shape: f32[2,8,16], index: 1, kind: output, shape index: {}]  }
   0x1   :  { %v2_v0 = vld [vmem:[%s40_s0] sm:$0xff]  ;;  %v16_v1 = vld [vmem:[%s40_s0 + $0x8] sm:$0xff] }
   0x2   :  { %v5_v2 = vxor.u32 2147483648, %v2_v0  ;;  %v12_v3 = vxor.u32 2147483648, %v16_v1 }
   0x4   :  { %7 = vst [vmem:[%s41_s1] sm:$0xff] %v5_v2  ;;  %17 = vst [vmem:[%s41_s1 + $0x8] sm:$0xff] %v12_v3 }

// kernel: ridbnet_seg_forward.31
= control target key start
LH: loop header
LB: loop body
LE: loop exit
PB: predicated region body
PF: predicated region fallthrough
CT: control target
= control target key end

     0   :  { %s494_s15 = smov 0   ;;  %s520_s0 = inlined_call_operand.vmem [shape: f32[2,8,3], index: 0, kind: input, shape index: {}]   ;;  %s521_s1 = inlined_call_operand.vmem [shape: f32[2,3,16], index: 1, kind: input, shape index: {}]   ;;  %s522_s2 = inlined_call_operand.vmem [shape: f32[2,8,1], index: 2, kind: input, shape index: {}]   ;;  %s523_s3 = inlined_call_operand.vmem [shape: f32[2,1,16], index: 3, kind: input, shape index: {}]   ;;  %s524_s4 = inlined_call_operand.vmem [shape: f32[2,8,16], index: 4, kind: output, shape index: {}]  }
   0x1 LB: > { %s425_s16 = sadd.s32 4294967295, %s464_s15   ;;  %p429_p0 = scmp.ge.s32.totalorder %s464_s15, 1  ;;  %s464_s15 = sphi %s494_s15, %s14_s15  }
   0x2   : > { %p187_p1 = scmp.lt.s32.totalorder %s464_s15, 3 }
   0x4   : > { %p188_p2 = pnand %p429_p0, %p187_p1 }
   0x5   : > { %p222_p3 = scmp.lt.s32.totalorder (!%p188_p2), %s425_s16, 1  ;;  %v466_v0 = vmov (!%p188_p2), 0.0   ;;  %vm467_vm0 = vmmov (!%p188_p2), 0   ;;  %v468_v1 = vmov (!%p188_p2), 0   ;;  %vm247_vm1 = vcmask (!%p188_p2), 1042432  }
   0x6   : > { %191 = sbr.rel (%p188_p2) target bundleno = 235 (0xeb), region = 36  ;;  %441 = vmatprep.subr.mxu0 (!%p188_p2), %v466_v0  ;;  %443 = vmatprep.mubr.msk.f32.mxu0 (!%p188_p2), %vm467_vm0, %v466_v0  ;;  %vm243_vm2 = vcmask (!%p188_p2), 23552   ;;  %vm337_vm3 = vcmask (!%p188_p2), 130048  }
   0x7   : > { %457 = vset.pattern.permute.xlu0 (!%p188_p2), %v468_v1 }
   0xd   : > { %s526_s16 = smov (!%p222_p3, %s425_s16), 1 }
   0xe   : > { %s431_s17 = sshll.u32 %s526_s16, 2  ;;  %s430_s18 = sshll.u32 %s526_s16, 3 }
   0xf   : > { %s229_s21 = scalar_lea.vmem %s521_s1, %s431_s17  ;;  %s225_s24 = scalar_lea.vmem %s520_s0, %s430_s18 }
  0x10   : > { %v242_v2 = vld [vmem:[%s229_s21] sm:$0x7]  ;;  %s233_s27 = scalar_lea.vmem %s522_s2, %s430_s18  ;;  %s236_s30 = scalar_lea.vmem %s523_s3, %s526_s16 }
  0x11   : > { %v241_v3 = vld [vmem:[%s225_s24] sm:$0xff]  ;;  %442 = vmatpush3.msk.msra.mxu0 %vm247_vm1, %v242_v2  ;;  %s240_s7 = scalar_lea.vmem %s524_s4, %s430_s18 }
  0x12   : > { %v321_v4 = vld [vmem:[%s233_s27] sm:$0xff]  ;;  %444 = vmatmul.mubr.msk.f32.vlgmr.msra.gmra.mrb[0].mxu0 %vm243_vm2, %v241_v3 }
  0x13   : > { %325 = vperm.xlu0 %457, %v321_v4   ;;  %v436_v5 = vld [vmem:[%s236_s30] ss:$0 sm:$0xff] }
  0x92   : > { %v326_v6 = vpop.permute.xlu0 %325 }
  0x93   : > { %v334_v7 = vadd.f32 %v436_v5, %v326_v6 }
  0xe5   : > { %v317_v8 = vpop.f32.mrb[0].mxu0 }
  0xe6   : > { %v335_v9 = vmul.f32 2.0, %v317_v8  ;;  %v445_v10 = vpop.f32.mrb[1].mxu0 }
  0xe8   : > { %v336_v11 = vsub.f32 %v334_v7, %v335_v9 }
  0xea   : > { %338 = vst.msk [vmem:[%s240_s7] sm:$0xff] %vm337_vm3, %v336_v11 }
  0xeb PF: > { %s14_s15 = sadd.s32 1, %s464_s15  }
  0xec   : > { %p11_p4 = scmp.ge.s32.totalorder %s14_s15, 4  }
  0xee   :  { %13 = sbr.rel (!%p11_p4) target bundleno = 1 (0x1), region = 75 }

// kernel: ridbnet_seg_forward.33
= control target key start
LH: loop header
LB: loop body
LE: loop exit
PB: predicated region body
PF: predicated region fallthrough
CT: control target
= control target key end

     0   :  { %s527_s15 = smov 0   ;;  %s553_s0 = inlined_call_operand.vmem [shape: f32[2,16,3], index: 0, kind: input, shape index: {}]   ;;  %s554_s1 = inlined_call_operand.vmem [shape: f32[2,3,8], index: 1, kind: input, shape index: {}]   ;;  %s555_s2 = inlined_call_operand.vmem [shape: f32[2,16,1], index: 2, kind: input, shape index: {}]   ;;  %s556_s3 = inlined_call_operand.vmem [shape: f32[2,1,8], index: 3, kind: input, shape index: {}]   ;;  %s557_s4 = inlined_call_operand.vmem [shape: f32[2,16,8], index: 4, kind: output, shape index: {}]  }
   0x1 LB: > { %s454_s16 = sadd.s32 4294967295, %s499_s15   ;;  %p458_p0 = scmp.ge.s32.totalorder %s499_s15, 1  ;;  %s499_s15 = sphi %s527_s15, %s14_s15  }
   0x2   : > { %p189_p1 = scmp.lt.s32.totalorder %s499_s15, 3 }
   0x4   : > { %p190_p2 = pnand %p458_p0, %p189_p1 }
   0x5   : > { %p227_p3 = scmp.lt.s32.totalorder (!%p190_p2), %s454_s16, 1  ;;  %v501_v0 = vmov (!%p190_p2), 0   ;;  %vm259_vm0 = vcmask (!%p190_p2), 1042432   ;;  %vm252_vm1 = vcmask (!%p190_p2), 23552   ;;  %vm363_vm2 = vcmask (!%p190_p2), 64512  }
   0x6   : > { %193 = sbr.rel (%p190_p2) target bundleno = 237 (0xed), region = 36  ;;  %492 = vset.pattern.permute.xlu0 (!%p190_p2), %v501_v0 }
   0xd   : > { %s559_s16 = smov (!%p227_p3, %s454_s16), 1 }
   0xe   : > { %s461_s17 = sshll.u32 %s559_s16, 2  ;;  %s472_s18 = sshll.u32 %s559_s16, 4 }
   0xf   : > { %s235_s21 = scalar_lea.vmem %s554_s1, %s461_s17  ;;  %s231_s24 = scalar_lea.vmem %s553_s0, %s472_s18 }
  0x10   : > { %v251_v1 = vld [vmem:[%s235_s21] sm:$0x7]  ;;  %v250_v3 = vld [vmem:[%s231_s24 + $0x8] sm:$0xff]  ;;  %s240_s27 = scalar_lea.vmem %s555_s2, %s472_s18  ;;  %s243_s30 = scalar_lea.vmem %s556_s3, %s559_s16 }
  0x11   : > { %v249_v2 = vld [vmem:[%s231_s24] sm:$0xff]  ;;  %478 = vmatprep.subr.msk.mxu0 %vm259_vm0, %v251_v1  ;;  %v339_v5 = vld [vmem:[%s240_s27 + $0x8] sm:$0xff]  ;;  %s248_s7 = scalar_lea.vmem %s557_s4, %s472_s18 }
  0x12   : > { %480 = vmatprep.mubr.msk.f32.mxu0 %vm252_vm1, %v249_v2  ;;  %v338_v4 = vld [vmem:[%s240_s27] sm:$0xff]  ;;  %479 = vmatpush3.msk.msra.mxu0 %vm259_vm0, %v251_v1 }
  0x13   : > { %343 = vperm.xlu0 %492, %v338_v4   ;;  %481 = vmatmul.mubr.msk.f32.vlgmr.msra.gmra.mrb[0].mxu0 %vm252_vm1, %v250_v3  ;;  %v469_v7 = vld [vmem:[%s243_s30] ss:$0 sm:$0xff] }
  0x17   : > { %348 = vperm.xlu0 %492, %v339_v5  }
  0x92   : > { %v344_v6 = vpop.permute.xlu0 %343 }
  0x93   : > { %v357_v13 = vadd.f32 %v469_v7, %v344_v6 }
  0x96   : > { %v349_v8 = vpop.permute.xlu0 %348 }
  0x97   : > { %v358_v10 = vadd.f32 %v469_v7, %v349_v8 }
  0xe6   : > { %v482_v9 = vpop.f32.mrb[0].mxu0 }
  0xe7   : > { %v360_v11 = vmul.f32 2.0, %v482_v9  ;;  %v329_v12 = vpop.f32.mrb[1].mxu0 }
  0xe8   : > { %v359_v14 = vmul.f32 2.0, %v329_v12 }
  0xe9   : > { %v362_v15 = vsub.f32 %v358_v10, %v360_v11 }
  0xea   : > { %v361_v16 = vsub.f32 %v357_v13, %v359_v14 }
  0xeb   : > { %365 = vst.msk [vmem:[%s248_s7 + $0x8] sm:$0xff] %vm363_vm2, %v362_v15 }
  0xec   : > { %364 = vst.msk [vmem:[%s248_s7] sm:$0xff] %vm363_vm2, %v361_v16 }
  0xed PF: > { %s14_s15 = sadd.s32 1, %s499_s15  }
  0xee   : > { %p11_p4 = scmp.ge.s32.totalorder %s14_s15, 4  }
  0xf0   :  { %13 = sbr.rel (!%p11_p4) target bundleno = 1 (0x1), region = 75 }

// kernel: ridbnet_seg_forward.32
= control target key start
LH: loop header
LB: loop body
LE: loop exit
PB: predicated region body
PF: predicated region fallthrough
CT: control target
= control target key end

     0   :  { %s1355_s12 = smov 0   ;;  %s1655_s0 = inlined_call_operand.vmem [shape: f32[2,64,262], index: 0, kind: input, shape index: {}]   ;;  %s1656_s1 = inlined_call_operand.vmem [shape: bf16[262,512], index: 1, kind: input, shape index: {}]   ;;  %s1657_s2 = inlined_call_operand.vmem [shape: f32[1,512], index: 2, kind: input, shape index: {}]   ;;  %s1658_s3 = inlined_call_operand.vmem [shape: f32[2,8,512], index: 3, kind: output, shape index: {}]  }
   0x1 LB: > { %s1063_s13 = sadd.s32 4294967295, %s1332_s12   ;;  %p1067_p0 = scmp.ge.s32.totalorder %s1332_s12, 1  ;;  %s1332_s12 = sphi %s1355_s12, %s13_s12  }
   0x2   : > { %p137_p1 = scmp.lt.s32.totalorder %s1332_s12, 3 }
   0x4   : > { %p138_p2 = pnand %p1067_p0, %p137_p1 }
   0x5   : > { %v1226_v0 = vld [vmem:[%s1656_s1 + $0x4] ss:$16 sps:$4 sm:$0xff] (!%p138_p2)   ;;  %v1228_v1 = vld [vmem:[%s1656_s1 + $0xc] ss:$16 sps:$4 sm:$0xff] (!%p138_p2)   ;;  %v1230_v2 = vld [vmem:[%s1656_s1] ss:$16 sps:$4 sm:$0xff] (!%p138_p2)  }
   0x6   : > { %141 = sbr.rel (%p138_p2) target bundleno = 348 (0x15c), region = 32  ;;  %652 = vmatprep.subr.bf16.mxu0 (!%p138_p2), %v1226_v0  ;;  %v1231_v3 = vld [vmem:[%s1656_s1 + $0x8] ss:$16 sps:$4 sm:$0xff] (!%p138_p2)   ;;  %798 = vmatprep.subr.bf16.mxu1 (!%p138_p2), %v1228_v1  ;;  %v1232_v4 = vld [vmem:[%s1656_s1 + $0x24] ss:$16 sps:$4 sm:$0xff] (!%p138_p2)   ;;  %p161_p3 = scmp.lt.s32.totalorder (!%p138_p2), %s1063_s13, 1 }
   0x7   : > { %653 = vmatpush1.bf16.msra.mxu0 (!%p138_p2), %v1230_v2  ;;  %799 = vmatpush1.bf16.msra.mxu1 (!%p138_p2), %v1231_v3  ;;  %v1234_v5 = vld [vmem:[%s1656_s1 + $0x2c] ss:$16 sps:$4 sm:$0xff] (!%p138_p2)   ;;  %v1236_v6 = vld [vmem:[%s1656_s1 + $0x20] ss:$16 sps:$4 sm:$0xff] (!%p138_p2)   ;;  %v1237_v7 = vld [vmem:[%s1656_s1 + $0x28] ss:$16 sps:$4 sm:$0xff] (!%p138_p2)  }
   0x8   : > { %654 = vmatprep.subr.bf16.mxu0 (!%p138_p2), %v1232_v4  ;;  %800 = vmatprep.subr.bf16.mxu1 (!%p138_p2), %v1234_v5  ;;  %v1238_v8 = vld [vmem:[%s1656_s1 + $0x44] ss:$16 sps:$4 sm:$0xff] (!%p138_p2)   ;;  %v1240_v9 = vld [vmem:[%s1656_s1 + $0x4c] ss:$16 sps:$4 sm:$0xff] (!%p138_p2)   ;;  %v1242_v10 = vld [vmem:[%s1656_s1 + $0x40] ss:$16 sps:$4 sm:$0xff] (!%p138_p2)  }
   0x9   : > { %v1243_v11 = vld [vmem:[%s1656_s1 + $0x48] ss:$16 sps:$4 sm:$0xff] (!%p138_p2)   ;;  %v1244_v12 = vld [vmem:[%s1656_s1 + $0x64] ss:$16 sps:$4 sm:$0xff] (!%p138_p2)   ;;  %v1246_v13 = vld [vmem:[%s1656_s1 + $0x6c] ss:$16 sps:$4 sm:$0xff] (!%p138_p2)  }
   0xa   : > { %v1248_v14 = vld [vmem:[%s1656_s1 + $0x60] ss:$16 sps:$4 sm:$0xff] (!%p138_p2)   ;;  %v1249_v15 = vld [vmem:[%s1656_s1 + $0x68] ss:$16 sps:$4 sm:$0xff] (!%p138_p2)   ;;  %v1250_v16 = vld [vmem:[%s1656_s1 + $0x84] ss:$16 sps:$4 sm:$0xff] (!%p138_p2)  }
   0xb   : > { %655 = vmatpush1.bf16.msra.mxu0 (!%p138_p2), %v1236_v6  ;;  %801 = vmatpush1.bf16.msra.mxu1 (!%p138_p2), %v1237_v7  ;;  %v1252_v17 = vld [vmem:[%s1656_s1 + $0x8c] ss:$16 sps:$4 sm:$0xff] (!%p138_p2)   ;;  %v1254_v18 = vld [vmem:[%s1656_s1 + $0x80] ss:$16 sps:$4 sm:$0xff] (!%p138_p2)   ;;  %v1255_v19 = vld [vmem:[%s1656_s1 + $0x88] ss:$16 sps:$4 sm:$0xff] (!%p138_p2)  }
   0xc   : > { %656 = vmatprep.subr.bf16.mxu0 (!%p138_p2), %v1238_v8  ;;  %802 = vmatprep.subr.bf16.mxu1 (!%p138_p2), %v1240_v9  ;;  %v1256_v20 = vld [vmem:[%s1656_s1 + $0xa4] ss:$16 sps:$4 sm:$0xff] (!%p138_p2)   ;;  %v1258_v21 = vld [vmem:[%s1656_s1 + $0xac] ss:$16 sps:$4 sm:$0xff] (!%p138_p2)   ;;  %v1260_v22 = vld [vmem:[%s1656_s1 + $0xa0] ss:$16 sps:$4 sm:$0xff] (!%p138_p2)  }
   0xd   : > { %v1261_v23 = vld [vmem:[%s1656_s1 + $0xa8] ss:$16 sps:$4 sm:$0xff]   ;;  %v1262_v24 = vld [vmem:[%s1656_s1 + $0xc4] ss:$16 sps:$4 sm:$0xff]   ;;  %v1264_v25 = vld [vmem:[%s1656_s1 + $0xcc] ss:$16 sps:$4 sm:$0xff]  }
   0xe   : > { %v1266_v26 = vld [vmem:[%s1656_s1 + $0xc0] ss:$16 sps:$4 sm:$0xff]   ;;  %v1267_v27 = vld [vmem:[%s1656_s1 + $0xc8] ss:$16 sps:$4 sm:$0xff]   ;;  %v1268_v28 = vld [vmem:[%s1656_s1 + $0xe4] ss:$16 sps:$4 sm:$0xff]  }
   0xf   : > { %657 = vmatpush1.bf16.msra.mxu0 %v1242_v10  ;;  %803 = vmatpush1.bf16.msra.mxu1 %v1243_v11  ;;  %v1270_v29 = vld [vmem:[%s1656_s1 + $0xec] ss:$16 sps:$4 sm:$0xff]   ;;  %v1272_v30 = vld [vmem:[%s1656_s1 + $0xe0] ss:$16 sps:$4 sm:$0xff]   ;;  %v1273_v31 = vld [vmem:[%s1656_s1 + $0xe8] ss:$16 sps:$4 sm:$0xff]  }
  0x10   : > { %658 = vmatprep.subr.bf16.mxu0 %v1244_v12  ;;  %804 = vmatprep.subr.bf16.mxu1 %v1246_v13  ;;  %v1274_v32 = vld [vmem:[%s1656_s1 + $0x104] ss:$16 sps:$4 sm:$0xff]   ;;  %v1276_v33 = vld [vmem:[%s1656_s1 + $0x10c] ss:$16 sps:$4 sm:$0xff]   ;;  %v1278_v34 = vld [vmem:[%s1656_s1 + $0x100] ss:$16 sps:$4 sm:$0xff]  }
  0x11   : > { %v1279_v35 = vld [vmem:[%s1656_s1 + $0x108] ss:$16 sps:$4 sm:$0xff]   ;;  %s1660_s13 = smov (!%p161_p3, %s1063_s13), 1  ;;  %v1280_v36 = vld [vmem:[%s1656_s1 + $0x124] ss:$16 sps:$4 sm:$0xff]   ;;  %vm639_vm0 = vcmask 1042432  }
  0x12   : > { %v1282_v37 = vld [vmem:[%s1656_s1 + $0x12c] ss:$16 sps:$4 sm:$0xff]   ;;  %v1284_v38 = vld [vmem:[%s1656_s1 + $0x120] ss:$16 sps:$4 sm:$0xff]   ;;  %s1216_s17 = smul.u32 192, %s1660_s13  ;;  %vm626_vm1 = vcmask 48128  }
  0x13   : > { %659 = vmatpush1.bf16.msra.mxu0 %v1248_v14  ;;  %805 = vmatpush1.bf16.msra.mxu1 %v1249_v15  ;;  %v1285_v39 = vld [vmem:[%s1656_s1 + $0x128] ss:$16 sps:$4 sm:$0xff]   ;;  %v1286_v40 = vld [vmem:[%s1656_s1 + $0x144] ss:$16 sps:$4 sm:$0xff]   ;;  %v1288_v41 = vld [vmem:[%s1656_s1 + $0x14c] ss:$16 sps:$4 sm:$0xff]  }
  0x14   : > { %660 = vmatprep.subr.bf16.mxu0 %v1250_v16  ;;  %806 = vmatprep.subr.bf16.mxu1 %v1252_v17  ;;  %v1290_v42 = vld [vmem:[%s1656_s1 + $0x140] ss:$16 sps:$4 sm:$0xff]   ;;  %v1291_v43 = vld [vmem:[%s1656_s1 + $0x148] ss:$16 sps:$4 sm:$0xff]   ;;  %s1505_s30 = scalar_lea.vmem %s1655_s0, %s1216_s17  ;;  %v1292_v44 = vld [vmem:[%s1656_s1 + $0x164] ss:$16 sps:$4 sm:$0xff]  }
  0x15   : > { %v1294_v45 = vld [vmem:[%s1656_s1 + $0x16c] ss:$16 sps:$4 sm:$0xff]   ;;  %v176_v47 = vld [vmem:[%s1505_s30 + $0x20] sm:$0xff]  ;;  %v1297_v49 = vld [vmem:[%s1656_s1 + $0x168] ss:$16 sps:$4 sm:$0xff]  }
  0x16   : > { %v173_v46 = vld [vmem:[%s1505_s30 + $0x8] sm:$0xff]  ;;  %v1296_v48 = vld [vmem:[%s1656_s1 + $0x160] ss:$16 sps:$4 sm:$0xff]   ;;  %v1298_v51 = vld [vmem:[%s1656_s1 + $0x184] ss:$16 sps:$4 sm:$0xff]  }
  0x17   : > { %661 = vmatpush1.bf16.msra.mxu0 %v1254_v18  ;;  %807 = vmatpush1.bf16.msra.mxu1 %v1255_v19  ;;  %v197_v50 = vpack.c.bf16 %v176_v47, %v173_v46  ;;  %v1300_v52 = vld [vmem:[%s1656_s1 + $0x18c] ss:$16 sps:$4 sm:$0xff]   ;;  %v1302_v53 = vld [vmem:[%s1656_s1 + $0x180] ss:$16 sps:$4 sm:$0xff]   ;;  %v1303_v54 = vld [vmem:[%s1656_s1 + $0x188] ss:$16 sps:$4 sm:$0xff]  }
  0x18   : > { %662 = vmatprep.subr.bf16.mxu0 %v1256_v20  ;;  %808 = vmatprep.subr.bf16.mxu1 %v1258_v21  ;;  %v1304_v55 = vld [vmem:[%s1656_s1 + $0x1a4] ss:$16 sps:$4 sm:$0xff]   ;;  %v1306_v56 = vld [vmem:[%s1656_s1 + $0x1ac] ss:$16 sps:$4 sm:$0xff]   ;;  %v1308_v57 = vld [vmem:[%s1656_s1 + $0x1a0] ss:$16 sps:$4 sm:$0xff]  }
  0x19   : > { %684 = vmatprep.mubr.bf16.mxu0 %v197_v50  ;;  %830 = vmatprep.mubr.bf16.mxu1 %v197_v50  ;;  %v1309_v58 = vld [vmem:[%s1656_s1 + $0x1a8] ss:$16 sps:$4 sm:$0xff]   ;;  %v1310_v59 = vld [vmem:[%s1656_s1 + $0x1c4] ss:$16 sps:$4 sm:$0xff]   ;;  %v1312_v60 = vld [vmem:[%s1656_s1 + $0x1cc] ss:$16 sps:$4 sm:$0xff]  }
  0x1a   : > { %v1314_v61 = vld [vmem:[%s1656_s1 + $0x1c0] ss:$16 sps:$4 sm:$0xff]   ;;  %v1315_v62 = vld [vmem:[%s1656_s1 + $0x1c8] ss:$16 sps:$4 sm:$0xff]   ;;  %v1316_v63 = vld [vmem:[%s1656_s1 + $0x1e4] ss:$16 sps:$4 sm:$0xff]  }
  0x1b   : > { %663 = vmatpush1.bf16.msra.mxu0 %v1260_v22  ;;  %809 = vmatpush1.bf16.msra.mxu1 %v1261_v23  ;;  %v1318_v0 = vld [vmem:[%s1656_s1 + $0x1ec] ss:$16 sps:$4 sm:$0xff]   ;;  %v272_v1 = vld [vmem:[%s1656_s1 + $0x200] sm:$0x77]  ;;  %v1321_v4 = vld [vmem:[%s1656_s1 + $0x1e8] ss:$16 sps:$4 sm:$0xff]  }
  0x1c   : > { %664 = vmatprep.subr.bf16.mxu0 %v1262_v24  ;;  %810 = vmatprep.subr.bf16.mxu1 %v1264_v25  ;;  %v273_v2 = vld [vmem:[%s1656_s1 + $0x208] sm:$0x77]  ;;  %v1320_v3 = vld [vmem:[%s1656_s1 + $0x1e0] ss:$16 sps:$4 sm:$0xff]   ;;  %v175_v6 = vld [vmem:[%s1505_s30 + $0x18] sm:$0xff]  ;;  %v1136_v7 = vcombine.high %v272_v1, %v272_v1  ;;  %v1135_v9 = vcombine.low %v272_v1, %v272_v1 }
  0x1d   : > { %v172_v5 = vld [vmem:[%s1505_s30] sm:$0xff]  ;;  %v1138_v8 = vcombine.high %v273_v2, %v273_v2  ;;  %v1137_v10 = vcombine.low %v273_v2, %v273_v2  ;;  %v179_v11 = vld [vmem:[%s1505_s30 + $0x38] sm:$0xff]  ;;  %v182_v12 = vld [vmem:[%s1505_s30 + $0x50] sm:$0xff] }
  0x1e   : > { %v196_v13 = vpack.c.bf16 %v175_v6, %v172_v5  ;;  %v641_v14 = vsel %vm639_vm0, %v1135_v9, 0  ;;  %v200_v16 = vpack.c.bf16 %v182_v12, %v179_v11  ;;  %v178_v17 = vld [vmem:[%s1505_s30 + $0x30] sm:$0xff]  ;;  %v181_v18 = vld [vmem:[%s1505_s30 + $0x48] sm:$0xff]  ;;  %v188_v20 = vld [vmem:[%s1505_s30 + $0x80] sm:$0xff] }
  0x1f   : > { %665 = vmatpush1.bf16.msra.mxu0 %v1266_v26  ;;  %811 = vmatpush1.bf16.msra.mxu1 %v1267_v27  ;;  %v647_v15 = vsel %vm639_vm0, %v1137_v10, 0  ;;  %v185_v19 = vld [vmem:[%s1505_s30 + $0x68] sm:$0xff]  ;;  %v199_v21 = vpack.c.bf16 %v181_v18, %v178_v17  ;;  %v184_v23 = vld [vmem:[%s1505_s30 + $0x60] sm:$0xff]  ;;  %v187_v24 = vld [vmem:[%s1505_s30 + $0x78] sm:$0xff] }
  0x20   : > { %666 = vmatprep.subr.bf16.mxu0 %v1268_v28  ;;  %812 = vmatprep.subr.bf16.mxu1 %v1270_v29  ;;  %v203_v22 = vpack.c.bf16 %v188_v20, %v185_v19  ;;  %v191_v25 = vld [vmem:[%s1505_s30 + $0x98] sm:$0xff]  ;;  %v194_v26 = vld [vmem:[%s1505_s30 + $0xb0] sm:$0xff]  ;;  %v202_v27 = vpack.c.bf16 %v187_v24, %v184_v23 }
  0x21   : > { %v206_v28 = vpack.c.bf16 %v194_v26, %v191_v25  ;;  %v190_v29 = vld [vmem:[%s1505_s30 + $0x90] sm:$0xff] }
  0x23   : > { %667 = vmatpush1.bf16.msra.mxu0 %v1272_v30  ;;  %813 = vmatpush1.bf16.msra.mxu1 %v1273_v31  ;;  %v193_v30 = vld [vmem:[%s1505_s30 + $0xa8] sm:$0xff] }
  0x24   : > { %668 = vmatprep.subr.bf16.mxu0 %v1274_v32  ;;  %814 = vmatprep.subr.bf16.mxu1 %v1276_v33  ;;  %v205_v31 = vpack.c.bf16 %v193_v30, %v190_v29  ;;  %v1334_v32 = vmov 0   ;;  %v174_v33 = vld [vmem:[%s1505_s30 + $0x10] sm:$0xff] }
  0x27   : > { %669 = vmatpush1.bf16.msra.mxu0 %v1278_v34  ;;  %815 = vmatpush1.bf16.msra.mxu1 %v1279_v35  ;;  %v177_v34 = vld [vmem:[%s1505_s30 + $0x28] sm:$0xff] }
  0x28   : > { %670 = vmatprep.subr.bf16.mxu0 %v1280_v36  ;;  %816 = vmatprep.subr.bf16.mxu1 %v1282_v37  ;;  %v198_v35 = vpack.c.bf16 %v177_v34, %v174_v33  ;;  %v180_v36 = vld [vmem:[%s1505_s30 + $0x40] sm:$0xff]  ;;  %v183_v37 = vld [vmem:[%s1505_s30 + $0x58] sm:$0xff] }
  0x2b   : > { %671 = vmatpush1.bf16.msra.mxu0 %v1284_v38  ;;  %817 = vmatpush1.bf16.msra.mxu1 %v1285_v39  ;;  %v201_v38 = vpack.c.bf16 %v183_v37, %v180_v36  ;;  %v186_v39 = vld [vmem:[%s1505_s30 + $0x70] sm:$0xff] }
  0x2c   : > { %672 = vmatprep.subr.bf16.mxu0 %v1286_v40  ;;  %818 = vmatprep.subr.bf16.mxu1 %v1288_v41  ;;  %v189_v40 = vld [vmem:[%s1505_s30 + $0x88] sm:$0xff] }
  0x2d   : > { %v204_v41 = vpack.c.bf16 %v189_v40, %v186_v39 }
  0x2f   : > { %673 = vmatpush1.bf16.msra.mxu0 %v1290_v42  ;;  %819 = vmatpush1.bf16.msra.mxu1 %v1291_v43  ;;  %v192_v42 = vld [vmem:[%s1505_s30 + $0xa0] sm:$0xff]  ;;  %v195_v43 = vld [vmem:[%s1505_s30 + $0xb8] sm:$0xff]  ;;  %s1151_s30 = sshll.u32 %s1660_s13, 5 }
  0x30   : > { %674 = vmatprep.subr.bf16.mxu0 %v1292_v44  ;;  %820 = vmatprep.subr.bf16.mxu1 %v1294_v45  ;;  %v207_v44 = vpack.c.bf16 %v195_v43, %v192_v42  ;;  %v276_v45 = vlaneseq  ;;  %s170_s29 = scalar_lea.vmem %s1658_s3, %s1151_s30 }
  0x32   : > { %v277_v46 = vshrl.u32 %v276_v45, 7 }
  0x33   : > { %675 = vmatpush1.bf16.msra.mxu0 %v1296_v48  ;;  %821 = vmatpush1.bf16.msra.mxu1 %v1297_v49  ;;  %v274_v49 = vld [vmem:[%s1657_s2] sm:$0xf] }
  0x34   : > { %676 = vmatprep.subr.bf16.mxu0 %v1298_v51  ;;  %822 = vmatprep.subr.bf16.mxu1 %v1300_v52  ;;  %v278_v47 = vsub.s32 0, %v277_v46  ;;  %v286_v48 = vsub.s32 2, %v277_v46  ;;  %v282_v50 = vsub.s32 1, %v277_v46  ;;  %v290_v51 = vsub.s32 3, %v277_v46 }
  0x36   : > { %v1608_v52 = vrot.slane %v274_v49, %v278_v47 }
  0x37   : > { %677 = vmatpush1.bf16.msra.mxu0 %v1302_v53  ;;  %823 = vmatpush1.bf16.msra.mxu1 %v1303_v54  ;;  %v1610_v53 = vrot.slane %v274_v49, %v286_v48  ;;  %v1612_v54 = vrot.slane %v274_v49, %v282_v50 }
  0x38   : > { %678 = vmatprep.subr.bf16.mxu0 %v1304_v55  ;;  %824 = vmatprep.subr.bf16.mxu1 %v1306_v56  ;;  %v1614_v55 = vrot.slane %v274_v49, %v290_v51 }
  0x3b   : > { %679 = vmatpush1.bf16.msra.mxu0 %v1308_v57  ;;  %825 = vmatpush1.bf16.msra.mxu1 %v1309_v58 }
  0x3c   : > { %680 = vmatprep.subr.bf16.mxu0 %v1310_v59  ;;  %826 = vmatprep.subr.bf16.mxu1 %v1312_v60 }
  0x3f   : > { %681 = vmatpush1.bf16.msra.mxu0 %v1314_v61  ;;  %827 = vmatpush1.bf16.msra.mxu1 %v1315_v62 }
  0x40   : > { %682 = vmatprep.subr.bf16.mxu0 %v1316_v63  ;;  %828 = vmatprep.subr.bf16.mxu1 %v1318_v0 }
  0x43   : > { %683 = vmatpush1.bf16.msra.mxu0 %v1320_v3  ;;  %829 = vmatpush1.bf16.msra.mxu1 %v1321_v4 }
  0x44   : > { %1139 = vmatprep.subr.msk.bf16.mxu0 %vm639_vm0, %v1136_v7  ;;  %1144 = vmatprep.subr.msk.bf16.mxu1 %vm639_vm0, %v1138_v8 }
  0x46   : > { %685 = vmatmul.mubr.bf16.vlgmr.msra.gmra.mrb[0].mxu0 %v196_v13  ;;  %831 = vmatmul.mubr.bf16.vlgmr.msra.gmra.mrb[0].mxu1 %v196_v13 }
  0x47   : > { %726 = vmatpush1.bf16.msra.mxu0 %v641_v14  ;;  %872 = vmatpush1.bf16.msra.mxu1 %v647_v15 }
  0x48   : > { %694 = vmatprep.mubr.bf16.mxu0 %v200_v16  ;;  %840 = vmatprep.mubr.bf16.mxu1 %v200_v16 }
  0x4e   : > { %695 = vmatmul.mubr.bf16.gmra.mrb[4].mxu0 %v199_v21  ;;  %841 = vmatmul.mubr.bf16.gmra.mrb[4].mxu1 %v199_v21 }
  0x4f   : > { %704 = vmatprep.mubr.bf16.mxu0 %v203_v22  ;;  %850 = vmatprep.mubr.bf16.mxu1 %v203_v22 }
  0x56   : > { %705 = vmatmul.mubr.bf16.gmra.mrb[8].mxu0 %v202_v27  ;;  %851 = vmatmul.mubr.bf16.gmra.mrb[8].mxu1 %v202_v27 }
  0x57   : > { %714 = vmatprep.mubr.bf16.mxu0 %v206_v28  ;;  %860 = vmatprep.mubr.bf16.mxu1 %v206_v28 }
  0x5e   : > { %715 = vmatmul.mubr.bf16.gmra.mrb[12].mxu0 %v205_v31  ;;  %861 = vmatmul.mubr.bf16.gmra.mrb[12].mxu1 %v205_v31 }
  0x5f   : > { %757 = vmatprep.mubr.bf16.mxu0 %v1334_v32  ;;  %903 = vmatprep.mubr.bf16.mxu1 %v1334_v32 }
  0x66   : > { %1140 = vmatmul.mubr.msk.bf16.vlgmr.msra.gmra.mrb[0].mxu0 %vm626_vm1, %v198_v35  ;;  %1145 = vmatmul.mubr.msk.bf16.vlgmr.msra.gmra.mrb[0].mxu1 %vm626_vm1, %v198_v35 }
  0x67   : > { %767 = vmatprep.mubr.bf16.mxu0 %v1334_v32  ;;  %913 = vmatprep.mubr.bf16.mxu1 %v1334_v32 }
  0x6e   : > { %1141 = vmatmul.mubr.msk.bf16.gmra.mrb[4].mxu0 %vm626_vm1, %v201_v38  ;;  %1146 = vmatmul.mubr.msk.bf16.gmra.mrb[4].mxu1 %vm626_vm1, %v201_v38 }
  0x6f   : > { %777 = vmatprep.mubr.bf16.mxu0 %v1334_v32  ;;  %923 = vmatprep.mubr.bf16.mxu1 %v1334_v32 }
  0x76   : > { %1142 = vmatmul.mubr.msk.bf16.gmra.mrb[8].mxu0 %vm626_vm1, %v204_v41  ;;  %1147 = vmatmul.mubr.msk.bf16.gmra.mrb[8].mxu1 %vm626_vm1, %v204_v41 }
  0x77   : > { %787 = vmatprep.mubr.bf16.mxu0 %v1334_v32  ;;  %933 = vmatprep.mubr.bf16.mxu1 %v1334_v32 }
  0x7e   : > { %1143 = vmatmul.mubr.msk.bf16.gmra.mrb[12].mxu0 %vm626_vm1, %v207_v44  ;;  %1148 = vmatmul.mubr.msk.bf16.gmra.mrb[12].mxu1 %vm626_vm1, %v207_v44 }
 0x139   : > { %v759_v56 = vpop.f32.mrb[0].mxu0  ;;  %v905_v57 = vpop.f32.mrb[0].mxu1 }
 0x13a   : > { %v1152_v58 = vadd.f32 %v759_v56, %v1608_v52  ;;  %v1168_v59 = vadd.f32 %v905_v57, %v1610_v53  ;;  %v761_v60 = vpop.f32.mrb[1].mxu0  ;;  %v907_v61 = vpop.f32.mrb[1].mxu1 }
 0x13b   : > { %v1153_v62 = vadd.f32 %v761_v60, %v1612_v54  ;;  %v1169_v63 = vadd.f32 %v907_v61, %v1614_v55  ;;  %v763_v0 = vpop.f32.mrb[2].mxu0  ;;  %v909_v1 = vpop.f32.mrb[2].mxu1 }
 0x13c   : > { %v1154_v2 = vadd.f32 %v763_v0, %v1608_v52  ;;  %v1170_v3 = vadd.f32 %v909_v1, %v1610_v53  ;;  %v765_v4 = vpop.f32.mrb[3].mxu0  ;;  %v911_v5 = vpop.f32.mrb[3].mxu1  ;;  %v944_v8 = vmax.f32 %v1152_v58, 0.0  ;;  %v946_v9 = vmax.f32 %v1168_v59, 0.0 }
 0x13d   : > { %v1155_v6 = vadd.f32 %v765_v4, %v1612_v54  ;;  %v1171_v7 = vadd.f32 %v911_v5, %v1614_v55  ;;  %v945_v12 = vmax.f32 %v1153_v62, 0.0  ;;  %v947_v13 = vmax.f32 %v1169_v63, 0.0 }
 0x13e   : > { %v948_v10 = vmax.f32 %v1154_v2, 0.0  ;;  %v950_v11 = vmax.f32 %v1170_v3, 0.0 }
 0x13f   : > { %v949_v14 = vmax.f32 %v1155_v6, 0.0  ;;  %v951_v15 = vmax.f32 %v1171_v7, 0.0 }
 0x140   : > { %v976_v16 = vmax.f32 %v944_v8, %v948_v10  ;;  %v978_v17 = vmax.f32 %v946_v9, %v950_v11 }
 0x141   : > { %v977_v18 = vmax.f32 %v945_v12, %v949_v14  ;;  %v979_v19 = vmax.f32 %v947_v13, %v951_v15  ;;  %v769_v20 = vpop.f32.mrb[4].mxu0  ;;  %v915_v21 = vpop.f32.mrb[4].mxu1 }
 0x142   : > { %v1156_v22 = vadd.f32 %v769_v20, %v1608_v52  ;;  %v1172_v23 = vadd.f32 %v915_v21, %v1610_v53  ;;  %v771_v24 = vpop.f32.mrb[5].mxu0  ;;  %v917_v25 = vpop.f32.mrb[5].mxu1 }
 0x143   : > { %v1157_v26 = vadd.f32 %v771_v24, %v1612_v54  ;;  %v1173_v27 = vadd.f32 %v917_v25, %v1614_v55  ;;  %v773_v28 = vpop.f32.mrb[6].mxu0  ;;  %v919_v29 = vpop.f32.mrb[6].mxu1 }
 0x144   : > { %v952_v30 = vmax.f32 %v1156_v22, 0.0  ;;  %v954_v31 = vmax.f32 %v1172_v23, 0.0  ;;  %v1158_v32 = vadd.f32 %v773_v28, %v1608_v52  ;;  %v1174_v33 = vadd.f32 %v919_v29, %v1610_v53  ;;  %v775_v34 = vpop.f32.mrb[7].mxu0  ;;  %v921_v35 = vpop.f32.mrb[7].mxu1 }
 0x145   : > { %v953_v36 = vmax.f32 %v1157_v26, 0.0  ;;  %v955_v37 = vmax.f32 %v1173_v27, 0.0  ;;  %v1159_v38 = vadd.f32 %v775_v34, %v1612_v54  ;;  %v1175_v39 = vadd.f32 %v921_v35, %v1614_v55 }
 0x146   : > { %v980_v40 = vmax.f32 %v976_v16, %v952_v30  ;;  %v982_v41 = vmax.f32 %v978_v17, %v954_v31  ;;  %v956_v42 = vmax.f32 %v1158_v32, 0.0  ;;  %v958_v43 = vmax.f32 %v1174_v33, 0.0 }
 0x147   : > { %v981_v44 = vmax.f32 %v977_v18, %v953_v36  ;;  %v983_v45 = vmax.f32 %v979_v19, %v955_v37  ;;  %v957_v46 = vmax.f32 %v1159_v38, 0.0  ;;  %v959_v47 = vmax.f32 %v1175_v39, 0.0 }
 0x148   : > { %v984_v48 = vmax.f32 %v980_v40, %v956_v42  ;;  %v986_v49 = vmax.f32 %v982_v41, %v958_v43 }
 0x149   : > { %v985_v50 = vmax.f32 %v981_v44, %v957_v46  ;;  %v987_v51 = vmax.f32 %v983_v45, %v959_v47  ;;  %v779_v56 = vpop.f32.mrb[8].mxu0  ;;  %v925_v57 = vpop.f32.mrb[8].mxu1 }
 0x14a   : > { %v1160_v58 = vadd.f32 %v779_v56, %v1608_v52  ;;  %v1176_v59 = vadd.f32 %v925_v57, %v1610_v53  ;;  %v781_v60 = vpop.f32.mrb[9].mxu0  ;;  %v927_v61 = vpop.f32.mrb[9].mxu1 }
 0x14b   : > { %v1161_v62 = vadd.f32 %v781_v60, %v1612_v54  ;;  %v1177_v63 = vadd.f32 %v927_v61, %v1614_v55  ;;  %v783_v0 = vpop.f32.mrb[10].mxu0  ;;  %v929_v1 = vpop.f32.mrb[10].mxu1 }
 0x14c   : > { %v960_v2 = vmax.f32 %v1160_v58, 0.0  ;;  %v962_v3 = vmax.f32 %v1176_v59, 0.0  ;;  %v1162_v4 = vadd.f32 %v783_v0, %v1608_v52  ;;  %v1178_v5 = vadd.f32 %v929_v1, %v1610_v53  ;;  %v785_v6 = vpop.f32.mrb[11].mxu0  ;;  %v931_v7 = vpop.f32.mrb[11].mxu1 }
 0x14d   : > { %v961_v8 = vmax.f32 %v1161_v62, 0.0  ;;  %v963_v9 = vmax.f32 %v1177_v63, 0.0  ;;  %v1163_v10 = vadd.f32 %v785_v6, %v1612_v54  ;;  %v1179_v11 = vadd.f32 %v931_v7, %v1614_v55 }
 0x14e   : > { %v988_v12 = vmax.f32 %v984_v48, %v960_v2  ;;  %v990_v13 = vmax.f32 %v986_v49, %v962_v3  ;;  %v964_v14 = vmax.f32 %v1162_v4, 0.0  ;;  %v966_v15 = vmax.f32 %v1178_v5, 0.0 }
 0x14f   : > { %v989_v16 = vmax.f32 %v985_v50, %v961_v8  ;;  %v991_v17 = vmax.f32 %v987_v51, %v963_v9  ;;  %v965_v18 = vmax.f32 %v1163_v10, 0.0  ;;  %v967_v19 = vmax.f32 %v1179_v11, 0.0 }
 0x150   : > { %v992_v20 = vmax.f32 %v988_v12, %v964_v14  ;;  %v994_v21 = vmax.f32 %v990_v13, %v966_v15 }
 0x151   : > { %v993_v22 = vmax.f32 %v989_v16, %v965_v18  ;;  %v995_v23 = vmax.f32 %v991_v17, %v967_v19  ;;  %v789_v24 = vpop.f32.mrb[12].mxu0  ;;  %v935_v25 = vpop.f32.mrb[12].mxu1 }
 0x152   : > { %v1164_v26 = vadd.f32 %v789_v24, %v1608_v52  ;;  %v1180_v27 = vadd.f32 %v935_v25, %v1610_v53  ;;  %v791_v28 = vpop.f32.mrb[13].mxu0  ;;  %v937_v29 = vpop.f32.mrb[13].mxu1 }
 0x153   : > { %v1165_v30 = vadd.f32 %v791_v28, %v1612_v54  ;;  %v1181_v31 = vadd.f32 %v937_v29, %v1614_v55  ;;  %v793_v32 = vpop.f32.mrb[14].mxu0  ;;  %v939_v33 = vpop.f32.mrb[14].mxu1 }
 0x154   : > { %v968_v34 = vmax.f32 %v1164_v26, 0.0  ;;  %v970_v35 = vmax.f32 %v1180_v27, 0.0  ;;  %v1166_v36 = vadd.f32 %v793_v32, %v1608_v52  ;;  %v1182_v37 = vadd.f32 %v939_v33, %v1610_v53  ;;  %v795_v38 = vpop.f32.mrb[15].mxu0  ;;  %v941_v39 = vpop.f32.mrb[15].mxu1 }
 0x155   : > { %v969_v40 = vmax.f32 %v1165_v30, 0.0  ;;  %v971_v41 = vmax.f32 %v1181_v31, 0.0  ;;  %v1167_v42 = vadd.f32 %v795_v38, %v1612_v54  ;;  %v1183_v43 = vadd.f32 %v941_v39, %v1614_v55 }
 0x156   : > { %v996_v44 = vmax.f32 %v992_v20, %v968_v34  ;;  %v998_v45 = vmax.f32 %v994_v21, %v970_v35  ;;  %v972_v46 = vmax.f32 %v1166_v36, 0.0  ;;  %v974_v47 = vmax.f32 %v1182_v37, 0.0 }
 0x157   : > { %v997_v48 = vmax.f32 %v993_v22, %v969_v40  ;;  %v999_v49 = vmax.f32 %v995_v23, %v971_v41  ;;  %v973_v52 = vmax.f32 %v1167_v42, 0.0  ;;  %v975_v53 = vmax.f32 %v1183_v43, 0.0 }
 0x158   : > { %v1000_v50 = vmax.f32 %v996_v44, %v972_v46  ;;  %v1002_v51 = vmax.f32 %v998_v45, %v974_v47 }
 0x159   : > { %v1001_v56 = vmax.f32 %v997_v48, %v973_v52  ;;  %v1003_v57 = vmax.f32 %v999_v49, %v975_v53 }
 0x15a   : > { %1004 = vst [vmem:[%s170_s29] sm:$0xff] %v1000_v50  ;;  %1006 = vst [vmem:[%s170_s29 + $0x10] sm:$0xff] %v1002_v51 }
 0x15b   : > { %1005 = vst [vmem:[%s170_s29 + $0x8] sm:$0xff] %v1001_v56  ;;  %1007 = vst [vmem:[%s170_s29 + $0x18] sm:$0xff] %v1003_v57 }
 0x15c PF: > { %s13_s12 = sadd.s32 1, %s1332_s12  }
 0x15d   : > { %p10_p4 = scmp.ge.s32.totalorder %s13_s12, 4  }
 0x15f   :  { %12 = sbr.rel (!%p10_p4) target bundleno = 1 (0x1), region = 62 }

// kernel: neg.16
= control target key start
LH: loop header
LB: loop body
LE: loop exit
PB: predicated region body
PF: predicated region fallthrough
CT: control target
= control target key end

     0   :  { %s72_s0 = inlined_call_operand.vmem [shape: f32[2,16,8], index: 0, kind: input, shape index: {}]   ;;  %s73_s1 = inlined_call_operand.vmem [shape: f32[2,16,8], index: 1, kind: output, shape index: {}]  }
   0x1   :  { %v2_v0 = vld [vmem:[%s72_s0] sm:$0xff]  ;;  %v32_v1 = vld [vmem:[%s72_s0 + $0x10] sm:$0xff]  ;;  %v34_v2 = vld [vmem:[%s72_s0 + $0x8] sm:$0xff] }
   0x2   :  { %v5_v3 = vxor.u32 2147483648, %v2_v0  ;;  %v12_v4 = vxor.u32 2147483648, %v32_v1  ;;  %v20_v5 = vxor.u32 2147483648, %v34_v2  ;;  %v36_v6 = vld [vmem:[%s72_s0 + $0x18] sm:$0xff] }
   0x3   :  { %v28_v7 = vxor.u32 2147483648, %v36_v6 }
   0x4   :  { %7 = vst [vmem:[%s73_s1] sm:$0xff] %v5_v3  ;;  %33 = vst [vmem:[%s73_s1 + $0x10] sm:$0xff] %v12_v4 }
   0x5   :  { %35 = vst [vmem:[%s73_s1 + $0x8] sm:$0xff] %v20_v5  ;;  %37 = vst [vmem:[%s73_s1 + $0x18] sm:$0xff] %v28_v7 }

// kernel: neg.18
= control target key start
LH: loop header
LB: loop body
LE: loop exit
PB: predicated region body
PF: predicated region fallthrough
CT: control target
= control target key end

     0   :  { %s136_s0 = inlined_call_operand.vmem [shape: f32[2,32,16], index: 0, kind: input, shape index: {}]   ;;  %s137_s1 = inlined_call_operand.vmem [shape: f32[2,32,16], index: 1, kind: output, shape index: {}]  }
   0x1   :  { %v2_v0 = vld [vmem:[%s136_s0] sm:$0xff]  ;;  %v66_v2 = vld [vmem:[%s136_s0 + $0x8] sm:$0xff]  ;;  %v70_v7 = vld [vmem:[%s136_s0 + $0x10] sm:$0xff] }
   0x2   :  { %v64_v1 = vld [vmem:[%s136_s0 + $0x20] sm:$0xff]  ;;  %v5_v3 = vxor.u32 2147483648, %v2_v0  ;;  %v20_v5 = vxor.u32 2147483648, %v66_v2  ;;  %v68_v6 = vld [vmem:[%s136_s0 + $0x28] sm:$0xff]  ;;  %v72_v8 = vld [vmem:[%s136_s0 + $0x30] sm:$0xff]  ;;  %v36_v10 = vxor.u32 2147483648, %v70_v7 }
   0x3   :  { %v12_v4 = vxor.u32 2147483648, %v64_v1  ;;  %v28_v9 = vxor.u32 2147483648, %v68_v6  ;;  %v44_v11 = vxor.u32 2147483648, %v72_v8  ;;  %v74_v12 = vld [vmem:[%s136_s0 + $0x18] sm:$0xff] }
   0x4   :  { %v76_v13 = vld [vmem:[%s136_s0 + $0x38] sm:$0xff]  ;;  %7 = vst [vmem:[%s137_s1] sm:$0xff] %v5_v3  ;;  %67 = vst [vmem:[%s137_s1 + $0x8] sm:$0xff] %v20_v5  ;;  %v52_v14 = vxor.u32 2147483648, %v74_v12 }
   0x5   :  { %65 = vst [vmem:[%s137_s1 + $0x20] sm:$0xff] %v12_v4  ;;  %v60_v15 = vxor.u32 2147483648, %v76_v13  ;;  %69 = vst [vmem:[%s137_s1 + $0x28] sm:$0xff] %v28_v9 }
   0x6   :  { %71 = vst [vmem:[%s137_s1 + $0x10] sm:$0xff] %v36_v10  ;;  %73 = vst [vmem:[%s137_s1 + $0x30] sm:$0xff] %v44_v11 }
   0x7   :  { %75 = vst [vmem:[%s137_s1 + $0x18] sm:$0xff] %v52_v14  ;;  %77 = vst [vmem:[%s137_s1 + $0x38] sm:$0xff] %v60_v15 }

// kernel: ridbnet_seg_forward.35
= control target key start
LH: loop header
LB: loop body
LE: loop exit
PB: predicated region body
PF: predicated region fallthrough
CT: control target
= control target key end

     0   :  { %s575_s15 = smov 0   ;;  %s615_s0 = inlined_call_operand.vmem [shape: f32[2,32,3], index: 0, kind: input, shape index: {}]   ;;  %s616_s1 = inlined_call_operand.vmem [shape: f32[2,3,16], index: 1, kind: input, shape index: {}]   ;;  %s617_s2 = inlined_call_operand.vmem [shape: f32[2,32,1], index: 2, kind: input, shape index: {}]   ;;  %s618_s3 = inlined_call_operand.vmem [shape: f32[2,1,16], index: 3, kind: input, shape index: {}]   ;;  %s619_s4 = inlined_call_operand.vmem [shape: f32[2,32,16], index: 4, kind: output, shape index: {}]  }
   0x1 LB: > { %s492_s16 = sadd.s32 4294967295, %s547_s15   ;;  %p496_p0 = scmp.ge.s32.totalorder %s547_s15, 1  ;;  %s547_s15 = sphi %s575_s15, %s14_s15  }
   0x2   : > { %p189_p1 = scmp.lt.s32.totalorder %s547_s15, 3 }
   0x4   : > { %p190_p2 = pnand %p496_p0, %p189_p1 }
   0x5   : > { %p227_p3 = scmp.lt.s32.totalorder (!%p190_p2), %s492_s16, 1  ;;  %v549_v0 = vmov (!%p190_p2), 0   ;;  %vm267_vm0 = vcmask (!%p190_p2), 1042432   ;;  %vm254_vm1 = vcmask (!%p190_p2), 23552   ;;  %vm399_vm2 = vcmask (!%p190_p2), 130048  }
   0x6   : > { %193 = sbr.rel (%p190_p2) target bundleno = 238 (0xee), region = 36  ;;  %540 = vset.pattern.permute.xlu1 (!%p190_p2), %v549_v0  ;;  %539 = vset.pattern.permute.xlu0 (!%p190_p2), %v549_v0 }
   0xd   : > { %s621_s16 = smov (!%p227_p3, %s492_s16), 1 }
   0xe   : > { %s499_s17 = sshll.u32 %s621_s16, 2  ;;  %s587_s18 = sshll.u32 %s621_s16, 5 }
   0xf   : > { %s235_s21 = scalar_lea.vmem %s616_s1, %s499_s17  ;;  %s231_s24 = scalar_lea.vmem %s615_s0, %s587_s18 }
  0x10   : > { %v253_v1 = vld [vmem:[%s235_s21] sm:$0x7]  ;;  %v251_v3 = vld [vmem:[%s231_s24 + $0x10] sm:$0xff]  ;;  %s240_s27 = scalar_lea.vmem %s617_s2, %s587_s18  ;;  %v250_v4 = vld [vmem:[%s231_s24 + $0x8] sm:$0xff]  ;;  %s243_s30 = scalar_lea.vmem %s618_s3, %s621_s16 }
  0x11   : > { %v249_v2 = vld [vmem:[%s231_s24] sm:$0xff]  ;;  %520 = vmatprep.subr.msk.mxu0 %vm267_vm0, %v253_v1  ;;  %528 = vmatprep.subr.msk.mxu1 %vm267_vm0, %v253_v1  ;;  %v252_v5 = vld [vmem:[%s231_s24 + $0x18] sm:$0xff]  ;;  %v358_v6 = vld [vmem:[%s240_s27 + $0x10] sm:$0xff]  ;;  %s248_s7 = scalar_lea.vmem %s619_s4, %s587_s18 }
  0x12   : > { %521 = vmatpush3.msk.msra.mxu0 %vm267_vm0, %v253_v1  ;;  %529 = vmatpush3.msk.msra.mxu1 %vm267_vm0, %v253_v1  ;;  %v356_v7 = vld [vmem:[%s240_s27] sm:$0xff]  ;;  %v359_v8 = vld [vmem:[%s240_s27 + $0x18] sm:$0xff]  ;;  %v357_v9 = vld [vmem:[%s240_s27 + $0x8] sm:$0xff] }
  0x13   : > { %522 = vmatprep.mubr.msk.f32.mxu0 %vm254_vm1, %v249_v2  ;;  %525 = vmatprep.mubr.msk.f32.mxu1 %vm254_vm1, %v251_v3  ;;  %v509_v12 = vld [vmem:[%s243_s30] ss:$0 sm:$0xff] }
  0x14   : > { %523 = vmatmul.mubr.msk.f32.vlgmr.msra.gmra.mrb[0].mxu0 %vm254_vm1, %v250_v4  ;;  %526 = vmatmul.mubr.msk.f32.vlgmr.msra.gmra.mrb[0].mxu1 %vm254_vm1, %v252_v5 }
  0x15   : > { %373 = vperm.xlu1 %540, %v358_v6   ;;  %363 = vperm.xlu0 %539, %v356_v7  }
  0x19   : > { %378 = vperm.xlu1 %540, %v359_v8   ;;  %368 = vperm.xlu0 %539, %v357_v9  }
  0x94   : > { %v374_v10 = vpop.permute.xlu1 %373  ;;  %v364_v11 = vpop.permute.xlu0 %363 }
  0x95   : > { %v389_v23 = vadd.f32 %v509_v12, %v374_v10  ;;  %v387_v24 = vadd.f32 %v509_v12, %v364_v11 }
  0x98   : > { %v379_v13 = vpop.permute.xlu1 %378  ;;  %v369_v14 = vpop.permute.xlu0 %368 }
  0x99   : > { %v390_v17 = vadd.f32 %v509_v12, %v379_v13  ;;  %v388_v18 = vadd.f32 %v509_v12, %v369_v14 }
  0xe7   : > { %v524_v15 = vpop.f32.mrb[0].mxu0  ;;  %v527_v16 = vpop.f32.mrb[0].mxu1 }
  0xe8   : > { %v392_v19 = vmul.f32 2.0, %v524_v15  ;;  %v394_v20 = vmul.f32 2.0, %v527_v16  ;;  %v337_v21 = vpop.f32.mrb[1].mxu0  ;;  %v347_v22 = vpop.f32.mrb[1].mxu1 }
  0xe9   : > { %v391_v25 = vmul.f32 2.0, %v337_v21  ;;  %v393_v26 = vmul.f32 2.0, %v347_v22 }
  0xea   : > { %v396_v27 = vsub.f32 %v388_v18, %v392_v19  ;;  %v398_v28 = vsub.f32 %v390_v17, %v394_v20 }
  0xeb   : > { %v395_v29 = vsub.f32 %v387_v24, %v391_v25  ;;  %v397_v30 = vsub.f32 %v389_v23, %v393_v26 }
  0xec   : > { %401 = vst.msk [vmem:[%s248_s7 + $0x8] sm:$0xff] %vm399_vm2, %v396_v27  ;;  %403 = vst.msk [vmem:[%s248_s7 + $0x18] sm:$0xff] %vm399_vm2, %v398_v28 }
  0xed   : > { %400 = vst.msk [vmem:[%s248_s7] sm:$0xff] %vm399_vm2, %v395_v29  ;;  %402 = vst.msk [vmem:[%s248_s7 + $0x10] sm:$0xff] %vm399_vm2, %v397_v30 }
  0xee PF: > { %s14_s15 = sadd.s32 1, %s547_s15  }
  0xef   : > { %p11_p4 = scmp.ge.s32.totalorder %s14_s15, 4  }
  0xf1   :  { %13 = sbr.rel (!%p11_p4) target bundleno = 1 (0x1), region = 75 }

// kernel: ridbnet_seg_forward.34
= control target key start
LH: loop header
LB: loop body
LE: loop exit
PB: predicated region body
PF: predicated region fallthrough
CT: control target
= control target key end

     0   :  { %s2244_s12 = smov 0   ;;  %s2862_s0 = inlined_call_operand.vmem [shape: f32[2,16,768], index: 0, kind: input, shape index: {}]   ;;  %s2863_s1 = inlined_call_operand.vmem [shape: bf16[768,512], index: 1, kind: input, shape index: {}]   ;;  %s2864_s2 = inlined_call_operand.vmem [shape: f32[1,512], index: 2, kind: input, shape index: {}]   ;;  %s2865_s3 = inlined_call_operand.vmem [shape: f32[2,16,512], index: 3, kind: output, shape index: {}]  }
   0x1 LB: > { %s1692_s13 = sadd.s32 4294967295, %s2222_s12   ;;  %p1696_p0 = scmp.ge.s32.totalorder %s2222_s12, 1  ;;  %s2222_s12 = sphi %s2244_s12, %s13_s12  }
   0x2   : > { %p137_p1 = scmp.lt.s32.totalorder %s2222_s12, 3 }
   0x4   : > { %p138_p2 = pnand %p1696_p0, %p137_p1 }
   0x5   : > { %v1928_v0 = vld [vmem:[%s2863_s1 + $0x4] ss:$16 sps:$4 sm:$0xff] (!%p138_p2)   ;;  %v1930_v1 = vld [vmem:[%s2863_s1 + $0xc] ss:$16 sps:$4 sm:$0xff] (!%p138_p2)   ;;  %v1932_v2 = vld [vmem:[%s2863_s1] ss:$16 sps:$4 sm:$0xff] (!%p138_p2)  }
   0x6   : > { %141 = sbr.rel (%p138_p2) target bundleno = 418 (0x1a2), region = 32  ;;  %1363 = vmatprep.subr.bf16.mxu0 (!%p138_p2), %v1928_v0  ;;  %v1933_v3 = vld [vmem:[%s2863_s1 + $0x8] ss:$16 sps:$4 sm:$0xff] (!%p138_p2)   ;;  %1492 = vmatprep.subr.bf16.mxu1 (!%p138_p2), %v1930_v1  ;;  %v1934_v4 = vld [vmem:[%s2863_s1 + $0x24] ss:$16 sps:$4 sm:$0xff] (!%p138_p2)   ;;  %p161_p3 = scmp.lt.s32.totalorder (!%p138_p2), %s1692_s13, 1 }
   0x7   : > { %1364 = vmatpush1.bf16.msra.mxu0 (!%p138_p2), %v1932_v2  ;;  %1493 = vmatpush1.bf16.msra.mxu1 (!%p138_p2), %v1933_v3  ;;  %v1936_v5 = vld [vmem:[%s2863_s1 + $0x2c] ss:$16 sps:$4 sm:$0xff] (!%p138_p2)   ;;  %v1938_v6 = vld [vmem:[%s2863_s1 + $0x20] ss:$16 sps:$4 sm:$0xff] (!%p138_p2)   ;;  %v1939_v7 = vld [vmem:[%s2863_s1 + $0x28] ss:$16 sps:$4 sm:$0xff] (!%p138_p2)  }
   0x8   : > { %1365 = vmatprep.subr.bf16.mxu0 (!%p138_p2), %v1934_v4  ;;  %1494 = vmatprep.subr.bf16.mxu1 (!%p138_p2), %v1936_v5  ;;  %v1940_v8 = vld [vmem:[%s2863_s1 + $0x44] ss:$16 sps:$4 sm:$0xff] (!%p138_p2)   ;;  %v1942_v9 = vld [vmem:[%s2863_s1 + $0x4c] ss:$16 sps:$4 sm:$0xff] (!%p138_p2)   ;;  %v1944_v10 = vld [vmem:[%s2863_s1 + $0x40] ss:$16 sps:$4 sm:$0xff] (!%p138_p2)  }
   0x9   : > { %v1945_v11 = vld [vmem:[%s2863_s1 + $0x48] ss:$16 sps:$4 sm:$0xff] (!%p138_p2)   ;;  %v1946_v12 = vld [vmem:[%s2863_s1 + $0x64] ss:$16 sps:$4 sm:$0xff] (!%p138_p2)   ;;  %v1948_v13 = vld [vmem:[%s2863_s1 + $0x6c] ss:$16 sps:$4 sm:$0xff] (!%p138_p2)  }
   0xa   : > { %v1950_v14 = vld [vmem:[%s2863_s1 + $0x60] ss:$16 sps:$4 sm:$0xff] (!%p138_p2)   ;;  %v1951_v15 = vld [vmem:[%s2863_s1 + $0x68] ss:$16 sps:$4 sm:$0xff] (!%p138_p2)   ;;  %v1952_v16 = vld [vmem:[%s2863_s1 + $0x84] ss:$16 sps:$4 sm:$0xff] (!%p138_p2)  }
   0xb   : > { %1366 = vmatpush1.bf16.msra.mxu0 (!%p138_p2), %v1938_v6  ;;  %1495 = vmatpush1.bf16.msra.mxu1 (!%p138_p2), %v1939_v7  ;;  %v1954_v17 = vld [vmem:[%s2863_s1 + $0x8c] ss:$16 sps:$4 sm:$0xff] (!%p138_p2)   ;;  %v1956_v18 = vld [vmem:[%s2863_s1 + $0x80] ss:$16 sps:$4 sm:$0xff] (!%p138_p2)   ;;  %v1957_v19 = vld [vmem:[%s2863_s1 + $0x88] ss:$16 sps:$4 sm:$0xff] (!%p138_p2)  }
   0xc   : > { %1367 = vmatprep.subr.bf16.mxu0 (!%p138_p2), %v1940_v8  ;;  %1496 = vmatprep.subr.bf16.mxu1 (!%p138_p2), %v1942_v9  ;;  %v1958_v20 = vld [vmem:[%s2863_s1 + $0xa4] ss:$16 sps:$4 sm:$0xff] (!%p138_p2)   ;;  %v1960_v21 = vld [vmem:[%s2863_s1 + $0xac] ss:$16 sps:$4 sm:$0xff] (!%p138_p2)   ;;  %v1962_v22 = vld [vmem:[%s2863_s1 + $0xa0] ss:$16 sps:$4 sm:$0xff] (!%p138_p2)  }
   0xd   : > { %v1963_v23 = vld [vmem:[%s2863_s1 + $0xa8] ss:$16 sps:$4 sm:$0xff]   ;;  %v1964_v24 = vld [vmem:[%s2863_s1 + $0xc4] ss:$16 sps:$4 sm:$0xff]   ;;  %v1966_v25 = vld [vmem:[%s2863_s1 + $0xcc] ss:$16 sps:$4 sm:$0xff]  }
   0xe   : > { %v1968_v26 = vld [vmem:[%s2863_s1 + $0xc0] ss:$16 sps:$4 sm:$0xff]   ;;  %v1969_v27 = vld [vmem:[%s2863_s1 + $0xc8] ss:$16 sps:$4 sm:$0xff]   ;;  %v1970_v28 = vld [vmem:[%s2863_s1 + $0xe4] ss:$16 sps:$4 sm:$0xff]  }
   0xf   : > { %1368 = vmatpush1.bf16.msra.mxu0 %v1944_v10  ;;  %1497 = vmatpush1.bf16.msra.mxu1 %v1945_v11  ;;  %v1972_v29 = vld [vmem:[%s2863_s1 + $0xec] ss:$16 sps:$4 sm:$0xff]   ;;  %v1974_v30 = vld [vmem:[%s2863_s1 + $0xe0] ss:$16 sps:$4 sm:$0xff]   ;;  %v1975_v31 = vld [vmem:[%s2863_s1 + $0xe8] ss:$16 sps:$4 sm:$0xff]  }
  0x10   : > { %1369 = vmatprep.subr.bf16.mxu0 %v1946_v12  ;;  %1498 = vmatprep.subr.bf16.mxu1 %v1948_v13  ;;  %v1976_v32 = vld [vmem:[%s2863_s1 + $0x104] ss:$16 sps:$4 sm:$0xff]   ;;  %v1978_v33 = vld [vmem:[%s2863_s1 + $0x10c] ss:$16 sps:$4 sm:$0xff]   ;;  %v1980_v34 = vld [vmem:[%s2863_s1 + $0x100] ss:$16 sps:$4 sm:$0xff]  }
  0x11   : > { %v1981_v35 = vld [vmem:[%s2863_s1 + $0x108] ss:$16 sps:$4 sm:$0xff]   ;;  %s2867_s13 = smov (!%p161_p3, %s1692_s13), 1  ;;  %v1982_v36 = vld [vmem:[%s2863_s1 + $0x124] ss:$16 sps:$4 sm:$0xff]  }
  0x12   : > { %v1984_v37 = vld [vmem:[%s2863_s1 + $0x12c] ss:$16 sps:$4 sm:$0xff]   ;;  %v1986_v38 = vld [vmem:[%s2863_s1 + $0x120] ss:$16 sps:$4 sm:$0xff]   ;;  %s1919_s17 = smul.u32 96, %s2867_s13 }
  0x13   : > { %1370 = vmatpush1.bf16.msra.mxu0 %v1950_v14  ;;  %1499 = vmatpush1.bf16.msra.mxu1 %v1951_v15  ;;  %v1987_v39 = vld [vmem:[%s2863_s1 + $0x128] ss:$16 sps:$4 sm:$0xff]   ;;  %v1988_v40 = vld [vmem:[%s2863_s1 + $0x144] ss:$16 sps:$4 sm:$0xff]   ;;  %v1990_v41 = vld [vmem:[%s2863_s1 + $0x14c] ss:$16 sps:$4 sm:$0xff]  }
  0x14   : > { %1371 = vmatprep.subr.bf16.mxu0 %v1952_v16  ;;  %1500 = vmatprep.subr.bf16.mxu1 %v1954_v17  ;;  %v1992_v42 = vld [vmem:[%s2863_s1 + $0x140] ss:$16 sps:$4 sm:$0xff]   ;;  %v1993_v43 = vld [vmem:[%s2863_s1 + $0x148] ss:$16 sps:$4 sm:$0xff]   ;;  %s2394_s30 = scalar_lea.vmem %s2862_s0, %s1919_s17  ;;  %v1994_v44 = vld [vmem:[%s2863_s1 + $0x164] ss:$16 sps:$4 sm:$0xff]  }
  0x15   : > { %v1996_v45 = vld [vmem:[%s2863_s1 + $0x16c] ss:$16 sps:$4 sm:$0xff]   ;;  %v1998_v48 = vld [vmem:[%s2863_s1 + $0x160] ss:$16 sps:$4 sm:$0xff]   ;;  %v1999_v49 = vld [vmem:[%s2863_s1 + $0x168] ss:$16 sps:$4 sm:$0xff]  }
  0x16   : > { %v172_v46 = vld [vmem:[%s2394_s30 + $0x8] sm:$0xff]  ;;  %v178_v47 = vld [vmem:[%s2394_s30 + $0x38] sm:$0xff]  ;;  %v2000_v51 = vld [vmem:[%s2863_s1 + $0x184] ss:$16 sps:$4 sm:$0xff]  }
  0x17   : > { %1372 = vmatpush1.bf16.msra.mxu0 %v1956_v18  ;;  %1501 = vmatpush1.bf16.msra.mxu1 %v1957_v19  ;;  %v184_v50 = vpack.c.bf16 %v178_v47, %v172_v46  ;;  %v2002_v52 = vld [vmem:[%s2863_s1 + $0x18c] ss:$16 sps:$4 sm:$0xff]   ;;  %v2004_v53 = vld [vmem:[%s2863_s1 + $0x180] ss:$16 sps:$4 sm:$0xff]   ;;  %v2005_v54 = vld [vmem:[%s2863_s1 + $0x188] ss:$16 sps:$4 sm:$0xff]  }
  0x18   : > { %1373 = vmatprep.subr.bf16.mxu0 %v1958_v20  ;;  %1502 = vmatprep.subr.bf16.mxu1 %v1960_v21  ;;  %v2006_v55 = vld [vmem:[%s2863_s1 + $0x1a4] ss:$16 sps:$4 sm:$0xff]   ;;  %v2008_v56 = vld [vmem:[%s2863_s1 + $0x1ac] ss:$16 sps:$4 sm:$0xff]   ;;  %v2010_v57 = vld [vmem:[%s2863_s1 + $0x1a0] ss:$16 sps:$4 sm:$0xff]  }
  0x19   : > { %1395 = vmatprep.mubr.bf16.mxu0 %v184_v50  ;;  %1524 = vmatprep.mubr.bf16.mxu1 %v184_v50  ;;  %v2011_v58 = vld [vmem:[%s2863_s1 + $0x1a8] ss:$16 sps:$4 sm:$0xff]   ;;  %v2012_v59 = vld [vmem:[%s2863_s1 + $0x1c4] ss:$16 sps:$4 sm:$0xff]   ;;  %v2014_v60 = vld [vmem:[%s2863_s1 + $0x1cc] ss:$16 sps:$4 sm:$0xff]  }
  0x1a   : > { %v2016_v61 = vld [vmem:[%s2863_s1 + $0x1c0] ss:$16 sps:$4 sm:$0xff]   ;;  %v2017_v62 = vld [vmem:[%s2863_s1 + $0x1c8] ss:$16 sps:$4 sm:$0xff]   ;;  %v2018_v63 = vld [vmem:[%s2863_s1 + $0x1e4] ss:$16 sps:$4 sm:$0xff]  }
  0x1b   : > { %1374 = vmatpush1.bf16.msra.mxu0 %v1962_v22  ;;  %1503 = vmatpush1.bf16.msra.mxu1 %v1963_v23  ;;  %v2020_v0 = vld [vmem:[%s2863_s1 + $0x1ec] ss:$16 sps:$4 sm:$0xff]   ;;  %v2022_v1 = vld [vmem:[%s2863_s1 + $0x1e0] ss:$16 sps:$4 sm:$0xff]   ;;  %v2023_v2 = vld [vmem:[%s2863_s1 + $0x1e8] ss:$16 sps:$4 sm:$0xff]  }
  0x1c   : > { %1375 = vmatprep.subr.bf16.mxu0 %v1964_v24  ;;  %1504 = vmatprep.subr.bf16.mxu1 %v1966_v25  ;;  %v2026_v3 = vld [vmem:[%s2863_s1 + $0x204] ss:$16 sps:$4 sm:$0xff]   ;;  %v2029_v6 = vld [vmem:[%s2863_s1 + $0x20c] ss:$16 sps:$4 sm:$0xff]   ;;  %v2024_v7 = vld [vmem:[%s2863_s1 + $0x200] ss:$16 sps:$4 sm:$0xff]  }
  0x1d   : > { %v171_v4 = vld [vmem:[%s2394_s30] sm:$0xff]  ;;  %v177_v5 = vld [vmem:[%s2394_s30 + $0x30] sm:$0xff]  ;;  %v2027_v8 = vld [vmem:[%s2863_s1 + $0x208] ss:$16 sps:$4 sm:$0xff]  }
  0x1e   : > { %v183_v9 = vpack.c.bf16 %v177_v5, %v171_v4  ;;  %v2032_v10 = vld [vmem:[%s2863_s1 + $0x224] ss:$16 sps:$4 sm:$0xff]   ;;  %v2035_v11 = vld [vmem:[%s2863_s1 + $0x22c] ss:$16 sps:$4 sm:$0xff]   ;;  %v2030_v12 = vld [vmem:[%s2863_s1 + $0x220] ss:$16 sps:$4 sm:$0xff]  }
  0x1f   : > { %1376 = vmatpush1.bf16.msra.mxu0 %v1968_v26  ;;  %1505 = vmatpush1.bf16.msra.mxu1 %v1969_v27  ;;  %v2033_v13 = vld [vmem:[%s2863_s1 + $0x228] ss:$16 sps:$4 sm:$0xff]   ;;  %v2038_v14 = vld [vmem:[%s2863_s1 + $0x244] ss:$16 sps:$4 sm:$0xff]   ;;  %v2041_v15 = vld [vmem:[%s2863_s1 + $0x24c] ss:$16 sps:$4 sm:$0xff]  }
  0x20   : > { %1377 = vmatprep.subr.bf16.mxu0 %v1970_v28  ;;  %1506 = vmatprep.subr.bf16.mxu1 %v1972_v29  ;;  %v2036_v16 = vld [vmem:[%s2863_s1 + $0x240] ss:$16 sps:$4 sm:$0xff]   ;;  %v2039_v17 = vld [vmem:[%s2863_s1 + $0x248] ss:$16 sps:$4 sm:$0xff]   ;;  %v2044_v18 = vld [vmem:[%s2863_s1 + $0x264] ss:$16 sps:$4 sm:$0xff]  }
  0x21   : > { %v2047_v19 = vld [vmem:[%s2863_s1 + $0x26c] ss:$16 sps:$4 sm:$0xff]   ;;  %v2042_v20 = vld [vmem:[%s2863_s1 + $0x260] ss:$16 sps:$4 sm:$0xff]   ;;  %v2045_v21 = vld [vmem:[%s2863_s1 + $0x268] ss:$16 sps:$4 sm:$0xff]  }
  0x22   : > { %v2050_v22 = vld [vmem:[%s2863_s1 + $0x284] ss:$16 sps:$4 sm:$0xff]   ;;  %v2053_v23 = vld [vmem:[%s2863_s1 + $0x28c] ss:$16 sps:$4 sm:$0xff]   ;;  %v2048_v24 = vld [vmem:[%s2863_s1 + $0x280] ss:$16 sps:$4 sm:$0xff]  }
  0x23   : > { %1378 = vmatpush1.bf16.msra.mxu0 %v1974_v30  ;;  %1507 = vmatpush1.bf16.msra.mxu1 %v1975_v31  ;;  %v2051_v25 = vld [vmem:[%s2863_s1 + $0x288] ss:$16 sps:$4 sm:$0xff]   ;;  %v2056_v26 = vld [vmem:[%s2863_s1 + $0x2a4] ss:$16 sps:$4 sm:$0xff]   ;;  %v2059_v27 = vld [vmem:[%s2863_s1 + $0x2ac] ss:$16 sps:$4 sm:$0xff]  }
  0x24   : > { %1379 = vmatprep.subr.bf16.mxu0 %v1976_v32  ;;  %1508 = vmatprep.subr.bf16.mxu1 %v1978_v33  ;;  %v2054_v28 = vld [vmem:[%s2863_s1 + $0x2a0] ss:$16 sps:$4 sm:$0xff]   ;;  %v2057_v29 = vld [vmem:[%s2863_s1 + $0x2a8] ss:$16 sps:$4 sm:$0xff]   ;;  %v2062_v30 = vld [vmem:[%s2863_s1 + $0x2c4] ss:$16 sps:$4 sm:$0xff]  }
  0x25   : > { %v2065_v31 = vld [vmem:[%s2863_s1 + $0x2cc] ss:$16 sps:$4 sm:$0xff]   ;;  %v2078_v47 = vld [vmem:[%s2863_s1 + $0x320] ss:$16 sps:$4 sm:$0xff]   ;;  %v2111_v4 = vld [vmem:[%s2863_s1 + $0x3c8] ss:$16 sps:$4 sm:$0xff]  }
  0x26   : > { %v174_v32 = vld [vmem:[%s2394_s30 + $0x18] sm:$0xff]  ;;  %v180_v33 = vld [vmem:[%s2394_s30 + $0x48] sm:$0xff]  ;;  %v2116_v5 = vld [vmem:[%s2863_s1 + $0x3e4] ss:$16 sps:$4 sm:$0xff]  }
  0x27   : > { %1380 = vmatpush1.bf16.msra.mxu0 %v1980_v34  ;;  %1509 = vmatpush1.bf16.msra.mxu1 %v1981_v35  ;;  %v2060_v34 = vld [vmem:[%s2863_s1 + $0x2c0] ss:$16 sps:$4 sm:$0xff]   ;;  %v2063_v35 = vld [vmem:[%s2863_s1 + $0x2c8] ss:$16 sps:$4 sm:$0xff]   ;;  %v2083_v46 = vld [vmem:[%s2863_s1 + $0x32c] ss:$16 sps:$4 sm:$0xff]  }
  0x28   : > { %1381 = vmatprep.subr.bf16.mxu0 %v1982_v36  ;;  %1510 = vmatprep.subr.bf16.mxu1 %v1984_v37  ;;  %v186_v36 = vpack.c.bf16 %v180_v33, %v174_v32  ;;  %v2068_v37 = vld [vmem:[%s2863_s1 + $0x2e4] ss:$16 sps:$4 sm:$0xff]   ;;  %v2089_v50 = vld [vmem:[%s2863_s1 + $0x34c] ss:$16 sps:$4 sm:$0xff]   ;;  %v2144_v33 = vld [vmem:[%s2863_s1 + $0x480] ss:$16 sps:$4 sm:$0xff]  }
  0x29   : > { %v2149_v32 = vld [vmem:[%s2863_s1 + $0x48c] ss:$16 sps:$4 sm:$0xff]  }
  0x2b   : > { %1382 = vmatpush1.bf16.msra.mxu0 %v1986_v38  ;;  %1511 = vmatpush1.bf16.msra.mxu1 %v1987_v39  ;;  %v2071_v38 = vld [vmem:[%s2863_s1 + $0x2ec] ss:$16 sps:$4 sm:$0xff]   ;;  %v2066_v39 = vld [vmem:[%s2863_s1 + $0x2e0] ss:$16 sps:$4 sm:$0xff]  }
  0x2c   : > { %1383 = vmatprep.subr.bf16.mxu0 %v1988_v40  ;;  %1512 = vmatprep.subr.bf16.mxu1 %v1990_v41  ;;  %v2069_v40 = vld [vmem:[%s2863_s1 + $0x2e8] ss:$16 sps:$4 sm:$0xff]   ;;  %v2074_v41 = vld [vmem:[%s2863_s1 + $0x304] ss:$16 sps:$4 sm:$0xff]  }
  0x2f   : > { %1384 = vmatpush1.bf16.msra.mxu0 %v1992_v42  ;;  %1513 = vmatpush1.bf16.msra.mxu1 %v1993_v43  ;;  %v2077_v42 = vld [vmem:[%s2863_s1 + $0x30c] ss:$16 sps:$4 sm:$0xff]   ;;  %v2072_v43 = vld [vmem:[%s2863_s1 + $0x300] ss:$16 sps:$4 sm:$0xff]  }
  0x30   : > { %1385 = vmatprep.subr.bf16.mxu0 %v1994_v44  ;;  %1514 = vmatprep.subr.bf16.mxu1 %v1996_v45  ;;  %v2075_v44 = vld [vmem:[%s2863_s1 + $0x308] ss:$16 sps:$4 sm:$0xff]   ;;  %v2080_v45 = vld [vmem:[%s2863_s1 + $0x324] ss:$16 sps:$4 sm:$0xff]  }
  0x33   : > { %1386 = vmatpush1.bf16.msra.mxu0 %v1998_v48  ;;  %1515 = vmatpush1.bf16.msra.mxu1 %v1999_v49  ;;  %v2081_v48 = vld [vmem:[%s2863_s1 + $0x328] ss:$16 sps:$4 sm:$0xff]   ;;  %v2086_v49 = vld [vmem:[%s2863_s1 + $0x344] ss:$16 sps:$4 sm:$0xff]  }
  0x34   : > { %1387 = vmatprep.subr.bf16.mxu0 %v2000_v51  ;;  %1516 = vmatprep.subr.bf16.mxu1 %v2002_v52  ;;  %v2084_v51 = vld [vmem:[%s2863_s1 + $0x340] ss:$16 sps:$4 sm:$0xff]   ;;  %v2087_v52 = vld [vmem:[%s2863_s1 + $0x348] ss:$16 sps:$4 sm:$0xff]  }
  0x37   : > { %1388 = vmatpush1.bf16.msra.mxu0 %v2004_v53  ;;  %1517 = vmatpush1.bf16.msra.mxu1 %v2005_v54  ;;  %v2092_v53 = vld [vmem:[%s2863_s1 + $0x364] ss:$16 sps:$4 sm:$0xff]   ;;  %v2095_v54 = vld [vmem:[%s2863_s1 + $0x36c] ss:$16 sps:$4 sm:$0xff]  }
  0x38   : > { %1389 = vmatprep.subr.bf16.mxu0 %v2006_v55  ;;  %1518 = vmatprep.subr.bf16.mxu1 %v2008_v56  ;;  %v2090_v55 = vld [vmem:[%s2863_s1 + $0x360] ss:$16 sps:$4 sm:$0xff]   ;;  %v2093_v56 = vld [vmem:[%s2863_s1 + $0x368] ss:$16 sps:$4 sm:$0xff]  }
  0x3b   : > { %1390 = vmatpush1.bf16.msra.mxu0 %v2010_v57  ;;  %1519 = vmatpush1.bf16.msra.mxu1 %v2011_v58  ;;  %v2098_v57 = vld [vmem:[%s2863_s1 + $0x384] ss:$16 sps:$4 sm:$0xff]   ;;  %v2101_v58 = vld [vmem:[%s2863_s1 + $0x38c] ss:$16 sps:$4 sm:$0xff]  }
  0x3c   : > { %1391 = vmatprep.subr.bf16.mxu0 %v2012_v59  ;;  %1520 = vmatprep.subr.bf16.mxu1 %v2014_v60  ;;  %v2096_v59 = vld [vmem:[%s2863_s1 + $0x380] ss:$16 sps:$4 sm:$0xff]   ;;  %v2099_v60 = vld [vmem:[%s2863_s1 + $0x388] ss:$16 sps:$4 sm:$0xff]  }
  0x3f   : > { %1392 = vmatpush1.bf16.msra.mxu0 %v2016_v61  ;;  %1521 = vmatpush1.bf16.msra.mxu1 %v2017_v62  ;;  %v2104_v61 = vld [vmem:[%s2863_s1 + $0x3a4] ss:$16 sps:$4 sm:$0xff]   ;;  %v2107_v62 = vld [vmem:[%s2863_s1 + $0x3ac] ss:$16 sps:$4 sm:$0xff]  }
  0x40   : > { %1393 = vmatprep.subr.bf16.mxu0 %v2018_v63  ;;  %1522 = vmatprep.subr.bf16.mxu1 %v2020_v0  ;;  %v2102_v63 = vld [vmem:[%s2863_s1 + $0x3a0] ss:$16 sps:$4 sm:$0xff]   ;;  %v2105_v0 = vld [vmem:[%s2863_s1 + $0x3a8] ss:$16 sps:$4 sm:$0xff]  }
  0x43   : > { %1394 = vmatpush1.bf16.msra.mxu0 %v2022_v1  ;;  %1523 = vmatpush1.bf16.msra.mxu1 %v2023_v2  ;;  %v2110_v1 = vld [vmem:[%s2863_s1 + $0x3c4] ss:$16 sps:$4 sm:$0xff]   ;;  %v2113_v2 = vld [vmem:[%s2863_s1 + $0x3cc] ss:$16 sps:$4 sm:$0xff]  }
  0x44   : > { %1406 = vmatprep.subr.bf16.mxu0 %v2026_v3  ;;  %1535 = vmatprep.subr.bf16.mxu1 %v2029_v6  ;;  %v2108_v3 = vld [vmem:[%s2863_s1 + $0x3c0] ss:$16 sps:$4 sm:$0xff]   ;;  %v2119_v6 = vld [vmem:[%s2863_s1 + $0x3ec] ss:$16 sps:$4 sm:$0xff]  }
  0x46   : > { %1396 = vmatmul.mubr.bf16.vlgmr.msra.gmra.mrb[0].mxu0 %v183_v9  ;;  %1525 = vmatmul.mubr.bf16.vlgmr.msra.gmra.mrb[0].mxu1 %v183_v9  ;;  %v2122_v9 = vld [vmem:[%s2863_s1 + $0x404] ss:$16 sps:$4 sm:$0xff]  }
  0x47   : > { %1407 = vmatpush1.bf16.msra.mxu0 %v2024_v7  ;;  %1536 = vmatpush1.bf16.msra.mxu1 %v2027_v8  ;;  %v2114_v7 = vld [vmem:[%s2863_s1 + $0x3e0] ss:$16 sps:$4 sm:$0xff]   ;;  %v2117_v8 = vld [vmem:[%s2863_s1 + $0x3e8] ss:$16 sps:$4 sm:$0xff]  }
  0x48   : > { %1408 = vmatprep.subr.bf16.mxu0 %v2032_v10  ;;  %1537 = vmatprep.subr.bf16.mxu1 %v2035_v11  ;;  %v173_v10 = vld [vmem:[%s2394_s30 + $0x10] sm:$0xff]  ;;  %v179_v11 = vld [vmem:[%s2394_s30 + $0x40] sm:$0xff] }
  0x49   : > { %1438 = vmatprep.mubr.bf16.mxu0 %v186_v36  ;;  %1567 = vmatprep.mubr.bf16.mxu1 %v186_v36  ;;  %v2155_v36 = vld [vmem:[%s2863_s1 + $0x4ac] ss:$16 sps:$4 sm:$0xff]  }
  0x4b   : > { %1409 = vmatpush1.bf16.msra.mxu0 %v2030_v12  ;;  %1538 = vmatpush1.bf16.msra.mxu1 %v2033_v13  ;;  %v2125_v12 = vld [vmem:[%s2863_s1 + $0x40c] ss:$16 sps:$4 sm:$0xff]   ;;  %v2120_v13 = vld [vmem:[%s2863_s1 + $0x400] ss:$16 sps:$4 sm:$0xff]  }
  0x4c   : > { %1410 = vmatprep.subr.bf16.mxu0 %v2038_v14  ;;  %1539 = vmatprep.subr.bf16.mxu1 %v2041_v15  ;;  %v2123_v14 = vld [vmem:[%s2863_s1 + $0x408] ss:$16 sps:$4 sm:$0xff]   ;;  %v185_v15 = vpack.c.bf16 %v179_v11, %v173_v10  ;;  %v2212_v11 = vld [vmem:[%s2863_s1 + $0x5e4] ss:$16 sps:$4 sm:$0xff]  }
  0x4d   : > { %v2207_v10 = vld [vmem:[%s2863_s1 + $0x5c8] ss:$16 sps:$4 sm:$0xff]  }
  0x4f   : > { %1411 = vmatpush1.bf16.msra.mxu0 %v2036_v16  ;;  %1540 = vmatpush1.bf16.msra.mxu1 %v2039_v17  ;;  %v2128_v16 = vld [vmem:[%s2863_s1 + $0x424] ss:$16 sps:$4 sm:$0xff]   ;;  %v2131_v17 = vld [vmem:[%s2863_s1 + $0x42c] ss:$16 sps:$4 sm:$0xff]  }
  0x50   : > { %1412 = vmatprep.subr.bf16.mxu0 %v2044_v18  ;;  %1541 = vmatprep.subr.bf16.mxu1 %v2047_v19  ;;  %v176_v18 = vld [vmem:[%s2394_s30 + $0x28] sm:$0xff]  ;;  %v182_v19 = vld [vmem:[%s2394_s30 + $0x58] sm:$0xff] }
  0x53   : > { %1413 = vmatpush1.bf16.msra.mxu0 %v2042_v20  ;;  %1542 = vmatpush1.bf16.msra.mxu1 %v2045_v21  ;;  %v2126_v20 = vld [vmem:[%s2863_s1 + $0x420] ss:$16 sps:$4 sm:$0xff]   ;;  %v2129_v21 = vld [vmem:[%s2863_s1 + $0x428] ss:$16 sps:$4 sm:$0xff]  }
  0x54   : > { %1414 = vmatprep.subr.bf16.mxu0 %v2050_v22  ;;  %1543 = vmatprep.subr.bf16.mxu1 %v2053_v23  ;;  %v188_v22 = vpack.c.bf16 %v182_v19, %v176_v18  ;;  %v2134_v23 = vld [vmem:[%s2863_s1 + $0x444] ss:$16 sps:$4 sm:$0xff]   ;;  %v383_v18 = vlaneseq }
  0x56   : > { %v384_v19 = vshrl.u32 %v383_v18, 7 }
  0x57   : > { %1415 = vmatpush1.bf16.msra.mxu0 %v2048_v24  ;;  %1544 = vmatpush1.bf16.msra.mxu1 %v2051_v25  ;;  %v2137_v24 = vld [vmem:[%s2863_s1 + $0x44c] ss:$16 sps:$4 sm:$0xff]   ;;  %v2132_v25 = vld [vmem:[%s2863_s1 + $0x440] ss:$16 sps:$4 sm:$0xff]  }
  0x58   : > { %1416 = vmatprep.subr.bf16.mxu0 %v2056_v26  ;;  %1545 = vmatprep.subr.bf16.mxu1 %v2059_v27  ;;  %v2135_v26 = vld [vmem:[%s2863_s1 + $0x448] ss:$16 sps:$4 sm:$0xff]   ;;  %v2140_v27 = vld [vmem:[%s2863_s1 + $0x464] ss:$16 sps:$4 sm:$0xff]  }
  0x5b   : > { %1417 = vmatpush1.bf16.msra.mxu0 %v2054_v28  ;;  %1546 = vmatpush1.bf16.msra.mxu1 %v2057_v29  ;;  %v2143_v28 = vld [vmem:[%s2863_s1 + $0x46c] ss:$16 sps:$4 sm:$0xff]   ;;  %v2138_v29 = vld [vmem:[%s2863_s1 + $0x460] ss:$16 sps:$4 sm:$0xff]  }
  0x5c   : > { %1418 = vmatprep.subr.bf16.mxu0 %v2062_v30  ;;  %1547 = vmatprep.subr.bf16.mxu1 %v2065_v31  ;;  %v2141_v30 = vld [vmem:[%s2863_s1 + $0x468] ss:$16 sps:$4 sm:$0xff]   ;;  %v2146_v31 = vld [vmem:[%s2863_s1 + $0x484] ss:$16 sps:$4 sm:$0xff]  }
  0x5f   : > { %1419 = vmatpush1.bf16.msra.mxu0 %v2060_v34  ;;  %1548 = vmatpush1.bf16.msra.mxu1 %v2063_v35  ;;  %v2147_v34 = vld [vmem:[%s2863_s1 + $0x488] ss:$16 sps:$4 sm:$0xff]   ;;  %v2152_v35 = vld [vmem:[%s2863_s1 + $0x4a4] ss:$16 sps:$4 sm:$0xff]  }
  0x60   : > { %1420 = vmatprep.subr.bf16.mxu0 %v2068_v37  ;;  %1549 = vmatprep.subr.bf16.mxu1 %v2071_v38  ;;  %v2150_v37 = vld [vmem:[%s2863_s1 + $0x4a0] ss:$16 sps:$4 sm:$0xff]   ;;  %v2153_v38 = vld [vmem:[%s2863_s1 + $0x4a8] ss:$16 sps:$4 sm:$0xff]  }
  0x63   : > { %1421 = vmatpush1.bf16.msra.mxu0 %v2066_v39  ;;  %1550 = vmatpush1.bf16.msra.mxu1 %v2069_v40  ;;  %v2158_v39 = vld [vmem:[%s2863_s1 + $0x4c4] ss:$16 sps:$4 sm:$0xff]   ;;  %v2161_v40 = vld [vmem:[%s2863_s1 + $0x4cc] ss:$16 sps:$4 sm:$0xff]  }
  0x64   : > { %1422 = vmatprep.subr.bf16.mxu0 %v2074_v41  ;;  %1551 = vmatprep.subr.bf16.mxu1 %v2077_v42  ;;  %v2156_v41 = vld [vmem:[%s2863_s1 + $0x4c0] ss:$16 sps:$4 sm:$0xff]   ;;  %v2159_v42 = vld [vmem:[%s2863_s1 + $0x4c8] ss:$16 sps:$4 sm:$0xff]  }
  0x67   : > { %1423 = vmatpush1.bf16.msra.mxu0 %v2072_v43  ;;  %1552 = vmatpush1.bf16.msra.mxu1 %v2075_v44  ;;  %v2164_v43 = vld [vmem:[%s2863_s1 + $0x4e4] ss:$16 sps:$4 sm:$0xff]   ;;  %v2167_v44 = vld [vmem:[%s2863_s1 + $0x4ec] ss:$16 sps:$4 sm:$0xff]  }
  0x68   : > { %1424 = vmatprep.subr.bf16.mxu0 %v2080_v45  ;;  %1553 = vmatprep.subr.bf16.mxu1 %v2083_v46  ;;  %v2162_v45 = vld [vmem:[%s2863_s1 + $0x4e0] ss:$16 sps:$4 sm:$0xff]   ;;  %v2165_v46 = vld [vmem:[%s2863_s1 + $0x4e8] ss:$16 sps:$4 sm:$0xff]  }
  0x6b   : > { %1425 = vmatpush1.bf16.msra.mxu0 %v2078_v47  ;;  %1554 = vmatpush1.bf16.msra.mxu1 %v2081_v48  ;;  %v2170_v47 = vld [vmem:[%s2863_s1 + $0x504] ss:$16 sps:$4 sm:$0xff]   ;;  %v2173_v48 = vld [vmem:[%s2863_s1 + $0x50c] ss:$16 sps:$4 sm:$0xff]  }
  0x6c   : > { %1426 = vmatprep.subr.bf16.mxu0 %v2086_v49  ;;  %1555 = vmatprep.subr.bf16.mxu1 %v2089_v50  ;;  %v2168_v49 = vld [vmem:[%s2863_s1 + $0x500] ss:$16 sps:$4 sm:$0xff]   ;;  %v2171_v50 = vld [vmem:[%s2863_s1 + $0x508] ss:$16 sps:$4 sm:$0xff]  }
  0x6f   : > { %1427 = vmatpush1.bf16.msra.mxu0 %v2084_v51  ;;  %1556 = vmatpush1.bf16.msra.mxu1 %v2087_v52  ;;  %v2176_v51 = vld [vmem:[%s2863_s1 + $0x524] ss:$16 sps:$4 sm:$0xff]   ;;  %v2179_v52 = vld [vmem:[%s2863_s1 + $0x52c] ss:$16 sps:$4 sm:$0xff]  }
  0x70   : > { %1428 = vmatprep.subr.bf16.mxu0 %v2092_v53  ;;  %1557 = vmatprep.subr.bf16.mxu1 %v2095_v54  ;;  %v2174_v53 = vld [vmem:[%s2863_s1 + $0x520] ss:$16 sps:$4 sm:$0xff]   ;;  %v2177_v54 = vld [vmem:[%s2863_s1 + $0x528] ss:$16 sps:$4 sm:$0xff]  }
  0x73   : > { %1429 = vmatpush1.bf16.msra.mxu0 %v2090_v55  ;;  %1558 = vmatpush1.bf16.msra.mxu1 %v2093_v56  ;;  %v2182_v55 = vld [vmem:[%s2863_s1 + $0x544] ss:$16 sps:$4 sm:$0xff]   ;;  %v2185_v56 = vld [vmem:[%s2863_s1 + $0x54c] ss:$16 sps:$4 sm:$0xff]  }
  0x74   : > { %1430 = vmatprep.subr.bf16.mxu0 %v2098_v57  ;;  %1559 = vmatprep.subr.bf16.mxu1 %v2101_v58  ;;  %v2180_v57 = vld [vmem:[%s2863_s1 + $0x540] ss:$16 sps:$4 sm:$0xff]   ;;  %v2183_v58 = vld [vmem:[%s2863_s1 + $0x548] ss:$16 sps:$4 sm:$0xff]  }
  0x77   : > { %1431 = vmatpush1.bf16.msra.mxu0 %v2096_v59  ;;  %1560 = vmatpush1.bf16.msra.mxu1 %v2099_v60  ;;  %v2188_v59 = vld [vmem:[%s2863_s1 + $0x564] ss:$16 sps:$4 sm:$0xff]   ;;  %v2191_v60 = vld [vmem:[%s2863_s1 + $0x56c] ss:$16 sps:$4 sm:$0xff]  }
  0x78   : > { %1432 = vmatprep.subr.bf16.mxu0 %v2104_v61  ;;  %1561 = vmatprep.subr.bf16.mxu1 %v2107_v62  ;;  %v2186_v61 = vld [vmem:[%s2863_s1 + $0x560] ss:$16 sps:$4 sm:$0xff]   ;;  %v2189_v62 = vld [vmem:[%s2863_s1 + $0x568] ss:$16 sps:$4 sm:$0xff]  }
  0x7b   : > { %1433 = vmatpush1.bf16.msra.mxu0 %v2102_v63  ;;  %1562 = vmatpush1.bf16.msra.mxu1 %v2105_v0  ;;  %v2194_v63 = vld [vmem:[%s2863_s1 + $0x584] ss:$16 sps:$4 sm:$0xff]   ;;  %v2197_v0 = vld [vmem:[%s2863_s1 + $0x58c] ss:$16 sps:$4 sm:$0xff]  }
  0x7c   : > { %1434 = vmatprep.subr.bf16.mxu0 %v2110_v1  ;;  %1563 = vmatprep.subr.bf16.mxu1 %v2113_v2  ;;  %v2192_v1 = vld [vmem:[%s2863_s1 + $0x580] ss:$16 sps:$4 sm:$0xff]   ;;  %v2195_v2 = vld [vmem:[%s2863_s1 + $0x588] ss:$16 sps:$4 sm:$0xff]  }
  0x7f   : > { %1435 = vmatpush1.bf16.msra.mxu0 %v2108_v3  ;;  %1564 = vmatpush1.bf16.msra.mxu1 %v2111_v4  ;;  %v2200_v3 = vld [vmem:[%s2863_s1 + $0x5a4] ss:$16 sps:$4 sm:$0xff]   ;;  %v2203_v4 = vld [vmem:[%s2863_s1 + $0x5ac] ss:$16 sps:$4 sm:$0xff]  }
  0x80   : > { %1436 = vmatprep.subr.bf16.mxu0 %v2116_v5  ;;  %1565 = vmatprep.subr.bf16.mxu1 %v2119_v6  ;;  %v2198_v5 = vld [vmem:[%s2863_s1 + $0x5a0] ss:$16 sps:$4 sm:$0xff]   ;;  %v2201_v6 = vld [vmem:[%s2863_s1 + $0x5a8] ss:$16 sps:$4 sm:$0xff]  }
  0x83   : > { %1437 = vmatpush1.bf16.msra.mxu0 %v2114_v7  ;;  %1566 = vmatpush1.bf16.msra.mxu1 %v2117_v8  ;;  %v2206_v7 = vld [vmem:[%s2863_s1 + $0x5c4] ss:$16 sps:$4 sm:$0xff]   ;;  %v2209_v8 = vld [vmem:[%s2863_s1 + $0x5cc] ss:$16 sps:$4 sm:$0xff]  }
  0x84   : > { %1449 = vmatprep.subr.bf16.mxu0 %v2122_v9  ;;  %1578 = vmatprep.subr.bf16.mxu1 %v2125_v12  ;;  %v2204_v9 = vld [vmem:[%s2863_s1 + $0x5c0] ss:$16 sps:$4 sm:$0xff]   ;;  %v2215_v12 = vld [vmem:[%s2863_s1 + $0x5ec] ss:$16 sps:$4 sm:$0xff]  }
  0x86   : > { %1439 = vmatmul.mubr.bf16.vlgmr.msra.gmra.mrb[0].mxu0 %v185_v15  ;;  %1568 = vmatmul.mubr.bf16.vlgmr.msra.gmra.mrb[0].mxu1 %v185_v15  ;;  %v175_v15 = vld [vmem:[%s2394_s30 + $0x20] sm:$0xff] }
  0x87   : > { %1450 = vmatpush1.bf16.msra.mxu0 %v2120_v13  ;;  %1579 = vmatpush1.bf16.msra.mxu1 %v2123_v14  ;;  %v2210_v13 = vld [vmem:[%s2863_s1 + $0x5e0] ss:$16 sps:$4 sm:$0xff]   ;;  %v2213_v14 = vld [vmem:[%s2863_s1 + $0x5e8] ss:$16 sps:$4 sm:$0xff]  }
  0x88   : > { %1451 = vmatprep.subr.bf16.mxu0 %v2128_v16  ;;  %1580 = vmatprep.subr.bf16.mxu1 %v2131_v17  ;;  %v181_v16 = vld [vmem:[%s2394_s30 + $0x50] sm:$0xff]  ;;  %s1894_s30 = sshll.u32 %s2867_s13, 6 }
  0x89   : > { %1481 = vmatprep.mubr.bf16.mxu0 %v188_v22  ;;  %1610 = vmatprep.mubr.bf16.mxu1 %v188_v22  ;;  %v187_v17 = vpack.c.bf16 %v181_v16, %v175_v15  ;;  %v381_v22 = vld [vmem:[%s2864_s2] sm:$0xf]  ;;  %s170_s18 = scalar_lea.vmem %s2865_s3, %s1894_s30 }
  0x8b   : > { %1452 = vmatpush1.bf16.msra.mxu0 %v2126_v20  ;;  %1581 = vmatpush1.bf16.msra.mxu1 %v2129_v21  ;;  %v385_v20 = vsub.s32 0, %v384_v19  ;;  %v393_v21 = vsub.s32 2, %v384_v19 }
  0x8c   : > { %1453 = vmatprep.subr.bf16.mxu0 %v2134_v23  ;;  %1582 = vmatprep.subr.bf16.mxu1 %v2137_v24  ;;  %v389_v23 = vsub.s32 1, %v384_v19  ;;  %v397_v24 = vsub.s32 3, %v384_v19 }
  0x8f   : > { %1454 = vmatpush1.bf16.msra.mxu0 %v2132_v25  ;;  %1583 = vmatpush1.bf16.msra.mxu1 %v2135_v26  ;;  %v386_v25 = vrot.slane %v381_v22, %v385_v20  ;;  %v394_v26 = vrot.slane %v381_v22, %v393_v21 }
  0x90   : > { %1455 = vmatprep.subr.bf16.mxu0 %v2140_v27  ;;  %1584 = vmatprep.subr.bf16.mxu1 %v2143_v28  ;;  %v390_v27 = vrot.slane %v381_v22, %v389_v23  ;;  %v398_v28 = vrot.slane %v381_v22, %v397_v24 }
  0x93   : > { %1456 = vmatpush1.bf16.msra.mxu0 %v2138_v29  ;;  %1585 = vmatpush1.bf16.msra.mxu1 %v2141_v30 }
  0x94   : > { %1457 = vmatprep.subr.bf16.mxu0 %v2146_v31  ;;  %1586 = vmatprep.subr.bf16.mxu1 %v2149_v32 }
  0x97   : > { %1458 = vmatpush1.bf16.msra.mxu0 %v2144_v33  ;;  %1587 = vmatpush1.bf16.msra.mxu1 %v2147_v34 }
  0x98   : > { %1459 = vmatprep.subr.bf16.mxu0 %v2152_v35  ;;  %1588 = vmatprep.subr.bf16.mxu1 %v2155_v36 }
  0x9b   : > { %1460 = vmatpush1.bf16.msra.mxu0 %v2150_v37  ;;  %1589 = vmatpush1.bf16.msra.mxu1 %v2153_v38 }
  0x9c   : > { %1461 = vmatprep.subr.bf16.mxu0 %v2158_v39  ;;  %1590 = vmatprep.subr.bf16.mxu1 %v2161_v40 }
  0x9f   : > { %1462 = vmatpush1.bf16.msra.mxu0 %v2156_v41  ;;  %1591 = vmatpush1.bf16.msra.mxu1 %v2159_v42 }
  0xa0   : > { %1463 = vmatprep.subr.bf16.mxu0 %v2164_v43  ;;  %1592 = vmatprep.subr.bf16.mxu1 %v2167_v44 }
  0xa3   : > { %1464 = vmatpush1.bf16.msra.mxu0 %v2162_v45  ;;  %1593 = vmatpush1.bf16.msra.mxu1 %v2165_v46 }
  0xa4   : > { %1465 = vmatprep.subr.bf16.mxu0 %v2170_v47  ;;  %1594 = vmatprep.subr.bf16.mxu1 %v2173_v48 }
  0xa7   : > { %1466 = vmatpush1.bf16.msra.mxu0 %v2168_v49  ;;  %1595 = vmatpush1.bf16.msra.mxu1 %v2171_v50 }
  0xa8   : > { %1467 = vmatprep.subr.bf16.mxu0 %v2176_v51  ;;  %1596 = vmatprep.subr.bf16.mxu1 %v2179_v52 }
  0xab   : > { %1468 = vmatpush1.bf16.msra.mxu0 %v2174_v53  ;;  %1597 = vmatpush1.bf16.msra.mxu1 %v2177_v54 }
  0xac   : > { %1469 = vmatprep.subr.bf16.mxu0 %v2182_v55  ;;  %1598 = vmatprep.subr.bf16.mxu1 %v2185_v56 }
  0xaf   : > { %1470 = vmatpush1.bf16.msra.mxu0 %v2180_v57  ;;  %1599 = vmatpush1.bf16.msra.mxu1 %v2183_v58 }
  0xb0   : > { %1471 = vmatprep.subr.bf16.mxu0 %v2188_v59  ;;  %1600 = vmatprep.subr.bf16.mxu1 %v2191_v60 }
  0xb3   : > { %1472 = vmatpush1.bf16.msra.mxu0 %v2186_v61  ;;  %1601 = vmatpush1.bf16.msra.mxu1 %v2189_v62 }
  0xb4   : > { %1473 = vmatprep.subr.bf16.mxu0 %v2194_v63  ;;  %1602 = vmatprep.subr.bf16.mxu1 %v2197_v0 }
  0xb7   : > { %1474 = vmatpush1.bf16.msra.mxu0 %v2192_v1  ;;  %1603 = vmatpush1.bf16.msra.mxu1 %v2195_v2 }
  0xb8   : > { %1475 = vmatprep.subr.bf16.mxu0 %v2200_v3  ;;  %1604 = vmatprep.subr.bf16.mxu1 %v2203_v4 }
  0xbb   : > { %1476 = vmatpush1.bf16.msra.mxu0 %v2198_v5  ;;  %1605 = vmatpush1.bf16.msra.mxu1 %v2201_v6 }
  0xbc   : > { %1477 = vmatprep.subr.bf16.mxu0 %v2206_v7  ;;  %1606 = vmatprep.subr.bf16.mxu1 %v2209_v8 }
  0xbf   : > { %1478 = vmatpush1.bf16.msra.mxu0 %v2204_v9  ;;  %1607 = vmatpush1.bf16.msra.mxu1 %v2207_v10 }
  0xc0   : > { %1479 = vmatprep.subr.bf16.mxu0 %v2212_v11  ;;  %1608 = vmatprep.subr.bf16.mxu1 %v2215_v12 }
  0xc3   : > { %1480 = vmatpush1.bf16.msra.mxu0 %v2210_v13  ;;  %1609 = vmatpush1.bf16.msra.mxu1 %v2213_v14 }
  0xc6   : > { %1482 = vmatmul.mubr.bf16.vlgmr.msra.gmra.mrb[0].mxu0 %v187_v17  ;;  %1611 = vmatmul.mubr.bf16.vlgmr.msra.gmra.mrb[0].mxu1 %v187_v17 }
 0x199   : > { %v1483_v29 = vpop.f32.mrb[0].mxu0  ;;  %v1612_v30 = vpop.f32.mrb[0].mxu1 }
 0x19a   : > { %v1895_v31 = vadd.f32 %v1483_v29, %v386_v25  ;;  %v1899_v32 = vadd.f32 %v1612_v30, %v394_v26  ;;  %v1485_v33 = vpop.f32.mrb[1].mxu0  ;;  %v1614_v34 = vpop.f32.mrb[1].mxu1 }
 0x19b   : > { %v1896_v35 = vadd.f32 %v1485_v33, %v390_v27  ;;  %v1900_v36 = vadd.f32 %v1614_v34, %v398_v28  ;;  %v1487_v37 = vpop.f32.mrb[2].mxu0  ;;  %v1616_v38 = vpop.f32.mrb[2].mxu1 }
 0x19c   : > { %v1621_v39 = vmax.f32 %v1895_v31, 0.0  ;;  %v1623_v40 = vmax.f32 %v1899_v32, 0.0  ;;  %v1897_v41 = vadd.f32 %v1487_v37, %v386_v25  ;;  %v1901_v42 = vadd.f32 %v1616_v38, %v394_v26  ;;  %v1489_v43 = vpop.f32.mrb[3].mxu0  ;;  %v1618_v44 = vpop.f32.mrb[3].mxu1 }
 0x19d   : > { %v1622_v45 = vmax.f32 %v1896_v35, 0.0  ;;  %v1624_v46 = vmax.f32 %v1900_v36, 0.0  ;;  %v1898_v47 = vadd.f32 %v1489_v43, %v390_v27  ;;  %v1902_v48 = vadd.f32 %v1618_v44, %v398_v28 }
 0x19e   : > { %1629 = vst [vmem:[%s170_s18] sm:$0xff] %v1621_v39  ;;  %1631 = vst [vmem:[%s170_s18 + $0x10] sm:$0xff] %v1623_v40  ;;  %v1625_v49 = vmax.f32 %v1897_v41, 0.0  ;;  %v1627_v50 = vmax.f32 %v1901_v42, 0.0 }
 0x19f   : > { %1630 = vst [vmem:[%s170_s18 + $0x8] sm:$0xff] %v1622_v45  ;;  %1632 = vst [vmem:[%s170_s18 + $0x18] sm:$0xff] %v1624_v46  ;;  %v1626_v51 = vmax.f32 %v1898_v47, 0.0  ;;  %v1628_v52 = vmax.f32 %v1902_v48, 0.0 }
 0x1a0   : > { %1633 = vst [vmem:[%s170_s18 + $0x20] sm:$0xff] %v1625_v49  ;;  %1635 = vst [vmem:[%s170_s18 + $0x30] sm:$0xff] %v1627_v50 }
 0x1a1   : > { %1634 = vst [vmem:[%s170_s18 + $0x28] sm:$0xff] %v1626_v51  ;;  %1636 = vst [vmem:[%s170_s18 + $0x38] sm:$0xff] %v1628_v52 }
 0x1a2 PF: > { %s13_s12 = sadd.s32 1, %s2222_s12  }
 0x1a3   : > { %p10_p4 = scmp.ge.s32.totalorder %s13_s12, 4  }
 0x1a5   :  { %12 = sbr.rel (!%p10_p4) target bundleno = 1 (0x1), region = 62 }

// kernel: ridbnet_seg_forward.37
= control target key start
LH: loop header
LB: loop body
LE: loop exit
PB: predicated region body
PF: predicated region fallthrough
CT: control target
= control target key end

     0   :  { %s665_s15 = smov 0   ;;  %s737_s0 = inlined_call_operand.vmem [shape: f32[2,64,3], index: 0, kind: input, shape index: {}]   ;;  %s738_s1 = inlined_call_operand.vmem [shape: f32[2,3,32], index: 1, kind: input, shape index: {}]   ;;  %s739_s2 = inlined_call_operand.vmem [shape: f32[2,64,1], index: 2, kind: input, shape index: {}]   ;;  %s740_s3 = inlined_call_operand.vmem [shape: f32[2,1,32], index: 3, kind: input, shape index: {}]   ;;  %s741_s4 = inlined_call_operand.vmem [shape: f32[2,64,32], index: 4, kind: output, shape index: {}]  }
   0x1 LB: > { %s568_s16 = sadd.s32 4294967295, %s637_s15   ;;  %p572_p0 = scmp.ge.s32.totalorder %s637_s15, 1  ;;  %s637_s15 = sphi %s665_s15, %s14_s15  }
   0x2   : > { %p189_p1 = scmp.lt.s32.totalorder %s637_s15, 3 }
   0x4   : > { %p190_p2 = pnand %p572_p0, %p189_p1 }
   0x5   : > { %p227_p3 = scmp.lt.s32.totalorder (!%p190_p2), %s568_s16, 1  ;;  %v639_v0 = vmov (!%p190_p2), 0   ;;  %vm283_vm0 = vcmask (!%p190_p2), 1042432   ;;  %vm258_vm1 = vcmask (!%p190_p2), 23552   ;;  %vm471_vm2 = vcmask (!%p190_p2), 261120  }
   0x6   : > { %193 = sbr.rel (%p190_p2) target bundleno = 242 (0xf2), region = 36  ;;  %630 = vset.pattern.permute.xlu1 (!%p190_p2), %v639_v0  ;;  %629 = vset.pattern.permute.xlu0 (!%p190_p2), %v639_v0 }
   0xd   : > { %s743_s16 = smov (!%p227_p3, %s568_s16), 1 }
   0xe   : > { %s676_s17 = sshll.u32 %s743_s16, 6  ;;  %s575_s18 = sshll.u32 %s743_s16, 2 }
   0xf   : > { %s231_s21 = scalar_lea.vmem %s737_s0, %s676_s17  ;;  %s235_s24 = scalar_lea.vmem %s738_s1, %s575_s18 }
  0x10   : > { %s690_s27 = scalar_lea.vmem %s739_s2, %s676_s17  ;;  %v257_v1 = vld [vmem:[%s235_s24] sm:$0x7]  ;;  %v250_v4 = vld [vmem:[%s231_s21 + $0x8] sm:$0xff]  ;;  %v251_v6 = vld [vmem:[%s231_s21 + $0x10] sm:$0xff]  ;;  %s243_s30 = scalar_lea.vmem %s740_s3, %s743_s16 }
  0x11   : > { %v249_v2 = vld [vmem:[%s231_s21] sm:$0xff]  ;;  %604 = vmatprep.subr.msk.mxu0 %vm283_vm0, %v257_v1  ;;  %618 = vmatprep.subr.msk.mxu1 %vm283_vm0, %v257_v1  ;;  %v254_v5 = vld [vmem:[%s231_s21 + $0x28] sm:$0xff]  ;;  %v255_v7 = vld [vmem:[%s231_s21 + $0x30] sm:$0xff]  ;;  %s716_s7 = scalar_lea.vmem %s741_s4, %s676_s17 }
  0x12   : > { %v253_v3 = vld [vmem:[%s231_s21 + $0x20] sm:$0xff]  ;;  %605 = vmatpush3.msk.msra.mxu0 %vm283_vm0, %v257_v1  ;;  %619 = vmatpush3.msk.msra.mxu1 %vm283_vm0, %v257_v1  ;;  %v394_v8 = vld [vmem:[%s690_s27 + $0x10] sm:$0xff]  ;;  %v252_v10 = vld [vmem:[%s231_s21 + $0x18] sm:$0xff] }
  0x13   : > { %606 = vmatprep.mubr.msk.f32.mxu0 %vm258_vm1, %v249_v2  ;;  %612 = vmatprep.mubr.msk.f32.mxu1 %vm258_vm1, %v253_v3  ;;  %v392_v9 = vld [vmem:[%s690_s27] sm:$0xff]  ;;  %v256_v11 = vld [vmem:[%s231_s21 + $0x38] sm:$0xff]  ;;  %v393_v13 = vld [vmem:[%s690_s27 + $0x8] sm:$0xff] }
  0x14   : > { %607 = vmatmul.mubr.msk.f32.vlgmr.msra.gmra.mrb[0].mxu0 %vm258_vm1, %v250_v4  ;;  %613 = vmatmul.mubr.msk.f32.vlgmr.msra.gmra.mrb[0].mxu1 %vm258_vm1, %v254_v5  ;;  %v395_v12 = vld [vmem:[%s690_s27 + $0x18] sm:$0xff]  ;;  %v397_v14 = vld [vmem:[%s690_s27 + $0x28] sm:$0xff]  ;;  %v396_v15 = vld [vmem:[%s690_s27 + $0x20] sm:$0xff] }
  0x15   : > { %609 = vmatprep.mubr.msk.f32.mxu0 %vm258_vm1, %v251_v6  ;;  %615 = vmatprep.mubr.msk.f32.mxu1 %vm258_vm1, %v255_v7  ;;  %v399_v16 = vld [vmem:[%s690_s27 + $0x38] sm:$0xff]  ;;  %v398_v17 = vld [vmem:[%s690_s27 + $0x30] sm:$0xff]  ;;  %v589_v24 = vld [vmem:[%s243_s30] ss:$0 sm:$0xff] }
  0x16   : > { %413 = vperm.xlu1 %630, %v394_v8   ;;  %403 = vperm.xlu0 %629, %v392_v9  }
  0x18   : > { %610 = vmatmul.mubr.msk.f32.gmra.mrb[2].mxu0 %vm258_vm1, %v252_v10  ;;  %616 = vmatmul.mubr.msk.f32.gmra.mrb[2].mxu1 %vm258_vm1, %v256_v11 }
  0x1a   : > { %418 = vperm.xlu1 %630, %v395_v12   ;;  %408 = vperm.xlu0 %629, %v393_v13  }
  0x1e   : > { %428 = vperm.xlu1 %630, %v397_v14   ;;  %423 = vperm.xlu0 %629, %v396_v15  }
  0x22   : > { %438 = vperm.xlu1 %630, %v399_v16   ;;  %433 = vperm.xlu0 %629, %v398_v17  }
  0x95   : > { %v414_v18 = vpop.permute.xlu1 %413  ;;  %v404_v19 = vpop.permute.xlu0 %403 }
  0x96   : > { %v447_v33 = vadd.f32 %v589_v24, %v404_v19  ;;  %v449_v51 = vadd.f32 %v589_v24, %v414_v18 }
  0x99   : > { %v419_v20 = vpop.permute.xlu1 %418  ;;  %v409_v21 = vpop.permute.xlu0 %408 }
  0x9a   : > { %v448_v27 = vadd.f32 %v589_v24, %v409_v21  ;;  %v450_v45 = vadd.f32 %v589_v24, %v419_v20 }
  0x9d   : > { %v429_v22 = vpop.permute.xlu1 %428  ;;  %v424_v23 = vpop.permute.xlu0 %423 }
  0x9e   : > { %v452_v28 = vadd.f32 %v589_v24, %v429_v22  ;;  %v451_v34 = vadd.f32 %v589_v24, %v424_v23 }
  0xa1   : > { %v439_v35 = vpop.permute.xlu1 %438  ;;  %v434_v38 = vpop.permute.xlu0 %433 }
  0xa2   : > { %v454_v46 = vadd.f32 %v589_v24, %v439_v35  ;;  %v453_v52 = vadd.f32 %v589_v24, %v434_v38 }
  0xe7   : > { %v608_v25 = vpop.f32.mrb[0].mxu0  ;;  %v614_v26 = vpop.f32.mrb[0].mxu1 }
  0xe8   : > { %v456_v29 = vmul.f32 2.0, %v608_v25  ;;  %v460_v30 = vmul.f32 2.0, %v614_v26  ;;  %v353_v31 = vpop.f32.mrb[1].mxu0  ;;  %v373_v32 = vpop.f32.mrb[1].mxu1 }
  0xe9   : > { %v455_v36 = vmul.f32 2.0, %v353_v31  ;;  %v459_v37 = vmul.f32 2.0, %v373_v32 }
  0xea   : > { %v464_v39 = vsub.f32 %v448_v27, %v456_v29  ;;  %v468_v40 = vsub.f32 %v452_v28, %v460_v30 }
  0xeb   : > { %v463_v41 = vsub.f32 %v447_v33, %v455_v36  ;;  %v467_v42 = vsub.f32 %v451_v34, %v459_v37  ;;  %v611_v43 = vpop.f32.mrb[2].mxu0  ;;  %v617_v44 = vpop.f32.mrb[2].mxu1 }
  0xec   : > { %473 = vst.msk [vmem:[%s716_s7 + $0x8] sm:$0xff] %vm471_vm2, %v464_v39  ;;  %477 = vst.msk [vmem:[%s716_s7 + $0x28] sm:$0xff] %vm471_vm2, %v468_v40  ;;  %v458_v47 = vmul.f32 2.0, %v611_v43  ;;  %v462_v48 = vmul.f32 2.0, %v617_v44  ;;  %v363_v49 = vpop.f32.mrb[3].mxu0  ;;  %v383_v50 = vpop.f32.mrb[3].mxu1 }
  0xed   : > { %472 = vst.msk [vmem:[%s716_s7] sm:$0xff] %vm471_vm2, %v463_v41  ;;  %476 = vst.msk [vmem:[%s716_s7 + $0x20] sm:$0xff] %vm471_vm2, %v467_v42  ;;  %v457_v53 = vmul.f32 2.0, %v363_v49  ;;  %v461_v54 = vmul.f32 2.0, %v383_v50 }
  0xee   : > { %v466_v55 = vsub.f32 %v450_v45, %v458_v47  ;;  %v470_v56 = vsub.f32 %v454_v46, %v462_v48 }
  0xef   : > { %v465_v57 = vsub.f32 %v449_v51, %v457_v53  ;;  %v469_v58 = vsub.f32 %v453_v52, %v461_v54 }
  0xf0   : > { %475 = vst.msk [vmem:[%s716_s7 + $0x18] sm:$0xff] %vm471_vm2, %v466_v55  ;;  %479 = vst.msk [vmem:[%s716_s7 + $0x38] sm:$0xff] %vm471_vm2, %v470_v56 }
  0xf1   : > { %474 = vst.msk [vmem:[%s716_s7 + $0x10] sm:$0xff] %vm471_vm2, %v465_v57  ;;  %478 = vst.msk [vmem:[%s716_s7 + $0x30] sm:$0xff] %vm471_vm2, %v469_v58 }
  0xf2 PF: > { %s14_s15 = sadd.s32 1, %s637_s15  }
  0xf3   : > { %p11_p4 = scmp.ge.s32.totalorder %s14_s15, 4  }
  0xf5   :  { %13 = sbr.rel (!%p11_p4) target bundleno = 1 (0x1), region = 75 }

// kernel: neg.20
= control target key start
LH: loop header
LB: loop body
LE: loop exit
PB: predicated region body
PF: predicated region fallthrough
CT: control target
= control target key end

     0   :  { %s264_s0 = inlined_call_operand.vmem [shape: f32[2,64,32], index: 0, kind: input, shape index: {}]   ;;  %s265_s1 = inlined_call_operand.vmem [shape: f32[2,64,32], index: 1, kind: output, shape index: {}]  }
   0x1   :  { %v2_v0 = vld [vmem:[%s264_s0] sm:$0xff]  ;;  %v130_v2 = vld [vmem:[%s264_s0 + $0x8] sm:$0xff]  ;;  %v134_v7 = vld [vmem:[%s264_s0 + $0x10] sm:$0xff] }
   0x2   :  { %v128_v1 = vld [vmem:[%s264_s0 + $0x40] sm:$0xff]  ;;  %v5_v3 = vxor.u32 2147483648, %v2_v0  ;;  %v20_v5 = vxor.u32 2147483648, %v130_v2  ;;  %v132_v6 = vld [vmem:[%s264_s0 + $0x48] sm:$0xff]  ;;  %v136_v8 = vld [vmem:[%s264_s0 + $0x50] sm:$0xff]  ;;  %v36_v10 = vxor.u32 2147483648, %v134_v7 }
   0x3   :  { %v12_v4 = vxor.u32 2147483648, %v128_v1  ;;  %v28_v9 = vxor.u32 2147483648, %v132_v6  ;;  %v44_v11 = vxor.u32 2147483648, %v136_v8  ;;  %v138_v12 = vld [vmem:[%s264_s0 + $0x18] sm:$0xff]  ;;  %v142_v14 = vld [vmem:[%s264_s0 + $0x20] sm:$0xff]  ;;  %v146_v19 = vld [vmem:[%s264_s0 + $0x28] sm:$0xff] }
   0x4   :  { %v140_v13 = vld [vmem:[%s264_s0 + $0x58] sm:$0xff]  ;;  %7 = vst [vmem:[%s265_s1] sm:$0xff] %v5_v3  ;;  %131 = vst [vmem:[%s265_s1 + $0x8] sm:$0xff] %v20_v5  ;;  %v52_v15 = vxor.u32 2147483648, %v138_v12  ;;  %v68_v17 = vxor.u32 2147483648, %v142_v14  ;;  %v144_v18 = vld [vmem:[%s264_s0 + $0x60] sm:$0xff]  ;;  %v84_v22 = vxor.u32 2147483648, %v146_v19 }
   0x5   :  { %129 = vst [vmem:[%s265_s1 + $0x40] sm:$0xff] %v12_v4  ;;  %v60_v16 = vxor.u32 2147483648, %v140_v13  ;;  %v148_v20 = vld [vmem:[%s264_s0 + $0x68] sm:$0xff]  ;;  %133 = vst [vmem:[%s265_s1 + $0x48] sm:$0xff] %v28_v9  ;;  %v76_v21 = vxor.u32 2147483648, %v144_v18  ;;  %v150_v24 = vld [vmem:[%s264_s0 + $0x30] sm:$0xff] }
   0x6   :  { %135 = vst [vmem:[%s265_s1 + $0x10] sm:$0xff] %v36_v10  ;;  %137 = vst [vmem:[%s265_s1 + $0x50] sm:$0xff] %v44_v11  ;;  %v92_v23 = vxor.u32 2147483648, %v148_v20  ;;  %v152_v25 = vld [vmem:[%s264_s0 + $0x70] sm:$0xff]  ;;  %v154_v26 = vld [vmem:[%s264_s0 + $0x38] sm:$0xff]  ;;  %v100_v27 = vxor.u32 2147483648, %v150_v24 }
   0x7   :  { %139 = vst [vmem:[%s265_s1 + $0x18] sm:$0xff] %v52_v15  ;;  %141 = vst [vmem:[%s265_s1 + $0x58] sm:$0xff] %v60_v16  ;;  %v108_v28 = vxor.u32 2147483648, %v152_v25  ;;  %v116_v29 = vxor.u32 2147483648, %v154_v26  ;;  %v156_v30 = vld [vmem:[%s264_s0 + $0x78] sm:$0xff] }
   0x8   :  { %143 = vst [vmem:[%s265_s1 + $0x20] sm:$0xff] %v68_v17  ;;  %145 = vst [vmem:[%s265_s1 + $0x60] sm:$0xff] %v76_v21  ;;  %v124_v31 = vxor.u32 2147483648, %v156_v30 }
   0x9   :  { %147 = vst [vmem:[%s265_s1 + $0x28] sm:$0xff] %v84_v22  ;;  %149 = vst [vmem:[%s265_s1 + $0x68] sm:$0xff] %v92_v23 }
   0xa   :  { %151 = vst [vmem:[%s265_s1 + $0x30] sm:$0xff] %v100_v27  ;;  %153 = vst [vmem:[%s265_s1 + $0x70] sm:$0xff] %v108_v28 }
   0xb   :  { %155 = vst [vmem:[%s265_s1 + $0x38] sm:$0xff] %v116_v29  ;;  %157 = vst [vmem:[%s265_s1 + $0x78] sm:$0xff] %v124_v31 }

// kernel: ridbnet_seg_forward.36
= control target key start
LH: loop header
LB: loop body
LE: loop exit
PB: predicated region body
PF: predicated region fallthrough
CT: control target
= control target key end

     0   :  { %s1214_s12 = smov 0   ;;  %s1504_s0 = inlined_call_operand.vmem [shape: f32[2,32,640], index: 0, kind: input, shape index: {}]   ;;  %s1505_s1 = inlined_call_operand.vmem [shape: bf16[640,256], index: 1, kind: input, shape index: {}]   ;;  %s1506_s2 = inlined_call_operand.vmem [shape: f32[1,256], index: 2, kind: input, shape index: {}]   ;;  %s1507_s3 = inlined_call_operand.vmem [shape: f32[2,32,256], index: 3, kind: output, shape index: {}]  }
   0x1 LB: > { %s924_s13 = sadd.s32 4294967295, %s1191_s12   ;;  %p928_p0 = scmp.ge.s32.totalorder %s1191_s12, 1  ;;  %s1191_s12 = sphi %s1214_s12, %s13_s12  }
   0x2   : > { %p137_p1 = scmp.lt.s32.totalorder %s1191_s12, 3 }
   0x4   : > { %p138_p2 = pnand %p928_p0, %p137_p1 }
   0x5   : > { %v1065_v0 = vld [vmem:[%s1505_s1 + $0x4] ss:$8 sps:$4 sm:$0xff] (!%p138_p2)   ;;  %v1069_v2 = vld [vmem:[%s1505_s1] ss:$8 sps:$4 sm:$0xff] (!%p138_p2)   ;;  %v1071_v4 = vld [vmem:[%s1505_s1 + $0x14] ss:$8 sps:$4 sm:$0xff] (!%p138_p2)  }
   0x6   : > { %141 = sbr.rel (%p138_p2) target bundleno = 323 (0x143), region = 32  ;;  %v1067_v1 = vld [vmem:[%s1505_s1 + $0x104] ss:$8 sps:$4 sm:$0xff] (!%p138_p2)   ;;  %694 = vmatprep.subr.bf16.mxu1 (!%p138_p2), %v1065_v0  ;;  %v1070_v3 = vld [vmem:[%s1505_s1 + $0x100] ss:$8 sps:$4 sm:$0xff] (!%p138_p2)   ;;  %p161_p3 = scmp.lt.s32.totalorder (!%p138_p2), %s924_s13, 1 }
   0x7   : > { %747 = vmatprep.subr.bf16.mxu0 (!%p138_p2), %v1067_v1  ;;  %695 = vmatpush1.bf16.msra.mxu1 (!%p138_p2), %v1069_v2  ;;  %v1073_v5 = vld [vmem:[%s1505_s1 + $0x114] ss:$8 sps:$4 sm:$0xff] (!%p138_p2)   ;;  %v1075_v6 = vld [vmem:[%s1505_s1 + $0x10] ss:$8 sps:$4 sm:$0xff] (!%p138_p2)   ;;  %v1077_v8 = vld [vmem:[%s1505_s1 + $0x24] ss:$8 sps:$4 sm:$0xff] (!%p138_p2)  }
   0x8   : > { %748 = vmatpush1.bf16.msra.mxu0 (!%p138_p2), %v1070_v3  ;;  %696 = vmatprep.subr.bf16.mxu1 (!%p138_p2), %v1071_v4  ;;  %v1076_v7 = vld [vmem:[%s1505_s1 + $0x110] ss:$8 sps:$4 sm:$0xff] (!%p138_p2)   ;;  %v1079_v9 = vld [vmem:[%s1505_s1 + $0x124] ss:$8 sps:$4 sm:$0xff] (!%p138_p2)   ;;  %v1081_v10 = vld [vmem:[%s1505_s1 + $0x20] ss:$8 sps:$4 sm:$0xff] (!%p138_p2)  }
   0x9   : > { %749 = vmatprep.subr.bf16.mxu0 (!%p138_p2), %v1073_v5  ;;  %v1082_v11 = vld [vmem:[%s1505_s1 + $0x120] ss:$8 sps:$4 sm:$0xff] (!%p138_p2)   ;;  %v1083_v12 = vld [vmem:[%s1505_s1 + $0x34] ss:$8 sps:$4 sm:$0xff] (!%p138_p2)   ;;  %v1087_v14 = vld [vmem:[%s1505_s1 + $0x30] ss:$8 sps:$4 sm:$0xff] (!%p138_p2)  }
   0xa   : > { %v1085_v13 = vld [vmem:[%s1505_s1 + $0x134] ss:$8 sps:$4 sm:$0xff] (!%p138_p2)   ;;  %v1088_v15 = vld [vmem:[%s1505_s1 + $0x130] ss:$8 sps:$4 sm:$0xff] (!%p138_p2)   ;;  %v1089_v16 = vld [vmem:[%s1505_s1 + $0x44] ss:$8 sps:$4 sm:$0xff] (!%p138_p2)  }
   0xb   : > { %697 = vmatpush1.bf16.msra.mxu1 (!%p138_p2), %v1075_v6  ;;  %v1091_v17 = vld [vmem:[%s1505_s1 + $0x144] ss:$8 sps:$4 sm:$0xff] (!%p138_p2)   ;;  %v1093_v18 = vld [vmem:[%s1505_s1 + $0x40] ss:$8 sps:$4 sm:$0xff] (!%p138_p2)   ;;  %v1095_v20 = vld [vmem:[%s1505_s1 + $0x54] ss:$8 sps:$4 sm:$0xff] (!%p138_p2)  }
   0xc   : > { %750 = vmatpush1.bf16.msra.mxu0 (!%p138_p2), %v1076_v7  ;;  %698 = vmatprep.subr.bf16.mxu1 (!%p138_p2), %v1077_v8  ;;  %v1094_v19 = vld [vmem:[%s1505_s1 + $0x140] ss:$8 sps:$4 sm:$0xff] (!%p138_p2)   ;;  %v1097_v21 = vld [vmem:[%s1505_s1 + $0x154] ss:$8 sps:$4 sm:$0xff] (!%p138_p2)   ;;  %v1099_v22 = vld [vmem:[%s1505_s1 + $0x50] ss:$8 sps:$4 sm:$0xff] (!%p138_p2)  }
   0xd   : > { %751 = vmatprep.subr.bf16.mxu0 %v1079_v9  ;;  %v1100_v23 = vld [vmem:[%s1505_s1 + $0x150] ss:$8 sps:$4 sm:$0xff]   ;;  %v1101_v24 = vld [vmem:[%s1505_s1 + $0x64] ss:$8 sps:$4 sm:$0xff]   ;;  %v1105_v26 = vld [vmem:[%s1505_s1 + $0x60] ss:$8 sps:$4 sm:$0xff]  }
   0xe   : > { %v1103_v25 = vld [vmem:[%s1505_s1 + $0x164] ss:$8 sps:$4 sm:$0xff]   ;;  %v1106_v27 = vld [vmem:[%s1505_s1 + $0x160] ss:$8 sps:$4 sm:$0xff]   ;;  %v1107_v28 = vld [vmem:[%s1505_s1 + $0x74] ss:$8 sps:$4 sm:$0xff]  }
   0xf   : > { %699 = vmatpush1.bf16.msra.mxu1 %v1081_v10  ;;  %v1109_v29 = vld [vmem:[%s1505_s1 + $0x174] ss:$8 sps:$4 sm:$0xff]   ;;  %v1111_v30 = vld [vmem:[%s1505_s1 + $0x70] ss:$8 sps:$4 sm:$0xff]   ;;  %v1113_v32 = vld [vmem:[%s1505_s1 + $0x84] ss:$8 sps:$4 sm:$0xff]  }
  0x10   : > { %752 = vmatpush1.bf16.msra.mxu0 %v1082_v11  ;;  %700 = vmatprep.subr.bf16.mxu1 %v1083_v12  ;;  %v1112_v31 = vld [vmem:[%s1505_s1 + $0x170] ss:$8 sps:$4 sm:$0xff]   ;;  %v1115_v33 = vld [vmem:[%s1505_s1 + $0x184] ss:$8 sps:$4 sm:$0xff]   ;;  %v1117_v34 = vld [vmem:[%s1505_s1 + $0x80] ss:$8 sps:$4 sm:$0xff]  }
  0x11   : > { %753 = vmatprep.subr.bf16.mxu0 %v1085_v13  ;;  %v1118_v35 = vld [vmem:[%s1505_s1 + $0x180] ss:$8 sps:$4 sm:$0xff]   ;;  %s1509_s13 = smov (!%p161_p3, %s924_s13), 1  ;;  %v1119_v36 = vld [vmem:[%s1505_s1 + $0x94] ss:$8 sps:$4 sm:$0xff]  }
  0x12   : > { %v1121_v37 = vld [vmem:[%s1505_s1 + $0x194] ss:$8 sps:$4 sm:$0xff]   ;;  %v1123_v38 = vld [vmem:[%s1505_s1 + $0x90] ss:$8 sps:$4 sm:$0xff]   ;;  %s1055_s17 = smul.u32 160, %s1509_s13 }
  0x13   : > { %701 = vmatpush1.bf16.msra.mxu1 %v1087_v14  ;;  %v1124_v39 = vld [vmem:[%s1505_s1 + $0x190] ss:$8 sps:$4 sm:$0xff]   ;;  %v1125_v40 = vld [vmem:[%s1505_s1 + $0xa4] ss:$8 sps:$4 sm:$0xff]   ;;  %v1129_v42 = vld [vmem:[%s1505_s1 + $0xa0] ss:$8 sps:$4 sm:$0xff]  }
  0x14   : > { %754 = vmatpush1.bf16.msra.mxu0 %v1088_v15  ;;  %702 = vmatprep.subr.bf16.mxu1 %v1089_v16  ;;  %v1127_v41 = vld [vmem:[%s1505_s1 + $0x1a4] ss:$8 sps:$4 sm:$0xff]   ;;  %v1130_v43 = vld [vmem:[%s1505_s1 + $0x1a0] ss:$8 sps:$4 sm:$0xff]   ;;  %s1364_s30 = scalar_lea.vmem %s1504_s0, %s1055_s17  ;;  %v1131_v44 = vld [vmem:[%s1505_s1 + $0xb4] ss:$8 sps:$4 sm:$0xff]  }
  0x15   : > { %755 = vmatprep.subr.bf16.mxu0 %v1091_v17  ;;  %v1133_v45 = vld [vmem:[%s1505_s1 + $0x1b4] ss:$8 sps:$4 sm:$0xff]   ;;  %v173_v46 = vld [vmem:[%s1364_s30 + $0x8] sm:$0xff]  ;;  %v1135_v47 = vld [vmem:[%s1505_s1 + $0xb0] ss:$8 sps:$4 sm:$0xff]  }
  0x16   : > { %v1136_v48 = vld [vmem:[%s1505_s1 + $0x1b0] ss:$8 sps:$4 sm:$0xff]   ;;  %v180_v52 = vld [vmem:[%s1364_s30 + $0x40] sm:$0xff]  ;;  %v1143_v58 = vld [vmem:[%s1505_s1 + $0xd4] ss:$8 sps:$4 sm:$0xff]  }
  0x17   : > { %703 = vmatpush1.bf16.msra.mxu1 %v1093_v18  ;;  %v178_v49 = vld [vmem:[%s1364_s30 + $0x30] sm:$0xff]  ;;  %v175_v51 = vld [vmem:[%s1364_s30 + $0x18] sm:$0xff]  ;;  %v1137_v53 = vld [vmem:[%s1505_s1 + $0xc4] ss:$8 sps:$4 sm:$0xff]  }
  0x18   : > { %756 = vmatpush1.bf16.msra.mxu0 %v1094_v19  ;;  %704 = vmatprep.subr.bf16.mxu1 %v1095_v20  ;;  %v193_v50 = vpack.c.bf16 %v178_v49, %v173_v46  ;;  %v1139_v54 = vld [vmem:[%s1505_s1 + $0x1c4] ss:$8 sps:$4 sm:$0xff]   ;;  %v195_v55 = vpack.c.bf16 %v180_v52, %v175_v51  ;;  %v1141_v56 = vld [vmem:[%s1505_s1 + $0xc0] ss:$8 sps:$4 sm:$0xff]   ;;  %v1145_v59 = vld [vmem:[%s1505_s1 + $0x1d4] ss:$8 sps:$4 sm:$0xff]  }
  0x19   : > { %757 = vmatprep.subr.bf16.mxu0 %v1097_v21  ;;  %v1142_v57 = vld [vmem:[%s1505_s1 + $0x1c0] ss:$8 sps:$4 sm:$0xff]   ;;  %v1147_v60 = vld [vmem:[%s1505_s1 + $0xd0] ss:$8 sps:$4 sm:$0xff]   ;;  %v1149_v62 = vld [vmem:[%s1505_s1 + $0xe4] ss:$8 sps:$4 sm:$0xff]  }
  0x1a   : > { %726 = vmatprep.mubr.bf16.mxu1 %v193_v50  ;;  %779 = vmatprep.mubr.bf16.mxu0 %v195_v55  ;;  %v1148_v61 = vld [vmem:[%s1505_s1 + $0x1d0] ss:$8 sps:$4 sm:$0xff]   ;;  %v1151_v63 = vld [vmem:[%s1505_s1 + $0x1e4] ss:$8 sps:$4 sm:$0xff]   ;;  %v1153_v0 = vld [vmem:[%s1505_s1 + $0xe0] ss:$8 sps:$4 sm:$0xff]  }
  0x1b   : > { %705 = vmatpush1.bf16.msra.mxu1 %v1099_v22  ;;  %v1154_v1 = vld [vmem:[%s1505_s1 + $0x1e0] ss:$8 sps:$4 sm:$0xff]   ;;  %v1155_v2 = vld [vmem:[%s1505_s1 + $0xf4] ss:$8 sps:$4 sm:$0xff]   ;;  %v1159_v4 = vld [vmem:[%s1505_s1 + $0xf0] ss:$8 sps:$4 sm:$0xff]  }
  0x1c   : > { %758 = vmatpush1.bf16.msra.mxu0 %v1100_v23  ;;  %706 = vmatprep.subr.bf16.mxu1 %v1101_v24  ;;  %v1157_v3 = vld [vmem:[%s1505_s1 + $0x1f4] ss:$8 sps:$4 sm:$0xff]   ;;  %v1160_v5 = vld [vmem:[%s1505_s1 + $0x1f0] ss:$8 sps:$4 sm:$0xff]   ;;  %v172_v6 = vld [vmem:[%s1364_s30] sm:$0xff] }
  0x1d   : > { %759 = vmatprep.subr.bf16.mxu0 %v1103_v25  ;;  %v177_v7 = vld [vmem:[%s1364_s30 + $0x28] sm:$0xff]  ;;  %v174_v8 = vld [vmem:[%s1364_s30 + $0x10] sm:$0xff]  ;;  %v179_v9 = vld [vmem:[%s1364_s30 + $0x38] sm:$0xff] }
  0x1e   : > { %v1163_v10 = vld [vmem:[%s1505_s1 + $0x204] ss:$8 sps:$4 sm:$0xff]   ;;  %v183_v11 = vld [vmem:[%s1364_s30 + $0x58] sm:$0xff]  ;;  %v192_v12 = vpack.c.bf16 %v177_v7, %v172_v6  ;;  %v194_v13 = vpack.c.bf16 %v179_v9, %v174_v8  ;;  %v190_v16 = vld [vmem:[%s1364_s30 + $0x90] sm:$0xff] }
  0x1f   : > { %707 = vmatpush1.bf16.msra.mxu1 %v1105_v26  ;;  %v188_v14 = vld [vmem:[%s1364_s30 + $0x80] sm:$0xff]  ;;  %v185_v15 = vld [vmem:[%s1364_s30 + $0x68] sm:$0xff]  ;;  %v1166_v18 = vld [vmem:[%s1505_s1 + $0x214] ss:$8 sps:$4 sm:$0xff]  }
  0x20   : > { %760 = vmatpush1.bf16.msra.mxu0 %v1106_v27  ;;  %708 = vmatprep.subr.bf16.mxu1 %v1107_v28  ;;  %v1161_v17 = vld [vmem:[%s1505_s1 + $0x200] ss:$8 sps:$4 sm:$0xff]   ;;  %v198_v19 = vpack.c.bf16 %v188_v14, %v183_v11  ;;  %v200_v20 = vpack.c.bf16 %v190_v16, %v185_v15  ;;  %v1164_v21 = vld [vmem:[%s1505_s1 + $0x210] ss:$8 sps:$4 sm:$0xff]   ;;  %v1169_v26 = vld [vmem:[%s1505_s1 + $0x224] ss:$8 sps:$4 sm:$0xff]  }
  0x21   : > { %761 = vmatprep.subr.bf16.mxu0 %v1109_v29  ;;  %v182_v22 = vld [vmem:[%s1364_s30 + $0x50] sm:$0xff]  ;;  %v187_v23 = vld [vmem:[%s1364_s30 + $0x78] sm:$0xff]  ;;  %v184_v24 = vld [vmem:[%s1364_s30 + $0x60] sm:$0xff] }
  0x22   : > { %v189_v25 = vld [vmem:[%s1364_s30 + $0x88] sm:$0xff]  ;;  %v197_v27 = vpack.c.bf16 %v187_v23, %v182_v22 }
  0x23   : > { %709 = vmatpush1.bf16.msra.mxu1 %v1111_v30  ;;  %v199_v28 = vpack.c.bf16 %v189_v25, %v184_v24  ;;  %v1167_v29 = vld [vmem:[%s1505_s1 + $0x220] ss:$8 sps:$4 sm:$0xff]   ;;  %v1172_v30 = vld [vmem:[%s1505_s1 + $0x234] ss:$8 sps:$4 sm:$0xff]  }
  0x24   : > { %762 = vmatpush1.bf16.msra.mxu0 %v1112_v31  ;;  %710 = vmatprep.subr.bf16.mxu1 %v1113_v32  ;;  %v1170_v31 = vld [vmem:[%s1505_s1 + $0x230] ss:$8 sps:$4 sm:$0xff]   ;;  %v1175_v32 = vld [vmem:[%s1505_s1 + $0x244] ss:$8 sps:$4 sm:$0xff]  }
  0x25   : > { %763 = vmatprep.subr.bf16.mxu0 %v1115_v33  ;;  %v1193_v33 = vmov 0  }
  0x27   : > { %711 = vmatpush1.bf16.msra.mxu1 %v1117_v34  ;;  %v1173_v34 = vld [vmem:[%s1505_s1 + $0x240] ss:$8 sps:$4 sm:$0xff]  }
  0x28   : > { %764 = vmatpush1.bf16.msra.mxu0 %v1118_v35  ;;  %712 = vmatprep.subr.bf16.mxu1 %v1119_v36  ;;  %v1178_v35 = vld [vmem:[%s1505_s1 + $0x254] ss:$8 sps:$4 sm:$0xff]   ;;  %v1176_v36 = vld [vmem:[%s1505_s1 + $0x250] ss:$8 sps:$4 sm:$0xff]  }
  0x29   : > { %765 = vmatprep.subr.bf16.mxu0 %v1121_v37  ;;  %v1181_v37 = vld [vmem:[%s1505_s1 + $0x264] ss:$8 sps:$4 sm:$0xff]  }
  0x2b   : > { %713 = vmatpush1.bf16.msra.mxu1 %v1123_v38  ;;  %v1179_v38 = vld [vmem:[%s1505_s1 + $0x260] ss:$8 sps:$4 sm:$0xff]  }
  0x2c   : > { %766 = vmatpush1.bf16.msra.mxu0 %v1124_v39  ;;  %714 = vmatprep.subr.bf16.mxu1 %v1125_v40  ;;  %v1184_v39 = vld [vmem:[%s1505_s1 + $0x274] ss:$8 sps:$4 sm:$0xff]   ;;  %v1182_v40 = vld [vmem:[%s1505_s1 + $0x270] ss:$8 sps:$4 sm:$0xff]  }
  0x2d   : > { %767 = vmatprep.subr.bf16.mxu0 %v1127_v41  ;;  %v176_v41 = vld [vmem:[%s1364_s30 + $0x20] sm:$0xff] }
  0x2f   : > { %715 = vmatpush1.bf16.msra.mxu1 %v1129_v42  ;;  %v181_v42 = vld [vmem:[%s1364_s30 + $0x48] sm:$0xff] }
  0x30   : > { %768 = vmatpush1.bf16.msra.mxu0 %v1130_v43  ;;  %716 = vmatprep.subr.bf16.mxu1 %v1131_v44  ;;  %v186_v43 = vld [vmem:[%s1364_s30 + $0x70] sm:$0xff]  ;;  %v191_v44 = vld [vmem:[%s1364_s30 + $0x98] sm:$0xff]  ;;  %s1014_s30 = sshll.u32 %s1509_s13, 6 }
  0x31   : > { %769 = vmatprep.subr.bf16.mxu0 %v1133_v45  ;;  %v196_v45 = vpack.c.bf16 %v181_v42, %v176_v41  ;;  %v201_v46 = vpack.c.bf16 %v191_v44, %v186_v43  ;;  %s170_s8 = scalar_lea.vmem %s1507_s3, %s1014_s30 }
  0x33   : > { %717 = vmatpush1.bf16.msra.mxu1 %v1135_v47  ;;  %v284_v47 = vlaneseq }
  0x34   : > { %770 = vmatpush1.bf16.msra.mxu0 %v1136_v48  ;;  %718 = vmatprep.subr.bf16.mxu1 %v1137_v53 }
  0x35   : > { %771 = vmatprep.subr.bf16.mxu0 %v1139_v54  ;;  %v285_v48 = vshrl.u32 %v284_v47, 7  ;;  %v282_v54 = vld [vmem:[%s1506_s2] sm:$0x3] }
  0x37   : > { %719 = vmatpush1.bf16.msra.mxu1 %v1141_v56  ;;  %v286_v52 = vsub.s32 0, %v285_v48  ;;  %v290_v55 = vsub.s32 1, %v285_v48 }
  0x38   : > { %772 = vmatpush1.bf16.msra.mxu0 %v1142_v57  ;;  %720 = vmatprep.subr.bf16.mxu1 %v1143_v58 }
  0x39   : > { %773 = vmatprep.subr.bf16.mxu0 %v1145_v59  ;;  %v287_v56 = vrot.slane %v282_v54, %v286_v52  ;;  %v291_v57 = vrot.slane %v282_v54, %v290_v55 }
  0x3b   : > { %721 = vmatpush1.bf16.msra.mxu1 %v1147_v60 }
  0x3c   : > { %774 = vmatpush1.bf16.msra.mxu0 %v1148_v61  ;;  %722 = vmatprep.subr.bf16.mxu1 %v1149_v62 }
  0x3d   : > { %775 = vmatprep.subr.bf16.mxu0 %v1151_v63 }
  0x3f   : > { %723 = vmatpush1.bf16.msra.mxu1 %v1153_v0 }
  0x40   : > { %776 = vmatpush1.bf16.msra.mxu0 %v1154_v1  ;;  %724 = vmatprep.subr.bf16.mxu1 %v1155_v2 }
  0x41   : > { %777 = vmatprep.subr.bf16.mxu0 %v1157_v3 }
  0x43   : > { %725 = vmatpush1.bf16.msra.mxu1 %v1159_v4 }
  0x44   : > { %778 = vmatpush1.bf16.msra.mxu0 %v1160_v5  ;;  %1015 = vmatprep.subr.bf16.mxu1 %v1163_v10 }
  0x45   : > { %800 = vmatprep.subr.bf16.mxu0 %v1163_v10 }
  0x46   : > { %727 = vmatmul.mubr.bf16.vlgmr.msra.gmra.mrb[0].mxu1 %v192_v12 }
  0x47   : > { %780 = vmatmul.mubr.bf16.vlgmr.msra.gmra.mrb[0].mxu0 %v194_v13  ;;  %1023 = vmatpush1.bf16.msra.mxu1 %v1161_v17 }
  0x48   : > { %801 = vmatpush1.bf16.msra.mxu0 %v1161_v17  ;;  %1016 = vmatprep.subr.bf16.mxu1 %v1166_v18 }
  0x49   : > { %802 = vmatprep.subr.bf16.mxu0 %v1166_v18  ;;  %736 = vmatprep.mubr.bf16.mxu1 %v198_v19 }
  0x4a   : > { %789 = vmatprep.mubr.bf16.mxu0 %v200_v20 }
  0x4b   : > { %1024 = vmatpush1.bf16.msra.mxu1 %v1164_v21 }
  0x4c   : > { %803 = vmatpush1.bf16.msra.mxu0 %v1164_v21  ;;  %1017 = vmatprep.subr.bf16.mxu1 %v1169_v26 }
  0x4d   : > { %804 = vmatprep.subr.bf16.mxu0 %v1169_v26 }
  0x4e   : > { %737 = vmatmul.mubr.bf16.gmra.mrb[4].mxu1 %v197_v27 }
  0x4f   : > { %790 = vmatmul.mubr.bf16.gmra.mrb[4].mxu0 %v199_v28  ;;  %1025 = vmatpush1.bf16.msra.mxu1 %v1167_v29 }
  0x50   : > { %805 = vmatpush1.bf16.msra.mxu0 %v1167_v29  ;;  %1018 = vmatprep.subr.bf16.mxu1 %v1172_v30 }
  0x51   : > { %806 = vmatprep.subr.bf16.mxu0 %v1172_v30  ;;  %832 = vmatprep.mubr.bf16.mxu0 %v1193_v33 }
  0x52   : > { %842 = vmatprep.mubr.bf16.mxu1 %v1193_v33 }
  0x53   : > { %1026 = vmatpush1.bf16.msra.mxu1 %v1170_v31 }
  0x54   : > { %807 = vmatpush1.bf16.msra.mxu0 %v1170_v31  ;;  %1019 = vmatprep.subr.bf16.mxu1 %v1175_v32 }
  0x55   : > { %808 = vmatprep.subr.bf16.mxu0 %v1175_v32 }
  0x57   : > { %1027 = vmatpush1.bf16.msra.mxu1 %v1173_v34 }
  0x58   : > { %809 = vmatpush1.bf16.msra.mxu0 %v1173_v34  ;;  %1020 = vmatprep.subr.bf16.mxu1 %v1178_v35 }
  0x59   : > { %810 = vmatprep.subr.bf16.mxu0 %v1178_v35 }
  0x5b   : > { %1028 = vmatpush1.bf16.msra.mxu1 %v1176_v36 }
  0x5c   : > { %811 = vmatpush1.bf16.msra.mxu0 %v1176_v36  ;;  %1021 = vmatprep.subr.bf16.mxu1 %v1181_v37 }
  0x5d   : > { %812 = vmatprep.subr.bf16.mxu0 %v1181_v37 }
  0x5f   : > { %1029 = vmatpush1.bf16.msra.mxu1 %v1179_v38 }
  0x60   : > { %813 = vmatpush1.bf16.msra.mxu0 %v1179_v38  ;;  %1022 = vmatprep.subr.bf16.mxu1 %v1184_v39 }
  0x61   : > { %814 = vmatprep.subr.bf16.mxu0 %v1184_v39 }
  0x63   : > { %1030 = vmatpush1.bf16.msra.mxu1 %v1182_v40 }
  0x64   : > { %815 = vmatpush1.bf16.msra.mxu0 %v1182_v40 }
  0x66   : > { %843 = vmatmul.mubr.bf16.vlgmr.msra.gmra.mrb[8].mxu1 %v201_v46 }
  0x67   : > { %833 = vmatmul.mubr.bf16.vlgmr.msra.gmra.mrb[0].mxu0 %v196_v45 }
 0x119   : > { %v728_v49 = vpop.f32.mrb[0].mxu1 }
 0x11a   : > { %v730_v50 = vpop.f32.mrb[1].mxu1  ;;  %v729_v10 = vadd.f32 %v728_v49, %v287_v56 }
 0x11b   : > { %v732_v51 = vpop.f32.mrb[2].mxu1  ;;  %v731_v11 = vadd.f32 %v730_v50, %v291_v57 }
 0x11c   : > { %v734_v53 = vpop.f32.mrb[3].mxu1  ;;  %v733_v14 = vadd.f32 %v732_v51, %v287_v56 }
 0x11d   : > { %v735_v19 = vadd.f32 %v734_v53, %v291_v57 }
 0x121   : > { %v738_v58 = vpop.f32.mrb[4].mxu1 }
 0x122   : > { %v791_v59 = vpop.f32.mrb[4].mxu0  ;;  %v739_v60 = vadd.f32 %v738_v58, %v287_v56  ;;  %v740_v61 = vpop.f32.mrb[5].mxu1 }
 0x123   : > { %v793_v62 = vpop.f32.mrb[5].mxu0  ;;  %v741_v63 = vadd.f32 %v740_v61, %v291_v57  ;;  %v742_v0 = vpop.f32.mrb[6].mxu1 }
 0x124   : > { %v795_v1 = vpop.f32.mrb[6].mxu0  ;;  %v743_v2 = vadd.f32 %v742_v0, %v287_v56  ;;  %v792_v3 = vadd.f32 %v791_v59, %v739_v60  ;;  %v744_v4 = vpop.f32.mrb[7].mxu1 }
 0x125   : > { %v797_v5 = vpop.f32.mrb[7].mxu0  ;;  %v745_v6 = vadd.f32 %v744_v4, %v291_v57  ;;  %v794_v7 = vadd.f32 %v793_v62, %v741_v63 }
 0x126   : > { %v796_v8 = vadd.f32 %v795_v1, %v743_v2 }
 0x127   : > { %v798_v9 = vadd.f32 %v797_v5, %v745_v6 }
 0x139   : > { %v844_v13 = vpop.f32.mrb[8].mxu1 }
 0x13a   : > { %v834_v12 = vpop.f32.mrb[0].mxu0  ;;  %v845_v16 = vadd.f32 %v844_v13, %v792_v3  ;;  %v846_v18 = vpop.f32.mrb[9].mxu1 }
 0x13b   : > { %v1032_v15 = vadd.f32 %v834_v12, %v729_v10  ;;  %v836_v17 = vpop.f32.mrb[1].mxu0  ;;  %v847_v21 = vadd.f32 %v846_v18, %v794_v7  ;;  %v848_v23 = vpop.f32.mrb[10].mxu1 }
 0x13c   : > { %v1034_v20 = vadd.f32 %v836_v17, %v731_v11  ;;  %v838_v22 = vpop.f32.mrb[2].mxu0  ;;  %v857_v25 = vmax.f32 %v845_v16, 0.0  ;;  %v849_v27 = vadd.f32 %v848_v23, %v796_v8  ;;  %v850_v29 = vpop.f32.mrb[11].mxu1 }
 0x13d   : > { %v853_v24 = vmax.f32 %v1032_v15, 0.0  ;;  %v1036_v26 = vadd.f32 %v838_v22, %v733_v14  ;;  %v840_v28 = vpop.f32.mrb[3].mxu0  ;;  %v858_v31 = vmax.f32 %v847_v21, 0.0  ;;  %v851_v33 = vadd.f32 %v850_v29, %v798_v9 }
 0x13e   : > { %v854_v30 = vmax.f32 %v1034_v20, 0.0  ;;  %v1038_v32 = vadd.f32 %v840_v28, %v735_v19  ;;  %865 = vst [vmem:[%s170_s8 + $0x20] sm:$0xff] %v857_v25  ;;  %v859_v35 = vmax.f32 %v849_v27, 0.0 }
 0x13f   : > { %861 = vst [vmem:[%s170_s8] sm:$0xff] %v853_v24  ;;  %v855_v34 = vmax.f32 %v1036_v26, 0.0  ;;  %866 = vst [vmem:[%s170_s8 + $0x28] sm:$0xff] %v858_v31  ;;  %v860_v37 = vmax.f32 %v851_v33, 0.0 }
 0x140   : > { %862 = vst [vmem:[%s170_s8 + $0x8] sm:$0xff] %v854_v30  ;;  %v856_v36 = vmax.f32 %v1038_v32, 0.0  ;;  %867 = vst [vmem:[%s170_s8 + $0x30] sm:$0xff] %v859_v35 }
 0x141   : > { %863 = vst [vmem:[%s170_s8 + $0x10] sm:$0xff] %v855_v34  ;;  %868 = vst [vmem:[%s170_s8 + $0x38] sm:$0xff] %v860_v37 }
 0x142   : > { %864 = vst [vmem:[%s170_s8 + $0x18] sm:$0xff] %v856_v36 }
 0x143 PF: > { %s13_s12 = sadd.s32 1, %s1191_s12  }
 0x144   : > { %p10_p4 = scmp.ge.s32.totalorder %s13_s12, 4  }
 0x146   :  { %12 = sbr.rel (!%p10_p4) target bundleno = 1 (0x1), region = 62 }

// kernel: ridbnet_seg_forward.38
= control target key start
LH: loop header
LB: loop body
LE: loop exit
PB: predicated region body
PF: predicated region fallthrough
CT: control target
= control target key end

     0   :  { %s746_s12 = smov 0   ;;  %s870_s0 = inlined_call_operand.vmem [shape: f32[2,64,320], index: 0, kind: input, shape index: {}]   ;;  %s871_s1 = inlined_call_operand.vmem [shape: bf16[320,128], index: 1, kind: input, shape index: {}]   ;;  %s872_s2 = inlined_call_operand.vmem [shape: f32[1,128], index: 2, kind: input, shape index: {}]   ;;  %s873_s3 = inlined_call_operand.vmem [shape: f32[2,64,128], index: 3, kind: output, shape index: {}]  }
   0x1 LB: > { %s589_s13 = sadd.s32 4294967295, %s724_s12   ;;  %p593_p0 = scmp.ge.s32.totalorder %s724_s12, 1  ;;  %s724_s12 = sphi %s746_s12, %s13_s12  }
   0x2   : > { %p137_p1 = scmp.lt.s32.totalorder %s724_s12, 3 }
   0x4   : > { %p138_p2 = pnand %p593_p0, %p137_p1 }
   0x5   : > { %v698_v0 = vld [vmem:[%s871_s1 + $0x40] sm:$0xff] (!%p138_p2)   ;;  %v700_v2 = vld [vmem:[%s871_s1 + $0x48] sm:$0xff] (!%p138_p2)   ;;  %v702_v4 = vld [vmem:[%s871_s1 + $0x50] sm:$0xff] (!%p138_p2)   ;;  %p161_p3 = scmp.lt.s32.totalorder (!%p138_p2), %s589_s13, 1  ;;  %vm375_vm0 = vcmask (!%p138_p2), 523264  }
   0x6   : > { %141 = sbr.rel (%p138_p2) target bundleno = 286 (0x11e), region = 32  ;;  %v699_v1 = vld [vmem:[%s871_s1] sm:$0xff] (!%p138_p2)   ;;  %625 = vmatprep.subr.bf16.mxu0 (!%p138_p2), %v698_v0  ;;  %v701_v3 = vld [vmem:[%s871_s1 + $0x8] sm:$0xff] (!%p138_p2)   ;;  %v703_v5 = vld [vmem:[%s871_s1 + $0x10] sm:$0xff] (!%p138_p2)  }
   0x7   : > { %626 = vmatpush3.bf16.msra.mxu0 (!%p138_p2), %v699_v1  ;;  %v704_v6 = vld [vmem:[%s871_s1 + $0x58] sm:$0xff] (!%p138_p2)   ;;  %v709_v8 = vld [vmem:[%s871_s1 + $0x80] sm:$0xff] (!%p138_p2)   ;;  %v712_v10 = vld [vmem:[%s871_s1 + $0x88] sm:$0xff] (!%p138_p2)  }
   0x8   : > { %627 = vmatprep.subr.bf16.mxu0 (!%p138_p2), %v700_v2  ;;  %v705_v7 = vld [vmem:[%s871_s1 + $0x18] sm:$0xff] (!%p138_p2)   ;;  %v706_v9 = vld [vmem:[%s871_s1 + $0x60] sm:$0xff] (!%p138_p2)   ;;  %673 = vmatprep.subr.bf16.mxu1 (!%p138_p2), %v709_v8  ;;  %v708_v12 = vld [vmem:[%s871_s1 + $0x68] sm:$0xff] (!%p138_p2)  }
   0x9   : > { %674 = vmatpush3.bf16.msra.mxu1 (!%p138_p2), %v709_v8  ;;  %v707_v11 = vld [vmem:[%s871_s1 + $0x20] sm:$0xff] (!%p138_p2)   ;;  %v715_v13 = vld [vmem:[%s871_s1 + $0x90] sm:$0xff] (!%p138_p2)   ;;  %v710_v14 = vld [vmem:[%s871_s1 + $0x28] sm:$0xff] (!%p138_p2)  }
   0xa   : > { %675 = vmatprep.subr.bf16.mxu1 (!%p138_p2), %v712_v10  ;;  %v711_v17 = vld [vmem:[%s871_s1 + $0x70] sm:$0xff] (!%p138_p2)   ;;  %v717_v19 = vld [vmem:[%s871_s1 + $0x98] sm:$0xff] (!%p138_p2)   ;;  %v597_v62 = vld [vmem:[%s872_s2] ss:$0 sm:$0xff] (!%p138_p2) }
   0xb   : > { %628 = vmatpush3.bf16.msra.mxu0 (!%p138_p2), %v701_v3  ;;  %v713_v25 = vld [vmem:[%s871_s1 + $0x30] sm:$0xff] (!%p138_p2)   ;;  %v714_v26 = vld [vmem:[%s871_s1 + $0x78] sm:$0xff] (!%p138_p2)  }
   0xc   : > { %629 = vmatprep.subr.bf16.mxu0 (!%p138_p2), %v702_v4  ;;  %v716_v31 = vld [vmem:[%s871_s1 + $0x38] sm:$0xff] (!%p138_p2)  }
   0xd   : > { %s875_s13 = smov (!%p161_p3, %s589_s13), 1  ;;  %676 = vmatpush3.bf16.msra.mxu1 %v712_v10 }
   0xe   : > { %s689_s7 = smul.u32 192, %s875_s13  ;;  %677 = vmatprep.subr.bf16.mxu1 %v715_v13  ;;  %s624_s8 = sshll.u32 %s875_s13, 6 }
   0xf   : > { %630 = vmatpush3.bf16.msra.mxu0 %v703_v5  ;;  %s857_s11 = scalar_lea.vmem %s873_s3, %s624_s8 }
  0x10   : > { %631 = vmatprep.subr.bf16.mxu0 %v704_v6  ;;  %s799_s18 = scalar_lea.vmem %s870_s0, %s689_s7 }
  0x11   : > { %v173_v15 = vld [vmem:[%s799_s18 + $0x8] sm:$0xff]  ;;  %v176_v16 = vld [vmem:[%s799_s18 + $0x20] sm:$0xff]  ;;  %v174_v20 = vld [vmem:[%s799_s18 + $0x10] sm:$0xff]  ;;  %678 = vmatpush3.bf16.msra.mxu1 %v715_v13 }
  0x12   : > { %v197_v18 = vpack.c.bf16 %v176_v16, %v173_v15  ;;  %v177_v21 = vld [vmem:[%s799_s18 + $0x28] sm:$0xff]  ;;  %v180_v23 = vld [vmem:[%s799_s18 + $0x40] sm:$0xff]  ;;  %v183_v24 = vld [vmem:[%s799_s18 + $0x58] sm:$0xff]  ;;  %679 = vmatprep.subr.bf16.mxu1 %v717_v19 }
  0x13   : > { %632 = vmatpush3.bf16.msra.mxu0 %v705_v7  ;;  %v198_v22 = vpack.c.bf16 %v177_v21, %v174_v20  ;;  %v201_v27 = vpack.c.bf16 %v183_v24, %v180_v23  ;;  %v186_v28 = vld [vmem:[%s799_s18 + $0x70] sm:$0xff]  ;;  %v189_v29 = vld [vmem:[%s799_s18 + $0x88] sm:$0xff]  ;;  %v172_v32 = vld [vmem:[%s799_s18] sm:$0xff] }
  0x14   : > { %633 = vmatprep.subr.bf16.mxu0 %v706_v9  ;;  %420 = vmatprep.mubr.bf16.mxu0 %v197_v18  ;;  %v204_v30 = vpack.c.bf16 %v189_v29, %v186_v28  ;;  %v175_v33 = vld [vmem:[%s799_s18 + $0x18] sm:$0xff]  ;;  %v182_v35 = vld [vmem:[%s799_s18 + $0x50] sm:$0xff]  ;;  %v192_v37 = vld [vmem:[%s799_s18 + $0xa0] sm:$0xff] }
  0x15   : > { %681 = vmatprep.mubr.msk.bf16.mxu1 %vm375_vm0, %v198_v22  ;;  %680 = vmatpush3.bf16.msra.mxu1 %v717_v19  ;;  %v179_v34 = vld [vmem:[%s799_s18 + $0x38] sm:$0xff]  ;;  %v196_v36 = vpack.c.bf16 %v175_v33, %v172_v32  ;;  %v178_v41 = vld [vmem:[%s799_s18 + $0x30] sm:$0xff]  ;;  %v181_v42 = vld [vmem:[%s799_s18 + $0x48] sm:$0xff] }
  0x16   : > { %v195_v38 = vld [vmem:[%s799_s18 + $0xb8] sm:$0xff]  ;;  %v200_v39 = vpack.c.bf16 %v182_v35, %v179_v34  ;;  %v185_v43 = vld [vmem:[%s799_s18 + $0x68] sm:$0xff]  ;;  %v188_v44 = vld [vmem:[%s799_s18 + $0x80] sm:$0xff]  ;;  %v199_v45 = vpack.c.bf16 %v181_v42, %v178_v41 }
  0x17   : > { %634 = vmatpush3.bf16.msra.mxu0 %v707_v11  ;;  %v207_v40 = vpack.c.bf16 %v195_v38, %v192_v37  ;;  %v203_v46 = vpack.c.bf16 %v188_v44, %v185_v43  ;;  %v184_v47 = vld [vmem:[%s799_s18 + $0x60] sm:$0xff]  ;;  %v187_v48 = vld [vmem:[%s799_s18 + $0x78] sm:$0xff]  ;;  %v194_v50 = vld [vmem:[%s799_s18 + $0xb0] sm:$0xff] }
  0x18   : > { %635 = vmatprep.subr.bf16.mxu0 %v708_v12  ;;  %682 = vmatmul.mubr.msk.bf16.vlgmr.msra.gmra.mrb[0].mxu1 %vm375_vm0, %v201_v27  ;;  %v191_v49 = vld [vmem:[%s799_s18 + $0x98] sm:$0xff]  ;;  %v202_v51 = vpack.c.bf16 %v187_v48, %v184_v47  ;;  %v190_v53 = vld [vmem:[%s799_s18 + $0x90] sm:$0xff]  ;;  %v193_v54 = vld [vmem:[%s799_s18 + $0xa8] sm:$0xff] }
  0x19   : > { %685 = vmatprep.mubr.msk.bf16.mxu1 %vm375_vm0, %v204_v30  ;;  %v206_v52 = vpack.c.bf16 %v194_v50, %v191_v49  ;;  %v205_v55 = vpack.c.bf16 %v193_v54, %v190_v53 }
  0x1b   : > { %636 = vmatpush3.bf16.msra.mxu0 %v710_v14 }
  0x1c   : > { %637 = vmatprep.subr.bf16.mxu0 %v711_v17 }
  0x1f   : > { %638 = vmatpush3.bf16.msra.mxu0 %v713_v25 }
  0x20   : > { %639 = vmatprep.subr.bf16.mxu0 %v714_v26  ;;  %686 = vmatmul.mubr.msk.bf16.gmra.mrb[4].mxu1 %vm375_vm0, %v207_v40 }
  0x23   : > { %640 = vmatpush3.bf16.msra.mxu0 %v716_v31 }
  0x26   : > { %421 = vmatmul.mubr.bf16.vlgmr.msra.gmra.mrb[0].mxu0 %v196_v36 }
  0x27   : > { %428 = vmatprep.mubr.bf16.mxu0 %v200_v39 }
  0x2e   : > { %429 = vmatmul.mubr.bf16.gmra.mrb[4].mxu0 %v199_v45 }
  0x2f   : > { %436 = vmatprep.mubr.bf16.mxu0 %v203_v46 }
  0x36   : > { %437 = vmatmul.mubr.bf16.gmra.mrb[8].mxu0 %v202_v51 }
  0x37   : > { %444 = vmatprep.mubr.bf16.mxu0 %v206_v52 }
  0x3e   : > { %445 = vmatmul.mubr.bf16.gmra.mrb[12].mxu0 %v205_v55 }
  0xeb   : > { %v683_v56 = vpop.f32.mrb[0].mxu1 }
  0xec   : > { %v487_v57 = vpop.f32.mrb[1].mxu1 }
  0xed   : > { %v684_v58 = vpop.f32.mrb[2].mxu1 }
  0xee   : > { %v490_v59 = vpop.f32.mrb[3].mxu1 }
  0xf3   : > { %v687_v2 = vpop.f32.mrb[4].mxu1 }
  0xf4   : > { %v503_v5 = vpop.f32.mrb[5].mxu1 }
  0xf5   : > { %v688_v6 = vpop.f32.mrb[6].mxu1 }
  0xf6   : > { %v506_v9 = vpop.f32.mrb[7].mxu1 }
  0xf9   : > { %v641_v60 = vpop.f32.mrb[0].mxu0 }
  0xfa   : > { %v642_v61 = vpop.f32.mrb[1].mxu0 }
  0xfb   : > { %v643_v63 = vadd.f32 %v642_v61, %v641_v60  ;;  %v644_v0 = vpop.f32.mrb[2].mxu0 }
  0xfc   : > { %v645_v1 = vpop.f32.mrb[3].mxu0 }
  0xfd   : > { %v646_v3 = vadd.f32 %v645_v1, %v644_v0  ;;  %v423_v4 = vadd.f32 %v643_v63, %v597_v62 }
  0xff   : > { %v488_v7 = vadd.f32 %v487_v57, %v423_v4  ;;  %v426_v8 = vadd.f32 %v646_v3, %v597_v62 }
 0x101   : > { %v518_v10 = vmax.f32 %v488_v7, 0.0  ;;  %v491_v11 = vadd.f32 %v490_v59, %v426_v8  ;;  %v647_v12 = vpop.f32.mrb[4].mxu0 }
 0x102   : > { %v648_v13 = vpop.f32.mrb[5].mxu0 }
 0x103   : > { %526 = vst [vmem:[%s857_s11] sm:$0xff] %v518_v10  ;;  %v519_v14 = vmax.f32 %v491_v11, 0.0  ;;  %v649_v15 = vadd.f32 %v648_v13, %v647_v12  ;;  %v650_v16 = vpop.f32.mrb[6].mxu0 }
 0x104   : > { %v651_v17 = vpop.f32.mrb[7].mxu0 }
 0x105   : > { %527 = vst [vmem:[%s857_s11 + $0x8] sm:$0xff] %v519_v14  ;;  %v431_v18 = vadd.f32 %v649_v15, %v597_v62  ;;  %v652_v19 = vadd.f32 %v651_v17, %v650_v16 }
 0x107   : > { %v496_v20 = vadd.f32 %v683_v56, %v431_v18  ;;  %v434_v21 = vadd.f32 %v652_v19, %v597_v62 }
 0x109   : > { %v520_v22 = vmax.f32 %v496_v20, 0.0  ;;  %v499_v23 = vadd.f32 %v684_v58, %v434_v21  ;;  %v653_v24 = vpop.f32.mrb[8].mxu0 }
 0x10a   : > { %v654_v25 = vpop.f32.mrb[9].mxu0 }
 0x10b   : > { %528 = vst [vmem:[%s857_s11 + $0x10] sm:$0xff] %v520_v22  ;;  %v521_v26 = vmax.f32 %v499_v23, 0.0  ;;  %v655_v27 = vadd.f32 %v654_v25, %v653_v24  ;;  %v656_v28 = vpop.f32.mrb[10].mxu0 }
 0x10c   : > { %v657_v29 = vpop.f32.mrb[11].mxu0 }
 0x10d   : > { %529 = vst [vmem:[%s857_s11 + $0x18] sm:$0xff] %v521_v26  ;;  %v658_v30 = vadd.f32 %v657_v29, %v656_v28  ;;  %v439_v31 = vadd.f32 %v655_v27, %v597_v62 }
 0x10f   : > { %v504_v32 = vadd.f32 %v503_v5, %v439_v31  ;;  %v442_v33 = vadd.f32 %v658_v30, %v597_v62 }
 0x111   : > { %v522_v34 = vmax.f32 %v504_v32, 0.0  ;;  %v507_v35 = vadd.f32 %v506_v9, %v442_v33  ;;  %v659_v36 = vpop.f32.mrb[12].mxu0 }
 0x112   : > { %v660_v37 = vpop.f32.mrb[13].mxu0 }
 0x113   : > { %530 = vst [vmem:[%s857_s11 + $0x20] sm:$0xff] %v522_v34  ;;  %v523_v38 = vmax.f32 %v507_v35, 0.0  ;;  %v661_v39 = vadd.f32 %v660_v37, %v659_v36  ;;  %v662_v40 = vpop.f32.mrb[14].mxu0 }
 0x114   : > { %v663_v41 = vpop.f32.mrb[15].mxu0 }
 0x115   : > { %531 = vst [vmem:[%s857_s11 + $0x28] sm:$0xff] %v523_v38  ;;  %v447_v42 = vadd.f32 %v661_v39, %v597_v62  ;;  %v664_v43 = vadd.f32 %v663_v41, %v662_v40 }
 0x117   : > { %v512_v44 = vadd.f32 %v687_v2, %v447_v42  ;;  %v450_v45 = vadd.f32 %v664_v43, %v597_v62 }
 0x119   : > { %v524_v46 = vmax.f32 %v512_v44, 0.0  ;;  %v515_v47 = vadd.f32 %v688_v6, %v450_v45 }
 0x11b   : > { %532 = vst [vmem:[%s857_s11 + $0x30] sm:$0xff] %v524_v46  ;;  %v525_v48 = vmax.f32 %v515_v47, 0.0 }
 0x11d   : > { %533 = vst [vmem:[%s857_s11 + $0x38] sm:$0xff] %v525_v48 }
 0x11e PF: > { %s13_s12 = sadd.s32 1, %s724_s12  }
 0x11f   : > { %p10_p4 = scmp.ge.s32.totalorder %s13_s12, 4  }
 0x121   :  { %12 = sbr.rel (!%p10_p4) target bundleno = 1 (0x1), region = 62 }

// kernel: ridbnet_seg_forward.39
= control target key start
LH: loop header
LB: loop body
LE: loop exit
PB: predicated region body
PF: predicated region fallthrough
CT: control target
= control target key end

     0   :  { %s845_s15 = smov 0   ;;  %s991_s0 = inlined_call_operand.vmem [shape: f32[2,128,3], index: 0, kind: input, shape index: {}]   ;;  %s992_s1 = inlined_call_operand.vmem [shape: f32[2,3,64], index: 1, kind: input, shape index: {}]   ;;  %s993_s2 = inlined_call_operand.vmem [shape: f32[2,128,1], index: 2, kind: input, shape index: {}]   ;;  %s994_s3 = inlined_call_operand.vmem [shape: f32[2,1,64], index: 3, kind: input, shape index: {}]   ;;  %s995_s4 = inlined_call_operand.vmem [shape: f32[2,128,64], index: 4, kind: output, shape index: {}]  }
   0x1 LB: > { %s720_s16 = sadd.s32 4294967295, %s817_s15   ;;  %p724_p0 = scmp.ge.s32.totalorder %s817_s15, 1  ;;  %s817_s15 = sphi %s845_s15, %s14_s15  }
   0x2   : > { %p189_p1 = scmp.lt.s32.totalorder %s817_s15, 3 }
   0x4   : > { %p190_p2 = pnand %p724_p0, %p189_p1 }
   0x5   : > { %p227_p3 = scmp.lt.s32.totalorder (!%p190_p2), %s720_s16, 1  ;;  %v819_v0 = vmov (!%p190_p2), 0   ;;  %vm315_vm0 = vcmask (!%p190_p2), 1042432   ;;  %vm266_vm1 = vcmask (!%p190_p2), 23552   ;;  %vm615_vm2 = vcmask (!%p190_p2), 523264  }
   0x6   : > { %193 = sbr.rel (%p190_p2) target bundleno = 250 (0xfa), region = 36  ;;  %810 = vset.pattern.permute.xlu1 (!%p190_p2), %v819_v0  ;;  %809 = vset.pattern.permute.xlu0 (!%p190_p2), %v819_v0 }
   0xd   : > { %s997_s16 = smov (!%p227_p3, %s720_s16), 1 }
   0xe   : > { %s856_s17 = sshll.u32 %s997_s16, 7  ;;  %s727_s18 = sshll.u32 %s997_s16, 2 }
   0xf   : > { %s863_s21 = scalar_lea.vmem %s991_s0, %s856_s17  ;;  %s235_s24 = scalar_lea.vmem %s992_s1, %s727_s18 }
  0x10   : > { %v265_v1 = vld [vmem:[%s235_s24] sm:$0x7]  ;;  %v250_v4 = vld [vmem:[%s863_s21 + $0x8] sm:$0xff]  ;;  %v251_v6 = vld [vmem:[%s863_s21 + $0x10] sm:$0xff]  ;;  %s878_s27 = scalar_lea.vmem %s993_s2, %s856_s17  ;;  %s243_s30 = scalar_lea.vmem %s994_s3, %s997_s16 }
  0x11   : > { %v249_v2 = vld [vmem:[%s863_s21] sm:$0xff]  ;;  %772 = vmatprep.subr.msk.mxu0 %vm315_vm0, %v265_v1  ;;  %798 = vmatprep.subr.msk.mxu1 %vm315_vm0, %v265_v1  ;;  %v258_v5 = vld [vmem:[%s863_s21 + $0x48] sm:$0xff]  ;;  %v259_v7 = vld [vmem:[%s863_s21 + $0x50] sm:$0xff]  ;;  %s938_s7 = scalar_lea.vmem %s995_s4, %s856_s17 }
  0x12   : > { %v257_v3 = vld [vmem:[%s863_s21 + $0x40] sm:$0xff]  ;;  %773 = vmatpush3.msk.msra.mxu0 %vm315_vm0, %v265_v1  ;;  %799 = vmatpush3.msk.msra.mxu1 %vm315_vm0, %v265_v1  ;;  %v252_v8 = vld [vmem:[%s863_s21 + $0x18] sm:$0xff]  ;;  %v466_v12 = vld [vmem:[%s878_s27 + $0x10] sm:$0xff] }
  0x13   : > { %774 = vmatprep.mubr.msk.f32.mxu0 %vm266_vm1, %v249_v2  ;;  %786 = vmatprep.mubr.msk.f32.mxu1 %vm266_vm1, %v257_v3  ;;  %v260_v9 = vld [vmem:[%s863_s21 + $0x58] sm:$0xff]  ;;  %v253_v10 = vld [vmem:[%s863_s21 + $0x20] sm:$0xff]  ;;  %v465_v15 = vld [vmem:[%s878_s27 + $0x8] sm:$0xff] }
  0x14   : > { %775 = vmatmul.mubr.msk.f32.vlgmr.msra.gmra.mrb[0].mxu0 %vm266_vm1, %v250_v4  ;;  %787 = vmatmul.mubr.msk.f32.vlgmr.msra.gmra.mrb[0].mxu1 %vm266_vm1, %v258_v5  ;;  %v261_v11 = vld [vmem:[%s863_s21 + $0x60] sm:$0xff]  ;;  %v467_v14 = vld [vmem:[%s878_s27 + $0x18] sm:$0xff]  ;;  %v254_v16 = vld [vmem:[%s863_s21 + $0x28] sm:$0xff] }
  0x15   : > { %777 = vmatprep.mubr.msk.f32.mxu0 %vm266_vm1, %v251_v6  ;;  %789 = vmatprep.mubr.msk.f32.mxu1 %vm266_vm1, %v259_v7  ;;  %v464_v13 = vld [vmem:[%s878_s27] sm:$0xff]  ;;  %v262_v17 = vld [vmem:[%s863_s21 + $0x68] sm:$0xff]  ;;  %v255_v18 = vld [vmem:[%s863_s21 + $0x30] sm:$0xff] }
  0x16   : > { %493 = vperm.xlu1 %810, %v466_v12   ;;  %483 = vperm.xlu0 %809, %v464_v13   ;;  %v263_v19 = vld [vmem:[%s863_s21 + $0x70] sm:$0xff]  ;;  %v469_v20 = vld [vmem:[%s878_s27 + $0x28] sm:$0xff]  ;;  %v468_v21 = vld [vmem:[%s878_s27 + $0x20] sm:$0xff] }
  0x17   : > { %v256_v22 = vld [vmem:[%s863_s21 + $0x38] sm:$0xff]  ;;  %v470_v25 = vld [vmem:[%s878_s27 + $0x30] sm:$0xff]  ;;  %v473_v26 = vld [vmem:[%s878_s27 + $0x48] sm:$0xff] }
  0x18   : > { %778 = vmatmul.mubr.msk.f32.gmra.mrb[2].mxu0 %vm266_vm1, %v252_v8  ;;  %790 = vmatmul.mubr.msk.f32.gmra.mrb[2].mxu1 %vm266_vm1, %v260_v9  ;;  %v264_v23 = vld [vmem:[%s863_s21 + $0x78] sm:$0xff]  ;;  %v472_v27 = vld [vmem:[%s878_s27 + $0x40] sm:$0xff]  ;;  %v474_v29 = vld [vmem:[%s878_s27 + $0x50] sm:$0xff] }
  0x19   : > { %780 = vmatprep.mubr.msk.f32.mxu0 %vm266_vm1, %v253_v10  ;;  %792 = vmatprep.mubr.msk.f32.mxu1 %vm266_vm1, %v261_v11  ;;  %v471_v24 = vld [vmem:[%s878_s27 + $0x38] sm:$0xff]  ;;  %v477_v30 = vld [vmem:[%s878_s27 + $0x68] sm:$0xff]  ;;  %v476_v31 = vld [vmem:[%s878_s27 + $0x60] sm:$0xff] }
  0x1a   : > { %498 = vperm.xlu1 %810, %v467_v14   ;;  %488 = vperm.xlu0 %809, %v465_v15   ;;  %v475_v28 = vld [vmem:[%s878_s27 + $0x58] sm:$0xff]  ;;  %v478_v33 = vld [vmem:[%s878_s27 + $0x70] sm:$0xff]  ;;  %v930_v46 = vld [vmem:[%s243_s30] ss:$0 sm:$0xff] }
  0x1b   : > { %v479_v32 = vld [vmem:[%s878_s27 + $0x78] sm:$0xff] }
  0x1c   : > { %781 = vmatmul.mubr.msk.f32.gmra.mrb[4].mxu0 %vm266_vm1, %v254_v16  ;;  %793 = vmatmul.mubr.msk.f32.gmra.mrb[4].mxu1 %vm266_vm1, %v262_v17 }
  0x1d   : > { %783 = vmatprep.mubr.msk.f32.mxu0 %vm266_vm1, %v255_v18  ;;  %795 = vmatprep.mubr.msk.f32.mxu1 %vm266_vm1, %v263_v19 }
  0x1e   : > { %508 = vperm.xlu1 %810, %v469_v20   ;;  %503 = vperm.xlu0 %809, %v468_v21  }
  0x20   : > { %784 = vmatmul.mubr.msk.f32.gmra.mrb[6].mxu0 %vm266_vm1, %v256_v22  ;;  %796 = vmatmul.mubr.msk.f32.gmra.mrb[6].mxu1 %vm266_vm1, %v264_v23 }
  0x22   : > { %518 = vperm.xlu1 %810, %v471_v24   ;;  %513 = vperm.xlu0 %809, %v470_v25  }
  0x26   : > { %528 = vperm.xlu1 %810, %v473_v26   ;;  %523 = vperm.xlu0 %809, %v472_v27  }
  0x2a   : > { %538 = vperm.xlu1 %810, %v475_v28   ;;  %533 = vperm.xlu0 %809, %v474_v29  }
  0x2e   : > { %548 = vperm.xlu1 %810, %v477_v30   ;;  %543 = vperm.xlu0 %809, %v476_v31  }
  0x32   : > { %558 = vperm.xlu1 %810, %v479_v32   ;;  %553 = vperm.xlu0 %809, %v478_v33  }
  0x95   : > { %v494_v34 = vpop.permute.xlu1 %493  ;;  %v484_v35 = vpop.permute.xlu0 %483 }
  0x96   : > { %v567_v55 = vadd.f32 %v930_v46, %v484_v35  ;;  %v569_v9 = vadd.f32 %v930_v46, %v494_v34 }
  0x99   : > { %v499_v36 = vpop.permute.xlu1 %498  ;;  %v489_v37 = vpop.permute.xlu0 %488 }
  0x9a   : > { %v568_v49 = vadd.f32 %v930_v46, %v489_v37  ;;  %v570_v3 = vadd.f32 %v930_v46, %v499_v36 }
  0x9d   : > { %v509_v38 = vpop.permute.xlu1 %508  ;;  %v504_v39 = vpop.permute.xlu0 %503 }
  0x9e   : > { %v572_v19 = vadd.f32 %v930_v46, %v509_v38  ;;  %v571_v25 = vadd.f32 %v930_v46, %v504_v39 }
  0xa1   : > { %v922_v40 = vpop.permute.xlu1 %518  ;;  %v924_v41 = vpop.permute.xlu0 %513 }
  0xa2   : > { %v574_v37 = vadd.f32 %v930_v46, %v922_v40 }
  0xa5   : > { %v529_v42 = vpop.permute.xlu1 %528  ;;  %v524_v43 = vpop.permute.xlu0 %523 }
  0xa6   : > { %v576_v50 = vadd.f32 %v930_v46, %v529_v42  ;;  %v575_v56 = vadd.f32 %v930_v46, %v524_v43 }
  0xa9   : > { %v539_v44 = vpop.permute.xlu1 %538  ;;  %v534_v45 = vpop.permute.xlu0 %533 }
  0xaa   : > { %v578_v4 = vadd.f32 %v930_v46, %v539_v44  ;;  %v577_v10 = vadd.f32 %v930_v46, %v534_v45  ;;  %v573_v45 = vadd.f32 %v930_v46, %v924_v41 }
  0xad   : > { %v549_v59 = vpop.permute.xlu1 %548  ;;  %v544_v60 = vpop.permute.xlu0 %543 }
  0xae   : > { %v580_v20 = vadd.f32 %v930_v46, %v549_v59  ;;  %v579_v26 = vadd.f32 %v930_v46, %v544_v60 }
  0xb1   : > { %v559_v27 = vpop.permute.xlu1 %558  ;;  %v554_v30 = vpop.permute.xlu0 %553 }
  0xb2   : > { %v582_v38 = vadd.f32 %v930_v46, %v559_v27 }
  0xe7   : > { %v776_v47 = vpop.f32.mrb[0].mxu0  ;;  %v788_v48 = vpop.f32.mrb[0].mxu1 }
  0xe8   : > { %v584_v51 = vmul.f32 2.0, %v776_v47  ;;  %v592_v52 = vmul.f32 2.0, %v788_v48  ;;  %v385_v53 = vpop.f32.mrb[1].mxu0  ;;  %v425_v54 = vpop.f32.mrb[1].mxu1  ;;  %v581_v47 = vadd.f32 %v930_v46, %v554_v30 }
  0xe9   : > { %v583_v57 = vmul.f32 2.0, %v385_v53  ;;  %v591_v58 = vmul.f32 2.0, %v425_v54 }
  0xea   : > { %v600_v61 = vsub.f32 %v568_v49, %v584_v51  ;;  %v608_v62 = vsub.f32 %v576_v50, %v592_v52 }
  0xeb   : > { %v599_v63 = vsub.f32 %v567_v55, %v583_v57  ;;  %v607_v0 = vsub.f32 %v575_v56, %v591_v58  ;;  %v779_v1 = vpop.f32.mrb[2].mxu0  ;;  %v791_v2 = vpop.f32.mrb[2].mxu1 }
  0xec   : > { %617 = vst.msk [vmem:[%s938_s7 + $0x8] sm:$0xff] %vm615_vm2, %v600_v61  ;;  %625 = vst.msk [vmem:[%s938_s7 + $0x48] sm:$0xff] %vm615_vm2, %v608_v62  ;;  %v586_v5 = vmul.f32 2.0, %v779_v1  ;;  %v594_v6 = vmul.f32 2.0, %v791_v2  ;;  %v395_v7 = vpop.f32.mrb[3].mxu0  ;;  %v435_v8 = vpop.f32.mrb[3].mxu1 }
  0xed   : > { %616 = vst.msk [vmem:[%s938_s7] sm:$0xff] %vm615_vm2, %v599_v63  ;;  %624 = vst.msk [vmem:[%s938_s7 + $0x40] sm:$0xff] %vm615_vm2, %v607_v0  ;;  %v585_v11 = vmul.f32 2.0, %v395_v7  ;;  %v593_v12 = vmul.f32 2.0, %v435_v8 }
  0xee   : > { %v602_v13 = vsub.f32 %v570_v3, %v586_v5  ;;  %v610_v14 = vsub.f32 %v578_v4, %v594_v6 }
  0xef   : > { %v601_v15 = vsub.f32 %v569_v9, %v585_v11  ;;  %v609_v16 = vsub.f32 %v577_v10, %v593_v12  ;;  %v782_v17 = vpop.f32.mrb[4].mxu0  ;;  %v794_v18 = vpop.f32.mrb[4].mxu1 }
  0xf0   : > { %619 = vst.msk [vmem:[%s938_s7 + $0x18] sm:$0xff] %vm615_vm2, %v602_v13  ;;  %627 = vst.msk [vmem:[%s938_s7 + $0x58] sm:$0xff] %vm615_vm2, %v610_v14  ;;  %v588_v21 = vmul.f32 2.0, %v782_v17  ;;  %v596_v22 = vmul.f32 2.0, %v794_v18  ;;  %v405_v23 = vpop.f32.mrb[5].mxu0  ;;  %v445_v24 = vpop.f32.mrb[5].mxu1 }
  0xf1   : > { %618 = vst.msk [vmem:[%s938_s7 + $0x10] sm:$0xff] %vm615_vm2, %v601_v15  ;;  %626 = vst.msk [vmem:[%s938_s7 + $0x50] sm:$0xff] %vm615_vm2, %v609_v16  ;;  %v587_v28 = vmul.f32 2.0, %v405_v23  ;;  %v595_v29 = vmul.f32 2.0, %v445_v24 }
  0xf2   : > { %v604_v31 = vsub.f32 %v572_v19, %v588_v21  ;;  %v612_v32 = vsub.f32 %v580_v20, %v596_v22 }
  0xf3   : > { %v603_v33 = vsub.f32 %v571_v25, %v587_v28  ;;  %v611_v34 = vsub.f32 %v579_v26, %v595_v29  ;;  %v785_v35 = vpop.f32.mrb[6].mxu0  ;;  %v797_v36 = vpop.f32.mrb[6].mxu1 }
  0xf4   : > { %621 = vst.msk [vmem:[%s938_s7 + $0x28] sm:$0xff] %vm615_vm2, %v604_v31  ;;  %629 = vst.msk [vmem:[%s938_s7 + $0x68] sm:$0xff] %vm615_vm2, %v612_v32  ;;  %v590_v39 = vmul.f32 2.0, %v785_v35  ;;  %v598_v42 = vmul.f32 2.0, %v797_v36  ;;  %v415_v43 = vpop.f32.mrb[7].mxu0  ;;  %v455_v44 = vpop.f32.mrb[7].mxu1 }
  0xf5   : > { %620 = vst.msk [vmem:[%s938_s7 + $0x20] sm:$0xff] %vm615_vm2, %v603_v33  ;;  %628 = vst.msk [vmem:[%s938_s7 + $0x60] sm:$0xff] %vm615_vm2, %v611_v34  ;;  %v589_v40 = vmul.f32 2.0, %v415_v43  ;;  %v597_v48 = vmul.f32 2.0, %v455_v44 }
  0xf6   : > { %v606_v49 = vsub.f32 %v574_v37, %v590_v39  ;;  %v614_v50 = vsub.f32 %v582_v38, %v598_v42 }
  0xf7   : > { %v605_v51 = vsub.f32 %v573_v45, %v589_v40  ;;  %v613_v52 = vsub.f32 %v581_v47, %v597_v48 }
  0xf8   : > { %623 = vst.msk [vmem:[%s938_s7 + $0x38] sm:$0xff] %vm615_vm2, %v606_v49  ;;  %631 = vst.msk [vmem:[%s938_s7 + $0x78] sm:$0xff] %vm615_vm2, %v614_v50 }
  0xf9   : > { %622 = vst.msk [vmem:[%s938_s7 + $0x30] sm:$0xff] %vm615_vm2, %v605_v51  ;;  %630 = vst.msk [vmem:[%s938_s7 + $0x70] sm:$0xff] %vm615_vm2, %v613_v52 }
  0xfa PF: > { %s14_s15 = sadd.s32 1, %s817_s15  }
  0xfb   : > { %p11_p4 = scmp.ge.s32.totalorder %s14_s15, 4  }
  0xfd   :  { %13 = sbr.rel (!%p11_p4) target bundleno = 1 (0x1), region = 75 }

// kernel: neg.22
= control target key start
LH: loop header
LB: loop body
LE: loop exit
PB: predicated region body
PF: predicated region fallthrough
CT: control target
= control target key end

     0   :  { %s520_s0 = inlined_call_operand.vmem [shape: f32[2,128,64], index: 0, kind: input, shape index: {}]   ;;  %s521_s1 = inlined_call_operand.vmem [shape: f32[2,128,64], index: 1, kind: output, shape index: {}]  }
   0x1   :  { %v2_v0 = vld [vmem:[%s520_s0] sm:$0xff]  ;;  %v258_v2 = vld [vmem:[%s520_s0 + $0x8] sm:$0xff]  ;;  %v262_v7 = vld [vmem:[%s520_s0 + $0x10] sm:$0xff] }
   0x2   :  { %v256_v1 = vld [vmem:[%s520_s0 + $0x80] sm:$0xff]  ;;  %v5_v3 = vxor.u32 2147483648, %v2_v0  ;;  %v20_v5 = vxor.u32 2147483648, %v258_v2  ;;  %v260_v6 = vld [vmem:[%s520_s0 + $0x88] sm:$0xff]  ;;  %v264_v8 = vld [vmem:[%s520_s0 + $0x90] sm:$0xff]  ;;  %v36_v10 = vxor.u32 2147483648, %v262_v7 }
   0x3   :  { %v12_v4 = vxor.u32 2147483648, %v256_v1  ;;  %v28_v9 = vxor.u32 2147483648, %v260_v6  ;;  %v44_v11 = vxor.u32 2147483648, %v264_v8  ;;  %v266_v12 = vld [vmem:[%s520_s0 + $0x18] sm:$0xff]  ;;  %v270_v14 = vld [vmem:[%s520_s0 + $0x20] sm:$0xff]  ;;  %v274_v19 = vld [vmem:[%s520_s0 + $0x28] sm:$0xff] }
   0x4   :  { %v268_v13 = vld [vmem:[%s520_s0 + $0x98] sm:$0xff]  ;;  %7 = vst [vmem:[%s521_s1] sm:$0xff] %v5_v3  ;;  %259 = vst [vmem:[%s521_s1 + $0x8] sm:$0xff] %v20_v5  ;;  %v52_v15 = vxor.u32 2147483648, %v266_v12  ;;  %v68_v17 = vxor.u32 2147483648, %v270_v14  ;;  %v272_v18 = vld [vmem:[%s520_s0 + $0xa0] sm:$0xff]  ;;  %v84_v22 = vxor.u32 2147483648, %v274_v19 }
   0x5   :  { %257 = vst [vmem:[%s521_s1 + $0x80] sm:$0xff] %v12_v4  ;;  %v60_v16 = vxor.u32 2147483648, %v268_v13  ;;  %v276_v20 = vld [vmem:[%s520_s0 + $0xa8] sm:$0xff]  ;;  %261 = vst [vmem:[%s521_s1 + $0x88] sm:$0xff] %v28_v9  ;;  %v76_v21 = vxor.u32 2147483648, %v272_v18  ;;  %v278_v24 = vld [vmem:[%s520_s0 + $0x30] sm:$0xff] }
   0x6   :  { %263 = vst [vmem:[%s521_s1 + $0x10] sm:$0xff] %v36_v10  ;;  %265 = vst [vmem:[%s521_s1 + $0x90] sm:$0xff] %v44_v11  ;;  %v92_v23 = vxor.u32 2147483648, %v276_v20  ;;  %v280_v25 = vld [vmem:[%s520_s0 + $0xb0] sm:$0xff]  ;;  %v282_v26 = vld [vmem:[%s520_s0 + $0x38] sm:$0xff]  ;;  %v100_v27 = vxor.u32 2147483648, %v278_v24 }
   0x7   :  { %267 = vst [vmem:[%s521_s1 + $0x18] sm:$0xff] %v52_v15  ;;  %269 = vst [vmem:[%s521_s1 + $0x98] sm:$0xff] %v60_v16  ;;  %v108_v28 = vxor.u32 2147483648, %v280_v25  ;;  %v116_v29 = vxor.u32 2147483648, %v282_v26  ;;  %v284_v30 = vld [vmem:[%s520_s0 + $0xb8] sm:$0xff]  ;;  %v286_v31 = vld [vmem:[%s520_s0 + $0x40] sm:$0xff] }
   0x8   :  { %271 = vst [vmem:[%s521_s1 + $0x20] sm:$0xff] %v68_v17  ;;  %v288_v32 = vld [vmem:[%s520_s0 + $0xc0] sm:$0xff]  ;;  %273 = vst [vmem:[%s521_s1 + $0xa0] sm:$0xff] %v76_v21  ;;  %v124_v33 = vxor.u32 2147483648, %v284_v30  ;;  %v132_v34 = vxor.u32 2147483648, %v286_v31  ;;  %v290_v36 = vld [vmem:[%s520_s0 + $0x48] sm:$0xff] }
   0x9   :  { %275 = vst [vmem:[%s521_s1 + $0x28] sm:$0xff] %v84_v22  ;;  %277 = vst [vmem:[%s521_s1 + $0xa8] sm:$0xff] %v92_v23  ;;  %v140_v35 = vxor.u32 2147483648, %v288_v32  ;;  %v292_v37 = vld [vmem:[%s520_s0 + $0xc8] sm:$0xff]  ;;  %v294_v38 = vld [vmem:[%s520_s0 + $0x50] sm:$0xff]  ;;  %v148_v39 = vxor.u32 2147483648, %v290_v36 }
   0xa   :  { %279 = vst [vmem:[%s521_s1 + $0x30] sm:$0xff] %v100_v27  ;;  %281 = vst [vmem:[%s521_s1 + $0xb0] sm:$0xff] %v108_v28  ;;  %v156_v40 = vxor.u32 2147483648, %v292_v37  ;;  %v164_v41 = vxor.u32 2147483648, %v294_v38  ;;  %v296_v42 = vld [vmem:[%s520_s0 + $0xd0] sm:$0xff]  ;;  %v298_v43 = vld [vmem:[%s520_s0 + $0x58] sm:$0xff] }
   0xb   :  { %283 = vst [vmem:[%s521_s1 + $0x38] sm:$0xff] %v116_v29  ;;  %v300_v44 = vld [vmem:[%s520_s0 + $0xd8] sm:$0xff]  ;;  %285 = vst [vmem:[%s521_s1 + $0xb8] sm:$0xff] %v124_v33  ;;  %v172_v45 = vxor.u32 2147483648, %v296_v42  ;;  %v180_v46 = vxor.u32 2147483648, %v298_v43  ;;  %v302_v48 = vld [vmem:[%s520_s0 + $0x60] sm:$0xff] }
   0xc   :  { %287 = vst [vmem:[%s521_s1 + $0x40] sm:$0xff] %v132_v34  ;;  %289 = vst [vmem:[%s521_s1 + $0xc0] sm:$0xff] %v140_v35  ;;  %v188_v47 = vxor.u32 2147483648, %v300_v44  ;;  %v304_v49 = vld [vmem:[%s520_s0 + $0xe0] sm:$0xff]  ;;  %v306_v50 = vld [vmem:[%s520_s0 + $0x68] sm:$0xff]  ;;  %v196_v51 = vxor.u32 2147483648, %v302_v48 }
   0xd   :  { %291 = vst [vmem:[%s521_s1 + $0x48] sm:$0xff] %v148_v39  ;;  %293 = vst [vmem:[%s521_s1 + $0xc8] sm:$0xff] %v156_v40  ;;  %v204_v52 = vxor.u32 2147483648, %v304_v49  ;;  %v212_v53 = vxor.u32 2147483648, %v306_v50  ;;  %v308_v54 = vld [vmem:[%s520_s0 + $0xe8] sm:$0xff]  ;;  %v310_v55 = vld [vmem:[%s520_s0 + $0x70] sm:$0xff] }
   0xe   :  { %295 = vst [vmem:[%s521_s1 + $0x50] sm:$0xff] %v164_v41  ;;  %v312_v56 = vld [vmem:[%s520_s0 + $0xf0] sm:$0xff]  ;;  %297 = vst [vmem:[%s521_s1 + $0xd0] sm:$0xff] %v172_v45  ;;  %v220_v57 = vxor.u32 2147483648, %v308_v54  ;;  %v228_v58 = vxor.u32 2147483648, %v310_v55  ;;  %v314_v60 = vld [vmem:[%s520_s0 + $0x78] sm:$0xff] }
   0xf   :  { %299 = vst [vmem:[%s521_s1 + $0x58] sm:$0xff] %v180_v46  ;;  %301 = vst [vmem:[%s521_s1 + $0xd8] sm:$0xff] %v188_v47  ;;  %v236_v59 = vxor.u32 2147483648, %v312_v56  ;;  %v316_v61 = vld [vmem:[%s520_s0 + $0xf8] sm:$0xff]  ;;  %v244_v62 = vxor.u32 2147483648, %v314_v60 }
  0x10   :  { %303 = vst [vmem:[%s521_s1 + $0x60] sm:$0xff] %v196_v51  ;;  %305 = vst [vmem:[%s521_s1 + $0xe0] sm:$0xff] %v204_v52  ;;  %v252_v63 = vxor.u32 2147483648, %v316_v61 }
  0x11   :  { %307 = vst [vmem:[%s521_s1 + $0x68] sm:$0xff] %v212_v53  ;;  %309 = vst [vmem:[%s521_s1 + $0xe8] sm:$0xff] %v220_v57 }
  0x12   :  { %311 = vst [vmem:[%s521_s1 + $0x70] sm:$0xff] %v228_v58  ;;  %313 = vst [vmem:[%s521_s1 + $0xf0] sm:$0xff] %v236_v59 }
  0x13   :  { %315 = vst [vmem:[%s521_s1 + $0x78] sm:$0xff] %v244_v62  ;;  %317 = vst [vmem:[%s521_s1 + $0xf8] sm:$0xff] %v252_v63 }

// kernel: ridbnet_seg_forward.40
= control target key start
LH: loop header
LB: loop body
LE: loop exit
PB: predicated region body
PF: predicated region fallthrough
CT: control target
= control target key end

     0   :  { %s616_s12 = smov 0   ;;  %s768_s0 = inlined_call_operand.vmem [shape: f32[2,128,150], index: 0, kind: input, shape index: {}]   ;;  %s769_s1 = inlined_call_operand.vmem [shape: bf16[150,128], index: 1, kind: input, shape index: {}]   ;;  %s770_s2 = inlined_call_operand.vmem [shape: f32[1,128], index: 2, kind: input, shape index: {}]   ;;  %s771_s3 = inlined_call_operand.vmem [shape: f32[2,128,128], index: 3, kind: output, shape index: {}]  }
   0x1 LB: > { %s516_s13 = sadd.s32 4294967295, %s593_s12   ;;  %p520_p0 = scmp.ge.s32.totalorder %s593_s12, 1  ;;  %s593_s12 = sphi %s616_s12, %s13_s12  }
   0x2   : > { %p137_p1 = scmp.lt.s32.totalorder %s593_s12, 3 }
   0x4   : > { %p138_p2 = pnand %p520_p0, %p137_p1 }
   0x5   : > { %v577_v0 = vld [vmem:[%s769_s1] sm:$0xff] (!%p138_p2)   ;;  %v595_v1 = vmov (!%p138_p2), 0   ;;  %v578_v2 = vld [vmem:[%s769_s1 + $0x8] sm:$0xff] (!%p138_p2)   ;;  %p161_p3 = scmp.lt.s32.totalorder (!%p138_p2), %s516_s13, 1  ;;  %v579_v3 = vld [vmem:[%s769_s1 + $0x10] sm:$0xff] (!%p138_p2)   ;;  %vm303_vm0 = vcmask (!%p138_p2), 179200  }
   0x6   : > { %141 = sbr.rel (%p138_p2) target bundleno = 290 (0x122), region = 32  ;;  %332 = vmatprep.subr.bf16.mxu0 (!%p138_p2), %v595_v1  ;;  %548 = vmatprep.subr.bf16.mxu1 (!%p138_p2), %v595_v1  ;;  %v580_v4 = vld [vmem:[%s769_s1 + $0x18] sm:$0xff] (!%p138_p2)   ;;  %v581_v11 = vld [vmem:[%s769_s1 + $0x20] sm:$0xff] (!%p138_p2)   ;;  %v582_v12 = vld [vmem:[%s769_s1 + $0x28] sm:$0xff] (!%p138_p2)   ;;  %vm328_vm1 = vcmask (!%p138_p2), 1042432  }
   0x7   : > { %333 = vmatpush1.bf16.msra.mxu0 (!%p138_p2), %v577_v0  ;;  %558 = vmatpush1.bf16.msra.mxu1 (!%p138_p2), %v577_v0  ;;  %v583_v13 = vld [vmem:[%s769_s1 + $0x30] sm:$0xff] (!%p138_p2)   ;;  %v584_v14 = vld [vmem:[%s769_s1 + $0x38] sm:$0xff] (!%p138_p2)   ;;  %v585_v15 = vld [vmem:[%s769_s1 + $0x40] sm:$0xff] (!%p138_p2)  }
   0x8   : > { %334 = vmatprep.subr.bf16.mxu0 (!%p138_p2), %v595_v1  ;;  %549 = vmatprep.subr.bf16.mxu1 (!%p138_p2), %v595_v1  ;;  %v586_v16 = vld [vmem:[%s769_s1 + $0x48] ss:$0 sps:$4 sm:$0x77] (!%p138_p2)   ;;  %v725_v60 = vld [vmem:[%s770_s2] ss:$0 sm:$0xff] (!%p138_p2) }
   0x9   : > { %v330_v22 = vsel (!%p138_p2), %vm328_vm1, %v586_v16, 0 }
   0xb   : > { %335 = vmatpush1.bf16.msra.mxu0 (!%p138_p2), %v578_v2  ;;  %559 = vmatpush1.bf16.msra.mxu1 (!%p138_p2), %v578_v2 }
   0xc   : > { %336 = vmatprep.subr.bf16.mxu0 (!%p138_p2), %v595_v1  ;;  %550 = vmatprep.subr.bf16.mxu1 (!%p138_p2), %v595_v1 }
   0xd   : > { %s773_s13 = smov (!%p161_p3, %s516_s13), 1 }
   0xe   : > { %s546_s20 = sshll.u32 %s773_s13, 8  ;;  %s547_s15 = sshll.u32 %s773_s13, 7 }
   0xf   : > { %s645_s23 = scalar_lea.vmem %s768_s0, %s546_s20  ;;  %337 = vmatpush1.bf16.msra.mxu0 %v579_v3  ;;  %560 = vmatpush1.bf16.msra.mxu1 %v579_v3  ;;  %s733_s18 = scalar_lea.vmem %s771_s3, %s547_s15 }
  0x10   : > { %v173_v5 = vld [vmem:[%s645_s23 + $0x8] sm:$0xff]  ;;  %v175_v6 = vld [vmem:[%s645_s23 + $0x18] sm:$0xff]  ;;  %338 = vmatprep.subr.bf16.mxu0 %v595_v1  ;;  %551 = vmatprep.subr.bf16.mxu1 %v595_v1  ;;  %v172_v17 = vld [vmem:[%s645_s23] sm:$0xff] }
  0x11   : > { %v189_v7 = vld [vmem:[%s645_s23 + $0x88] sm:$0xff]  ;;  %v191_v8 = vld [vmem:[%s645_s23 + $0x98] sm:$0xff]  ;;  %v205_v9 = vpack.c.bf16 %v175_v6, %v173_v5  ;;  %v174_v18 = vld [vmem:[%s645_s23 + $0x10] sm:$0xff] }
  0x12   : > { %v213_v10 = vpack.c.bf16 %v191_v8, %v189_v7  ;;  %v188_v19 = vld [vmem:[%s645_s23 + $0x80] sm:$0xff]  ;;  %v190_v20 = vld [vmem:[%s645_s23 + $0x90] sm:$0xff]  ;;  %v177_v21 = vld [vmem:[%s645_s23 + $0x28] sm:$0xff]  ;;  %v204_v26 = vpack.c.bf16 %v174_v18, %v172_v17 }
  0x13   : > { %536 = vmatprep.mubr.msk.bf16.mxu0 %vm303_vm0, %v205_v9  ;;  %339 = vmatpush1.bf16.msra.mxu0 %v580_v4  ;;  %v179_v23 = vld [vmem:[%s645_s23 + $0x38] sm:$0xff]  ;;  %v193_v24 = vld [vmem:[%s645_s23 + $0xa8] sm:$0xff]  ;;  %v212_v27 = vpack.c.bf16 %v190_v20, %v188_v19  ;;  %v176_v30 = vld [vmem:[%s645_s23 + $0x20] sm:$0xff] }
  0x14   : > { %540 = vmatprep.mubr.msk.bf16.mxu1 %vm303_vm0, %v213_v10  ;;  %561 = vmatpush1.bf16.msra.mxu1 %v580_v4  ;;  %v195_v25 = vld [vmem:[%s645_s23 + $0xb8] sm:$0xff]  ;;  %v207_v28 = vpack.c.bf16 %v179_v23, %v177_v21  ;;  %v178_v31 = vld [vmem:[%s645_s23 + $0x30] sm:$0xff]  ;;  %v192_v32 = vld [vmem:[%s645_s23 + $0xa0] sm:$0xff] }
  0x15   : > { %340 = vmatprep.subr.bf16.mxu0 %v595_v1  ;;  %552 = vmatprep.subr.bf16.mxu1 %v595_v1  ;;  %v215_v29 = vpack.c.bf16 %v195_v25, %v193_v24  ;;  %v194_v33 = vld [vmem:[%s645_s23 + $0xb0] sm:$0xff]  ;;  %v181_v34 = vld [vmem:[%s645_s23 + $0x48] sm:$0xff]  ;;  %v183_v35 = vld [vmem:[%s645_s23 + $0x58] sm:$0xff]  ;;  %v206_v38 = vpack.c.bf16 %v178_v31, %v176_v30 }
  0x16   : > { %v197_v36 = vld [vmem:[%s645_s23 + $0xc8] sm:$0xff]  ;;  %v199_v37 = vld [vmem:[%s645_s23 + $0xd8] sm:$0xff]  ;;  %v214_v39 = vpack.c.bf16 %v194_v33, %v192_v32  ;;  %v209_v40 = vpack.c.bf16 %v183_v35, %v181_v34  ;;  %v180_v42 = vld [vmem:[%s645_s23 + $0x40] sm:$0xff] }
  0x17   : > { %341 = vmatpush1.bf16.msra.mxu0 %v581_v11  ;;  %v217_v41 = vpack.c.bf16 %v199_v37, %v197_v36  ;;  %v182_v43 = vld [vmem:[%s645_s23 + $0x50] sm:$0xff]  ;;  %v196_v44 = vld [vmem:[%s645_s23 + $0xc0] sm:$0xff]  ;;  %v185_v46 = vld [vmem:[%s645_s23 + $0x68] sm:$0xff] }
  0x18   : > { %562 = vmatpush1.bf16.msra.mxu1 %v581_v11  ;;  %342 = vmatprep.subr.bf16.mxu0 %v595_v1  ;;  %v198_v45 = vld [vmem:[%s645_s23 + $0xd0] sm:$0xff]  ;;  %v187_v47 = vld [vmem:[%s645_s23 + $0x78] sm:$0xff]  ;;  %v201_v48 = vld [vmem:[%s645_s23 + $0xe8] sm:$0xff]  ;;  %v208_v50 = vpack.c.bf16 %v182_v43, %v180_v42 }
  0x19   : > { %553 = vmatprep.subr.bf16.mxu1 %v595_v1  ;;  %v203_v49 = vld [vmem:[%s645_s23 + $0xf8] sm:$0xff]  ;;  %v216_v51 = vpack.c.bf16 %v198_v45, %v196_v44  ;;  %v211_v52 = vpack.c.bf16 %v187_v47, %v185_v46  ;;  %v184_v54 = vld [vmem:[%s645_s23 + $0x60] sm:$0xff]  ;;  %v186_v55 = vld [vmem:[%s645_s23 + $0x70] sm:$0xff] }
  0x1a   : > { %v219_v53 = vpack.c.bf16 %v203_v49, %v201_v48  ;;  %v200_v56 = vld [vmem:[%s645_s23 + $0xe0] sm:$0xff]  ;;  %v202_v57 = vld [vmem:[%s645_s23 + $0xf0] sm:$0xff]  ;;  %v210_v58 = vpack.c.bf16 %v186_v55, %v184_v54 }
  0x1b   : > { %343 = vmatpush1.bf16.msra.mxu0 %v582_v12  ;;  %v218_v59 = vpack.c.bf16 %v202_v57, %v200_v56 }
  0x1c   : > { %563 = vmatpush1.bf16.msra.mxu1 %v582_v12  ;;  %344 = vmatprep.subr.bf16.mxu0 %v595_v1 }
  0x1d   : > { %554 = vmatprep.subr.bf16.mxu1 %v595_v1 }
  0x1f   : > { %345 = vmatpush1.bf16.msra.mxu0 %v583_v13 }
  0x20   : > { %564 = vmatpush1.bf16.msra.mxu1 %v583_v13  ;;  %346 = vmatprep.subr.bf16.mxu0 %v595_v1 }
  0x21   : > { %555 = vmatprep.subr.bf16.mxu1 %v595_v1 }
  0x23   : > { %347 = vmatpush1.bf16.msra.mxu0 %v584_v14 }
  0x24   : > { %565 = vmatpush1.bf16.msra.mxu1 %v584_v14  ;;  %348 = vmatprep.subr.bf16.mxu0 %v595_v1 }
  0x25   : > { %556 = vmatprep.subr.bf16.mxu1 %v595_v1 }
  0x27   : > { %349 = vmatpush1.bf16.msra.mxu0 %v585_v15 }
  0x28   : > { %566 = vmatpush1.bf16.msra.mxu1 %v585_v15  ;;  %350 = vmatprep.subr.bf16.mxu0 %v595_v1 }
  0x29   : > { %557 = vmatprep.subr.bf16.mxu1 %v595_v1 }
  0x2b   : > { %351 = vmatpush1.bf16.msra.mxu0 %v330_v22 }
  0x2c   : > { %567 = vmatpush1.bf16.msra.mxu1 %v330_v22 }
  0x2e   : > { %365 = vmatmul.mubr.bf16.vlgmr.msra.gmra.mrb[0].mxu0 %v204_v26 }
  0x2f   : > { %397 = vmatmul.mubr.bf16.vlgmr.msra.gmra.mrb[0].mxu1 %v212_v27  ;;  %537 = vmatprep.mubr.msk.bf16.mxu0 %vm303_vm0, %v207_v28 }
  0x30   : > { %541 = vmatprep.mubr.msk.bf16.mxu1 %vm303_vm0, %v215_v29 }
  0x36   : > { %373 = vmatmul.mubr.bf16.gmra.mrb[4].mxu0 %v206_v38 }
  0x37   : > { %405 = vmatmul.mubr.bf16.gmra.mrb[4].mxu1 %v214_v39  ;;  %538 = vmatprep.mubr.msk.bf16.mxu0 %vm303_vm0, %v209_v40 }
  0x38   : > { %542 = vmatprep.mubr.msk.bf16.mxu1 %vm303_vm0, %v217_v41 }
  0x3e   : > { %381 = vmatmul.mubr.bf16.gmra.mrb[8].mxu0 %v208_v50 }
  0x3f   : > { %413 = vmatmul.mubr.bf16.gmra.mrb[8].mxu1 %v216_v51  ;;  %539 = vmatprep.mubr.msk.bf16.mxu0 %vm303_vm0, %v211_v52 }
  0x40   : > { %543 = vmatprep.mubr.msk.bf16.mxu1 %vm303_vm0, %v219_v53 }
  0x46   : > { %389 = vmatmul.mubr.bf16.gmra.mrb[12].mxu0 %v210_v58 }
  0x47   : > { %421 = vmatmul.mubr.bf16.gmra.mrb[12].mxu1 %v218_v59 }
 0x101   : > { %v366_v61 = vpop.f32.mrb[0].mxu0 }
 0x102   : > { %v398_v62 = vpop.f32.mrb[0].mxu1  ;;  %v367_v63 = vadd.f32 %v725_v60, %v366_v61  ;;  %v368_v1 = vpop.f32.mrb[1].mxu0 }
 0x103   : > { %v399_v0 = vadd.f32 %v725_v60, %v398_v62  ;;  %v400_v2 = vpop.f32.mrb[1].mxu1  ;;  %v369_v3 = vpop.f32.mrb[2].mxu0 }
 0x104   : > { %v401_v4 = vpop.f32.mrb[2].mxu1  ;;  %v429_v5 = vmax.f32 %v367_v63, 0.0  ;;  %v370_v7 = vadd.f32 %v725_v60, %v369_v3  ;;  %v371_v9 = vpop.f32.mrb[3].mxu0 }
 0x105   : > { %v437_v6 = vmax.f32 %v399_v0, 0.0  ;;  %v402_v8 = vadd.f32 %v725_v60, %v401_v4  ;;  %v403_v10 = vpop.f32.mrb[3].mxu1 }
 0x106   : > { %445 = vst [vmem:[%s733_s18] sm:$0xff] %v429_v5  ;;  %v430_v11 = vmax.f32 %v370_v7, 0.0 }
 0x107   : > { %453 = vst [vmem:[%s733_s18 + $0x40] sm:$0xff] %v437_v6  ;;  %v438_v12 = vmax.f32 %v402_v8, 0.0 }
 0x108   : > { %446 = vst [vmem:[%s733_s18 + $0x8] sm:$0xff] %v430_v11 }
 0x109   : > { %454 = vst [vmem:[%s733_s18 + $0x48] sm:$0xff] %v438_v12  ;;  %v374_v13 = vpop.f32.mrb[4].mxu0 }
 0x10a   : > { %v406_v14 = vpop.f32.mrb[4].mxu1  ;;  %v375_v15 = vadd.f32 %v725_v60, %v374_v13  ;;  %v376_v17 = vpop.f32.mrb[5].mxu0 }
 0x10b   : > { %v407_v16 = vadd.f32 %v725_v60, %v406_v14  ;;  %v408_v18 = vpop.f32.mrb[5].mxu1  ;;  %v377_v19 = vpop.f32.mrb[6].mxu0 }
 0x10c   : > { %v409_v20 = vpop.f32.mrb[6].mxu1  ;;  %v431_v21 = vmax.f32 %v375_v15, 0.0  ;;  %v378_v23 = vadd.f32 %v725_v60, %v377_v19  ;;  %v379_v25 = vpop.f32.mrb[7].mxu0 }
 0x10d   : > { %v439_v22 = vmax.f32 %v407_v16, 0.0  ;;  %v410_v24 = vadd.f32 %v725_v60, %v409_v20  ;;  %v411_v26 = vpop.f32.mrb[7].mxu1 }
 0x10e   : > { %447 = vst [vmem:[%s733_s18 + $0x10] sm:$0xff] %v431_v21  ;;  %v432_v27 = vmax.f32 %v378_v23, 0.0 }
 0x10f   : > { %455 = vst [vmem:[%s733_s18 + $0x50] sm:$0xff] %v439_v22  ;;  %v440_v28 = vmax.f32 %v410_v24, 0.0 }
 0x110   : > { %448 = vst [vmem:[%s733_s18 + $0x18] sm:$0xff] %v432_v27 }
 0x111   : > { %456 = vst [vmem:[%s733_s18 + $0x58] sm:$0xff] %v440_v28  ;;  %v382_v29 = vpop.f32.mrb[8].mxu0 }
 0x112   : > { %v414_v30 = vpop.f32.mrb[8].mxu1  ;;  %v383_v31 = vadd.f32 %v725_v60, %v382_v29  ;;  %v384_v33 = vpop.f32.mrb[9].mxu0 }
 0x113   : > { %v415_v32 = vadd.f32 %v725_v60, %v414_v30  ;;  %v416_v34 = vpop.f32.mrb[9].mxu1  ;;  %v385_v35 = vpop.f32.mrb[10].mxu0 }
 0x114   : > { %v417_v36 = vpop.f32.mrb[10].mxu1  ;;  %v433_v37 = vmax.f32 %v383_v31, 0.0  ;;  %v386_v39 = vadd.f32 %v725_v60, %v385_v35  ;;  %v387_v41 = vpop.f32.mrb[11].mxu0 }
 0x115   : > { %v441_v38 = vmax.f32 %v415_v32, 0.0  ;;  %v418_v40 = vadd.f32 %v725_v60, %v417_v36  ;;  %v419_v42 = vpop.f32.mrb[11].mxu1 }
 0x116   : > { %449 = vst [vmem:[%s733_s18 + $0x20] sm:$0xff] %v433_v37  ;;  %v434_v43 = vmax.f32 %v386_v39, 0.0 }
 0x117   : > { %457 = vst [vmem:[%s733_s18 + $0x60] sm:$0xff] %v441_v38  ;;  %v442_v44 = vmax.f32 %v418_v40, 0.0 }
 0x118   : > { %450 = vst [vmem:[%s733_s18 + $0x28] sm:$0xff] %v434_v43 }
 0x119   : > { %458 = vst [vmem:[%s733_s18 + $0x68] sm:$0xff] %v442_v44  ;;  %v390_v45 = vpop.f32.mrb[12].mxu0 }
 0x11a   : > { %v422_v46 = vpop.f32.mrb[12].mxu1  ;;  %v391_v47 = vadd.f32 %v725_v60, %v390_v45  ;;  %v392_v49 = vpop.f32.mrb[13].mxu0 }
 0x11b   : > { %v423_v48 = vadd.f32 %v725_v60, %v422_v46  ;;  %v424_v50 = vpop.f32.mrb[13].mxu1  ;;  %v393_v51 = vpop.f32.mrb[14].mxu0 }
 0x11c   : > { %v425_v52 = vpop.f32.mrb[14].mxu1  ;;  %v435_v53 = vmax.f32 %v391_v47, 0.0  ;;  %v394_v55 = vadd.f32 %v725_v60, %v393_v51  ;;  %v395_v57 = vpop.f32.mrb[15].mxu0 }
 0x11d   : > { %v443_v54 = vmax.f32 %v423_v48, 0.0  ;;  %v426_v56 = vadd.f32 %v725_v60, %v425_v52  ;;  %v427_v58 = vpop.f32.mrb[15].mxu1 }
 0x11e   : > { %451 = vst [vmem:[%s733_s18 + $0x30] sm:$0xff] %v435_v53  ;;  %v436_v59 = vmax.f32 %v394_v55, 0.0 }
 0x11f   : > { %459 = vst [vmem:[%s733_s18 + $0x70] sm:$0xff] %v443_v54  ;;  %v444_v61 = vmax.f32 %v426_v56, 0.0 }
 0x120   : > { %452 = vst [vmem:[%s733_s18 + $0x38] sm:$0xff] %v436_v59 }
 0x121   : > { %460 = vst [vmem:[%s733_s18 + $0x78] sm:$0xff] %v444_v61 }
 0x122 PF: > { %s13_s12 = sadd.s32 1, %s593_s12  }
 0x123   : > { %p10_p4 = scmp.ge.s32.totalorder %s13_s12, 4  }
 0x125   :  { %12 = sbr.rel (!%p10_p4) target bundleno = 1 (0x1), region = 62 }

// kernel: ridbnet_seg_forward.41
= control target key start
LH: loop header
LB: loop body
LE: loop exit
PB: predicated region body
PF: predicated region fallthrough
CT: control target
= control target key end

     0   :  { %s566_s12 = smov 0   ;;  %s669_s0 = inlined_call_operand.vmem [shape: f32[2,128,128], index: 0, kind: input, shape index: {}]   ;;  %s670_s1 = inlined_call_operand.vmem [shape: bf16[128,50], index: 1, kind: input, shape index: {}]   ;;  %s671_s2 = inlined_call_operand.vmem [shape: f32[1,50], index: 2, kind: input, shape index: {}]   ;;  %s672_s3 = inlined_call_operand.vmem [shape: f32[2,128,50], index: 3, kind: output, shape index: {}]  }
   0x1 LB: > { %s436_s13 = sadd.s32 4294967295, %s544_s12   ;;  %p440_p0 = scmp.ge.s32.totalorder %s544_s12, 1  ;;  %s544_s12 = sphi %s566_s12, %s13_s12  }
   0x2   : > { %p137_p1 = scmp.lt.s32.totalorder %s544_s12, 3 }
   0x4   : > { %p138_p2 = pnand %p440_p0, %p137_p1 }
   0x5   : > { %v530_v0 = vld [vmem:[%s670_s1] sm:$0xff] (!%p138_p2)   ;;  %p161_p3 = scmp.lt.s32.totalorder (!%p138_p2), %s436_s13, 1  ;;  %v531_v1 = vld [vmem:[%s670_s1 + $0x8] sm:$0xff] (!%p138_p2)   ;;  %v532_v2 = vld [vmem:[%s670_s1 + $0x10] sm:$0xff] (!%p138_p2)   ;;  %vm364_vm0 = vcmask (!%p138_p2), 408576  }
   0x6   : > { %141 = sbr.rel (%p138_p2) target bundleno = 265 (0x109), region = 32  ;;  %474 = vmatprep.subr.bf16.mxu0 (!%p138_p2), %v530_v0  ;;  %506 = vmatprep.subr.bf16.mxu1 (!%p138_p2), %v530_v0  ;;  %v533_v3 = vld [vmem:[%s670_s1 + $0x18] sm:$0xff] (!%p138_p2)   ;;  %v534_v10 = vld [vmem:[%s670_s1 + $0x20] sm:$0xff] (!%p138_p2)   ;;  %v535_v11 = vld [vmem:[%s670_s1 + $0x28] sm:$0xff] (!%p138_p2)  }
   0x7   : > { %475 = vmatpush3.bf16.msra.mxu0 (!%p138_p2), %v530_v0  ;;  %514 = vmatpush3.bf16.msra.mxu1 (!%p138_p2), %v530_v0  ;;  %v536_v12 = vld [vmem:[%s670_s1 + $0x30] sm:$0xff] (!%p138_p2)   ;;  %v537_v13 = vld [vmem:[%s670_s1 + $0x38] sm:$0xff] (!%p138_p2)   ;;  %v445_v32 = vld [vmem:[%s671_s2] ss:$0 sm:$0xff] (!%p138_p2) }
   0x8   : > { %476 = vmatprep.subr.bf16.mxu0 (!%p138_p2), %v531_v1  ;;  %507 = vmatprep.subr.bf16.mxu1 (!%p138_p2), %v531_v1 }
   0xb   : > { %477 = vmatpush3.bf16.msra.mxu0 (!%p138_p2), %v531_v1  ;;  %515 = vmatpush3.bf16.msra.mxu1 (!%p138_p2), %v531_v1 }
   0xc   : > { %478 = vmatprep.subr.bf16.mxu0 (!%p138_p2), %v532_v2  ;;  %508 = vmatprep.subr.bf16.mxu1 (!%p138_p2), %v532_v2 }
   0xd   : > { %s674_s13 = smov (!%p161_p3, %s436_s13), 1 }
   0xe   : > { %s456_s20 = sshll.u32 %s674_s13, 7 }
   0xf   : > { %s591_s23 = scalar_lea.vmem %s669_s0, %s456_s20  ;;  %479 = vmatpush3.bf16.msra.mxu0 %v532_v2  ;;  %516 = vmatpush3.bf16.msra.mxu1 %v532_v2  ;;  %s632_s11 = scalar_lea.vmem %s672_s3, %s456_s20 }
  0x10   : > { %v172_v4 = vld [vmem:[%s591_s23] sm:$0xff]  ;;  %v173_v5 = vld [vmem:[%s591_s23 + $0x8] sm:$0xff]  ;;  %480 = vmatprep.subr.bf16.mxu0 %v533_v3  ;;  %509 = vmatprep.subr.bf16.mxu1 %v533_v3  ;;  %v174_v14 = vld [vmem:[%s591_s23 + $0x10] sm:$0xff] }
  0x11   : > { %v180_v6 = vld [vmem:[%s591_s23 + $0x40] sm:$0xff]  ;;  %v188_v7 = vpack.c.bf16 %v173_v5, %v172_v4  ;;  %v181_v8 = vld [vmem:[%s591_s23 + $0x48] sm:$0xff]  ;;  %v175_v15 = vld [vmem:[%s591_s23 + $0x18] sm:$0xff] }
  0x12   : > { %v192_v9 = vpack.c.bf16 %v181_v8, %v180_v6  ;;  %v182_v16 = vld [vmem:[%s591_s23 + $0x50] sm:$0xff]  ;;  %v183_v17 = vld [vmem:[%s591_s23 + $0x58] sm:$0xff]  ;;  %v176_v18 = vld [vmem:[%s591_s23 + $0x20] sm:$0xff]  ;;  %v189_v22 = vpack.c.bf16 %v175_v15, %v174_v14 }
  0x13   : > { %490 = vmatprep.mubr.bf16.mxu0 %v188_v7  ;;  %481 = vmatpush3.bf16.msra.mxu0 %v533_v3  ;;  %v177_v19 = vld [vmem:[%s591_s23 + $0x28] sm:$0xff]  ;;  %v184_v20 = vld [vmem:[%s591_s23 + $0x60] sm:$0xff]  ;;  %v193_v23 = vpack.c.bf16 %v183_v17, %v182_v16  ;;  %v178_v26 = vld [vmem:[%s591_s23 + $0x30] sm:$0xff] }
  0x14   : > { %498 = vmatprep.mubr.bf16.mxu1 %v192_v9  ;;  %517 = vmatpush3.bf16.msra.mxu1 %v533_v3  ;;  %v185_v21 = vld [vmem:[%s591_s23 + $0x68] sm:$0xff]  ;;  %v190_v24 = vpack.c.bf16 %v177_v19, %v176_v18  ;;  %v179_v27 = vld [vmem:[%s591_s23 + $0x38] sm:$0xff]  ;;  %v186_v28 = vld [vmem:[%s591_s23 + $0x70] sm:$0xff] }
  0x15   : > { %482 = vmatprep.subr.bf16.mxu0 %v534_v10  ;;  %510 = vmatprep.subr.bf16.mxu1 %v534_v10  ;;  %v194_v25 = vpack.c.bf16 %v185_v21, %v184_v20  ;;  %v187_v29 = vld [vmem:[%s591_s23 + $0x78] sm:$0xff]  ;;  %v191_v30 = vpack.c.bf16 %v179_v27, %v178_v26 }
  0x16   : > { %v195_v31 = vpack.c.bf16 %v187_v29, %v186_v28 }
  0x17   : > { %483 = vmatpush3.bf16.msra.mxu0 %v534_v10 }
  0x18   : > { %518 = vmatpush3.bf16.msra.mxu1 %v534_v10  ;;  %484 = vmatprep.subr.bf16.mxu0 %v535_v11 }
  0x19   : > { %511 = vmatprep.subr.bf16.mxu1 %v535_v11 }
  0x1b   : > { %485 = vmatpush3.bf16.msra.mxu0 %v535_v11 }
  0x1c   : > { %519 = vmatpush3.bf16.msra.mxu1 %v535_v11  ;;  %486 = vmatprep.subr.bf16.mxu0 %v536_v12 }
  0x1d   : > { %512 = vmatprep.subr.bf16.mxu1 %v536_v12 }
  0x1f   : > { %487 = vmatpush3.bf16.msra.mxu0 %v536_v12 }
  0x20   : > { %520 = vmatpush3.bf16.msra.mxu1 %v536_v12  ;;  %488 = vmatprep.subr.bf16.mxu0 %v537_v13 }
  0x21   : > { %513 = vmatprep.subr.bf16.mxu1 %v537_v13 }
  0x23   : > { %489 = vmatpush3.bf16.msra.mxu0 %v537_v13 }
  0x24   : > { %521 = vmatpush3.bf16.msra.mxu1 %v537_v13 }
  0x26   : > { %491 = vmatmul.mubr.bf16.vlgmr.msra.gmra.mrb[0].mxu0 %v189_v22 }
  0x27   : > { %499 = vmatmul.mubr.bf16.vlgmr.msra.gmra.mrb[0].mxu1 %v193_v23  ;;  %494 = vmatprep.mubr.bf16.mxu0 %v190_v24 }
  0x28   : > { %502 = vmatprep.mubr.bf16.mxu1 %v194_v25 }
  0x2e   : > { %495 = vmatmul.mubr.bf16.gmra.mrb[4].mxu0 %v191_v30 }
  0x2f   : > { %503 = vmatmul.mubr.bf16.gmra.mrb[4].mxu1 %v195_v31 }
  0xf9   : > { %v492_v33 = vpop.f32.mrb[0].mxu0 }
  0xfa   : > { %v500_v34 = vpop.f32.mrb[0].mxu1  ;;  %v310_v35 = vadd.f32 %v492_v33, %v445_v32  ;;  %v301_v37 = vpop.f32.mrb[1].mxu0 }
  0xfb   : > { %v342_v36 = vadd.f32 %v500_v34, %v445_v32  ;;  %v333_v38 = vpop.f32.mrb[1].mxu1  ;;  %v302_v39 = vadd.f32 %v445_v32, %v301_v37  ;;  %v493_v41 = vpop.f32.mrb[2].mxu0 }
  0xfc   : > { %v334_v40 = vadd.f32 %v445_v32, %v333_v38  ;;  %v501_v42 = vpop.f32.mrb[2].mxu1  ;;  %367 = vst.msk [vmem:[%s632_s11 + $0x10] sm:$0xff] %vm364_vm0, %v310_v35  ;;  %v313_v43 = vadd.f32 %v493_v41, %v445_v32  ;;  %v304_v45 = vpop.f32.mrb[3].mxu0 }
  0xfd   : > { %375 = vst.msk [vmem:[%s632_s11 + $0x50] sm:$0xff] %vm364_vm0, %v342_v36  ;;  %v345_v44 = vadd.f32 %v501_v42, %v445_v32  ;;  %v336_v46 = vpop.f32.mrb[3].mxu1  ;;  %365 = vst.msk [vmem:[%s632_s11] sm:$0xff] %vm364_vm0, %v302_v39  ;;  %v305_v47 = vadd.f32 %v445_v32, %v304_v45 }
  0xfe   : > { %373 = vst.msk [vmem:[%s632_s11 + $0x40] sm:$0xff] %vm364_vm0, %v334_v40  ;;  %v337_v48 = vadd.f32 %v445_v32, %v336_v46  ;;  %368 = vst.msk [vmem:[%s632_s11 + $0x18] sm:$0xff] %vm364_vm0, %v313_v43 }
  0xff   : > { %376 = vst.msk [vmem:[%s632_s11 + $0x58] sm:$0xff] %vm364_vm0, %v345_v44  ;;  %366 = vst.msk [vmem:[%s632_s11 + $0x8] sm:$0xff] %vm364_vm0, %v305_v47 }
 0x100   : > { %374 = vst.msk [vmem:[%s632_s11 + $0x48] sm:$0xff] %vm364_vm0, %v337_v48 }
 0x101   : > { %v496_v49 = vpop.f32.mrb[4].mxu0 }
 0x102   : > { %v504_v50 = vpop.f32.mrb[4].mxu1  ;;  %v326_v51 = vadd.f32 %v496_v49, %v445_v32  ;;  %v317_v53 = vpop.f32.mrb[5].mxu0 }
 0x103   : > { %v358_v52 = vadd.f32 %v504_v50, %v445_v32  ;;  %v349_v54 = vpop.f32.mrb[5].mxu1  ;;  %v318_v55 = vadd.f32 %v445_v32, %v317_v53  ;;  %v497_v57 = vpop.f32.mrb[6].mxu0 }
 0x104   : > { %v350_v56 = vadd.f32 %v445_v32, %v349_v54  ;;  %v505_v58 = vpop.f32.mrb[6].mxu1  ;;  %371 = vst.msk [vmem:[%s632_s11 + $0x30] sm:$0xff] %vm364_vm0, %v326_v51  ;;  %v329_v59 = vadd.f32 %v497_v57, %v445_v32  ;;  %v320_v61 = vpop.f32.mrb[7].mxu0 }
 0x105   : > { %379 = vst.msk [vmem:[%s632_s11 + $0x70] sm:$0xff] %vm364_vm0, %v358_v52  ;;  %v361_v60 = vadd.f32 %v505_v58, %v445_v32  ;;  %v352_v62 = vpop.f32.mrb[7].mxu1  ;;  %369 = vst.msk [vmem:[%s632_s11 + $0x20] sm:$0xff] %vm364_vm0, %v318_v55  ;;  %v321_v63 = vadd.f32 %v445_v32, %v320_v61 }
 0x106   : > { %377 = vst.msk [vmem:[%s632_s11 + $0x60] sm:$0xff] %vm364_vm0, %v350_v56  ;;  %v353_v0 = vadd.f32 %v445_v32, %v352_v62  ;;  %372 = vst.msk [vmem:[%s632_s11 + $0x38] sm:$0xff] %vm364_vm0, %v329_v59 }
 0x107   : > { %380 = vst.msk [vmem:[%s632_s11 + $0x78] sm:$0xff] %vm364_vm0, %v361_v60  ;;  %370 = vst.msk [vmem:[%s632_s11 + $0x28] sm:$0xff] %vm364_vm0, %v321_v63 }
 0x108   : > { %378 = vst.msk [vmem:[%s632_s11 + $0x68] sm:$0xff] %vm364_vm0, %v353_v0 }
 0x109 PF: > { %s13_s12 = sadd.s32 1, %s544_s12  }
 0x10a   : > { %p10_p4 = scmp.ge.s32.totalorder %s13_s12, 4  }
 0x10c   :  { %12 = sbr.rel (!%p10_p4) target bundleno = 1 (0x1), region = 62 }

</bundles_post_ra>
